<compile_context>
chip_gen: v6e
topology: v6e:2x2x1
jax: 0.10.0
libtpu: 0.0.40
codegen_flags: <defaults>
</compile_context>

<pallas_src>
import functools
import math

import jax
import jax.numpy as jnp
import numpy as np
from jax.experimental import pallas as pl
from jax.experimental.pallas import tpu as pltpu


def _round_up(v, m):
    return ((v + m - 1) // m) * m


# ----------------------------------------------------------------------------
# Fully fused forward kernel (single invocation, everything in VMEM).
# ----------------------------------------------------------------------------
def _fused_forward_kernel(
    # inputs
    x_ref,                                         # (T*BP, DP)
    wih1f_ref, whh1f_ref, b1f_ref,                 # layer-1 forward
    wih1b_ref, whh1b_ref, b1b_ref,                 # layer-1 backward
    wih2f_ref, wih2b_ref, whh2_ref, b2l_ref,       # layer-2 (split input proj)
    wa1_ref, ba1_ref, wa2_ref, ba2_ref,            # attention
    bn1s_ref, bn1h_ref, w1_ref, bfc1_ref,          # folded bn1 + fc1
    bn2s_ref, bn2h_ref, w2_ref, bfc2_ref,          # folded bn2 + fc2
    w3_ref, bfc3_ref,                              # fc3
    # output
    out_ref,                                       # (B, 1)
    # scratch
    xp1f_scr, xp1b_scr, xp2_scr,                   # (T*BP, 4*HP) each
    hf_scr, hb_scr, y2_scr,                        # (T*BP, HP) each
    *, T, B, BP, HP):
    f32 = jnp.float32

    def lstm_cell(gates, c_prev):
        # gate blocks are 128-lane aligned (PyTorch order i, f, g, o)
        i = jax.nn.sigmoid(gates[:, 0:HP])
        f = jax.nn.sigmoid(gates[:, HP:2 * HP])
        g = jnp.tanh(gates[:, 2 * HP:3 * HP])
        o = jax.nn.sigmoid(gates[:, 3 * HP:4 * HP])
        c = f * c_prev + i * g
        h = o * jnp.tanh(c)
        return h, c

    x = x_ref[...]                                          # (T*BP, DP)

    # ---- layer 1: hoist input projections (one big MXU matmul per direction)
    xp1f_scr[...] = (jnp.dot(x, wih1f_ref[...], preferred_element_type=f32)
                     + b1f_ref[...])
    xp1b_scr[...] = (jnp.dot(x, wih1b_ref[...], preferred_element_type=f32)
                     + b1b_ref[...])

    zeros_bh = jnp.zeros((BP, HP), f32)
    hf, cf = zeros_bh, zeros_bh
    hb, cb = zeros_bh, zeros_bh
    # fwd / bwd recurrences interleaved (independent chains -> ILP); backward
    # direction reads/writes time-reversed rows, no data reversal anywhere.
    for t in range(T):
        rf = t * BP
        rb = (T - 1 - t) * BP
        gf = xp1f_scr[rf:rf + BP, :] + jnp.dot(
            hf, whh1f_ref[...], preferred_element_type=f32)
        gb = xp1b_scr[rb:rb + BP, :] + jnp.dot(
            hb, whh1b_ref[...], preferred_element_type=f32)
        hf, cf = lstm_cell(gf, cf)
        hb, cb = lstm_cell(gb, cb)
        hf_scr[rf:rf + BP, :] = hf
        hb_scr[rb:rb + BP, :] = hb

    # ---- layer 2: split input projection (replaces the fwd/bwd concat),
    # hoisted out of the recurrence as two big matmuls.
    xp2_scr[...] = (
        jnp.dot(hf_scr[...], wih2f_ref[...], preferred_element_type=f32)
        + jnp.dot(hb_scr[...], wih2b_ref[...], preferred_element_type=f32)
        + b2l_ref[...])

    h2, c2 = zeros_bh, zeros_bh
    for t in range(T):
        r = t * BP
        g2 = xp2_scr[r:r + BP, :] + jnp.dot(
            h2, whh2_ref[...], preferred_element_type=f32)
        h2, c2 = lstm_cell(g2, c2)
        y2_scr[r:r + BP, :] = h2

    # ---- attention: one 2-D matmul for all (t, b) scores, then a numerically
    # stable softmax over time using per-step vreg ops (no reshapes).
    a1 = jnp.tanh(jnp.dot(y2_scr[...], wa1_ref[...],
                          preferred_element_type=f32) + ba1_ref[...])
    s_flat = (jnp.sum(a1 * wa2_ref[...], axis=-1, keepdims=True)
              + ba2_ref[...])                              # (T*BP, 1)
    s_list = [s_flat[t * BP:(t + 1) * BP, :] for t in range(T)]
    m = s_list[0]
    for t in range(1, T):
        m = jnp.maximum(m, s_list[t])
    e_list = [jnp.exp(s - m) for s in s_list]
    den = e_list[0]
    for t in range(1, T):
        den = den + e_list[t]
    ctx = e_list[0] * y2_scr[0:BP, :]
    for t in range(1, T):
        ctx = ctx + e_list[t] * y2_scr[t * BP:(t + 1) * BP, :]
    ctx = ctx / den                                        # (BP, HP)

    # ---- BN (eval mode, folded to scale/shift) + MLP head
    out = ctx * bn1s_ref[...] + bn1h_ref[...]
    out = jnp.dot(out, w1_ref[...], preferred_element_type=f32) + bfc1_ref[...]
    out = jnp.where(out > 0, out, 0.1 * out)               # LeakyReLU(0.1)
    # TODO(synk): nn.Dropout is identity at inference; not implemented as a mask.
    out = out * bn2s_ref[...] + bn2h_ref[...]
    out = jnp.dot(out, w2_ref[...], preferred_element_type=f32) + bfc2_ref[...]
    out = jnp.where(out > 0, out, 0.1 * out)
    out = jnp.sum(out * w3_ref[...], axis=-1, keepdims=True) + bfc3_ref[...]
    out_ref[...] = out[0:B, :]                             # drop batch padding


# ----------------------------------------------------------------------------
# One-time parameter preparation: transpose to (in, out), split layer-2 W_ih
# into fwd/bwd halves, fold eval-mode BatchNorm, pad all feature dims so each
# gate block / matmul operand is 128-lane aligned (pad entries are zero, which
# keeps padded lanes exactly zero through the whole network).
# ----------------------------------------------------------------------------
def prepare_params(p):
    H = p['l1_whh'].shape[1]
    H2 = p['wa1'].shape[0]
    D = p['l1_wih'].shape[1]
    HP = _round_up(H, 128)
    HAP = _round_up(H2, 128)
    DP = _round_up(D, 128)
    eps = 1e-5
    f32 = jnp.float32

    def gate_pack(w, in_pad):
        # w: (4H, in_dim) PyTorch layout -> (in_pad, 4*HP), gate-block aligned.
        wt = jnp.transpose(w)                              # (in_dim, 4H)
        in_dim = wt.shape[0]
        w4 = wt.reshape(in_dim, 4, H)
        w4 = jnp.pad(w4, ((0, in_pad - in_dim), (0, 0), (0, HP - H)))
        return w4.reshape(in_pad, 4 * HP).astype(f32)

    def gate_bias(b):
        b4 = jnp.pad(b.reshape(4, H), ((0, 0), (0, HP - H)))
        return b4.reshape(1, 4 * HP).astype(f32)

    def pad2(w, r, c):
        return jnp.pad(w, ((0, r - w.shape[0]), (0, c - w.shape[1]))).astype(f32)

    def bn_fold(bn):  # rows: gamma, beta, running_mean, running_var
        scale = bn[0] * jax.lax.rsqrt(bn[3] + eps)
        shift = bn[1] - bn[2] * scale
        return (jnp.pad(scale, (0, HP - H)).reshape(1, HP).astype(f32),
                jnp.pad(shift, (0, HP - H)).reshape(1, HP).astype(f32))

    bn1s, bn1h = bn_fold(p['bn1'])
    bn2s, bn2h = bn_fold(p['bn2'])
    l2_wih = p['l2_wih']                                   # (4H, 2H)

    return {
        'wih1f': gate_pack(p['l1_wih'], DP),
        'whh1f': gate_pack(p['l1_whh'], HP),
        'b1f': gate_bias(p['l1_b']),
        'wih1b': gate_pack(p['l1r_wih'], DP),
        'whh1b': gate_pack(p['l1r_whh'], HP),
        'b1b': gate_bias(p['l1r_b']),
        'wih2f': gate_pack(l2_wih[:, :H], HP),
        'wih2b': gate_pack(l2_wih[:, H:], HP),
        'whh2': gate_pack(p['l2_whh'], HP),
        'b2l': gate_bias(p['l2_b']),
        'wa1': pad2(jnp.transpose(p['wa1']), HP, HAP),
        'ba1': pad2(p['ba1'].reshape(1, H2), 1, HAP),
        'wa2': pad2(p['wa2'].reshape(1, H2), 1, HAP),
        'ba2': p['ba2'].reshape(1, 1).astype(f32),
        'bn1s': bn1s, 'bn1h': bn1h,
        'w1': pad2(jnp.transpose(p['w1']), HP, HP),
        'bfc1': pad2(p['b1'].reshape(1, H), 1, HP),
        'bn2s': bn2s, 'bn2h': bn2h,
        'w2': pad2(jnp.transpose(p['w2']), HP, HAP),
        'bfc2': pad2(p['b2'].reshape(1, H2), 1, HAP),
        'w3': pad2(p['w3'].reshape(1, H2), 1, HAP),
        'bfc3': p['b3'].reshape(1, 1).astype(f32),
    }


_PARAM_ORDER = ('wih1f', 'whh1f', 'b1f', 'wih1b', 'whh1b', 'b1b',
                'wih2f', 'wih2b', 'whh2', 'b2l',
                'wa1', 'ba1', 'wa2', 'ba2',
                'bn1s', 'bn1h', 'w1', 'bfc1',
                'bn2s', 'bn2h', 'w2', 'bfc2', 'w3', 'bfc3')


# ----------------------------------------------------------------------------
# Forward wrapper: tiny input prep + one pallas_call.
# ----------------------------------------------------------------------------
@jax.jit
def improved_lstm_forward(x, pp):
    """x: (B, T, input_size) -> (B, 1)"""
    B, T, D = x.shape
    DP = pp['wih1f'].shape[0]
    HP = pp['whh1f'].shape[0]
    BP = _round_up(B, 8)

    xt = jnp.transpose(x, (1, 0, 2)).astype(jnp.float32)   # (T, B, D)
    xt = jnp.pad(xt, ((0, 0), (0, BP - B), (0, DP - D)))
    x_flat = xt.reshape(T * BP, DP)

    kernel = functools.partial(_fused_forward_kernel, T=T, B=B, BP=BP, HP=HP)
    return pl.pallas_call(
        kernel,
        out_shape=jax.ShapeDtypeStruct((B, 1), jnp.float32),
        scratch_shapes=[
            pltpu.VMEM((T * BP, 4 * HP), jnp.float32),
            pltpu.VMEM((T * BP, 4 * HP), jnp.float32),
            pltpu.VMEM((T * BP, 4 * HP), jnp.float32),
            pltpu.VMEM((T * BP, HP), jnp.float32),
            pltpu.VMEM((T * BP, HP), jnp.float32),
            pltpu.VMEM((T * BP, HP), jnp.float32),
        ],
    )(x_flat, *[pp[k] for k in _PARAM_ORDER])


# ----------------------------------------------------------------------------
# Deterministic parameter init (mirrors ImprovedLSTMModel.init_weights).
# ----------------------------------------------------------------------------
def _xavier_uniform(key, shape):
    fan_out, fan_in = shape
    bound = math.sqrt(6.0 / (fan_in + fan_out))
    return jax.random.uniform(key, shape, jnp.float32, -bound, bound)


def init_params(key, input_size=1, hidden_size=96, output_size=1):
    H, H2 = hidden_size, hidden_size // 2
    ks = jax.random.split(key, 11)
    orth = jax.nn.initializers.orthogonal()
    bn_init = jnp.stack([jnp.ones((H,)), jnp.zeros((H,)),
                         jnp.zeros((H,)), jnp.ones((H,))]).astype(jnp.float32)
    return {
        'l1_wih': _xavier_uniform(ks[0], (4 * H, input_size)),
        'l1_whh': orth(ks[1], (4 * H, H), jnp.float32),
        'l1_b': jnp.zeros((4 * H,), jnp.float32),
        'l1r_wih': _xavier_uniform(ks[2], (4 * H, input_size)),
        'l1r_whh': orth(ks[3], (4 * H, H), jnp.float32),
        'l1r_b': jnp.zeros((4 * H,), jnp.float32),
        'l2_wih': _xavier_uniform(ks[4], (4 * H, 2 * H)),
        'l2_whh': orth(ks[5], (4 * H, H), jnp.float32),
        'l2_b': jnp.zeros((4 * H,), jnp.float32),
        'wa1': _xavier_uniform(ks[6], (H2, H)),
        'ba1': jnp.zeros((H2,), jnp.float32),
        'wa2': _xavier_uniform(ks[7], (1, H2)),
        'ba2': jnp.zeros((1,), jnp.float32),
        'bn1': bn_init,
        'bn2': bn_init,
        'w1': _xavier_uniform(ks[8], (H, H)),
        'b1': jnp.zeros((H,), jnp.float32),
        'w2': _xavier_uniform(ks[9], (H2, H)),
        'b2': jnp.zeros((H2,), jnp.float32),
        'w3': _xavier_uniform(ks[10], (output_size, H2)),
        'b3': jnp.zeros((output_size,), jnp.float32),
    }


# ----------------------------------------------------------------------------
# Pure-JAX reference (for correctness check).
# ----------------------------------------------------------------------------
def _lstm_ref(x_btd, wih, whh, b):
    B = x_btd.shape[0]
    H = whh.shape[1]

    def step(carry, xt):
        h, c = carry
        gates = xt @ wih.T + h @ whh.T + b
        i, f, g, o = jnp.split(gates, 4, axis=-1)
        i, f, o = jax.nn.sigmoid(i), jax.nn.sigmoid(f), jax.nn.sigmoid(o)
        g = jnp.tanh(g)
        c = f * c + i * g
        h = o * jnp.tanh(c)
        return (h, c), h

    init = (jnp.zeros((B, H), jnp.float32), jnp.zeros((B, H), jnp.float32))
    _, ys = jax.lax.scan(step, init, jnp.transpose(x_btd, (1, 0, 2)))
    return jnp.transpose(ys, (1, 0, 2))


def model_ref(x, p):
    fwd = _lstm_ref(x, p['l1_wih'], p['l1_whh'], p['l1_b'])
    bwd = _lstm_ref(x[:, ::-1], p['l1r_wih'], p['l1r_whh'], p['l1r_b'])[:, ::-1]
    y1 = jnp.concatenate([fwd, bwd], axis=-1)
    y2 = _lstm_ref(y1, p['l2_wih'], p['l2_whh'], p['l2_b'])
    h1 = jnp.tanh(jnp.einsum('bth,kh->btk', y2, p['wa1']) + p['ba1'])
    s = jnp.einsum('btk,ok->bto', h1, p['wa2']) + p['ba2']
    attn = jax.nn.softmax(s, axis=1)
    context = jnp.einsum('bto,bth->bh', attn, y2)
    eps = 1e-5
    bn1, bn2 = p['bn1'], p['bn2']
    out = (context - bn1[2]) * jax.lax.rsqrt(bn1[3] + eps) * bn1[0] + bn1[1]
    out = out @ p['w1'].T + p['b1']
    out = jnp.where(out > 0, out, 0.1 * out)
    out = (out - bn2[2]) * jax.lax.rsqrt(bn2[3] + eps) * bn2[0] + bn2[1]
    out = out @ p['w2'].T + p['b2']
    out = jnp.where(out > 0, out, 0.1 * out)
    return out @ p['w3'].T + p['b3']


if __name__ == "__main__":
    key = jax.random.PRNGKey(0)
    pkey, xkey = jax.random.split(key)
    B, T, D, H = 2, 8, 1, 96
    params = init_params(pkey, input_size=D, hidden_size=H, output_size=1)
    x = jax.random.normal(xkey, (B, T, D), jnp.float32)

    prepared = prepare_params(params)
    out = jax.block_until_ready(improved_lstm_forward(x, prepared))
    ref = jax.block_until_ready(model_ref(x, params))

    assert out.shape == (B, 1), out.shape
    np.testing.assert_allclose(np.asarray(out), np.asarray(ref),
                               atol=1e-3, rtol=1e-3)
    print("KERNEL_OK")
</pallas_src>

<mosaic_0001>
module attributes {stable_mosaic.version = 11 : i64} {
  func.func @_fused_forward_kernel(%arg0: memref<64x128xf32, #tpu.memory_space<vmem>>, %arg1: memref<128x512xf32, #tpu.memory_space<vmem>>, %arg2: memref<128x512xf32, #tpu.memory_space<vmem>>, %arg3: memref<1x512xf32, #tpu.memory_space<vmem>>, %arg4: memref<128x512xf32, #tpu.memory_space<vmem>>, %arg5: memref<128x512xf32, #tpu.memory_space<vmem>>, %arg6: memref<1x512xf32, #tpu.memory_space<vmem>>, %arg7: memref<128x512xf32, #tpu.memory_space<vmem>>, %arg8: memref<128x512xf32, #tpu.memory_space<vmem>>, %arg9: memref<128x512xf32, #tpu.memory_space<vmem>>, %arg10: memref<1x512xf32, #tpu.memory_space<vmem>>, %arg11: memref<128x128xf32, #tpu.memory_space<vmem>>, %arg12: memref<1x128xf32, #tpu.memory_space<vmem>>, %arg13: memref<1x128xf32, #tpu.memory_space<vmem>>, %arg14: memref<1x1xf32, #tpu.memory_space<vmem>>, %arg15: memref<1x128xf32, #tpu.memory_space<vmem>>, %arg16: memref<1x128xf32, #tpu.memory_space<vmem>>, %arg17: memref<128x128xf32, #tpu.memory_space<vmem>>, %arg18: memref<1x128xf32, #tpu.memory_space<vmem>>, %arg19: memref<1x128xf32, #tpu.memory_space<vmem>>, %arg20: memref<1x128xf32, #tpu.memory_space<vmem>>, %arg21: memref<128x128xf32, #tpu.memory_space<vmem>>, %arg22: memref<1x128xf32, #tpu.memory_space<vmem>>, %arg23: memref<1x128xf32, #tpu.memory_space<vmem>>, %arg24: memref<1x1xf32, #tpu.memory_space<vmem>>, %arg25: memref<2x1xf32, #tpu.memory_space<vmem>>, %arg26: memref<64x512xf32, #tpu.memory_space<vmem>>, %arg27: memref<64x512xf32, #tpu.memory_space<vmem>>, %arg28: memref<64x512xf32, #tpu.memory_space<vmem>>, %arg29: memref<64x128xf32, #tpu.memory_space<vmem>>, %arg30: memref<64x128xf32, #tpu.memory_space<vmem>>, %arg31: memref<64x128xf32, #tpu.memory_space<vmem>>) attributes {dimension_semantics = [], scalar_prefetch = 0 : i64, scratch_operands = 6 : i64, tpu.core_type = #tpu.core_type<tc>} {
    %c0 = arith.constant 0 : index
    %c0_0 = arith.constant 0 : index
    %0 = vector.load %arg0[%c0, %c0_0] : memref<64x128xf32, #tpu.memory_space<vmem>>, vector<64x128xf32>
    %c0_1 = arith.constant 0 : index
    %c0_2 = arith.constant 0 : index
    %1 = vector.load %arg1[%c0_1, %c0_2] : memref<128x512xf32, #tpu.memory_space<vmem>>, vector<128x512xf32>
    %cst = arith.constant dense<0.000000e+00> : vector<64x512xf32>
    %2 = tpu.matmul %0, %1, %cst {dimension_numbers = #tpu.dot_dimension_numbers<[1], [0], [0], [1], [0, 0, 1, 1], [], []>} : vector<64x128xf32>, vector<128x512xf32>, vector<64x512xf32> -> vector<64x512xf32>
    %c0_3 = arith.constant 0 : index
    %c0_4 = arith.constant 0 : index
    %3 = vector.load %arg3[%c0_3, %c0_4] : memref<1x512xf32, #tpu.memory_space<vmem>>, vector<1x512xf32>
    %4 = vector.broadcast %3 : vector<1x512xf32> to vector<64x512xf32>
    %5 = arith.addf %2, %4 : vector<64x512xf32>
    %c0_5 = arith.constant 0 : index
    %c0_6 = arith.constant 0 : index
    %6 = vector.load %arg26[%c0_5, %c0_6] : memref<64x512xf32, #tpu.memory_space<vmem>>, vector<64x512xf32>
    tpu.vector_store %arg26[%c0_5, %c0_6], %5 {strides = array<i32>} : memref<64x512xf32, #tpu.memory_space<vmem>>, vector<64x512xf32>,
    %c0_7 = arith.constant 0 : index
    %c0_8 = arith.constant 0 : index
    %7 = vector.load %arg4[%c0_7, %c0_8] : memref<128x512xf32, #tpu.memory_space<vmem>>, vector<128x512xf32>
    %cst_9 = arith.constant dense<0.000000e+00> : vector<64x512xf32>
    %8 = tpu.matmul %0, %7, %cst_9 {dimension_numbers = #tpu.dot_dimension_numbers<[1], [0], [0], [1], [0, 0, 1, 1], [], []>} : vector<64x128xf32>, vector<128x512xf32>, vector<64x512xf32> -> vector<64x512xf32>
    %c0_10 = arith.constant 0 : index
    %c0_11 = arith.constant 0 : index
    %9 = vector.load %arg6[%c0_10, %c0_11] : memref<1x512xf32, #tpu.memory_space<vmem>>, vector<1x512xf32>
    %10 = vector.broadcast %9 : vector<1x512xf32> to vector<64x512xf32>
    %11 = arith.addf %8, %10 : vector<64x512xf32>
    %c0_12 = arith.constant 0 : index
    %c0_13 = arith.constant 0 : index
    %12 = vector.load %arg27[%c0_12, %c0_13] : memref<64x512xf32, #tpu.memory_space<vmem>>, vector<64x512xf32>
    tpu.vector_store %arg27[%c0_12, %c0_13], %11 {strides = array<i32>} : memref<64x512xf32, #tpu.memory_space<vmem>>, vector<64x512xf32>,
    %cst_14 = arith.constant 0.000000e+00 : f32
    %13 = vector.broadcast %cst_14 : f32 to vector<8x128xf32>
    %c0_15 = arith.constant 0 : index
    %c0_16 = arith.constant 0 : index
    %14 = vector.load %arg26[%c0_15, %c0_16] : memref<64x512xf32, #tpu.memory_space<vmem>>, vector<8x512xf32>
    %c0_17 = arith.constant 0 : index
    %c0_18 = arith.constant 0 : index
    %15 = vector.load %arg2[%c0_17, %c0_18] : memref<128x512xf32, #tpu.memory_space<vmem>>, vector<128x512xf32>
    %cst_19 = arith.constant dense<0.000000e+00> : vector<8x512xf32>
    %16 = tpu.matmul %13, %15, %cst_19 {dimension_numbers = #tpu.dot_dimension_numbers<[1], [0], [0], [1], [0, 0, 1, 1], [], []>} : vector<8x128xf32>, vector<128x512xf32>, vector<8x512xf32> -> vector<8x512xf32>
    %17 = arith.addf %14, %16 : vector<8x512xf32>
    %c56 = arith.constant 56 : index
    %c0_20 = arith.constant 0 : index
    %18 = vector.load %arg27[%c56, %c0_20] : memref<64x512xf32, #tpu.memory_space<vmem>>, vector<8x512xf32>
    %c0_21 = arith.constant 0 : index
    %c0_22 = arith.constant 0 : index
    %19 = vector.load %arg5[%c0_21, %c0_22] : memref<128x512xf32, #tpu.memory_space<vmem>>, vector<128x512xf32>
    %cst_23 = arith.constant dense<0.000000e+00> : vector<8x512xf32>
    %20 = tpu.matmul %13, %19, %cst_23 {dimension_numbers = #tpu.dot_dimension_numbers<[1], [0], [0], [1], [0, 0, 1, 1], [], []>} : vector<8x128xf32>, vector<128x512xf32>, vector<8x512xf32> -> vector<8x512xf32>
    %21 = arith.addf %18, %20 : vector<8x512xf32>
    %22 = vector.extract_strided_slice %17 {offsets = [0, 0], sizes = [8, 128], strides = [1, 1]} : vector<8x512xf32> to vector<8x128xf32>
    %23 = arith.negf %22 : vector<8x128xf32>
    %24 = math.exp %23 : vector<8x128xf32>
    %cst_24 = arith.constant 1.000000e+00 : f32
    %25 = vector.broadcast %cst_24 : f32 to vector<8x128xf32>
    %26 = arith.addf %25, %24 : vector<8x128xf32>
    %27 = arith.divf %25, %26 : vector<8x128xf32>
    %28 = vector.extract_strided_slice %17 {offsets = [0, 128], sizes = [8, 128], strides = [1, 1]} : vector<8x512xf32> to vector<8x128xf32>
    %29 = arith.negf %28 : vector<8x128xf32>
    %30 = math.exp %29 : vector<8x128xf32>
    %cst_25 = arith.constant 1.000000e+00 : f32
    %31 = vector.broadcast %cst_25 : f32 to vector<8x128xf32>
    %32 = arith.addf %31, %30 : vector<8x128xf32>
    %33 = arith.divf %31, %32 : vector<8x128xf32>
    %34 = vector.extract_strided_slice %17 {offsets = [0, 256], sizes = [8, 128], strides = [1, 1]} : vector<8x512xf32> to vector<8x128xf32>
    %35 = math.tanh %34 : vector<8x128xf32>
    %36 = vector.extract_strided_slice %17 {offsets = [0, 384], sizes = [8, 128], strides = [1, 1]} : vector<8x512xf32> to vector<8x128xf32>
    %37 = arith.negf %36 : vector<8x128xf32>
    %38 = math.exp %37 : vector<8x128xf32>
    %cst_26 = arith.constant 1.000000e+00 : f32
    %39 = vector.broadcast %cst_26 : f32 to vector<8x128xf32>
    %40 = arith.addf %39, %38 : vector<8x128xf32>
    %41 = arith.divf %39, %40 : vector<8x128xf32>
    %42 = arith.mulf %33, %13 : vector<8x128xf32>
    %43 = arith.mulf %27, %35 : vector<8x128xf32>
    %44 = arith.addf %42, %43 : vector<8x128xf32>
    %45 = math.tanh %44 : vector<8x128xf32>
    %46 = arith.mulf %41, %45 : vector<8x128xf32>
    %47 = vector.extract_strided_slice %21 {offsets = [0, 0], sizes = [8, 128], strides = [1, 1]} : vector<8x512xf32> to vector<8x128xf32>
    %48 = arith.negf %47 : vector<8x128xf32>
    %49 = math.exp %48 : vector<8x128xf32>
    %cst_27 = arith.constant 1.000000e+00 : f32
    %50 = vector.broadcast %cst_27 : f32 to vector<8x128xf32>
    %51 = arith.addf %50, %49 : vector<8x128xf32>
    %52 = arith.divf %50, %51 : vector<8x128xf32>
    %53 = vector.extract_strided_slice %21 {offsets = [0, 128], sizes = [8, 128], strides = [1, 1]} : vector<8x512xf32> to vector<8x128xf32>
    %54 = arith.negf %53 : vector<8x128xf32>
    %55 = math.exp %54 : vector<8x128xf32>
    %cst_28 = arith.constant 1.000000e+00 : f32
    %56 = vector.broadcast %cst_28 : f32 to vector<8x128xf32>
    %57 = arith.addf %56, %55 : vector<8x128xf32>
    %58 = arith.divf %56, %57 : vector<8x128xf32>
    %59 = vector.extract_strided_slice %21 {offsets = [0, 256], sizes = [8, 128], strides = [1, 1]} : vector<8x512xf32> to vector<8x128xf32>
    %60 = math.tanh %59 : vector<8x128xf32>
    %61 = vector.extract_strided_slice %21 {offsets = [0, 384], sizes = [8, 128], strides = [1, 1]} : vector<8x512xf32> to vector<8x128xf32>
    %62 = arith.negf %61 : vector<8x128xf32>
    %63 = math.exp %62 : vector<8x128xf32>
    %cst_29 = arith.constant 1.000000e+00 : f32
    %64 = vector.broadcast %cst_29 : f32 to vector<8x128xf32>
    %65 = arith.addf %64, %63 : vector<8x128xf32>
    %66 = arith.divf %64, %65 : vector<8x128xf32>
    %67 = arith.mulf %58, %13 : vector<8x128xf32>
    %68 = arith.mulf %52, %60 : vector<8x128xf32>
    %69 = arith.addf %67, %68 : vector<8x128xf32>
    %70 = math.tanh %69 : vector<8x128xf32>
    %71 = arith.mulf %66, %70 : vector<8x128xf32>
    %c0_30 = arith.constant 0 : index
    %c0_31 = arith.constant 0 : index
    %72 = vector.load %arg29[%c0_30, %c0_31] : memref<64x128xf32, #tpu.memory_space<vmem>>, vector<8x128xf32>
    tpu.vector_store %arg29[%c0_30, %c0_31], %46 {strides = array<i32>} : memref<64x128xf32, #tpu.memory_space<vmem>>, vector<8x128xf32>,
    %c56_32 = arith.constant 56 : index
    %c0_33 = arith.constant 0 : index
    %73 = vector.load %arg30[%c56_32, %c0_33] : memref<64x128xf32, #tpu.memory_space<vmem>>, vector<8x128xf32>
    tpu.vector_store %arg30[%c56_32, %c0_33], %71 {strides = array<i32>} : memref<64x128xf32, #tpu.memory_space<vmem>>, vector<8x128xf32>,
    %c8 = arith.constant 8 : index
    %c0_34 = arith.constant 0 : index
    %74 = vector.load %arg26[%c8, %c0_34] : memref<64x512xf32, #tpu.memory_space<vmem>>, vector<8x512xf32>
    %c0_35 = arith.constant 0 : index
    %c0_36 = arith.constant 0 : index
    %75 = vector.load %arg2[%c0_35, %c0_36] : memref<128x512xf32, #tpu.memory_space<vmem>>, vector<128x512xf32>
    %cst_37 = arith.constant dense<0.000000e+00> : vector<8x512xf32>
    %76 = tpu.matmul %46, %75, %cst_37 {dimension_numbers = #tpu.dot_dimension_numbers<[1], [0], [0], [1], [0, 0, 1, 1], [], []>} : vector<8x128xf32>, vector<128x512xf32>, vector<8x512xf32> -> vector<8x512xf32>
    %77 = arith.addf %74, %76 : vector<8x512xf32>
    %c48 = arith.constant 48 : index
    %c0_38 = arith.constant 0 : index
    %78 = vector.load %arg27[%c48, %c0_38] : memref<64x512xf32, #tpu.memory_space<vmem>>, vector<8x512xf32>
    %c0_39 = arith.constant 0 : index
    %c0_40 = arith.constant 0 : index
    %79 = vector.load %arg5[%c0_39, %c0_40] : memref<128x512xf32, #tpu.memory_space<vmem>>, vector<128x512xf32>
    %cst_41 = arith.constant dense<0.000000e+00> : vector<8x512xf32>
    %80 = tpu.matmul %71, %79, %cst_41 {dimension_numbers = #tpu.dot_dimension_numbers<[1], [0], [0], [1], [0, 0, 1, 1], [], []>} : vector<8x128xf32>, vector<128x512xf32>, vector<8x512xf32> -> vector<8x512xf32>
    %81 = arith.addf %78, %80 : vector<8x512xf32>
    %82 = vector.extract_strided_slice %77 {offsets = [0, 0], sizes = [8, 128], strides = [1, 1]} : vector<8x512xf32> to vector<8x128xf32>
    %83 = arith.negf %82 : vector<8x128xf32>
    %84 = math.exp %83 : vector<8x128xf32>
    %cst_42 = arith.constant 1.000000e+00 : f32
    %85 = vector.broadcast %cst_42 : f32 to vector<8x128xf32>
    %86 = arith.addf %85, %84 : vector<8x128xf32>
    %87 = arith.divf %85, %86 : vector<8x128xf32>
    %88 = vector.extract_strided_slice %77 {offsets = [0, 128], sizes = [8, 128], strides = [1, 1]} : vector<8x512xf32> to vector<8x128xf32>
    %89 = arith.negf %88 : vector<8x128xf32>
    %90 = math.exp %89 : vector<8x128xf32>
    %cst_43 = arith.constant 1.000000e+00 : f32
    %91 = vector.broadcast %cst_43 : f32 to vector<8x128xf32>
    %92 = arith.addf %91, %90 : vector<8x128xf32>
    %93 = arith.divf %91, %92 : vector<8x128xf32>
    %94 = vector.extract_strided_slice %77 {offsets = [0, 256], sizes = [8, 128], strides = [1, 1]} : vector<8x512xf32> to vector<8x128xf32>
    %95 = math.tanh %94 : vector<8x128xf32>
    %96 = vector.extract_strided_slice %77 {offsets = [0, 384], sizes = [8, 128], strides = [1, 1]} : vector<8x512xf32> to vector<8x128xf32>
    %97 = arith.negf %96 : vector<8x128xf32>
    %98 = math.exp %97 : vector<8x128xf32>
    %cst_44 = arith.constant 1.000000e+00 : f32
    %99 = vector.broadcast %cst_44 : f32 to vector<8x128xf32>
    %100 = arith.addf %99, %98 : vector<8x128xf32>
    %101 = arith.divf %99, %100 : vector<8x128xf32>
    %102 = arith.mulf %93, %44 : vector<8x128xf32>
    %103 = arith.mulf %87, %95 : vector<8x128xf32>
    %104 = arith.addf %102, %103 : vector<8x128xf32>
    %105 = math.tanh %104 : vector<8x128xf32>
    %106 = arith.mulf %101, %105 : vector<8x128xf32>
    %107 = vector.extract_strided_slice %81 {offsets = [0, 0], sizes = [8, 128], strides = [1, 1]} : vector<8x512xf32> to vector<8x128xf32>
    %108 = arith.negf %107 : vector<8x128xf32>
    %109 = math.exp %108 : vector<8x128xf32>
    %cst_45 = arith.constant 1.000000e+00 : f32
    %110 = vector.broadcast %cst_45 : f32 to vector<8x128xf32>
    %111 = arith.addf %110, %109 : vector<8x128xf32>
    %112 = arith.divf %110, %111 : vector<8x128xf32>
    %113 = vector.extract_strided_slice %81 {offsets = [0, 128], sizes = [8, 128], strides = [1, 1]} : vector<8x512xf32> to vector<8x128xf32>
    %114 = arith.negf %113 : vector<8x128xf32>
    %115 = math.exp %114 : vector<8x128xf32>
    %cst_46 = arith.constant 1.000000e+00 : f32
    %116 = vector.broadcast %cst_46 : f32 to vector<8x128xf32>
    %117 = arith.addf %116, %115 : vector<8x128xf32>
    %118 = arith.divf %116, %117 : vector<8x128xf32>
    %119 = vector.extract_strided_slice %81 {offsets = [0, 256], sizes = [8, 128], strides = [1, 1]} : vector<8x512xf32> to vector<8x128xf32>
    %120 = math.tanh %119 : vector<8x128xf32>
    %121 = vector.extract_strided_slice %81 {offsets = [0, 384], sizes = [8, 128], strides = [1, 1]} : vector<8x512xf32> to vector<8x128xf32>
    %122 = arith.negf %121 : vector<8x128xf32>
    %123 = math.exp %122 : vector<8x128xf32>
    %cst_47 = arith.constant 1.000000e+00 : f32
    %124 = vector.broadcast %cst_47 : f32 to vector<8x128xf32>
    %125 = arith.addf %124, %123 : vector<8x128xf32>
    %126 = arith.divf %124, %125 : vector<8x128xf32>
    %127 = arith.mulf %118, %69 : vector<8x128xf32>
    %128 = arith.mulf %112, %120 : vector<8x128xf32>
    %129 = arith.addf %127, %128 : vector<8x128xf32>
    %130 = math.tanh %129 : vector<8x128xf32>
    %131 = arith.mulf %126, %130 : vector<8x128xf32>
    %c8_48 = arith.constant 8 : index
    %c0_49 = arith.constant 0 : index
    %132 = vector.load %arg29[%c8_48, %c0_49] : memref<64x128xf32, #tpu.memory_space<vmem>>, vector<8x128xf32>
    tpu.vector_store %arg29[%c8_48, %c0_49], %106 {strides = array<i32>} : memref<64x128xf32, #tpu.memory_space<vmem>>, vector<8x128xf32>,
    %c48_50 = arith.constant 48 : index
    %c0_51 = arith.constant 0 : index
    %133 = vector.load %arg30[%c48_50, %c0_51] : memref<64x128xf32, #tpu.memory_space<vmem>>, vector<8x128xf32>
    tpu.vector_store %arg30[%c48_50, %c0_51], %131 {strides = array<i32>} : memref<64x128xf32, #tpu.memory_space<vmem>>, vector<8x128xf32>,
    %c16 = arith.constant 16 : index
    %c0_52 = arith.constant 0 : index
    %134 = vector.load %arg26[%c16, %c0_52] : memref<64x512xf32, #tpu.memory_space<vmem>>, vector<8x512xf32>
    %c0_53 = arith.constant 0 : index
    %c0_54 = arith.constant 0 : index
    %135 = vector.load %arg2[%c0_53, %c0_54] : memref<128x512xf32, #tpu.memory_space<vmem>>, vector<128x512xf32>
    %cst_55 = arith.constant dense<0.000000e+00> : vector<8x512xf32>
    %136 = tpu.matmul %106, %135, %cst_55 {dimension_numbers = #tpu.dot_dimension_numbers<[1], [0], [0], [1], [0, 0, 1, 1], [], []>} : vector<8x128xf32>, vector<128x512xf32>, vector<8x512xf32> -> vector<8x512xf32>
    %137 = arith.addf %134, %136 : vector<8x512xf32>
    %c40 = arith.constant 40 : index
    %c0_56 = arith.constant 0 : index
    %138 = vector.load %arg27[%c40, %c0_56] : memref<64x512xf32, #tpu.memory_space<vmem>>, vector<8x512xf32>
    %c0_57 = arith.constant 0 : index
    %c0_58 = arith.constant 0 : index
    %139 = vector.load %arg5[%c0_57, %c0_58] : memref<128x512xf32, #tpu.memory_space<vmem>>, vector<128x512xf32>
    %cst_59 = arith.constant dense<0.000000e+00> : vector<8x512xf32>
    %140 = tpu.matmul %131, %139, %cst_59 {dimension_numbers = #tpu.dot_dimension_numbers<[1], [0], [0], [1], [0, 0, 1, 1], [], []>} : vector<8x128xf32>, vector<128x512xf32>, vector<8x512xf32> -> vector<8x512xf32>
    %141 = arith.addf %138, %140 : vector<8x512xf32>
    %142 = vector.extract_strided_slice %137 {offsets = [0, 0], sizes = [8, 128], strides = [1, 1]} : vector<8x512xf32> to vector<8x128xf32>
    %143 = arith.negf %142 : vector<8x128xf32>
    %144 = math.exp %143 : vector<8x128xf32>
    %cst_60 = arith.constant 1.000000e+00 : f32
    %145 = vector.broadcast %cst_60 : f32 to vector<8x128xf32>
    %146 = arith.addf %145, %144 : vector<8x128xf32>
    %147 = arith.divf %145, %146 : vector<8x128xf32>
    %148 = vector.extract_strided_slice %137 {offsets = [0, 128], sizes = [8, 128], strides = [1, 1]} : vector<8x512xf32> to vector<8x128xf32>
    %149 = arith.negf %148 : vector<8x128xf32>
    %150 = math.exp %149 : vector<8x128xf32>
    %cst_61 = arith.constant 1.000000e+00 : f32
    %151 = vector.broadcast %cst_61 : f32 to vector<8x128xf32>
    %152 = arith.addf %151, %150 : vector<8x128xf32>
    %153 = arith.divf %151, %152 : vector<8x128xf32>
    %154 = vector.extract_strided_slice %137 {offsets = [0, 256], sizes = [8, 128], strides = [1, 1]} : vector<8x512xf32> to vector<8x128xf32>
    %155 = math.tanh %154 : vector<8x128xf32>
    %156 = vector.extract_strided_slice %137 {offsets = [0, 384], sizes = [8, 128], strides = [1, 1]} : vector<8x512xf32> to vector<8x128xf32>
    %157 = arith.negf %156 : vector<8x128xf32>
    %158 = math.exp %157 : vector<8x128xf32>
    %cst_62 = arith.constant 1.000000e+00 : f32
    %159 = vector.broadcast %cst_62 : f32 to vector<8x128xf32>
    %160 = arith.addf %159, %158 : vector<8x128xf32>
    %161 = arith.divf %159, %160 : vector<8x128xf32>
    %162 = arith.mulf %153, %104 : vector<8x128xf32>
    %163 = arith.mulf %147, %155 : vector<8x128xf32>
    %164 = arith.addf %162, %163 : vector<8x128xf32>
    %165 = math.tanh %164 : vector<8x128xf32>
    %166 = arith.mulf %161, %165 : vector<8x128xf32>
    %167 = vector.extract_strided_slice %141 {offsets = [0, 0], sizes = [8, 128], strides = [1, 1]} : vector<8x512xf32> to vector<8x128xf32>
    %168 = arith.negf %167 : vector<8x128xf32>
    %169 = math.exp %168 : vector<8x128xf32>
    %cst_63 = arith.constant 1.000000e+00 : f32
    %170 = vector.broadcast %cst_63 : f32 to vector<8x128xf32>
    %171 = arith.addf %170, %169 : vector<8x128xf32>
    %172 = arith.divf %170, %171 : vector<8x128xf32>
    %173 = vector.extract_strided_slice %141 {offsets = [0, 128], sizes = [8, 128], strides = [1, 1]} : vector<8x512xf32> to vector<8x128xf32>
    %174 = arith.negf %173 : vector<8x128xf32>
    %175 = math.exp %174 : vector<8x128xf32>
    %cst_64 = arith.constant 1.000000e+00 : f32
    %176 = vector.broadcast %cst_64 : f32 to vector<8x128xf32>
    %177 = arith.addf %176, %175 : vector<8x128xf32>
    %178 = arith.divf %176, %177 : vector<8x128xf32>
    %179 = vector.extract_strided_slice %141 {offsets = [0, 256], sizes = [8, 128], strides = [1, 1]} : vector<8x512xf32> to vector<8x128xf32>
    %180 = math.tanh %179 : vector<8x128xf32>
    %181 = vector.extract_strided_slice %141 {offsets = [0, 384], sizes = [8, 128], strides = [1, 1]} : vector<8x512xf32> to vector<8x128xf32>
    %182 = arith.negf %181 : vector<8x128xf32>
    %183 = math.exp %182 : vector<8x128xf32>
    %cst_65 = arith.constant 1.000000e+00 : f32
    %184 = vector.broadcast %cst_65 : f32 to vector<8x128xf32>
    %185 = arith.addf %184, %183 : vector<8x128xf32>
    %186 = arith.divf %184, %185 : vector<8x128xf32>
    %187 = arith.mulf %178, %129 : vector<8x128xf32>
    %188 = arith.mulf %172, %180 : vector<8x128xf32>
    %189 = arith.addf %187, %188 : vector<8x128xf32>
    %190 = math.tanh %189 : vector<8x128xf32>
    %191 = arith.mulf %186, %190 : vector<8x128xf32>
    %c16_66 = arith.constant 16 : index
    %c0_67 = arith.constant 0 : index
    %192 = vector.load %arg29[%c16_66, %c0_67] : memref<64x128xf32, #tpu.memory_space<vmem>>, vector<8x128xf32>
    tpu.vector_store %arg29[%c16_66, %c0_67], %166 {strides = array<i32>} : memref<64x128xf32, #tpu.memory_space<vmem>>, vector<8x128xf32>,
    %c40_68 = arith.constant 40 : index
    %c0_69 = arith.constant 0 : index
    %193 = vector.load %arg30[%c40_68, %c0_69] : memref<64x128xf32, #tpu.memory_space<vmem>>, vector<8x128xf32>
    tpu.vector_store %arg30[%c40_68, %c0_69], %191 {strides = array<i32>} : memref<64x128xf32, #tpu.memory_space<vmem>>, vector<8x128xf32>,
    %c24 = arith.constant 24 : index
    %c0_70 = arith.constant 0 : index
    %194 = vector.load %arg26[%c24, %c0_70] : memref<64x512xf32, #tpu.memory_space<vmem>>, vector<8x512xf32>
    %c0_71 = arith.constant 0 : index
    %c0_72 = arith.constant 0 : index
    %195 = vector.load %arg2[%c0_71, %c0_72] : memref<128x512xf32, #tpu.memory_space<vmem>>, vector<128x512xf32>
    %cst_73 = arith.constant dense<0.000000e+00> : vector<8x512xf32>
    %196 = tpu.matmul %166, %195, %cst_73 {dimension_numbers = #tpu.dot_dimension_numbers<[1], [0], [0], [1], [0, 0, 1, 1], [], []>} : vector<8x128xf32>, vector<128x512xf32>, vector<8x512xf32> -> vector<8x512xf32>
    %197 = arith.addf %194, %196 : vector<8x512xf32>
    %c32 = arith.constant 32 : index
    %c0_74 = arith.constant 0 : index
    %198 = vector.load %arg27[%c32, %c0_74] : memref<64x512xf32, #tpu.memory_space<vmem>>, vector<8x512xf32>
    %c0_75 = arith.constant 0 : index
    %c0_76 = arith.constant 0 : index
    %199 = vector.load %arg5[%c0_75, %c0_76] : memref<128x512xf32, #tpu.memory_space<vmem>>, vector<128x512xf32>
    %cst_77 = arith.constant dense<0.000000e+00> : vector<8x512xf32>
    %200 = tpu.matmul %191, %199, %cst_77 {dimension_numbers = #tpu.dot_dimension_numbers<[1], [0], [0], [1], [0, 0, 1, 1], [], []>} : vector<8x128xf32>, vector<128x512xf32>, vector<8x512xf32> -> vector<8x512xf32>
    %201 = arith.addf %198, %200 : vector<8x512xf32>
    %202 = vector.extract_strided_slice %197 {offsets = [0, 0], sizes = [8, 128], strides = [1, 1]} : vector<8x512xf32> to vector<8x128xf32>
    %203 = arith.negf %202 : vector<8x128xf32>
    %204 = math.exp %203 : vector<8x128xf32>
    %cst_78 = arith.constant 1.000000e+00 : f32
    %205 = vector.broadcast %cst_78 : f32 to vector<8x128xf32>
    %206 = arith.addf %205, %204 : vector<8x128xf32>
    %207 = arith.divf %205, %206 : vector<8x128xf32>
    %208 = vector.extract_strided_slice %197 {offsets = [0, 128], sizes = [8, 128], strides = [1, 1]} : vector<8x512xf32> to vector<8x128xf32>
    %209 = arith.negf %208 : vector<8x128xf32>
    %210 = math.exp %209 : vector<8x128xf32>
    %cst_79 = arith.constant 1.000000e+00 : f32
    %211 = vector.broadcast %cst_79 : f32 to vector<8x128xf32>
    %212 = arith.addf %211, %210 : vector<8x128xf32>
    %213 = arith.divf %211, %212 : vector<8x128xf32>
    %214 = vector.extract_strided_slice %197 {offsets = [0, 256], sizes = [8, 128], strides = [1, 1]} : vector<8x512xf32> to vector<8x128xf32>
    %215 = math.tanh %214 : vector<8x128xf32>
    %216 = vector.extract_strided_slice %197 {offsets = [0, 384], sizes = [8, 128], strides = [1, 1]} : vector<8x512xf32> to vector<8x128xf32>
    %217 = arith.negf %216 : vector<8x128xf32>
    %218 = math.exp %217 : vector<8x128xf32>
    %cst_80 = arith.constant 1.000000e+00 : f32
    %219 = vector.broadcast %cst_80 : f32 to vector<8x128xf32>
    %220 = arith.addf %219, %218 : vector<8x128xf32>
    %221 = arith.divf %219, %220 : vector<8x128xf32>
    %222 = arith.mulf %213, %164 : vector<8x128xf32>
    %223 = arith.mulf %207, %215 : vector<8x128xf32>
    %224 = arith.addf %222, %223 : vector<8x128xf32>
    %225 = math.tanh %224 : vector<8x128xf32>
    %226 = arith.mulf %221, %225 : vector<8x128xf32>
    %227 = vector.extract_strided_slice %201 {offsets = [0, 0], sizes = [8, 128], strides = [1, 1]} : vector<8x512xf32> to vector<8x128xf32>
    %228 = arith.negf %227 : vector<8x128xf32>
    %229 = math.exp %228 : vector<8x128xf32>
    %cst_81 = arith.constant 1.000000e+00 : f32
    %230 = vector.broadcast %cst_81 : f32 to vector<8x128xf32>
    %231 = arith.addf %230, %229 : vector<8x128xf32>
    %232 = arith.divf %230, %231 : vector<8x128xf32>
    %233 = vector.extract_strided_slice %201 {offsets = [0, 128], sizes = [8, 128], strides = [1, 1]} : vector<8x512xf32> to vector<8x128xf32>
    %234 = arith.negf %233 : vector<8x128xf32>
    %235 = math.exp %234 : vector<8x128xf32>
    %cst_82 = arith.constant 1.000000e+00 : f32
    %236 = vector.broadcast %cst_82 : f32 to vector<8x128xf32>
    %237 = arith.addf %236, %235 : vector<8x128xf32>
    %238 = arith.divf %236, %237 : vector<8x128xf32>
    %239 = vector.extract_strided_slice %201 {offsets = [0, 256], sizes = [8, 128], strides = [1, 1]} : vector<8x512xf32> to vector<8x128xf32>
    %240 = math.tanh %239 : vector<8x128xf32>
    %241 = vector.extract_strided_slice %201 {offsets = [0, 384], sizes = [8, 128], strides = [1, 1]} : vector<8x512xf32> to vector<8x128xf32>
    %242 = arith.negf %241 : vector<8x128xf32>
    %243 = math.exp %242 : vector<8x128xf32>
    %cst_83 = arith.constant 1.000000e+00 : f32
    %244 = vector.broadcast %cst_83 : f32 to vector<8x128xf32>
    %245 = arith.addf %244, %243 : vector<8x128xf32>
    %246 = arith.divf %244, %245 : vector<8x128xf32>
    %247 = arith.mulf %238, %189 : vector<8x128xf32>
    %248 = arith.mulf %232, %240 : vector<8x128xf32>
    %249 = arith.addf %247, %248 : vector<8x128xf32>
    %250 = math.tanh %249 : vector<8x128xf32>
    %251 = arith.mulf %246, %250 : vector<8x128xf32>
    %c24_84 = arith.constant 24 : index
    %c0_85 = arith.constant 0 : index
    %252 = vector.load %arg29[%c24_84, %c0_85] : memref<64x128xf32, #tpu.memory_space<vmem>>, vector<8x128xf32>
    tpu.vector_store %arg29[%c24_84, %c0_85], %226 {strides = array<i32>} : memref<64x128xf32, #tpu.memory_space<vmem>>, vector<8x128xf32>,
    %c32_86 = arith.constant 32 : index
    %c0_87 = arith.constant 0 : index
    %253 = vector.load %arg30[%c32_86, %c0_87] : memref<64x128xf32, #tpu.memory_space<vmem>>, vector<8x128xf32>
    tpu.vector_store %arg30[%c32_86, %c0_87], %251 {strides = array<i32>} : memref<64x128xf32, #tpu.memory_space<vmem>>, vector<8x128xf32>,
    %c32_88 = arith.constant 32 : index
    %c0_89 = arith.constant 0 : index
    %254 = vector.load %arg26[%c32_88, %c0_89] : memref<64x512xf32, #tpu.memory_space<vmem>>, vector<8x512xf32>
    %c0_90 = arith.constant 0 : index
    %c0_91 = arith.constant 0 : index
    %255 = vector.load %arg2[%c0_90, %c0_91] : memref<128x512xf32, #tpu.memory_space<vmem>>, vector<128x512xf32>
    %cst_92 = arith.constant dense<0.000000e+00> : vector<8x512xf32>
    %256 = tpu.matmul %226, %255, %cst_92 {dimension_numbers = #tpu.dot_dimension_numbers<[1], [0], [0], [1], [0, 0, 1, 1], [], []>} : vector<8x128xf32>, vector<128x512xf32>, vector<8x512xf32> -> vector<8x512xf32>
    %257 = arith.addf %254, %256 : vector<8x512xf32>
    %c24_93 = arith.constant 24 : index
    %c0_94 = arith.constant 0 : index
    %258 = vector.load %arg27[%c24_93, %c0_94] : memref<64x512xf32, #tpu.memory_space<vmem>>, vector<8x512xf32>
    %c0_95 = arith.constant 0 : index
    %c0_96 = arith.constant 0 : index
    %259 = vector.load %arg5[%c0_95, %c0_96] : memref<128x512xf32, #tpu.memory_space<vmem>>, vector<128x512xf32>
    %cst_97 = arith.constant dense<0.000000e+00> : vector<8x512xf32>
    %260 = tpu.matmul %251, %259, %cst_97 {dimension_numbers = #tpu.dot_dimension_numbers<[1], [0], [0], [1], [0, 0, 1, 1], [], []>} : vector<8x128xf32>, vector<128x512xf32>, vector<8x512xf32> -> vector<8x512xf32>
    %261 = arith.addf %258, %260 : vector<8x512xf32>
    %262 = vector.extract_strided_slice %257 {offsets = [0, 0], sizes = [8, 128], strides = [1, 1]} : vector<8x512xf32> to vector<8x128xf32>
    %263 = arith.negf %262 : vector<8x128xf32>
    %264 = math.exp %263 : vector<8x128xf32>
    %cst_98 = arith.constant 1.000000e+00 : f32
    %265 = vector.broadcast %cst_98 : f32 to vector<8x128xf32>
    %266 = arith.addf %265, %264 : vector<8x128xf32>
    %267 = arith.divf %265, %266 : vector<8x128xf32>
    %268 = vector.extract_strided_slice %257 {offsets = [0, 128], sizes = [8, 128], strides = [1, 1]} : vector<8x512xf32> to vector<8x128xf32>
    %269 = arith.negf %268 : vector<8x128xf32>
    %270 = math.exp %269 : vector<8x128xf32>
    %cst_99 = arith.constant 1.000000e+00 : f32
    %271 = vector.broadcast %cst_99 : f32 to vector<8x128xf32>
    %272 = arith.addf %271, %270 : vector<8x128xf32>
    %273 = arith.divf %271, %272 : vector<8x128xf32>
    %274 = vector.extract_strided_slice %257 {offsets = [0, 256], sizes = [8, 128], strides = [1, 1]} : vector<8x512xf32> to vector<8x128xf32>
    %275 = math.tanh %274 : vector<8x128xf32>
    %276 = vector.extract_strided_slice %257 {offsets = [0, 384], sizes = [8, 128], strides = [1, 1]} : vector<8x512xf32> to vector<8x128xf32>
    %277 = arith.negf %276 : vector<8x128xf32>
    %278 = math.exp %277 : vector<8x128xf32>
    %cst_100 = arith.constant 1.000000e+00 : f32
    %279 = vector.broadcast %cst_100 : f32 to vector<8x128xf32>
    %280 = arith.addf %279, %278 : vector<8x128xf32>
    %281 = arith.divf %279, %280 : vector<8x128xf32>
    %282 = arith.mulf %273, %224 : vector<8x128xf32>
    %283 = arith.mulf %267, %275 : vector<8x128xf32>
    %284 = arith.addf %282, %283 : vector<8x128xf32>
    %285 = math.tanh %284 : vector<8x128xf32>
    %286 = arith.mulf %281, %285 : vector<8x128xf32>
    %287 = vector.extract_strided_slice %261 {offsets = [0, 0], sizes = [8, 128], strides = [1, 1]} : vector<8x512xf32> to vector<8x128xf32>
    %288 = arith.negf %287 : vector<8x128xf32>
    %289 = math.exp %288 : vector<8x128xf32>
    %cst_101 = arith.constant 1.000000e+00 : f32
    %290 = vector.broadcast %cst_101 : f32 to vector<8x128xf32>
    %291 = arith.addf %290, %289 : vector<8x128xf32>
    %292 = arith.divf %290, %291 : vector<8x128xf32>
    %293 = vector.extract_strided_slice %261 {offsets = [0, 128], sizes = [8, 128], strides = [1, 1]} : vector<8x512xf32> to vector<8x128xf32>
    %294 = arith.negf %293 : vector<8x128xf32>
    %295 = math.exp %294 : vector<8x128xf32>
    %cst_102 = arith.constant 1.000000e+00 : f32
    %296 = vector.broadcast %cst_102 : f32 to vector<8x128xf32>
    %297 = arith.addf %296, %295 : vector<8x128xf32>
    %298 = arith.divf %296, %297 : vector<8x128xf32>
    %299 = vector.extract_strided_slice %261 {offsets = [0, 256], sizes = [8, 128], strides = [1, 1]} : vector<8x512xf32> to vector<8x128xf32>
    %300 = math.tanh %299 : vector<8x128xf32>
    %301 = vector.extract_strided_slice %261 {offsets = [0, 384], sizes = [8, 128], strides = [1, 1]} : vector<8x512xf32> to vector<8x128xf32>
    %302 = arith.negf %301 : vector<8x128xf32>
    %303 = math.exp %302 : vector<8x128xf32>
    %cst_103 = arith.constant 1.000000e+00 : f32
    %304 = vector.broadcast %cst_103 : f32 to vector<8x128xf32>
    %305 = arith.addf %304, %303 : vector<8x128xf32>
    %306 = arith.divf %304, %305 : vector<8x128xf32>
    %307 = arith.mulf %298, %249 : vector<8x128xf32>
    %308 = arith.mulf %292, %300 : vector<8x128xf32>
    %309 = arith.addf %307, %308 : vector<8x128xf32>
    %310 = math.tanh %309 : vector<8x128xf32>
    %311 = arith.mulf %306, %310 : vector<8x128xf32>
    %c32_104 = arith.constant 32 : index
    %c0_105 = arith.constant 0 : index
    %312 = vector.load %arg29[%c32_104, %c0_105] : memref<64x128xf32, #tpu.memory_space<vmem>>, vector<8x128xf32>
    tpu.vector_store %arg29[%c32_104, %c0_105], %286 {strides = array<i32>} : memref<64x128xf32, #tpu.memory_space<vmem>>, vector<8x128xf32>,
    %c24_106 = arith.constant 24 : index
    %c0_107 = arith.constant 0 : index
    %313 = vector.load %arg30[%c24_106, %c0_107] : memref<64x128xf32, #tpu.memory_space<vmem>>, vector<8x128xf32>
    tpu.vector_store %arg30[%c24_106, %c0_107], %311 {strides = array<i32>} : memref<64x128xf32, #tpu.memory_space<vmem>>, vector<8x128xf32>,
    %c40_108 = arith.constant 40 : index
    %c0_109 = arith.constant 0 : index
    %314 = vector.load %arg26[%c40_108, %c0_109] : memref<64x512xf32, #tpu.memory_space<vmem>>, vector<8x512xf32>
    %c0_110 = arith.constant 0 : index
    %c0_111 = arith.constant 0 : index
    %315 = vector.load %arg2[%c0_110, %c0_111] : memref<128x512xf32, #tpu.memory_space<vmem>>, vector<128x512xf32>
    %cst_112 = arith.constant dense<0.000000e+00> : vector<8x512xf32>
    %316 = tpu.matmul %286, %315, %cst_112 {dimension_numbers = #tpu.dot_dimension_numbers<[1], [0], [0], [1], [0, 0, 1, 1], [], []>} : vector<8x128xf32>, vector<128x512xf32>, vector<8x512xf32> -> vector<8x512xf32>
    %317 = arith.addf %314, %316 : vector<8x512xf32>
    %c16_113 = arith.constant 16 : index
    %c0_114 = arith.constant 0 : index
    %318 = vector.load %arg27[%c16_113, %c0_114] : memref<64x512xf32, #tpu.memory_space<vmem>>, vector<8x512xf32>
    %c0_115 = arith.constant 0 : index
    %c0_116 = arith.constant 0 : index
    %319 = vector.load %arg5[%c0_115, %c0_116] : memref<128x512xf32, #tpu.memory_space<vmem>>, vector<128x512xf32>
    %cst_117 = arith.constant dense<0.000000e+00> : vector<8x512xf32>
    %320 = tpu.matmul %311, %319, %cst_117 {dimension_numbers = #tpu.dot_dimension_numbers<[1], [0], [0], [1], [0, 0, 1, 1], [], []>} : vector<8x128xf32>, vector<128x512xf32>, vector<8x512xf32> -> vector<8x512xf32>
    %321 = arith.addf %318, %320 : vector<8x512xf32>
    %322 = vector.extract_strided_slice %317 {offsets = [0, 0], sizes = [8, 128], strides = [1, 1]} : vector<8x512xf32> to vector<8x128xf32>
    %323 = arith.negf %322 : vector<8x128xf32>
    %324 = math.exp %323 : vector<8x128xf32>
    %cst_118 = arith.constant 1.000000e+00 : f32
    %325 = vector.broadcast %cst_118 : f32 to vector<8x128xf32>
    %326 = arith.addf %325, %324 : vector<8x128xf32>
    %327 = arith.divf %325, %326 : vector<8x128xf32>
    %328 = vector.extract_strided_slice %317 {offsets = [0, 128], sizes = [8, 128], strides = [1, 1]} : vector<8x512xf32> to vector<8x128xf32>
    %329 = arith.negf %328 : vector<8x128xf32>
    %330 = math.exp %329 : vector<8x128xf32>
    %cst_119 = arith.constant 1.000000e+00 : f32
    %331 = vector.broadcast %cst_119 : f32 to vector<8x128xf32>
    %332 = arith.addf %331, %330 : vector<8x128xf32>
    %333 = arith.divf %331, %332 : vector<8x128xf32>
    %334 = vector.extract_strided_slice %317 {offsets = [0, 256], sizes = [8, 128], strides = [1, 1]} : vector<8x512xf32> to vector<8x128xf32>
    %335 = math.tanh %334 : vector<8x128xf32>
    %336 = vector.extract_strided_slice %317 {offsets = [0, 384], sizes = [8, 128], strides = [1, 1]} : vector<8x512xf32> to vector<8x128xf32>
    %337 = arith.negf %336 : vector<8x128xf32>
    %338 = math.exp %337 : vector<8x128xf32>
    %cst_120 = arith.constant 1.000000e+00 : f32
    %339 = vector.broadcast %cst_120 : f32 to vector<8x128xf32>
    %340 = arith.addf %339, %338 : vector<8x128xf32>
    %341 = arith.divf %339, %340 : vector<8x128xf32>
    %342 = arith.mulf %333, %284 : vector<8x128xf32>
    %343 = arith.mulf %327, %335 : vector<8x128xf32>
    %344 = arith.addf %342, %343 : vector<8x128xf32>
    %345 = math.tanh %344 : vector<8x128xf32>
    %346 = arith.mulf %341, %345 : vector<8x128xf32>
    %347 = vector.extract_strided_slice %321 {offsets = [0, 0], sizes = [8, 128], strides = [1, 1]} : vector<8x512xf32> to vector<8x128xf32>
    %348 = arith.negf %347 : vector<8x128xf32>
    %349 = math.exp %348 : vector<8x128xf32>
    %cst_121 = arith.constant 1.000000e+00 : f32
    %350 = vector.broadcast %cst_121 : f32 to vector<8x128xf32>
    %351 = arith.addf %350, %349 : vector<8x128xf32>
    %352 = arith.divf %350, %351 : vector<8x128xf32>
    %353 = vector.extract_strided_slice %321 {offsets = [0, 128], sizes = [8, 128], strides = [1, 1]} : vector<8x512xf32> to vector<8x128xf32>
    %354 = arith.negf %353 : vector<8x128xf32>
    %355 = math.exp %354 : vector<8x128xf32>
    %cst_122 = arith.constant 1.000000e+00 : f32
    %356 = vector.broadcast %cst_122 : f32 to vector<8x128xf32>
    %357 = arith.addf %356, %355 : vector<8x128xf32>
    %358 = arith.divf %356, %357 : vector<8x128xf32>
    %359 = vector.extract_strided_slice %321 {offsets = [0, 256], sizes = [8, 128], strides = [1, 1]} : vector<8x512xf32> to vector<8x128xf32>
    %360 = math.tanh %359 : vector<8x128xf32>
    %361 = vector.extract_strided_slice %321 {offsets = [0, 384], sizes = [8, 128], strides = [1, 1]} : vector<8x512xf32> to vector<8x128xf32>
    %362 = arith.negf %361 : vector<8x128xf32>
    %363 = math.exp %362 : vector<8x128xf32>
    %cst_123 = arith.constant 1.000000e+00 : f32
    %364 = vector.broadcast %cst_123 : f32 to vector<8x128xf32>
    %365 = arith.addf %364, %363 : vector<8x128xf32>
    %366 = arith.divf %364, %365 : vector<8x128xf32>
    %367 = arith.mulf %358, %309 : vector<8x128xf32>
    %368 = arith.mulf %352, %360 : vector<8x128xf32>
    %369 = arith.addf %367, %368 : vector<8x128xf32>
    %370 = math.tanh %369 : vector<8x128xf32>
    %371 = arith.mulf %366, %370 : vector<8x128xf32>
    %c40_124 = arith.constant 40 : index
    %c0_125 = arith.constant 0 : index
    %372 = vector.load %arg29[%c40_124, %c0_125] : memref<64x128xf32, #tpu.memory_space<vmem>>, vector<8x128xf32>
    tpu.vector_store %arg29[%c40_124, %c0_125], %346 {strides = array<i32>} : memref<64x128xf32, #tpu.memory_space<vmem>>, vector<8x128xf32>,
    %c16_126 = arith.constant 16 : index
    %c0_127 = arith.constant 0 : index
    %373 = vector.load %arg30[%c16_126, %c0_127] : memref<64x128xf32, #tpu.memory_space<vmem>>, vector<8x128xf32>
    tpu.vector_store %arg30[%c16_126, %c0_127], %371 {strides = array<i32>} : memref<64x128xf32, #tpu.memory_space<vmem>>, vector<8x128xf32>,
    %c48_128 = arith.constant 48 : index
    %c0_129 = arith.constant 0 : index
    %374 = vector.load %arg26[%c48_128, %c0_129] : memref<64x512xf32, #tpu.memory_space<vmem>>, vector<8x512xf32>
    %c0_130 = arith.constant 0 : index
    %c0_131 = arith.constant 0 : index
    %375 = vector.load %arg2[%c0_130, %c0_131] : memref<128x512xf32, #tpu.memory_space<vmem>>, vector<128x512xf32>
    %cst_132 = arith.constant dense<0.000000e+00> : vector<8x512xf32>
    %376 = tpu.matmul %346, %375, %cst_132 {dimension_numbers = #tpu.dot_dimension_numbers<[1], [0], [0], [1], [0, 0, 1, 1], [], []>} : vector<8x128xf32>, vector<128x512xf32>, vector<8x512xf32> -> vector<8x512xf32>
    %377 = arith.addf %374, %376 : vector<8x512xf32>
    %c8_133 = arith.constant 8 : index
    %c0_134 = arith.constant 0 : index
    %378 = vector.load %arg27[%c8_133, %c0_134] : memref<64x512xf32, #tpu.memory_space<vmem>>, vector<8x512xf32>
    %c0_135 = arith.constant 0 : index
    %c0_136 = arith.constant 0 : index
    %379 = vector.load %arg5[%c0_135, %c0_136] : memref<128x512xf32, #tpu.memory_space<vmem>>, vector<128x512xf32>
    %cst_137 = arith.constant dense<0.000000e+00> : vector<8x512xf32>
    %380 = tpu.matmul %371, %379, %cst_137 {dimension_numbers = #tpu.dot_dimension_numbers<[1], [0], [0], [1], [0, 0, 1, 1], [], []>} : vector<8x128xf32>, vector<128x512xf32>, vector<8x512xf32> -> vector<8x512xf32>
    %381 = arith.addf %378, %380 : vector<8x512xf32>
    %382 = vector.extract_strided_slice %377 {offsets = [0, 0], sizes = [8, 128], strides = [1, 1]} : vector<8x512xf32> to vector<8x128xf32>
    %383 = arith.negf %382 : vector<8x128xf32>
    %384 = math.exp %383 : vector<8x128xf32>
    %cst_138 = arith.constant 1.000000e+00 : f32
    %385 = vector.broadcast %cst_138 : f32 to vector<8x128xf32>
    %386 = arith.addf %385, %384 : vector<8x128xf32>
    %387 = arith.divf %385, %386 : vector<8x128xf32>
    %388 = vector.extract_strided_slice %377 {offsets = [0, 128], sizes = [8, 128], strides = [1, 1]} : vector<8x512xf32> to vector<8x128xf32>
    %389 = arith.negf %388 : vector<8x128xf32>
    %390 = math.exp %389 : vector<8x128xf32>
    %cst_139 = arith.constant 1.000000e+00 : f32
    %391 = vector.broadcast %cst_139 : f32 to vector<8x128xf32>
    %392 = arith.addf %391, %390 : vector<8x128xf32>
    %393 = arith.divf %391, %392 : vector<8x128xf32>
    %394 = vector.extract_strided_slice %377 {offsets = [0, 256], sizes = [8, 128], strides = [1, 1]} : vector<8x512xf32> to vector<8x128xf32>
    %395 = math.tanh %394 : vector<8x128xf32>
    %396 = vector.extract_strided_slice %377 {offsets = [0, 384], sizes = [8, 128], strides = [1, 1]} : vector<8x512xf32> to vector<8x128xf32>
    %397 = arith.negf %396 : vector<8x128xf32>
    %398 = math.exp %397 : vector<8x128xf32>
    %cst_140 = arith.constant 1.000000e+00 : f32
    %399 = vector.broadcast %cst_140 : f32 to vector<8x128xf32>
    %400 = arith.addf %399, %398 : vector<8x128xf32>
    %401 = arith.divf %399, %400 : vector<8x128xf32>
    %402 = arith.mulf %393, %344 : vector<8x128xf32>
    %403 = arith.mulf %387, %395 : vector<8x128xf32>
    %404 = arith.addf %402, %403 : vector<8x128xf32>
    %405 = math.tanh %404 : vector<8x128xf32>
    %406 = arith.mulf %401, %405 : vector<8x128xf32>
    %407 = vector.extract_strided_slice %381 {offsets = [0, 0], sizes = [8, 128], strides = [1, 1]} : vector<8x512xf32> to vector<8x128xf32>
    %408 = arith.negf %407 : vector<8x128xf32>
    %409 = math.exp %408 : vector<8x128xf32>
    %cst_141 = arith.constant 1.000000e+00 : f32
    %410 = vector.broadcast %cst_141 : f32 to vector<8x128xf32>
    %411 = arith.addf %410, %409 : vector<8x128xf32>
    %412 = arith.divf %410, %411 : vector<8x128xf32>
    %413 = vector.extract_strided_slice %381 {offsets = [0, 128], sizes = [8, 128], strides = [1, 1]} : vector<8x512xf32> to vector<8x128xf32>
    %414 = arith.negf %413 : vector<8x128xf32>
    %415 = math.exp %414 : vector<8x128xf32>
    %cst_142 = arith.constant 1.000000e+00 : f32
    %416 = vector.broadcast %cst_142 : f32 to vector<8x128xf32>
    %417 = arith.addf %416, %415 : vector<8x128xf32>
    %418 = arith.divf %416, %417 : vector<8x128xf32>
    %419 = vector.extract_strided_slice %381 {offsets = [0, 256], sizes = [8, 128], strides = [1, 1]} : vector<8x512xf32> to vector<8x128xf32>
    %420 = math.tanh %419 : vector<8x128xf32>
    %421 = vector.extract_strided_slice %381 {offsets = [0, 384], sizes = [8, 128], strides = [1, 1]} : vector<8x512xf32> to vector<8x128xf32>
    %422 = arith.negf %421 : vector<8x128xf32>
    %423 = math.exp %422 : vector<8x128xf32>
    %cst_143 = arith.constant 1.000000e+00 : f32
    %424 = vector.broadcast %cst_143 : f32 to vector<8x128xf32>
    %425 = arith.addf %424, %423 : vector<8x128xf32>
    %426 = arith.divf %424, %425 : vector<8x128xf32>
    %427 = arith.mulf %418, %369 : vector<8x128xf32>
    %428 = arith.mulf %412, %420 : vector<8x128xf32>
    %429 = arith.addf %427, %428 : vector<8x128xf32>
    %430 = math.tanh %429 : vector<8x128xf32>
    %431 = arith.mulf %426, %430 : vector<8x128xf32>
    %c48_144 = arith.constant 48 : index
    %c0_145 = arith.constant 0 : index
    %432 = vector.load %arg29[%c48_144, %c0_145] : memref<64x128xf32, #tpu.memory_space<vmem>>, vector<8x128xf32>
    tpu.vector_store %arg29[%c48_144, %c0_145], %406 {strides = array<i32>} : memref<64x128xf32, #tpu.memory_space<vmem>>, vector<8x128xf32>,
    %c8_146 = arith.constant 8 : index
    %c0_147 = arith.constant 0 : index
    %433 = vector.load %arg30[%c8_146, %c0_147] : memref<64x128xf32, #tpu.memory_space<vmem>>, vector<8x128xf32>
    tpu.vector_store %arg30[%c8_146, %c0_147], %431 {strides = array<i32>} : memref<64x128xf32, #tpu.memory_space<vmem>>, vector<8x128xf32>,
    %c56_148 = arith.constant 56 : index
    %c0_149 = arith.constant 0 : index
    %434 = vector.load %arg26[%c56_148, %c0_149] : memref<64x512xf32, #tpu.memory_space<vmem>>, vector<8x512xf32>
    %c0_150 = arith.constant 0 : index
    %c0_151 = arith.constant 0 : index
    %435 = vector.load %arg2[%c0_150, %c0_151] : memref<128x512xf32, #tpu.memory_space<vmem>>, vector<128x512xf32>
    %cst_152 = arith.constant dense<0.000000e+00> : vector<8x512xf32>
    %436 = tpu.matmul %406, %435, %cst_152 {dimension_numbers = #tpu.dot_dimension_numbers<[1], [0], [0], [1], [0, 0, 1, 1], [], []>} : vector<8x128xf32>, vector<128x512xf32>, vector<8x512xf32> -> vector<8x512xf32>
    %437 = arith.addf %434, %436 : vector<8x512xf32>
    %c0_153 = arith.constant 0 : index
    %c0_154 = arith.constant 0 : index
    %438 = vector.load %arg27[%c0_153, %c0_154] : memref<64x512xf32, #tpu.memory_space<vmem>>, vector<8x512xf32>
    %c0_155 = arith.constant 0 : index
    %c0_156 = arith.constant 0 : index
    %439 = vector.load %arg5[%c0_155, %c0_156] : memref<128x512xf32, #tpu.memory_space<vmem>>, vector<128x512xf32>
    %cst_157 = arith.constant dense<0.000000e+00> : vector<8x512xf32>
    %440 = tpu.matmul %431, %439, %cst_157 {dimension_numbers = #tpu.dot_dimension_numbers<[1], [0], [0], [1], [0, 0, 1, 1], [], []>} : vector<8x128xf32>, vector<128x512xf32>, vector<8x512xf32> -> vector<8x512xf32>
    %441 = arith.addf %438, %440 : vector<8x512xf32>
    %442 = vector.extract_strided_slice %437 {offsets = [0, 0], sizes = [8, 128], strides = [1, 1]} : vector<8x512xf32> to vector<8x128xf32>
    %443 = arith.negf %442 : vector<8x128xf32>
    %444 = math.exp %443 : vector<8x128xf32>
    %cst_158 = arith.constant 1.000000e+00 : f32
    %445 = vector.broadcast %cst_158 : f32 to vector<8x128xf32>
    %446 = arith.addf %445, %444 : vector<8x128xf32>
    %447 = arith.divf %445, %446 : vector<8x128xf32>
    %448 = vector.extract_strided_slice %437 {offsets = [0, 128], sizes = [8, 128], strides = [1, 1]} : vector<8x512xf32> to vector<8x128xf32>
    %449 = arith.negf %448 : vector<8x128xf32>
    %450 = math.exp %449 : vector<8x128xf32>
    %cst_159 = arith.constant 1.000000e+00 : f32
    %451 = vector.broadcast %cst_159 : f32 to vector<8x128xf32>
    %452 = arith.addf %451, %450 : vector<8x128xf32>
    %453 = arith.divf %451, %452 : vector<8x128xf32>
    %454 = vector.extract_strided_slice %437 {offsets = [0, 256], sizes = [8, 128], strides = [1, 1]} : vector<8x512xf32> to vector<8x128xf32>
    %455 = math.tanh %454 : vector<8x128xf32>
    %456 = vector.extract_strided_slice %437 {offsets = [0, 384], sizes = [8, 128], strides = [1, 1]} : vector<8x512xf32> to vector<8x128xf32>
    %457 = arith.negf %456 : vector<8x128xf32>
    %458 = math.exp %457 : vector<8x128xf32>
    %cst_160 = arith.constant 1.000000e+00 : f32
    %459 = vector.broadcast %cst_160 : f32 to vector<8x128xf32>
    %460 = arith.addf %459, %458 : vector<8x128xf32>
    %461 = arith.divf %459, %460 : vector<8x128xf32>
    %462 = arith.mulf %453, %404 : vector<8x128xf32>
    %463 = arith.mulf %447, %455 : vector<8x128xf32>
    %464 = arith.addf %462, %463 : vector<8x128xf32>
    %465 = math.tanh %464 : vector<8x128xf32>
    %466 = arith.mulf %461, %465 : vector<8x128xf32>
    %467 = vector.extract_strided_slice %441 {offsets = [0, 0], sizes = [8, 128], strides = [1, 1]} : vector<8x512xf32> to vector<8x128xf32>
    %468 = arith.negf %467 : vector<8x128xf32>
    %469 = math.exp %468 : vector<8x128xf32>
    %cst_161 = arith.constant 1.000000e+00 : f32
    %470 = vector.broadcast %cst_161 : f32 to vector<8x128xf32>
    %471 = arith.addf %470, %469 : vector<8x128xf32>
    %472 = arith.divf %470, %471 : vector<8x128xf32>
    %473 = vector.extract_strided_slice %441 {offsets = [0, 128], sizes = [8, 128], strides = [1, 1]} : vector<8x512xf32> to vector<8x128xf32>
    %474 = arith.negf %473 : vector<8x128xf32>
    %475 = math.exp %474 : vector<8x128xf32>
    %cst_162 = arith.constant 1.000000e+00 : f32
    %476 = vector.broadcast %cst_162 : f32 to vector<8x128xf32>
    %477 = arith.addf %476, %475 : vector<8x128xf32>
    %478 = arith.divf %476, %477 : vector<8x128xf32>
    %479 = vector.extract_strided_slice %441 {offsets = [0, 256], sizes = [8, 128], strides = [1, 1]} : vector<8x512xf32> to vector<8x128xf32>
    %480 = math.tanh %479 : vector<8x128xf32>
    %481 = vector.extract_strided_slice %441 {offsets = [0, 384], sizes = [8, 128], strides = [1, 1]} : vector<8x512xf32> to vector<8x128xf32>
    %482 = arith.negf %481 : vector<8x128xf32>
    %483 = math.exp %482 : vector<8x128xf32>
    %cst_163 = arith.constant 1.000000e+00 : f32
    %484 = vector.broadcast %cst_163 : f32 to vector<8x128xf32>
    %485 = arith.addf %484, %483 : vector<8x128xf32>
    %486 = arith.divf %484, %485 : vector<8x128xf32>
    %487 = arith.mulf %478, %429 : vector<8x128xf32>
    %488 = arith.mulf %472, %480 : vector<8x128xf32>
    %489 = arith.addf %487, %488 : vector<8x128xf32>
    %490 = math.tanh %489 : vector<8x128xf32>
    %491 = arith.mulf %486, %490 : vector<8x128xf32>
    %c56_164 = arith.constant 56 : index
    %c0_165 = arith.constant 0 : index
    %492 = vector.load %arg29[%c56_164, %c0_165] : memref<64x128xf32, #tpu.memory_space<vmem>>, vector<8x128xf32>
    tpu.vector_store %arg29[%c56_164, %c0_165], %466 {strides = array<i32>} : memref<64x128xf32, #tpu.memory_space<vmem>>, vector<8x128xf32>,
    %c0_166 = arith.constant 0 : index
    %c0_167 = arith.constant 0 : index
    %493 = vector.load %arg30[%c0_166, %c0_167] : memref<64x128xf32, #tpu.memory_space<vmem>>, vector<8x128xf32>
    tpu.vector_store %arg30[%c0_166, %c0_167], %491 {strides = array<i32>} : memref<64x128xf32, #tpu.memory_space<vmem>>, vector<8x128xf32>,
    %c0_168 = arith.constant 0 : index
    %c0_169 = arith.constant 0 : index
    %494 = vector.load %arg29[%c0_168, %c0_169] : memref<64x128xf32, #tpu.memory_space<vmem>>, vector<64x128xf32>
    %c0_170 = arith.constant 0 : index
    %c0_171 = arith.constant 0 : index
    %495 = vector.load %arg7[%c0_170, %c0_171] : memref<128x512xf32, #tpu.memory_space<vmem>>, vector<128x512xf32>
    %cst_172 = arith.constant dense<0.000000e+00> : vector<64x512xf32>
    %496 = tpu.matmul %494, %495, %cst_172 {dimension_numbers = #tpu.dot_dimension_numbers<[1], [0], [0], [1], [0, 0, 1, 1], [], []>} : vector<64x128xf32>, vector<128x512xf32>, vector<64x512xf32> -> vector<64x512xf32>
    %c0_173 = arith.constant 0 : index
    %c0_174 = arith.constant 0 : index
    %497 = vector.load %arg30[%c0_173, %c0_174] : memref<64x128xf32, #tpu.memory_space<vmem>>, vector<64x128xf32>
    %c0_175 = arith.constant 0 : index
    %c0_176 = arith.constant 0 : index
    %498 = vector.load %arg8[%c0_175, %c0_176] : memref<128x512xf32, #tpu.memory_space<vmem>>, vector<128x512xf32>
    %cst_177 = arith.constant dense<0.000000e+00> : vector<64x512xf32>
    %499 = tpu.matmul %497, %498, %cst_177 {dimension_numbers = #tpu.dot_dimension_numbers<[1], [0], [0], [1], [0, 0, 1, 1], [], []>} : vector<64x128xf32>, vector<128x512xf32>, vector<64x512xf32> -> vector<64x512xf32>
    %500 = arith.addf %496, %499 : vector<64x512xf32>
    %c0_178 = arith.constant 0 : index
    %c0_179 = arith.constant 0 : index
    %501 = vector.load %arg10[%c0_178, %c0_179] : memref<1x512xf32, #tpu.memory_space<vmem>>, vector<1x512xf32>
    %502 = vector.broadcast %501 : vector<1x512xf32> to vector<64x512xf32>
    %503 = arith.addf %500, %502 : vector<64x512xf32>
    %c0_180 = arith.constant 0 : index
    %c0_181 = arith.constant 0 : index
    %504 = vector.load %arg28[%c0_180, %c0_181] : memref<64x512xf32, #tpu.memory_space<vmem>>, vector<64x512xf32>
    tpu.vector_store %arg28[%c0_180, %c0_181], %503 {strides = array<i32>} : memref<64x512xf32, #tpu.memory_space<vmem>>, vector<64x512xf32>,
    %c0_182 = arith.constant 0 : index
    %c0_183 = arith.constant 0 : index
    %505 = vector.load %arg28[%c0_182, %c0_183] : memref<64x512xf32, #tpu.memory_space<vmem>>, vector<8x512xf32>
    %c0_184 = arith.constant 0 : index
    %c0_185 = arith.constant 0 : index
    %506 = vector.load %arg9[%c0_184, %c0_185] : memref<128x512xf32, #tpu.memory_space<vmem>>, vector<128x512xf32>
    %cst_186 = arith.constant dense<0.000000e+00> : vector<8x512xf32>
    %507 = tpu.matmul %13, %506, %cst_186 {dimension_numbers = #tpu.dot_dimension_numbers<[1], [0], [0], [1], [0, 0, 1, 1], [], []>} : vector<8x128xf32>, vector<128x512xf32>, vector<8x512xf32> -> vector<8x512xf32>
    %508 = arith.addf %505, %507 : vector<8x512xf32>
    %509 = vector.extract_strided_slice %508 {offsets = [0, 0], sizes = [8, 128], strides = [1, 1]} : vector<8x512xf32> to vector<8x128xf32>
    %510 = arith.negf %509 : vector<8x128xf32>
    %511 = math.exp %510 : vector<8x128xf32>
    %cst_187 = arith.constant 1.000000e+00 : f32
    %512 = vector.broadcast %cst_187 : f32 to vector<8x128xf32>
    %513 = arith.addf %512, %511 : vector<8x128xf32>
    %514 = arith.divf %512, %513 : vector<8x128xf32>
    %515 = vector.extract_strided_slice %508 {offsets = [0, 128], sizes = [8, 128], strides = [1, 1]} : vector<8x512xf32> to vector<8x128xf32>
    %516 = arith.negf %515 : vector<8x128xf32>
    %517 = math.exp %516 : vector<8x128xf32>
    %cst_188 = arith.constant 1.000000e+00 : f32
    %518 = vector.broadcast %cst_188 : f32 to vector<8x128xf32>
    %519 = arith.addf %518, %517 : vector<8x128xf32>
    %520 = arith.divf %518, %519 : vector<8x128xf32>
    %521 = vector.extract_strided_slice %508 {offsets = [0, 256], sizes = [8, 128], strides = [1, 1]} : vector<8x512xf32> to vector<8x128xf32>
    %522 = math.tanh %521 : vector<8x128xf32>
    %523 = vector.extract_strided_slice %508 {offsets = [0, 384], sizes = [8, 128], strides = [1, 1]} : vector<8x512xf32> to vector<8x128xf32>
    %524 = arith.negf %523 : vector<8x128xf32>
    %525 = math.exp %524 : vector<8x128xf32>
    %cst_189 = arith.constant 1.000000e+00 : f32
    %526 = vector.broadcast %cst_189 : f32 to vector<8x128xf32>
    %527 = arith.addf %526, %525 : vector<8x128xf32>
    %528 = arith.divf %526, %527 : vector<8x128xf32>
    %529 = arith.mulf %520, %13 : vector<8x128xf32>
    %530 = arith.mulf %514, %522 : vector<8x128xf32>
    %531 = arith.addf %529, %530 : vector<8x128xf32>
    %532 = math.tanh %531 : vector<8x128xf32>
    %533 = arith.mulf %528, %532 : vector<8x128xf32>
    %c0_190 = arith.constant 0 : index
    %c0_191 = arith.constant 0 : index
    %534 = vector.load %arg31[%c0_190, %c0_191] : memref<64x128xf32, #tpu.memory_space<vmem>>, vector<8x128xf32>
    tpu.vector_store %arg31[%c0_190, %c0_191], %533 {strides = array<i32>} : memref<64x128xf32, #tpu.memory_space<vmem>>, vector<8x128xf32>,
    %c8_192 = arith.constant 8 : index
    %c0_193 = arith.constant 0 : index
    %535 = vector.load %arg28[%c8_192, %c0_193] : memref<64x512xf32, #tpu.memory_space<vmem>>, vector<8x512xf32>
    %c0_194 = arith.constant 0 : index
    %c0_195 = arith.constant 0 : index
    %536 = vector.load %arg9[%c0_194, %c0_195] : memref<128x512xf32, #tpu.memory_space<vmem>>, vector<128x512xf32>
    %cst_196 = arith.constant dense<0.000000e+00> : vector<8x512xf32>
    %537 = tpu.matmul %533, %536, %cst_196 {dimension_numbers = #tpu.dot_dimension_numbers<[1], [0], [0], [1], [0, 0, 1, 1], [], []>} : vector<8x128xf32>, vector<128x512xf32>, vector<8x512xf32> -> vector<8x512xf32>
    %538 = arith.addf %535, %537 : vector<8x512xf32>
    %539 = vector.extract_strided_slice %538 {offsets = [0, 0], sizes = [8, 128], strides = [1, 1]} : vector<8x512xf32> to vector<8x128xf32>
    %540 = arith.negf %539 : vector<8x128xf32>
    %541 = math.exp %540 : vector<8x128xf32>
    %cst_197 = arith.constant 1.000000e+00 : f32
    %542 = vector.broadcast %cst_197 : f32 to vector<8x128xf32>
    %543 = arith.addf %542, %541 : vector<8x128xf32>
    %544 = arith.divf %542, %543 : vector<8x128xf32>
    %545 = vector.extract_strided_slice %538 {offsets = [0, 128], sizes = [8, 128], strides = [1, 1]} : vector<8x512xf32> to vector<8x128xf32>
    %546 = arith.negf %545 : vector<8x128xf32>
    %547 = math.exp %546 : vector<8x128xf32>
    %cst_198 = arith.constant 1.000000e+00 : f32
    %548 = vector.broadcast %cst_198 : f32 to vector<8x128xf32>
    %549 = arith.addf %548, %547 : vector<8x128xf32>
    %550 = arith.divf %548, %549 : vector<8x128xf32>
    %551 = vector.extract_strided_slice %538 {offsets = [0, 256], sizes = [8, 128], strides = [1, 1]} : vector<8x512xf32> to vector<8x128xf32>
    %552 = math.tanh %551 : vector<8x128xf32>
    %553 = vector.extract_strided_slice %538 {offsets = [0, 384], sizes = [8, 128], strides = [1, 1]} : vector<8x512xf32> to vector<8x128xf32>
    %554 = arith.negf %553 : vector<8x128xf32>
    %555 = math.exp %554 : vector<8x128xf32>
    %cst_199 = arith.constant 1.000000e+00 : f32
    %556 = vector.broadcast %cst_199 : f32 to vector<8x128xf32>
    %557 = arith.addf %556, %555 : vector<8x128xf32>
    %558 = arith.divf %556, %557 : vector<8x128xf32>
    %559 = arith.mulf %550, %531 : vector<8x128xf32>
    %560 = arith.mulf %544, %552 : vector<8x128xf32>
    %561 = arith.addf %559, %560 : vector<8x128xf32>
    %562 = math.tanh %561 : vector<8x128xf32>
    %563 = arith.mulf %558, %562 : vector<8x128xf32>
    %c8_200 = arith.constant 8 : index
    %c0_201 = arith.constant 0 : index
    %564 = vector.load %arg31[%c8_200, %c0_201] : memref<64x128xf32, #tpu.memory_space<vmem>>, vector<8x128xf32>
    tpu.vector_store %arg31[%c8_200, %c0_201], %563 {strides = array<i32>} : memref<64x128xf32, #tpu.memory_space<vmem>>, vector<8x128xf32>,
    %c16_202 = arith.constant 16 : index
    %c0_203 = arith.constant 0 : index
    %565 = vector.load %arg28[%c16_202, %c0_203] : memref<64x512xf32, #tpu.memory_space<vmem>>, vector<8x512xf32>
    %c0_204 = arith.constant 0 : index
    %c0_205 = arith.constant 0 : index
    %566 = vector.load %arg9[%c0_204, %c0_205] : memref<128x512xf32, #tpu.memory_space<vmem>>, vector<128x512xf32>
    %cst_206 = arith.constant dense<0.000000e+00> : vector<8x512xf32>
    %567 = tpu.matmul %563, %566, %cst_206 {dimension_numbers = #tpu.dot_dimension_numbers<[1], [0], [0], [1], [0, 0, 1, 1], [], []>} : vector<8x128xf32>, vector<128x512xf32>, vector<8x512xf32> -> vector<8x512xf32>
    %568 = arith.addf %565, %567 : vector<8x512xf32>
    %569 = vector.extract_strided_slice %568 {offsets = [0, 0], sizes = [8, 128], strides = [1, 1]} : vector<8x512xf32> to vector<8x128xf32>
    %570 = arith.negf %569 : vector<8x128xf32>
    %571 = math.exp %570 : vector<8x128xf32>
    %cst_207 = arith.constant 1.000000e+00 : f32
    %572 = vector.broadcast %cst_207 : f32 to vector<8x128xf32>
    %573 = arith.addf %572, %571 : vector<8x128xf32>
    %574 = arith.divf %572, %573 : vector<8x128xf32>
    %575 = vector.extract_strided_slice %568 {offsets = [0, 128], sizes = [8, 128], strides = [1, 1]} : vector<8x512xf32> to vector<8x128xf32>
    %576 = arith.negf %575 : vector<8x128xf32>
    %577 = math.exp %576 : vector<8x128xf32>
    %cst_208 = arith.constant 1.000000e+00 : f32
    %578 = vector.broadcast %cst_208 : f32 to vector<8x128xf32>
    %579 = arith.addf %578, %577 : vector<8x128xf32>
    %580 = arith.divf %578, %579 : vector<8x128xf32>
    %581 = vector.extract_strided_slice %568 {offsets = [0, 256], sizes = [8, 128], strides = [1, 1]} : vector<8x512xf32> to vector<8x128xf32>
    %582 = math.tanh %581 : vector<8x128xf32>
    %583 = vector.extract_strided_slice %568 {offsets = [0, 384], sizes = [8, 128], strides = [1, 1]} : vector<8x512xf32> to vector<8x128xf32>
    %584 = arith.negf %583 : vector<8x128xf32>
    %585 = math.exp %584 : vector<8x128xf32>
    %cst_209 = arith.constant 1.000000e+00 : f32
    %586 = vector.broadcast %cst_209 : f32 to vector<8x128xf32>
    %587 = arith.addf %586, %585 : vector<8x128xf32>
    %588 = arith.divf %586, %587 : vector<8x128xf32>
    %589 = arith.mulf %580, %561 : vector<8x128xf32>
    %590 = arith.mulf %574, %582 : vector<8x128xf32>
    %591 = arith.addf %589, %590 : vector<8x128xf32>
    %592 = math.tanh %591 : vector<8x128xf32>
    %593 = arith.mulf %588, %592 : vector<8x128xf32>
    %c16_210 = arith.constant 16 : index
    %c0_211 = arith.constant 0 : index
    %594 = vector.load %arg31[%c16_210, %c0_211] : memref<64x128xf32, #tpu.memory_space<vmem>>, vector<8x128xf32>
    tpu.vector_store %arg31[%c16_210, %c0_211], %593 {strides = array<i32>} : memref<64x128xf32, #tpu.memory_space<vmem>>, vector<8x128xf32>,
    %c24_212 = arith.constant 24 : index
    %c0_213 = arith.constant 0 : index
    %595 = vector.load %arg28[%c24_212, %c0_213] : memref<64x512xf32, #tpu.memory_space<vmem>>, vector<8x512xf32>
    %c0_214 = arith.constant 0 : index
    %c0_215 = arith.constant 0 : index
    %596 = vector.load %arg9[%c0_214, %c0_215] : memref<128x512xf32, #tpu.memory_space<vmem>>, vector<128x512xf32>
    %cst_216 = arith.constant dense<0.000000e+00> : vector<8x512xf32>
    %597 = tpu.matmul %593, %596, %cst_216 {dimension_numbers = #tpu.dot_dimension_numbers<[1], [0], [0], [1], [0, 0, 1, 1], [], []>} : vector<8x128xf32>, vector<128x512xf32>, vector<8x512xf32> -> vector<8x512xf32>
    %598 = arith.addf %595, %597 : vector<8x512xf32>
    %599 = vector.extract_strided_slice %598 {offsets = [0, 0], sizes = [8, 128], strides = [1, 1]} : vector<8x512xf32> to vector<8x128xf32>
    %600 = arith.negf %599 : vector<8x128xf32>
    %601 = math.exp %600 : vector<8x128xf32>
    %cst_217 = arith.constant 1.000000e+00 : f32
    %602 = vector.broadcast %cst_217 : f32 to vector<8x128xf32>
    %603 = arith.addf %602, %601 : vector<8x128xf32>
    %604 = arith.divf %602, %603 : vector<8x128xf32>
    %605 = vector.extract_strided_slice %598 {offsets = [0, 128], sizes = [8, 128], strides = [1, 1]} : vector<8x512xf32> to vector<8x128xf32>
    %606 = arith.negf %605 : vector<8x128xf32>
    %607 = math.exp %606 : vector<8x128xf32>
    %cst_218 = arith.constant 1.000000e+00 : f32
    %608 = vector.broadcast %cst_218 : f32 to vector<8x128xf32>
    %609 = arith.addf %608, %607 : vector<8x128xf32>
    %610 = arith.divf %608, %609 : vector<8x128xf32>
    %611 = vector.extract_strided_slice %598 {offsets = [0, 256], sizes = [8, 128], strides = [1, 1]} : vector<8x512xf32> to vector<8x128xf32>
    %612 = math.tanh %611 : vector<8x128xf32>
    %613 = vector.extract_strided_slice %598 {offsets = [0, 384], sizes = [8, 128], strides = [1, 1]} : vector<8x512xf32> to vector<8x128xf32>
    %614 = arith.negf %613 : vector<8x128xf32>
    %615 = math.exp %614 : vector<8x128xf32>
    %cst_219 = arith.constant 1.000000e+00 : f32
    %616 = vector.broadcast %cst_219 : f32 to vector<8x128xf32>
    %617 = arith.addf %616, %615 : vector<8x128xf32>
    %618 = arith.divf %616, %617 : vector<8x128xf32>
    %619 = arith.mulf %610, %591 : vector<8x128xf32>
    %620 = arith.mulf %604, %612 : vector<8x128xf32>
    %621 = arith.addf %619, %620 : vector<8x128xf32>
    %622 = math.tanh %621 : vector<8x128xf32>
    %623 = arith.mulf %618, %622 : vector<8x128xf32>
    %c24_220 = arith.constant 24 : index
    %c0_221 = arith.constant 0 : index
    %624 = vector.load %arg31[%c24_220, %c0_221] : memref<64x128xf32, #tpu.memory_space<vmem>>, vector<8x128xf32>
    tpu.vector_store %arg31[%c24_220, %c0_221], %623 {strides = array<i32>} : memref<64x128xf32, #tpu.memory_space<vmem>>, vector<8x128xf32>,
    %c32_222 = arith.constant 32 : index
    %c0_223 = arith.constant 0 : index
    %625 = vector.load %arg28[%c32_222, %c0_223] : memref<64x512xf32, #tpu.memory_space<vmem>>, vector<8x512xf32>
    %c0_224 = arith.constant 0 : index
    %c0_225 = arith.constant 0 : index
    %626 = vector.load %arg9[%c0_224, %c0_225] : memref<128x512xf32, #tpu.memory_space<vmem>>, vector<128x512xf32>
    %cst_226 = arith.constant dense<0.000000e+00> : vector<8x512xf32>
    %627 = tpu.matmul %623, %626, %cst_226 {dimension_numbers = #tpu.dot_dimension_numbers<[1], [0], [0], [1], [0, 0, 1, 1], [], []>} : vector<8x128xf32>, vector<128x512xf32>, vector<8x512xf32> -> vector<8x512xf32>
    %628 = arith.addf %625, %627 : vector<8x512xf32>
    %629 = vector.extract_strided_slice %628 {offsets = [0, 0], sizes = [8, 128], strides = [1, 1]} : vector<8x512xf32> to vector<8x128xf32>
    %630 = arith.negf %629 : vector<8x128xf32>
    %631 = math.exp %630 : vector<8x128xf32>
    %cst_227 = arith.constant 1.000000e+00 : f32
    %632 = vector.broadcast %cst_227 : f32 to vector<8x128xf32>
    %633 = arith.addf %632, %631 : vector<8x128xf32>
    %634 = arith.divf %632, %633 : vector<8x128xf32>
    %635 = vector.extract_strided_slice %628 {offsets = [0, 128], sizes = [8, 128], strides = [1, 1]} : vector<8x512xf32> to vector<8x128xf32>
    %636 = arith.negf %635 : vector<8x128xf32>
    %637 = math.exp %636 : vector<8x128xf32>
    %cst_228 = arith.constant 1.000000e+00 : f32
    %638 = vector.broadcast %cst_228 : f32 to vector<8x128xf32>
    %639 = arith.addf %638, %637 : vector<8x128xf32>
    %640 = arith.divf %638, %639 : vector<8x128xf32>
    %641 = vector.extract_strided_slice %628 {offsets = [0, 256], sizes = [8, 128], strides = [1, 1]} : vector<8x512xf32> to vector<8x128xf32>
    %642 = math.tanh %641 : vector<8x128xf32>
    %643 = vector.extract_strided_slice %628 {offsets = [0, 384], sizes = [8, 128], strides = [1, 1]} : vector<8x512xf32> to vector<8x128xf32>
    %644 = arith.negf %643 : vector<8x128xf32>
    %645 = math.exp %644 : vector<8x128xf32>
    %cst_229 = arith.constant 1.000000e+00 : f32
    %646 = vector.broadcast %cst_229 : f32 to vector<8x128xf32>
    %647 = arith.addf %646, %645 : vector<8x128xf32>
    %648 = arith.divf %646, %647 : vector<8x128xf32>
    %649 = arith.mulf %640, %621 : vector<8x128xf32>
    %650 = arith.mulf %634, %642 : vector<8x128xf32>
    %651 = arith.addf %649, %650 : vector<8x128xf32>
    %652 = math.tanh %651 : vector<8x128xf32>
    %653 = arith.mulf %648, %652 : vector<8x128xf32>
    %c32_230 = arith.constant 32 : index
    %c0_231 = arith.constant 0 : index
    %654 = vector.load %arg31[%c32_230, %c0_231] : memref<64x128xf32, #tpu.memory_space<vmem>>, vector<8x128xf32>
    tpu.vector_store %arg31[%c32_230, %c0_231], %653 {strides = array<i32>} : memref<64x128xf32, #tpu.memory_space<vmem>>, vector<8x128xf32>,
    %c40_232 = arith.constant 40 : index
    %c0_233 = arith.constant 0 : index
    %655 = vector.load %arg28[%c40_232, %c0_233] : memref<64x512xf32, #tpu.memory_space<vmem>>, vector<8x512xf32>
    %c0_234 = arith.constant 0 : index
    %c0_235 = arith.constant 0 : index
    %656 = vector.load %arg9[%c0_234, %c0_235] : memref<128x512xf32, #tpu.memory_space<vmem>>, vector<128x512xf32>
    %cst_236 = arith.constant dense<0.000000e+00> : vector<8x512xf32>
    %657 = tpu.matmul %653, %656, %cst_236 {dimension_numbers = #tpu.dot_dimension_numbers<[1], [0], [0], [1], [0, 0, 1, 1], [], []>} : vector<8x128xf32>, vector<128x512xf32>, vector<8x512xf32> -> vector<8x512xf32>
    %658 = arith.addf %655, %657 : vector<8x512xf32>
    %659 = vector.extract_strided_slice %658 {offsets = [0, 0], sizes = [8, 128], strides = [1, 1]} : vector<8x512xf32> to vector<8x128xf32>
    %660 = arith.negf %659 : vector<8x128xf32>
    %661 = math.exp %660 : vector<8x128xf32>
    %cst_237 = arith.constant 1.000000e+00 : f32
    %662 = vector.broadcast %cst_237 : f32 to vector<8x128xf32>
    %663 = arith.addf %662, %661 : vector<8x128xf32>
    %664 = arith.divf %662, %663 : vector<8x128xf32>
    %665 = vector.extract_strided_slice %658 {offsets = [0, 128], sizes = [8, 128], strides = [1, 1]} : vector<8x512xf32> to vector<8x128xf32>
    %666 = arith.negf %665 : vector<8x128xf32>
    %667 = math.exp %666 : vector<8x128xf32>
    %cst_238 = arith.constant 1.000000e+00 : f32
    %668 = vector.broadcast %cst_238 : f32 to vector<8x128xf32>
    %669 = arith.addf %668, %667 : vector<8x128xf32>
    %670 = arith.divf %668, %669 : vector<8x128xf32>
    %671 = vector.extract_strided_slice %658 {offsets = [0, 256], sizes = [8, 128], strides = [1, 1]} : vector<8x512xf32> to vector<8x128xf32>
    %672 = math.tanh %671 : vector<8x128xf32>
    %673 = vector.extract_strided_slice %658 {offsets = [0, 384], sizes = [8, 128], strides = [1, 1]} : vector<8x512xf32> to vector<8x128xf32>
    %674 = arith.negf %673 : vector<8x128xf32>
    %675 = math.exp %674 : vector<8x128xf32>
    %cst_239 = arith.constant 1.000000e+00 : f32
    %676 = vector.broadcast %cst_239 : f32 to vector<8x128xf32>
    %677 = arith.addf %676, %675 : vector<8x128xf32>
    %678 = arith.divf %676, %677 : vector<8x128xf32>
    %679 = arith.mulf %670, %651 : vector<8x128xf32>
    %680 = arith.mulf %664, %672 : vector<8x128xf32>
    %681 = arith.addf %679, %680 : vector<8x128xf32>
    %682 = math.tanh %681 : vector<8x128xf32>
    %683 = arith.mulf %678, %682 : vector<8x128xf32>
    %c40_240 = arith.constant 40 : index
    %c0_241 = arith.constant 0 : index
    %684 = vector.load %arg31[%c40_240, %c0_241] : memref<64x128xf32, #tpu.memory_space<vmem>>, vector<8x128xf32>
    tpu.vector_store %arg31[%c40_240, %c0_241], %683 {strides = array<i32>} : memref<64x128xf32, #tpu.memory_space<vmem>>, vector<8x128xf32>,
    %c48_242 = arith.constant 48 : index
    %c0_243 = arith.constant 0 : index
    %685 = vector.load %arg28[%c48_242, %c0_243] : memref<64x512xf32, #tpu.memory_space<vmem>>, vector<8x512xf32>
    %c0_244 = arith.constant 0 : index
    %c0_245 = arith.constant 0 : index
    %686 = vector.load %arg9[%c0_244, %c0_245] : memref<128x512xf32, #tpu.memory_space<vmem>>, vector<128x512xf32>
    %cst_246 = arith.constant dense<0.000000e+00> : vector<8x512xf32>
    %687 = tpu.matmul %683, %686, %cst_246 {dimension_numbers = #tpu.dot_dimension_numbers<[1], [0], [0], [1], [0, 0, 1, 1], [], []>} : vector<8x128xf32>, vector<128x512xf32>, vector<8x512xf32> -> vector<8x512xf32>
    %688 = arith.addf %685, %687 : vector<8x512xf32>
    %689 = vector.extract_strided_slice %688 {offsets = [0, 0], sizes = [8, 128], strides = [1, 1]} : vector<8x512xf32> to vector<8x128xf32>
    %690 = arith.negf %689 : vector<8x128xf32>
    %691 = math.exp %690 : vector<8x128xf32>
    %cst_247 = arith.constant 1.000000e+00 : f32
    %692 = vector.broadcast %cst_247 : f32 to vector<8x128xf32>
    %693 = arith.addf %692, %691 : vector<8x128xf32>
    %694 = arith.divf %692, %693 : vector<8x128xf32>
    %695 = vector.extract_strided_slice %688 {offsets = [0, 128], sizes = [8, 128], strides = [1, 1]} : vector<8x512xf32> to vector<8x128xf32>
    %696 = arith.negf %695 : vector<8x128xf32>
    %697 = math.exp %696 : vector<8x128xf32>
    %cst_248 = arith.constant 1.000000e+00 : f32
    %698 = vector.broadcast %cst_248 : f32 to vector<8x128xf32>
    %699 = arith.addf %698, %697 : vector<8x128xf32>
    %700 = arith.divf %698, %699 : vector<8x128xf32>
    %701 = vector.extract_strided_slice %688 {offsets = [0, 256], sizes = [8, 128], strides = [1, 1]} : vector<8x512xf32> to vector<8x128xf32>
    %702 = math.tanh %701 : vector<8x128xf32>
    %703 = vector.extract_strided_slice %688 {offsets = [0, 384], sizes = [8, 128], strides = [1, 1]} : vector<8x512xf32> to vector<8x128xf32>
    %704 = arith.negf %703 : vector<8x128xf32>
    %705 = math.exp %704 : vector<8x128xf32>
    %cst_249 = arith.constant 1.000000e+00 : f32
    %706 = vector.broadcast %cst_249 : f32 to vector<8x128xf32>
    %707 = arith.addf %706, %705 : vector<8x128xf32>
    %708 = arith.divf %706, %707 : vector<8x128xf32>
    %709 = arith.mulf %700, %681 : vector<8x128xf32>
    %710 = arith.mulf %694, %702 : vector<8x128xf32>
    %711 = arith.addf %709, %710 : vector<8x128xf32>
    %712 = math.tanh %711 : vector<8x128xf32>
    %713 = arith.mulf %708, %712 : vector<8x128xf32>
    %c48_250 = arith.constant 48 : index
    %c0_251 = arith.constant 0 : index
    %714 = vector.load %arg31[%c48_250, %c0_251] : memref<64x128xf32, #tpu.memory_space<vmem>>, vector<8x128xf32>
    tpu.vector_store %arg31[%c48_250, %c0_251], %713 {strides = array<i32>} : memref<64x128xf32, #tpu.memory_space<vmem>>, vector<8x128xf32>,
    %c56_252 = arith.constant 56 : index
    %c0_253 = arith.constant 0 : index
    %715 = vector.load %arg28[%c56_252, %c0_253] : memref<64x512xf32, #tpu.memory_space<vmem>>, vector<8x512xf32>
    %c0_254 = arith.constant 0 : index
    %c0_255 = arith.constant 0 : index
    %716 = vector.load %arg9[%c0_254, %c0_255] : memref<128x512xf32, #tpu.memory_space<vmem>>, vector<128x512xf32>
    %cst_256 = arith.constant dense<0.000000e+00> : vector<8x512xf32>
    %717 = tpu.matmul %713, %716, %cst_256 {dimension_numbers = #tpu.dot_dimension_numbers<[1], [0], [0], [1], [0, 0, 1, 1], [], []>} : vector<8x128xf32>, vector<128x512xf32>, vector<8x512xf32> -> vector<8x512xf32>
    %718 = arith.addf %715, %717 : vector<8x512xf32>
    %719 = vector.extract_strided_slice %718 {offsets = [0, 0], sizes = [8, 128], strides = [1, 1]} : vector<8x512xf32> to vector<8x128xf32>
    %720 = arith.negf %719 : vector<8x128xf32>
    %721 = math.exp %720 : vector<8x128xf32>
    %cst_257 = arith.constant 1.000000e+00 : f32
    %722 = vector.broadcast %cst_257 : f32 to vector<8x128xf32>
    %723 = arith.addf %722, %721 : vector<8x128xf32>
    %724 = arith.divf %722, %723 : vector<8x128xf32>
    %725 = vector.extract_strided_slice %718 {offsets = [0, 128], sizes = [8, 128], strides = [1, 1]} : vector<8x512xf32> to vector<8x128xf32>
    %726 = arith.negf %725 : vector<8x128xf32>
    %727 = math.exp %726 : vector<8x128xf32>
    %cst_258 = arith.constant 1.000000e+00 : f32
    %728 = vector.broadcast %cst_258 : f32 to vector<8x128xf32>
    %729 = arith.addf %728, %727 : vector<8x128xf32>
    %730 = arith.divf %728, %729 : vector<8x128xf32>
    %731 = vector.extract_strided_slice %718 {offsets = [0, 256], sizes = [8, 128], strides = [1, 1]} : vector<8x512xf32> to vector<8x128xf32>
    %732 = math.tanh %731 : vector<8x128xf32>
    %733 = vector.extract_strided_slice %718 {offsets = [0, 384], sizes = [8, 128], strides = [1, 1]} : vector<8x512xf32> to vector<8x128xf32>
    %734 = arith.negf %733 : vector<8x128xf32>
    %735 = math.exp %734 : vector<8x128xf32>
    %cst_259 = arith.constant 1.000000e+00 : f32
    %736 = vector.broadcast %cst_259 : f32 to vector<8x128xf32>
    %737 = arith.addf %736, %735 : vector<8x128xf32>
    %738 = arith.divf %736, %737 : vector<8x128xf32>
    %739 = arith.mulf %730, %711 : vector<8x128xf32>
    %740 = arith.mulf %724, %732 : vector<8x128xf32>
    %741 = arith.addf %739, %740 : vector<8x128xf32>
    %742 = math.tanh %741 : vector<8x128xf32>
    %743 = arith.mulf %738, %742 : vector<8x128xf32>
    %c56_260 = arith.constant 56 : index
    %c0_261 = arith.constant 0 : index
    %744 = vector.load %arg31[%c56_260, %c0_261] : memref<64x128xf32, #tpu.memory_space<vmem>>, vector<8x128xf32>
    tpu.vector_store %arg31[%c56_260, %c0_261], %743 {strides = array<i32>} : memref<64x128xf32, #tpu.memory_space<vmem>>, vector<8x128xf32>,
    %c0_262 = arith.constant 0 : index
    %c0_263 = arith.constant 0 : index
    %745 = vector.load %arg31[%c0_262, %c0_263] : memref<64x128xf32, #tpu.memory_space<vmem>>, vector<64x128xf32>
    %c0_264 = arith.constant 0 : index
    %c0_265 = arith.constant 0 : index
    %746 = vector.load %arg11[%c0_264, %c0_265] : memref<128x128xf32, #tpu.memory_space<vmem>>, vector<128x128xf32>
    %cst_266 = arith.constant dense<0.000000e+00> : vector<64x128xf32>
    %747 = tpu.matmul %745, %746, %cst_266 {dimension_numbers = #tpu.dot_dimension_numbers<[1], [0], [0], [1], [0, 0, 1, 1], [], []>} : vector<64x128xf32>, vector<128x128xf32>, vector<64x128xf32> -> vector<64x128xf32>
    %c0_267 = arith.constant 0 : index
    %c0_268 = arith.constant 0 : index
    %748 = vector.load %arg12[%c0_267, %c0_268] : memref<1x128xf32, #tpu.memory_space<vmem>>, vector<1x128xf32>
    %749 = vector.broadcast %748 : vector<1x128xf32> to vector<64x128xf32>
    %750 = arith.addf %747, %749 : vector<64x128xf32>
    %751 = math.tanh %750 : vector<64x128xf32>
    %c0_269 = arith.constant 0 : index
    %c0_270 = arith.constant 0 : index
    %752 = vector.load %arg13[%c0_269, %c0_270] : memref<1x128xf32, #tpu.memory_space<vmem>>, vector<1x128xf32>
    %753 = vector.broadcast %752 : vector<1x128xf32> to vector<64x128xf32>
    %754 = arith.mulf %751, %753 : vector<64x128xf32>
    %cst_271 = arith.constant dense<0.000000e+00> : vector<64xf32>
    %755 = vector.multi_reduction <add>, %754, %cst_271 [1] : vector<64x128xf32> to vector<64xf32>
    %756 = vector.shape_cast %755 : vector<64xf32> to vector<64x1xf32>
    %c0_272 = arith.constant 0 : index
    %c0_273 = arith.constant 0 : index
    %757 = vector.load %arg14[%c0_272, %c0_273] : memref<1x1xf32, #tpu.memory_space<vmem>>, vector<1x1xf32>
    %758 = vector.broadcast %757 : vector<1x1xf32> to vector<64x1xf32>
    %759 = arith.addf %756, %758 : vector<64x1xf32>
    %760 = vector.extract_strided_slice %759 {offsets = [0, 0], sizes = [8, 1], strides = [1, 1]} : vector<64x1xf32> to vector<8x1xf32>
    %761 = vector.extract_strided_slice %759 {offsets = [8, 0], sizes = [8, 1], strides = [1, 1]} : vector<64x1xf32> to vector<8x1xf32>
    %762 = vector.extract_strided_slice %759 {offsets = [16, 0], sizes = [8, 1], strides = [1, 1]} : vector<64x1xf32> to vector<8x1xf32>
    %763 = vector.extract_strided_slice %759 {offsets = [24, 0], sizes = [8, 1], strides = [1, 1]} : vector<64x1xf32> to vector<8x1xf32>
    %764 = vector.extract_strided_slice %759 {offsets = [32, 0], sizes = [8, 1], strides = [1, 1]} : vector<64x1xf32> to vector<8x1xf32>
    %765 = vector.extract_strided_slice %759 {offsets = [40, 0], sizes = [8, 1], strides = [1, 1]} : vector<64x1xf32> to vector<8x1xf32>
    %766 = vector.extract_strided_slice %759 {offsets = [48, 0], sizes = [8, 1], strides = [1, 1]} : vector<64x1xf32> to vector<8x1xf32>
    %767 = vector.extract_strided_slice %759 {offsets = [56, 0], sizes = [8, 1], strides = [1, 1]} : vector<64x1xf32> to vector<8x1xf32>
    %768 = arith.maximumf %760, %761 : vector<8x1xf32>
    %769 = arith.maximumf %768, %762 : vector<8x1xf32>
    %770 = arith.maximumf %769, %763 : vector<8x1xf32>
    %771 = arith.maximumf %770, %764 : vector<8x1xf32>
    %772 = arith.maximumf %771, %765 : vector<8x1xf32>
    %773 = arith.maximumf %772, %766 : vector<8x1xf32>
    %774 = arith.maximumf %773, %767 : vector<8x1xf32>
    %775 = arith.subf %760, %774 : vector<8x1xf32>
    %776 = math.exp %775 : vector<8x1xf32>
    %777 = arith.subf %761, %774 : vector<8x1xf32>
    %778 = math.exp %777 : vector<8x1xf32>
    %779 = arith.subf %762, %774 : vector<8x1xf32>
    %780 = math.exp %779 : vector<8x1xf32>
    %781 = arith.subf %763, %774 : vector<8x1xf32>
    %782 = math.exp %781 : vector<8x1xf32>
    %783 = arith.subf %764, %774 : vector<8x1xf32>
    %784 = math.exp %783 : vector<8x1xf32>
    %785 = arith.subf %765, %774 : vector<8x1xf32>
    %786 = math.exp %785 : vector<8x1xf32>
    %787 = arith.subf %766, %774 : vector<8x1xf32>
    %788 = math.exp %787 : vector<8x1xf32>
    %789 = arith.subf %767, %774 : vector<8x1xf32>
    %790 = math.exp %789 : vector<8x1xf32>
    %791 = arith.addf %776, %778 : vector<8x1xf32>
    %792 = arith.addf %791, %780 : vector<8x1xf32>
    %793 = arith.addf %792, %782 : vector<8x1xf32>
    %794 = arith.addf %793, %784 : vector<8x1xf32>
    %795 = arith.addf %794, %786 : vector<8x1xf32>
    %796 = arith.addf %795, %788 : vector<8x1xf32>
    %797 = arith.addf %796, %790 : vector<8x1xf32>
    %c0_274 = arith.constant 0 : index
    %c0_275 = arith.constant 0 : index
    %798 = vector.load %arg31[%c0_274, %c0_275] : memref<64x128xf32, #tpu.memory_space<vmem>>, vector<8x128xf32>
    %799 = vector.broadcast %776 : vector<8x1xf32> to vector<8x128xf32>
    %800 = arith.mulf %799, %798 : vector<8x128xf32>
    %c8_276 = arith.constant 8 : index
    %c0_277 = arith.constant 0 : index
    %801 = vector.load %arg31[%c8_276, %c0_277] : memref<64x128xf32, #tpu.memory_space<vmem>>, vector<8x128xf32>
    %802 = vector.broadcast %778 : vector<8x1xf32> to vector<8x128xf32>
    %803 = arith.mulf %802, %801 : vector<8x128xf32>
    %804 = arith.addf %800, %803 : vector<8x128xf32>
    %c16_278 = arith.constant 16 : index
    %c0_279 = arith.constant 0 : index
    %805 = vector.load %arg31[%c16_278, %c0_279] : memref<64x128xf32, #tpu.memory_space<vmem>>, vector<8x128xf32>
    %806 = vector.broadcast %780 : vector<8x1xf32> to vector<8x128xf32>
    %807 = arith.mulf %806, %805 : vector<8x128xf32>
    %808 = arith.addf %804, %807 : vector<8x128xf32>
    %c24_280 = arith.constant 24 : index
    %c0_281 = arith.constant 0 : index
    %809 = vector.load %arg31[%c24_280, %c0_281] : memref<64x128xf32, #tpu.memory_space<vmem>>, vector<8x128xf32>
    %810 = vector.broadcast %782 : vector<8x1xf32> to vector<8x128xf32>
    %811 = arith.mulf %810, %809 : vector<8x128xf32>
    %812 = arith.addf %808, %811 : vector<8x128xf32>
    %c32_282 = arith.constant 32 : index
    %c0_283 = arith.constant 0 : index
    %813 = vector.load %arg31[%c32_282, %c0_283] : memref<64x128xf32, #tpu.memory_space<vmem>>, vector<8x128xf32>
    %814 = vector.broadcast %784 : vector<8x1xf32> to vector<8x128xf32>
    %815 = arith.mulf %814, %813 : vector<8x128xf32>
    %816 = arith.addf %812, %815 : vector<8x128xf32>
    %c40_284 = arith.constant 40 : index
    %c0_285 = arith.constant 0 : index
    %817 = vector.load %arg31[%c40_284, %c0_285] : memref<64x128xf32, #tpu.memory_space<vmem>>, vector<8x128xf32>
    %818 = vector.broadcast %786 : vector<8x1xf32> to vector<8x128xf32>
    %819 = arith.mulf %818, %817 : vector<8x128xf32>
    %820 = arith.addf %816, %819 : vector<8x128xf32>
    %c48_286 = arith.constant 48 : index
    %c0_287 = arith.constant 0 : index
    %821 = vector.load %arg31[%c48_286, %c0_287] : memref<64x128xf32, #tpu.memory_space<vmem>>, vector<8x128xf32>
    %822 = vector.broadcast %788 : vector<8x1xf32> to vector<8x128xf32>
    %823 = arith.mulf %822, %821 : vector<8x128xf32>
    %824 = arith.addf %820, %823 : vector<8x128xf32>
    %c56_288 = arith.constant 56 : index
    %c0_289 = arith.constant 0 : index
    %825 = vector.load %arg31[%c56_288, %c0_289] : memref<64x128xf32, #tpu.memory_space<vmem>>, vector<8x128xf32>
    %826 = vector.broadcast %790 : vector<8x1xf32> to vector<8x128xf32>
    %827 = arith.mulf %826, %825 : vector<8x128xf32>
    %828 = arith.addf %824, %827 : vector<8x128xf32>
    %829 = vector.broadcast %797 : vector<8x1xf32> to vector<8x128xf32>
    %830 = arith.divf %828, %829 : vector<8x128xf32>
    %c0_290 = arith.constant 0 : index
    %c0_291 = arith.constant 0 : index
    %831 = vector.load %arg15[%c0_290, %c0_291] : memref<1x128xf32, #tpu.memory_space<vmem>>, vector<1x128xf32>
    %832 = vector.broadcast %831 : vector<1x128xf32> to vector<8x128xf32>
    %833 = arith.mulf %830, %832 : vector<8x128xf32>
    %c0_292 = arith.constant 0 : index
    %c0_293 = arith.constant 0 : index
    %834 = vector.load %arg16[%c0_292, %c0_293] : memref<1x128xf32, #tpu.memory_space<vmem>>, vector<1x128xf32>
    %835 = vector.broadcast %834 : vector<1x128xf32> to vector<8x128xf32>
    %836 = arith.addf %833, %835 : vector<8x128xf32>
    %c0_294 = arith.constant 0 : index
    %c0_295 = arith.constant 0 : index
    %837 = vector.load %arg17[%c0_294, %c0_295] : memref<128x128xf32, #tpu.memory_space<vmem>>, vector<128x128xf32>
    %cst_296 = arith.constant dense<0.000000e+00> : vector<8x128xf32>
    %838 = tpu.matmul %836, %837, %cst_296 {dimension_numbers = #tpu.dot_dimension_numbers<[1], [0], [0], [1], [0, 0, 1, 1], [], []>} : vector<8x128xf32>, vector<128x128xf32>, vector<8x128xf32> -> vector<8x128xf32>
    %c0_297 = arith.constant 0 : index
    %c0_298 = arith.constant 0 : index
    %839 = vector.load %arg18[%c0_297, %c0_298] : memref<1x128xf32, #tpu.memory_space<vmem>>, vector<1x128xf32>
    %840 = vector.broadcast %839 : vector<1x128xf32> to vector<8x128xf32>
    %841 = arith.addf %838, %840 : vector<8x128xf32>
    %cst_299 = arith.constant 0.000000e+00 : f32
    %842 = vector.broadcast %cst_299 : f32 to vector<8x128xf32>
    %843 = arith.cmpf ogt, %841, %842 : vector<8x128xf32>
    %cst_300 = arith.constant 1.000000e-01 : f32
    %844 = vector.broadcast %cst_300 : f32 to vector<8x128xf32>
    %845 = arith.mulf %844, %841 : vector<8x128xf32>
    %846 = arith.select %843, %841, %845 : vector<8x128xi1>, vector<8x128xf32>
    %c0_301 = arith.constant 0 : index
    %c0_302 = arith.constant 0 : index
    %847 = vector.load %arg19[%c0_301, %c0_302] : memref<1x128xf32, #tpu.memory_space<vmem>>, vector<1x128xf32>
    %848 = vector.broadcast %847 : vector<1x128xf32> to vector<8x128xf32>
    %849 = arith.mulf %846, %848 : vector<8x128xf32>
    %c0_303 = arith.constant 0 : index
    %c0_304 = arith.constant 0 : index
    %850 = vector.load %arg20[%c0_303, %c0_304] : memref<1x128xf32, #tpu.memory_space<vmem>>, vector<1x128xf32>
    %851 = vector.broadcast %850 : vector<1x128xf32> to vector<8x128xf32>
    %852 = arith.addf %849, %851 : vector<8x128xf32>
    %c0_305 = arith.constant 0 : index
    %c0_306 = arith.constant 0 : index
    %853 = vector.load %arg21[%c0_305, %c0_306] : memref<128x128xf32, #tpu.memory_space<vmem>>, vector<128x128xf32>
    %cst_307 = arith.constant dense<0.000000e+00> : vector<8x128xf32>
    %854 = tpu.matmul %852, %853, %cst_307 {dimension_numbers = #tpu.dot_dimension_numbers<[1], [0], [0], [1], [0, 0, 1, 1], [], []>} : vector<8x128xf32>, vector<128x128xf32>, vector<8x128xf32> -> vector<8x128xf32>
    %c0_308 = arith.constant 0 : index
    %c0_309 = arith.constant 0 : index
    %855 = vector.load %arg22[%c0_308, %c0_309] : memref<1x128xf32, #tpu.memory_space<vmem>>, vector<1x128xf32>
    %856 = vector.broadcast %855 : vector<1x128xf32> to vector<8x128xf32>
    %857 = arith.addf %854, %856 : vector<8x128xf32>
    %cst_310 = arith.constant 0.000000e+00 : f32
    %858 = vector.broadcast %cst_310 : f32 to vector<8x128xf32>
    %859 = arith.cmpf ogt, %857, %858 : vector<8x128xf32>
    %cst_311 = arith.constant 1.000000e-01 : f32
    %860 = vector.broadcast %cst_311 : f32 to vector<8x128xf32>
    %861 = arith.mulf %860, %857 : vector<8x128xf32>
    %862 = arith.select %859, %857, %861 : vector<8x128xi1>, vector<8x128xf32>
    %c0_312 = arith.constant 0 : index
    %c0_313 = arith.constant 0 : index
    %863 = vector.load %arg23[%c0_312, %c0_313] : memref<1x128xf32, #tpu.memory_space<vmem>>, vector<1x128xf32>
    %864 = vector.broadcast %863 : vector<1x128xf32> to vector<8x128xf32>
    %865 = arith.mulf %862, %864 : vector<8x128xf32>
    %cst_314 = arith.constant dense<0.000000e+00> : vector<8xf32>
    %866 = vector.multi_reduction <add>, %865, %cst_314 [1] : vector<8x128xf32> to vector<8xf32>
    %867 = vector.shape_cast %866 : vector<8xf32> to vector<8x1xf32>
    %c0_315 = arith.constant 0 : index
    %c0_316 = arith.constant 0 : index
    %868 = vector.load %arg24[%c0_315, %c0_316] : memref<1x1xf32, #tpu.memory_space<vmem>>, vector<1x1xf32>
    %869 = vector.broadcast %868 : vector<1x1xf32> to vector<8x1xf32>
    %870 = arith.addf %867, %869 : vector<8x1xf32>
    %871 = vector.extract_strided_slice %870 {offsets = [0, 0], sizes = [2, 1], strides = [1, 1]} : vector<8x1xf32> to vector<2x1xf32>
    %c0_317 = arith.constant 0 : index
    %c0_318 = arith.constant 0 : index
    %872 = vector.load %arg25[%c0_317, %c0_318] : memref<2x1xf32, #tpu.memory_space<vmem>>, vector<2x1xf32>
    tpu.vector_store %arg25[%c0_317, %c0_318], %871 {strides = array<i32>} : memref<2x1xf32, #tpu.memory_space<vmem>>, vector<2x1xf32>,
    return
  }
}

</mosaic_0001>

<bundles_post_ra>
// kernel: improved_lstm_forward.1
= control target key start
LH: loop header
LB: loop body
LE: loop exit
PB: predicated region body
PF: predicated region fallthrough
CT: control target
= control target key end

     0   :  { %s12708_s0 = inlined_call_operand.vmem [shape: f32[64,128], index: 0, kind: input, shape index: {}]   ;;  %s12709_s1 = inlined_call_operand.hbm [shape: f32[128,512], index: 1, kind: input, shape index: {}]   ;;  %s12710_s2 = inlined_call_operand.hbm [shape: f32[128,512], index: 2, kind: input, shape index: {}]   ;;  %s12711_s3 = inlined_call_operand.vmem [shape: f32[1,512], index: 3, kind: input, shape index: {}]   ;;  %s12712_s4 = inlined_call_operand.hbm [shape: f32[128,512], index: 4, kind: input, shape index: {}]   ;;  %s12713_s5 = inlined_call_operand.hbm [shape: f32[128,512], index: 5, kind: input, shape index: {}]   ;;  %s12714_s6 = inlined_call_operand.vmem [shape: f32[1,512], index: 6, kind: input, shape index: {}]   ;;  %s12715_s7 = inlined_call_operand.hbm [shape: f32[128,512], index: 7, kind: input, shape index: {}]   ;;  %s12716_s8 = inlined_call_operand.hbm [shape: f32[128,512], index: 8, kind: input, shape index: {}]   ;;  %s12717_s9 = inlined_call_operand.hbm [shape: f32[128,512], index: 9, kind: input, shape index: {}]   ;;  %s12718_s10 = inlined_call_operand.vmem [shape: f32[1,512], index: 10, kind: input, shape index: {}]   ;;  %s12719_s11 = inlined_call_operand.hbm [shape: f32[128,128], index: 11, kind: input, shape index: {}]   ;;  %s12720_s12 = inlined_call_operand.vmem [shape: f32[1,128], index: 12, kind: input, shape index: {}]   ;;  %s12721_s13 = inlined_call_operand.vmem [shape: f32[1,128], index: 13, kind: input, shape index: {}]   ;;  %s12722_s14 = inlined_call_operand.<no memory space> [shape: f32[1,1], index: 14, kind: input, shape index: {}]   ;;  %s12723_s15 = inlined_call_operand.vmem [shape: f32[1,128], index: 15, kind: input, shape index: {}]   ;;  %s12724_s16 = inlined_call_operand.vmem [shape: f32[1,128], index: 16, kind: input, shape index: {}]   ;;  %s12725_s17 = inlined_call_operand.hbm [shape: f32[128,128], index: 17, kind: input, shape index: {}]   ;;  %s12726_s18 = inlined_call_operand.vmem [shape: f32[1,128], index: 18, kind: input, shape index: {}]   ;;  %s12727_s19 = inlined_call_operand.vmem [shape: f32[1,128], index: 19, kind: input, shape index: {}]   ;;  %s12728_s20 = inlined_call_operand.vmem [shape: f32[1,128], index: 20, kind: input, shape index: {}]   ;;  %s12729_s21 = inlined_call_operand.hbm [shape: f32[128,128], index: 21, kind: input, shape index: {}]   ;;  %s12730_s22 = inlined_call_operand.vmem [shape: f32[1,128], index: 22, kind: input, shape index: {}]   ;;  %s12731_s23 = inlined_call_operand.vmem [shape: f32[1,128], index: 23, kind: input, shape index: {}]   ;;  %s12732_s25 = inlined_call_operand.vmem [shape: f32[2,1], index: 25, kind: output, shape index: {}]   ;;  %s12733_s24 = inlined_call_operand.<no memory space> [shape: f32[1,1], index: 24, kind: input, shape index: {}]  }
   0x1   :  { %13143 = sst [smem:[#allocation159_spill]] %s12708_s0  ;;  %v30_v0 = vstv %s12722_s14  ;;  %v32_v1 = vstv %s12733_s24 }
   0x2   :  { %13144 = sst [smem:[#allocation160_spill]] %s12709_s1  ;;  %31 = vst [vmem:[#allocation8] sm:$0x1] %v30_v0  ;;  %33 = vst [vmem:[#allocation9] sm:$0x1] %v32_v1 }
   0x3   :  { %13145 = sst [smem:[#allocation161_spill]] %s12710_s2 }
   0x4   :  { %13146 = sst [smem:[#allocation162_spill]] %s12711_s3 }
   0x5   :  { %13147 = sst [smem:[#allocation163_spill]] %s12712_s4 }
   0x6   :  { %13148 = sst [smem:[#allocation164_spill]] %s12713_s5 }
   0x7   :  { %13149 = sst [smem:[#allocation165_spill]] %s12714_s6 }
   0x8   :  { %13150 = sst [smem:[#allocation166_spill]] %s12715_s7 }
   0x9   :  { %13151 = sst [smem:[#allocation167_spill]] %s12716_s8 }
   0xa   :  { %13152 = sst [smem:[#allocation168_spill]] %s12717_s9 }
   0xb   :  { %34 = vsyncpa [#allocation11], 0 }
   0xc   :  { %35 = vsyncpa [#allocation13], 0 }
   0xd   :  { %36 = vsyncpa [#allocation16], 0 }
   0xe   :  { %37 = vsyncpa [#allocation19], 0 }
   0xf   :  { %38 = vsyncpa [#allocation22], 0 }
  0x10   :  { %39 = vsyncpa [#allocation25], 0  ;;  %s8789_s7 = smov [#allocation12]   ;;  %s8790_s26 = smov [#allocation15]  }
  0x11   :  { %s59_s3 = sshll.u32 %s8789_s7, 4  ;;  %s85_s1 = sshll.u32 %s8790_s26, 4  ;;  %s60_s3 = int_to_ptr.vmem [resolvable:$true] %s59_s3  ;;  %s86_s1 = int_to_ptr.vmem [resolvable:$true] %s85_s1 }
  0x12   :  { %s8585_s8 = scalar_lea.vmem %s60_s3, 8192  ;;  %p8590_p1 = scmp.lt.s32.totalorder %s60_s3, %s60_s3 }
  0x13   :  { %p8586_p0 = scmp.ne.s32.totalorder %s60_s3, %s8585_s8  ;;  %p8591_p2 = scmp.lt.s32.totalorder %s8585_s8, %s8585_s8 }
  0x15   :  { %p8592_p3 = por %p8591_p2, %p8590_p1 }
  0x17   :  { %p8593_p4 = pnand %p8592_p3, %p8586_p0 }
  0x19   :  { %8596 = shalt.err (!%p8593_p4)
}
  0x1a   :  { %s8791_s14 = smov 512   ;;  %s8792_s24 = smov 32  }
  0x1b   :  { %s13153_s28 = sld [smem:[#allocation161_spill]]  ;;  %s8605_s9 = scalar_lea.vmem %s86_s1, 8192 }
  0x1c   :  { %p8606_p5 = scmp.ne.s32.totalorder %s86_s1, %s8605_s9  ;;  %p8610_p6 = scmp.lt.s32.totalorder %s86_s1, %s86_s1 }
  0x1d   :  { %p8611_p7 = scmp.lt.s32.totalorder %s8605_s9, %s8605_s9 }
  0x1f   :  { %p8612_p8 = por %p8611_p7, %p8610_p6 }
  0x21   :  { %65 = dma.hbm_to_vmem [thread:$0]  %s13153_s28, 8192, %s60_s3, [#allocation13], %s8791_s14, %s8791_s14, %s8792_s24  }
  0x22   :  { %p8613_p9 = pnand %p8612_p8, %p8606_p5 }
  0x24   :  { %8616 = shalt.err (!%p8613_p9)
}
  0x25   :  { %s13154_s29 = sld [smem:[#allocation164_spill]]  ;;  %s8793_s2 = smov [#allocation18]  }
  0x26   :  { %s111_s6 = sshll.u32 %s8793_s2, 4  ;;  %s8794_s30 = smov [#allocation21]   ;;  %s112_s6 = int_to_ptr.vmem [resolvable:$true] %s111_s6 }
  0x27   :  { %s137_s7 = sshll.u32 %s8794_s30, 4  ;;  %s8625_s3 = scalar_lea.vmem %s112_s6, 8192  ;;  %s138_s7 = int_to_ptr.vmem [resolvable:$true] %s137_s7 }
  0x28   :  { %p8626_p10 = scmp.ne.s32.totalorder %s112_s6, %s8625_s3  ;;  %p8630_p11 = scmp.lt.s32.totalorder %s112_s6, %s112_s6 }
  0x29   :  { %p8631_p12 = scmp.lt.s32.totalorder %s8625_s3, %s8625_s3 }
  0x2b   :  { %91 = dma.hbm_to_vmem [thread:$0]  %s13154_s29, 8192, %s86_s1, [#allocation16], %s8791_s14, %s8791_s14, %s8792_s24  }
  0x2c   :  { %p8632_p13 = por %p8631_p12, %p8630_p11 }
  0x2e   :  { %p8633_p0 = pnand %p8632_p13, %p8626_p10 }
  0x30   :  { %8636 = shalt.err (!%p8633_p0)
}
  0x31   :  { %s13155_s27 = sld [smem:[#allocation167_spill]]  ;;  %s8645_s1 = scalar_lea.vmem %s138_s7, 2048 }
  0x32   :  { %p8646_p1 = scmp.ne.s32.totalorder %s138_s7, %s8645_s1  ;;  %p8650_p2 = scmp.lt.s32.totalorder %s138_s7, %s138_s7 }
  0x33   :  { %p8651_p3 = scmp.lt.s32.totalorder %s8645_s1, %s8645_s1 }
  0x35   :  { %p8652_p4 = por %p8651_p3, %p8650_p2 }
  0x37   :  { %117 = dma.hbm_to_vmem [thread:$0]  %s13155_s27, 8192, %s112_s6, [#allocation19], %s8791_s14, %s8791_s14, %s8792_s24  }
  0x38   :  { %p8653_p5 = pnand %p8652_p4, %p8646_p1 }
  0x3a   :  { %8656 = shalt.err (!%p8653_p5)
}
  0x3b   :  { %s8795_s4 = smov 128   ;;  %s8796_s28 = smov 8  }
  0x3c   :  { %143 = dma.hbm_to_vmem [thread:$0]  %s12719_s11, 2048, %s138_s7, [#allocation22], %s8795_s4, %s8795_s4, %s8796_s28  }
  0x3d   :  { %s8797_s0 = smov [#allocation10]   ;;  %s8798_s2 = smov [#allocation14]  }
  0x3e   :  { %s47_s29 = sshll.u32 %s8797_s0, 4  ;;  %s73_s6 = sshll.u32 %s8798_s2, 4  ;;  %s48_s29 = int_to_ptr.vmem [resolvable:$true] %s47_s29  ;;  %s74_s6 = int_to_ptr.vmem [resolvable:$true] %s73_s6 }
  0x3f   :  { %s8665_s30 = scalar_lea.vmem %s48_s29, 8192  ;;  %p8670_p7 = scmp.lt.s32.totalorder %s48_s29, %s48_s29 }
  0x40   :  { %p8666_p6 = scmp.ne.s32.totalorder %s48_s29, %s8665_s30  ;;  %p8671_p8 = scmp.lt.s32.totalorder %s8665_s30, %s8665_s30 }
  0x42   :  { %p8672_p9 = por %p8671_p8, %p8670_p7 }
  0x44   :  { %p8673_p10 = pnand %p8672_p9, %p8666_p6 }
  0x46   :  { %8676 = shalt.err (!%p8673_p10)
}
  0x47   :  { %s13156_s8 = sld [smem:[#allocation160_spill]]  ;;  %s8685_s11 = scalar_lea.vmem %s74_s6, 8192 }
  0x48   :  { %p8686_p11 = scmp.ne.s32.totalorder %s74_s6, %s8685_s11  ;;  %p8690_p12 = scmp.lt.s32.totalorder %s74_s6, %s74_s6 }
  0x49   :  { %p8691_p13 = scmp.lt.s32.totalorder %s8685_s11, %s8685_s11 }
  0x4b   :  { %p8692_p0 = por %p8691_p13, %p8690_p12 }
  0x4d   :  { %53 = dma.hbm_to_vmem [thread:$0]  %s13156_s8, 8192, %s48_s29, [#allocation11], %s8791_s14, %s8791_s14, %s8792_s24  }
  0x4e   :  { %p8693_p1 = pnand %p8692_p0, %p8686_p11 }
  0x50   :  { %8696 = shalt.err (!%p8693_p1)
}
  0x51   :  { %s13157_s1 = sld [smem:[#allocation163_spill]]  ;;  %s8799_s9 = smov [#allocation17]  }
  0x52   :  { %s99_s5 = sshll.u32 %s8799_s9, 4  ;;  %s8800_s0 = smov [#allocation20]   ;;  %s100_s5 = int_to_ptr.vmem [resolvable:$true] %s99_s5 }
  0x53   :  { %s123_s2 = sshll.u32 %s8800_s0, 4  ;;  %s8705_s29 = scalar_lea.vmem %s100_s5, 8192  ;;  %s124_s2 = int_to_ptr.vmem [resolvable:$true] %s123_s2 }
  0x54   :  { %p8706_p2 = scmp.ne.s32.totalorder %s100_s5, %s8705_s29  ;;  %p8710_p3 = scmp.lt.s32.totalorder %s100_s5, %s100_s5 }
  0x55   :  { %p8711_p4 = scmp.lt.s32.totalorder %s8705_s29, %s8705_s29 }
  0x57   :  { %79 = dma.hbm_to_vmem [thread:$0]  %s13157_s1, 8192, %s74_s6, [#allocation13], %s8791_s14, %s8791_s14, %s8792_s24  }
  0x58   :  { %p8712_p5 = por %p8711_p4, %p8710_p3 }
  0x5a   :  { %p8713_p6 = pnand %p8712_p5, %p8706_p2 }
  0x5c   :  { %8716 = shalt.err (!%p8713_p6)
}
  0x5d   :  { %s13158_s26 = sld [smem:[#allocation166_spill]]  ;;  %s8725_s6 = scalar_lea.vmem %s124_s2, 8192 }
  0x5e   :  { %p8726_p7 = scmp.ne.s32.totalorder %s124_s2, %s8725_s6  ;;  %p8730_p8 = scmp.lt.s32.totalorder %s124_s2, %s124_s2 }
  0x5f   :  { %p8731_p9 = scmp.lt.s32.totalorder %s8725_s6, %s8725_s6 }
  0x61   :  { %p8732_p10 = por %p8731_p9, %p8730_p8 }
  0x63   :  { %105 = dma.hbm_to_vmem [thread:$0]  %s13158_s26, 8192, %s100_s5, [#allocation16], %s8791_s14, %s8791_s14, %s8792_s24  }
  0x64   :  { %p8733_p11 = pnand %p8732_p10, %p8726_p7 }
  0x66   :  { %8736 = shalt.err (!%p8733_p11)
}
  0x67   :  { %s13159_s7 = sld [smem:[#allocation168_spill]]  ;;  %s8801_s27 = smov [#allocation23]  }
  0x68   :  { %s159_s1 = sshll.u32 %s8801_s27, 4  ;;  %s8802_s9 = smov [#allocation24]   ;;  %s160_s1 = int_to_ptr.vmem [resolvable:$true] %s159_s1 }
  0x69   :  { %s177_s0 = sshll.u32 %s8802_s9, 4  ;;  %s8745_s5 = scalar_lea.vmem %s160_s1, 2048  ;;  %s178_s0 = int_to_ptr.vmem [resolvable:$true] %s177_s0 }
  0x6a   :  { %p8746_p12 = scmp.ne.s32.totalorder %s160_s1, %s8745_s5  ;;  %p8750_p13 = scmp.lt.s32.totalorder %s160_s1, %s160_s1 }
  0x6b   :  { %p8751_p0 = scmp.lt.s32.totalorder %s8745_s5, %s8745_s5 }
  0x6d   :  { %129 = dma.hbm_to_vmem [thread:$0]  %s13159_s7, 8192, %s124_s2, [#allocation19], %s8791_s14, %s8791_s14, %s8792_s24  }
  0x6e   :  { %p8752_p1 = por %p8751_p0, %p8750_p13 }
  0x70   :  { %p8753_p2 = pnand %p8752_p1, %p8746_p12 }
  0x72   :  { %8756 = shalt.err (!%p8753_p2)
}
  0x73   :  { %165 = dma.hbm_to_vmem [thread:$0]  %s12725_s17, 2048, %s160_s1, [#allocation22], %s8795_s4, %s8795_s4, %s8796_s28  }
  0x74   :  { %s8765_s14 = scalar_lea.vmem %s178_s0, 2048  ;;  %p8770_p4 = scmp.lt.s32.totalorder %s178_s0, %s178_s0 }
  0x75   :  { %p8766_p3 = scmp.ne.s32.totalorder %s178_s0, %s8765_s14  ;;  %p8771_p5 = scmp.lt.s32.totalorder %s8765_s14, %s8765_s14 }
  0x77   :  { %p8772_p6 = por %p8771_p5, %p8770_p4 }
  0x79   :  { %p8773_p7 = pnand %p8772_p6, %p8766_p3 }
  0x7b   :  { %8776 = shalt.err (!%p8773_p7)
}
  0x7c   :  { %183 = dma.hbm_to_vmem [thread:$0]  %s12729_s21, 2048, %s178_s0, [#allocation25], %s8795_s4, %s8795_s4, %s8796_s28  }
  0x7d   :  { %8777 = dma.done.wait [#allocation11], 8192  }
  0x7e   :  { %8778 = vsyncadd [#allocation11], 4294959104 }
  0x7f   :  { %8779 = dma.done.wait [#allocation13], 16384  }
  0x80   :  { %8780 = vsyncadd [#allocation13], 4294950912 }
  0x81   :  { %8781 = dma.done.wait [#allocation16], 16384  }
  0x82   :  { %8782 = vsyncadd [#allocation16], 4294950912 }
  0x83   :  { %8783 = dma.done.wait [#allocation19], 16384  }
  0x84   :  { %8784 = vsyncadd [#allocation19], 4294950912 }
  0x85   :  { %8785 = dma.done.wait [#allocation22], 4096  }
  0x86   :  { %8786 = vsyncadd [#allocation22], 4294963200 }
  0x87   :  { %8787 = dma.done.wait [#allocation25], 2048  }
  0x88   :  { %8788 = vsyncadd [#allocation25], 4294965248  ;;  %v12735_v2 = vmov 0.0   ;;  %v289_v3 = vld [vmem:[#allocation10 + $0x1e8] sm:$0xff]  ;;  %v291_v4 = vld [vmem:[#allocation10 + $0x1f8] sm:$0xff]  ;;  %s13160_s4 = sld [smem:[#allocation159_spill]] }
  0x89   :  { %378 = vmatprep.mubr.f32.mxu0 %v12735_v2  ;;  %491 = vmatprep.mubr.f32.mxu1 %v12735_v2  ;;  %v288_v5 = vld [vmem:[#allocation10 + $0x1e0] sm:$0xff]  ;;  %v290_v6 = vld [vmem:[#allocation10 + $0x1f0] sm:$0xff]  ;;  %v285_v7 = vld [vmem:[#allocation10 + $0x1c8] sm:$0xff]  ;;  %s13243_s2 = sld [smem:[#allocation162_spill]]  ;;  %vm8805_vm0 = vmmov 0   ;;  %vm7873_vm3 = vcmask 1024  }
  0x8a   :  { %314 = vmatprep.subr.mxu0 %v289_v3  ;;  %427 = vmatprep.subr.mxu1 %v291_v4  ;;  %v287_v8 = vld [vmem:[#allocation10 + $0x1d8] sm:$0xff]  ;;  %v284_v9 = vld [vmem:[#allocation10 + $0x1c0] sm:$0xff]  ;;  %v286_v10 = vld [vmem:[#allocation10 + $0x1d0] sm:$0xff] }
  0x8b   :  { %315 = vmatpush1.msra.mxu0 %v288_v5  ;;  %428 = vmatpush1.msra.mxu1 %v290_v6  ;;  %v281_v11 = vld [vmem:[#allocation10 + $0x1a8] sm:$0xff]  ;;  %v283_v12 = vld [vmem:[#allocation10 + $0x1b8] sm:$0xff]  ;;  %v280_v13 = vld [vmem:[#allocation10 + $0x1a0] sm:$0xff] }
  0x8c   :  { %316 = vmatprep.subr.mxu0 %v285_v7  ;;  %429 = vmatprep.subr.mxu1 %v287_v8  ;;  %v282_v14 = vld [vmem:[#allocation10 + $0x1b0] sm:$0xff]  ;;  %v277_v15 = vld [vmem:[#allocation10 + $0x188] sm:$0xff]  ;;  %v279_v16 = vld [vmem:[#allocation10 + $0x198] sm:$0xff] }
  0x8d   :  { %317 = vmatpush1.msra.mxu0 %v284_v9  ;;  %430 = vmatpush1.msra.mxu1 %v286_v10  ;;  %v276_v17 = vld [vmem:[#allocation10 + $0x180] sm:$0xff]  ;;  %v278_v18 = vld [vmem:[#allocation10 + $0x190] sm:$0xff]  ;;  %v273_v19 = vld [vmem:[#allocation10 + $0x168] sm:$0xff] }
  0x8e   :  { %318 = vmatprep.subr.mxu0 %v281_v11  ;;  %431 = vmatprep.subr.mxu1 %v283_v12  ;;  %v275_v20 = vld [vmem:[#allocation10 + $0x178] sm:$0xff]  ;;  %v272_v21 = vld [vmem:[#allocation10 + $0x160] sm:$0xff]  ;;  %v274_v22 = vld [vmem:[#allocation10 + $0x170] sm:$0xff] }
  0x8f   :  { %319 = vmatpush1.msra.mxu0 %v280_v13  ;;  %432 = vmatpush1.msra.mxu1 %v282_v14  ;;  %v269_v23 = vld [vmem:[#allocation10 + $0x148] sm:$0xff]  ;;  %v271_v24 = vld [vmem:[#allocation10 + $0x158] sm:$0xff]  ;;  %v268_v25 = vld [vmem:[#allocation10 + $0x140] sm:$0xff] }
  0x90   :  { %320 = vmatprep.subr.mxu0 %v277_v15  ;;  %433 = vmatprep.subr.mxu1 %v279_v16  ;;  %v270_v26 = vld [vmem:[#allocation10 + $0x150] sm:$0xff]  ;;  %v265_v27 = vld [vmem:[#allocation10 + $0x128] sm:$0xff]  ;;  %v267_v28 = vld [vmem:[#allocation10 + $0x138] sm:$0xff] }
  0x91   :  { %321 = vmatpush1.msra.mxu0 %v276_v17  ;;  %434 = vmatpush1.msra.mxu1 %v278_v18  ;;  %v264_v29 = vld [vmem:[#allocation10 + $0x120] sm:$0xff]  ;;  %v266_v30 = vld [vmem:[#allocation10 + $0x130] sm:$0xff]  ;;  %v261_v31 = vld [vmem:[#allocation10 + $0x108] sm:$0xff] }
  0x92   :  { %322 = vmatprep.subr.mxu0 %v273_v19  ;;  %435 = vmatprep.subr.mxu1 %v275_v20  ;;  %v263_v32 = vld [vmem:[#allocation10 + $0x118] sm:$0xff]  ;;  %v260_v33 = vld [vmem:[#allocation10 + $0x100] sm:$0xff]  ;;  %v262_v34 = vld [vmem:[#allocation10 + $0x110] sm:$0xff] }
  0x93   :  { %323 = vmatpush1.msra.mxu0 %v272_v21  ;;  %436 = vmatpush1.msra.mxu1 %v274_v22  ;;  %v257_v35 = vld [vmem:[#allocation10 + $0xe8] sm:$0xff]  ;;  %v259_v36 = vld [vmem:[#allocation10 + $0xf8] sm:$0xff]  ;;  %v256_v37 = vld [vmem:[#allocation10 + $0xe0] sm:$0xff] }
  0x94   :  { %324 = vmatprep.subr.mxu0 %v269_v23  ;;  %437 = vmatprep.subr.mxu1 %v271_v24  ;;  %v258_v38 = vld [vmem:[#allocation10 + $0xf0] sm:$0xff]  ;;  %v253_v39 = vld [vmem:[#allocation10 + $0xc8] sm:$0xff]  ;;  %v255_v40 = vld [vmem:[#allocation10 + $0xd8] sm:$0xff] }
  0x95   :  { %325 = vmatpush1.msra.mxu0 %v268_v25  ;;  %438 = vmatpush1.msra.mxu1 %v270_v26  ;;  %v252_v41 = vld [vmem:[#allocation10 + $0xc0] sm:$0xff]  ;;  %v254_v42 = vld [vmem:[#allocation10 + $0xd0] sm:$0xff]  ;;  %v249_v43 = vld [vmem:[#allocation10 + $0xa8] sm:$0xff] }
  0x96   :  { %326 = vmatprep.subr.mxu0 %v265_v27  ;;  %439 = vmatprep.subr.mxu1 %v267_v28  ;;  %v251_v44 = vld [vmem:[#allocation10 + $0xb8] sm:$0xff]  ;;  %v248_v45 = vld [vmem:[#allocation10 + $0xa0] sm:$0xff]  ;;  %v250_v46 = vld [vmem:[#allocation10 + $0xb0] sm:$0xff] }
  0x97   :  { %327 = vmatpush1.msra.mxu0 %v264_v29  ;;  %440 = vmatpush1.msra.mxu1 %v266_v30  ;;  %v245_v47 = vld [vmem:[#allocation10 + $0x88] sm:$0xff]  ;;  %v247_v48 = vld [vmem:[#allocation10 + $0x98] sm:$0xff]  ;;  %v244_v49 = vld [vmem:[#allocation10 + $0x80] sm:$0xff] }
  0x98   :  { %328 = vmatprep.subr.mxu0 %v261_v31  ;;  %441 = vmatprep.subr.mxu1 %v263_v32  ;;  %v246_v50 = vld [vmem:[#allocation10 + $0x90] sm:$0xff]  ;;  %v241_v51 = vld [vmem:[#allocation10 + $0x68] sm:$0xff]  ;;  %v243_v52 = vld [vmem:[#allocation10 + $0x78] sm:$0xff] }
  0x99   :  { %329 = vmatpush1.msra.mxu0 %v260_v33  ;;  %442 = vmatpush1.msra.mxu1 %v262_v34  ;;  %v240_v53 = vld [vmem:[#allocation10 + $0x60] sm:$0xff]  ;;  %v242_v54 = vld [vmem:[#allocation10 + $0x70] sm:$0xff]  ;;  %v237_v55 = vld [vmem:[#allocation10 + $0x48] sm:$0xff] }
  0x9a   :  { %330 = vmatprep.subr.mxu0 %v257_v35  ;;  %443 = vmatprep.subr.mxu1 %v259_v36  ;;  %v239_v56 = vld [vmem:[#allocation10 + $0x58] sm:$0xff]  ;;  %v236_v57 = vld [vmem:[#allocation10 + $0x40] sm:$0xff]  ;;  %v238_v58 = vld [vmem:[#allocation10 + $0x50] sm:$0xff] }
  0x9b   :  { %331 = vmatpush1.msra.mxu0 %v256_v37  ;;  %444 = vmatpush1.msra.mxu1 %v258_v38  ;;  %v233_v59 = vld [vmem:[#allocation10 + $0x28] sm:$0xff]  ;;  %v235_v60 = vld [vmem:[#allocation10 + $0x38] sm:$0xff]  ;;  %v232_v61 = vld [vmem:[#allocation10 + $0x20] sm:$0xff] }
  0x9c   :  { %332 = vmatprep.subr.mxu0 %v253_v39  ;;  %445 = vmatprep.subr.mxu1 %v255_v40  ;;  %v234_v62 = vld [vmem:[#allocation10 + $0x30] sm:$0xff]  ;;  %v229_v63 = vld [vmem:[#allocation10 + $0x8] sm:$0xff]  ;;  %v231_v0 = vld [vmem:[#allocation10 + $0x18] sm:$0xff] }
  0x9d   :  { %333 = vmatpush1.msra.mxu0 %v252_v41  ;;  %446 = vmatpush1.msra.mxu1 %v254_v42  ;;  %v228_v1 = vld [vmem:[#allocation10] sm:$0xff]  ;;  %v230_v3 = vld [vmem:[#allocation10 + $0x10] sm:$0xff]  ;;  %v633_v5 = vld [vmem:[#allocation14 + $0x1e8] sm:$0xff] }
  0x9e   :  { %334 = vmatprep.subr.mxu0 %v249_v43  ;;  %447 = vmatprep.subr.mxu1 %v251_v44  ;;  %v9007_v4 = vld [vmem:[%s13160_s4] sm:$0xff]  ;;  %v634_v8 = vld [vmem:[#allocation14 + $0x1f0] sm:$0xff]  ;;  %v629_v9 = vld [vmem:[#allocation14 + $0x1c8] sm:$0xff] }
  0x9f   :  { %335 = vmatpush1.msra.mxu0 %v248_v45  ;;  %448 = vmatpush1.msra.mxu1 %v250_v46  ;;  %v635_v6 = vld [vmem:[#allocation14 + $0x1f8] sm:$0xff]  ;;  %v632_v7 = vld [vmem:[#allocation14 + $0x1e0] sm:$0xff]  ;;  %v630_v12 = vld [vmem:[#allocation14 + $0x1d0] sm:$0xff] }
  0xa0   :  { %336 = vmatprep.subr.mxu0 %v245_v47  ;;  %449 = vmatprep.subr.mxu1 %v247_v48  ;;  %v631_v10 = vld [vmem:[#allocation14 + $0x1d8] sm:$0xff]  ;;  %v628_v11 = vld [vmem:[#allocation14 + $0x1c0] sm:$0xff]  ;;  %v625_v14 = vld [vmem:[#allocation14 + $0x1a8] sm:$0xff] }
  0xa1   :  { %337 = vmatpush1.msra.mxu0 %v244_v49  ;;  %450 = vmatpush1.msra.mxu1 %v246_v50  ;;  %v9014_v13 = vld [vmem:[%s13160_s4 + $0x8] sm:$0xff]  ;;  %v627_v15 = vld [vmem:[#allocation14 + $0x1b8] sm:$0xff]  ;;  %v626_v17 = vld [vmem:[#allocation14 + $0x1b0] sm:$0xff] }
  0xa2   :  { %338 = vmatprep.subr.mxu0 %v241_v51  ;;  %451 = vmatprep.subr.mxu1 %v243_v52  ;;  %v624_v16 = vld [vmem:[#allocation14 + $0x1a0] sm:$0xff]  ;;  %v621_v18 = vld [vmem:[#allocation14 + $0x188] sm:$0xff]  ;;  %v623_v19 = vld [vmem:[#allocation14 + $0x198] sm:$0xff] }
  0xa3   :  { %339 = vmatpush1.msra.mxu0 %v240_v53  ;;  %452 = vmatpush1.msra.mxu1 %v242_v54  ;;  %v620_v20 = vld [vmem:[#allocation14 + $0x180] sm:$0xff]  ;;  %v622_v21 = vld [vmem:[#allocation14 + $0x190] sm:$0xff]  ;;  %v617_v23 = vld [vmem:[#allocation14 + $0x168] sm:$0xff] }
  0xa4   :  { %340 = vmatprep.subr.mxu0 %v237_v55  ;;  %453 = vmatprep.subr.mxu1 %v239_v56  ;;  %v9023_v22 = vld [vmem:[%s13160_s4 + $0x10] sm:$0xff]  ;;  %v619_v24 = vld [vmem:[#allocation14 + $0x178] sm:$0xff]  ;;  %v616_v25 = vld [vmem:[#allocation14 + $0x160] sm:$0xff] }
  0xa5   :  { %341 = vmatpush1.msra.mxu0 %v236_v57  ;;  %454 = vmatpush1.msra.mxu1 %v238_v58  ;;  %v618_v26 = vld [vmem:[#allocation14 + $0x170] sm:$0xff]  ;;  %v613_v27 = vld [vmem:[#allocation14 + $0x148] sm:$0xff]  ;;  %v615_v28 = vld [vmem:[#allocation14 + $0x158] sm:$0xff] }
  0xa6   :  { %342 = vmatprep.subr.mxu0 %v233_v59  ;;  %455 = vmatprep.subr.mxu1 %v235_v60  ;;  %v612_v29 = vld [vmem:[#allocation14 + $0x140] sm:$0xff]  ;;  %v614_v30 = vld [vmem:[#allocation14 + $0x150] sm:$0xff]  ;;  %v609_v32 = vld [vmem:[#allocation14 + $0x128] sm:$0xff] }
  0xa7   :  { %343 = vmatpush1.msra.mxu0 %v232_v61  ;;  %456 = vmatpush1.msra.mxu1 %v234_v62  ;;  %v9032_v31 = vld [vmem:[%s13160_s4 + $0x18] sm:$0xff]  ;;  %v608_v34 = vld [vmem:[#allocation14 + $0x120] sm:$0xff]  ;;  %v605_v36 = vld [vmem:[#allocation14 + $0x108] sm:$0xff] }
  0xa8   :  { %344 = vmatprep.subr.mxu0 %v229_v63  ;;  %457 = vmatprep.subr.mxu1 %v231_v0  ;;  %v611_v33 = vld [vmem:[#allocation14 + $0x138] sm:$0xff]  ;;  %v610_v35 = vld [vmem:[#allocation14 + $0x130] sm:$0xff]  ;;  %v604_v38 = vld [vmem:[#allocation14 + $0x100] sm:$0xff] }
  0xa9   :  { %345 = vmatpush1.msra.mxu0 %v228_v1  ;;  %458 = vmatpush1.msra.mxu1 %v230_v3  ;;  %v607_v37 = vld [vmem:[#allocation14 + $0x118] sm:$0xff]  ;;  %v606_v39 = vld [vmem:[#allocation14 + $0x110] sm:$0xff]  ;;  %v601_v41 = vld [vmem:[#allocation14 + $0xe8] sm:$0xff] }
  0xaa   :  { %379 = vmatmul.mubr.f32.vlgmr.msra.gmra.mxu0 %v9007_v4  ;;  %492 = vmatmul.mubr.f32.vlgmr.msra.gmra.mxu1 %v9007_v4  ;;  %v9041_v40 = vld [vmem:[%s13160_s4 + $0x20] sm:$0xff]  ;;  %v602_v44 = vld [vmem:[#allocation14 + $0xf0] sm:$0xff]  ;;  %v597_v45 = vld [vmem:[#allocation14 + $0xc8] sm:$0xff] }
  0xab   :  { %658 = vmatprep.subr.mxu0 %v633_v5  ;;  %771 = vmatprep.subr.mxu1 %v635_v6  ;;  %v603_v42 = vld [vmem:[#allocation14 + $0xf8] sm:$0xff]  ;;  %v600_v43 = vld [vmem:[#allocation14 + $0xe0] sm:$0xff]  ;;  %v598_v48 = vld [vmem:[#allocation14 + $0xd0] sm:$0xff] }
  0xac   :  { %659 = vmatpush1.msra.mxu0 %v632_v7  ;;  %772 = vmatpush1.msra.mxu1 %v634_v8  ;;  %v599_v46 = vld [vmem:[#allocation14 + $0xd8] sm:$0xff]  ;;  %v596_v47 = vld [vmem:[#allocation14 + $0xc0] sm:$0xff]  ;;  %v593_v50 = vld [vmem:[#allocation14 + $0xa8] sm:$0xff] }
  0xad   :  { %660 = vmatprep.subr.mxu0 %v629_v9  ;;  %773 = vmatprep.subr.mxu1 %v631_v10  ;;  %v9050_v49 = vld [vmem:[%s13160_s4 + $0x28] sm:$0xff]  ;;  %v595_v51 = vld [vmem:[#allocation14 + $0xb8] sm:$0xff]  ;;  %v594_v53 = vld [vmem:[#allocation14 + $0xb0] sm:$0xff] }
  0xae   :  { %384 = vmatprep.mubr.f32.mxu0 %v12735_v2  ;;  %497 = vmatprep.mubr.f32.mxu1 %v12735_v2  ;;  %v592_v52 = vld [vmem:[#allocation14 + $0xa0] sm:$0xff]  ;;  %v589_v54 = vld [vmem:[#allocation14 + $0x88] sm:$0xff]  ;;  %v591_v55 = vld [vmem:[#allocation14 + $0x98] sm:$0xff] }
  0xaf   :  { %661 = vmatpush1.msra.mxu0 %v628_v11  ;;  %774 = vmatpush1.msra.mxu1 %v630_v12  ;;  %v588_v56 = vld [vmem:[#allocation14 + $0x80] sm:$0xff]  ;;  %v590_v57 = vld [vmem:[#allocation14 + $0x90] sm:$0xff]  ;;  %v585_v59 = vld [vmem:[#allocation14 + $0x68] sm:$0xff] }
  0xb0   :  { %385 = vmatmul.mubr.f32.gmra.mxu0 %v9014_v13  ;;  %498 = vmatmul.mubr.f32.gmra.mxu1 %v9014_v13  ;;  %v9059_v58 = vld [vmem:[%s13160_s4 + $0x30] sm:$0xff]  ;;  %v587_v60 = vld [vmem:[#allocation14 + $0x78] sm:$0xff]  ;;  %v584_v61 = vld [vmem:[#allocation14 + $0x60] sm:$0xff] }
  0xb1   :  { %662 = vmatprep.subr.mxu0 %v625_v14  ;;  %775 = vmatprep.subr.mxu1 %v627_v15  ;;  %v586_v62 = vld [vmem:[#allocation14 + $0x70] sm:$0xff]  ;;  %v581_v63 = vld [vmem:[#allocation14 + $0x48] sm:$0xff]  ;;  %v583_v0 = vld [vmem:[#allocation14 + $0x58] sm:$0xff] }
  0xb2   :  { %663 = vmatpush1.msra.mxu0 %v624_v16  ;;  %776 = vmatpush1.msra.mxu1 %v626_v17  ;;  %v580_v1 = vld [vmem:[#allocation14 + $0x40] sm:$0xff]  ;;  %v582_v3 = vld [vmem:[#allocation14 + $0x50] sm:$0xff]  ;;  %v577_v6 = vld [vmem:[#allocation14 + $0x28] sm:$0xff] }
  0xb3   :  { %664 = vmatprep.subr.mxu0 %v621_v18  ;;  %777 = vmatprep.subr.mxu1 %v623_v19  ;;  %v9068_v5 = vld [vmem:[%s13160_s4 + $0x38] sm:$0xff]  ;;  %v576_v8 = vld [vmem:[#allocation14 + $0x20] sm:$0xff]  ;;  %v573_v10 = vld [vmem:[#allocation14 + $0x8] sm:$0xff]  ;;  %s13266_s4 = sld [smem:[#allocation165_spill]] }
  0xb4   :  { %390 = vmatprep.mubr.f32.mxu0 %v12735_v2  ;;  %503 = vmatprep.mubr.f32.mxu1 %v12735_v2  ;;  %v579_v7 = vld [vmem:[#allocation14 + $0x38] sm:$0xff]  ;;  %v578_v9 = vld [vmem:[#allocation14 + $0x30] sm:$0xff]  ;;  %v572_v12 = vld [vmem:[#allocation14] sm:$0xff] }
  0xb5   :  { %665 = vmatpush1.msra.mxu0 %v620_v20  ;;  %778 = vmatpush1.msra.mxu1 %v622_v21  ;;  %v575_v11 = vld [vmem:[#allocation14 + $0x18] sm:$0xff]  ;;  %v574_v14 = vld [vmem:[#allocation14 + $0x10] sm:$0xff]  ;;  %v9075_v15 = vld [vmem:[#allocation12 + $0x1e8] sm:$0xff] }
  0xb6   :  { %391 = vmatmul.mubr.f32.gmra.mxu0 %v9023_v22  ;;  %504 = vmatmul.mubr.f32.gmra.mxu1 %v9023_v22  ;;  %v9077_v16 = vld [vmem:[#allocation12 + $0x1f8] sm:$0xff]  ;;  %v9080_v17 = vld [vmem:[#allocation12 + $0x1e0] sm:$0xff]  ;;  %v9082_v18 = vld [vmem:[#allocation12 + $0x1f0] sm:$0xff] }
  0xb7   :  { %666 = vmatprep.subr.mxu0 %v617_v23  ;;  %779 = vmatprep.subr.mxu1 %v619_v24  ;;  %v9086_v19 = vld [vmem:[#allocation12 + $0x1c8] sm:$0xff]  ;;  %v9088_v20 = vld [vmem:[#allocation12 + $0x1d8] sm:$0xff]  ;;  %v9094_v21 = vld [vmem:[#allocation12 + $0x1c0] sm:$0xff] }
  0xb8   :  { %667 = vmatpush1.msra.mxu0 %v616_v25  ;;  %780 = vmatpush1.msra.mxu1 %v618_v26  ;;  %v9096_v23 = vld [vmem:[#allocation12 + $0x1d0] sm:$0xff]  ;;  %v9104_v24 = vld [vmem:[#allocation12 + $0x1b8] sm:$0xff]  ;;  %v9108_v25 = vld [vmem:[#allocation12 + $0x1a0] sm:$0xff] }
  0xb9   :  { %668 = vmatprep.subr.mxu0 %v613_v27  ;;  %781 = vmatprep.subr.mxu1 %v615_v28  ;;  %v9110_v26 = vld [vmem:[#allocation12 + $0x1b0] sm:$0xff]  ;;  %v9114_v27 = vld [vmem:[#allocation12 + $0x188] sm:$0xff]  ;;  %v9116_v28 = vld [vmem:[#allocation12 + $0x198] sm:$0xff] }
  0xba   :  { %396 = vmatprep.mubr.f32.mxu0 %v12735_v2  ;;  %509 = vmatprep.mubr.f32.mxu1 %v12735_v2 }
  0xbb   :  { %669 = vmatpush1.msra.mxu0 %v612_v29  ;;  %782 = vmatpush1.msra.mxu1 %v614_v30  ;;  %v9122_v29 = vld [vmem:[#allocation12 + $0x180] sm:$0xff]  ;;  %v9124_v30 = vld [vmem:[#allocation12 + $0x190] sm:$0xff] }
  0xbc   :  { %397 = vmatmul.mubr.f32.gmra.mxu0 %v9032_v31  ;;  %510 = vmatmul.mubr.f32.gmra.mxu1 %v9032_v31 }
  0xbd   :  { %670 = vmatprep.subr.mxu0 %v609_v32  ;;  %783 = vmatprep.subr.mxu1 %v611_v33  ;;  %v9132_v32 = vld [vmem:[#allocation12 + $0x178] sm:$0xff]  ;;  %v9136_v33 = vld [vmem:[#allocation12 + $0x160] sm:$0xff] }
  0xbe   :  { %671 = vmatpush1.msra.mxu0 %v608_v34  ;;  %784 = vmatpush1.msra.mxu1 %v610_v35  ;;  %v9138_v34 = vld [vmem:[#allocation12 + $0x170] sm:$0xff]  ;;  %v9142_v35 = vld [vmem:[#allocation12 + $0x148] sm:$0xff] }
  0xbf   :  { %672 = vmatprep.subr.mxu0 %v605_v36  ;;  %785 = vmatprep.subr.mxu1 %v607_v37  ;;  %v9144_v36 = vld [vmem:[#allocation12 + $0x158] sm:$0xff]  ;;  %v9150_v37 = vld [vmem:[#allocation12 + $0x140] sm:$0xff] }
  0xc0   :  { %402 = vmatprep.mubr.f32.mxu0 %v12735_v2  ;;  %515 = vmatprep.mubr.f32.mxu1 %v12735_v2 }
  0xc1   :  { %673 = vmatpush1.msra.mxu0 %v604_v38  ;;  %786 = vmatpush1.msra.mxu1 %v606_v39  ;;  %v9152_v38 = vld [vmem:[#allocation12 + $0x150] sm:$0xff]  ;;  %v9160_v39 = vld [vmem:[#allocation12 + $0x138] sm:$0xff] }
  0xc2   :  { %403 = vmatmul.mubr.f32.gmra.mxu0 %v9041_v40  ;;  %516 = vmatmul.mubr.f32.gmra.mxu1 %v9041_v40 }
  0xc3   :  { %674 = vmatprep.subr.mxu0 %v601_v41  ;;  %787 = vmatprep.subr.mxu1 %v603_v42  ;;  %v9164_v41 = vld [vmem:[#allocation12 + $0x120] sm:$0xff]  ;;  %v9166_v42 = vld [vmem:[#allocation12 + $0x130] sm:$0xff] }
  0xc4   :  { %675 = vmatpush1.msra.mxu0 %v600_v43  ;;  %788 = vmatpush1.msra.mxu1 %v602_v44  ;;  %v9170_v43 = vld [vmem:[#allocation12 + $0x108] sm:$0xff]  ;;  %v9172_v44 = vld [vmem:[#allocation12 + $0x118] sm:$0xff] }
  0xc5   :  { %676 = vmatprep.subr.mxu0 %v597_v45  ;;  %789 = vmatprep.subr.mxu1 %v599_v46  ;;  %v9178_v45 = vld [vmem:[#allocation12 + $0x100] sm:$0xff]  ;;  %v9180_v46 = vld [vmem:[#allocation12 + $0x110] sm:$0xff] }
  0xc6   :  { %408 = vmatprep.mubr.f32.mxu0 %v12735_v2  ;;  %521 = vmatprep.mubr.f32.mxu1 %v12735_v2 }
  0xc7   :  { %677 = vmatpush1.msra.mxu0 %v596_v47  ;;  %790 = vmatpush1.msra.mxu1 %v598_v48  ;;  %v9188_v47 = vld [vmem:[#allocation12 + $0xf8] sm:$0xff]  ;;  %v9192_v48 = vld [vmem:[#allocation12 + $0xe0] sm:$0xff] }
  0xc8   :  { %409 = vmatmul.mubr.f32.gmra.mxu0 %v9050_v49  ;;  %522 = vmatmul.mubr.f32.gmra.mxu1 %v9050_v49 }
  0xc9   :  { %678 = vmatprep.subr.mxu0 %v593_v50  ;;  %791 = vmatprep.subr.mxu1 %v595_v51  ;;  %v9194_v50 = vld [vmem:[#allocation12 + $0xf0] sm:$0xff]  ;;  %v9198_v51 = vld [vmem:[#allocation12 + $0xc8] sm:$0xff] }
  0xca   :  { %679 = vmatpush1.msra.mxu0 %v592_v52  ;;  %792 = vmatpush1.msra.mxu1 %v594_v53  ;;  %v9200_v52 = vld [vmem:[#allocation12 + $0xd8] sm:$0xff]  ;;  %v9206_v53 = vld [vmem:[#allocation12 + $0xc0] sm:$0xff] }
  0xcb   :  { %680 = vmatprep.subr.mxu0 %v589_v54  ;;  %793 = vmatprep.subr.mxu1 %v591_v55  ;;  %v9208_v54 = vld [vmem:[#allocation12 + $0xd0] sm:$0xff]  ;;  %v9216_v55 = vld [vmem:[#allocation12 + $0xb8] sm:$0xff] }
  0xcc   :  { %414 = vmatprep.mubr.f32.mxu0 %v12735_v2  ;;  %527 = vmatprep.mubr.f32.mxu1 %v12735_v2 }
  0xcd   :  { %681 = vmatpush1.msra.mxu0 %v588_v56  ;;  %794 = vmatpush1.msra.mxu1 %v590_v57  ;;  %v9220_v56 = vld [vmem:[#allocation12 + $0xa0] sm:$0xff]  ;;  %v9222_v57 = vld [vmem:[#allocation12 + $0xb0] sm:$0xff] }
  0xce   :  { %415 = vmatmul.mubr.f32.gmra.mxu0 %v9059_v58  ;;  %528 = vmatmul.mubr.f32.gmra.mxu1 %v9059_v58 }
  0xcf   :  { %682 = vmatprep.subr.mxu0 %v585_v59  ;;  %795 = vmatprep.subr.mxu1 %v587_v60  ;;  %v9226_v59 = vld [vmem:[#allocation12 + $0x88] sm:$0xff]  ;;  %v9228_v60 = vld [vmem:[#allocation12 + $0x98] sm:$0xff] }
  0xd0   :  { %683 = vmatpush1.msra.mxu0 %v584_v61  ;;  %796 = vmatpush1.msra.mxu1 %v586_v62  ;;  %v9234_v61 = vld [vmem:[#allocation12 + $0x80] sm:$0xff]  ;;  %v9236_v62 = vld [vmem:[#allocation12 + $0x90] sm:$0xff] }
  0xd1   :  { %684 = vmatprep.subr.mxu0 %v581_v63  ;;  %797 = vmatprep.subr.mxu1 %v583_v0  ;;  %v9244_v63 = vld [vmem:[#allocation12 + $0x78] sm:$0xff]  ;;  %v9248_v0 = vld [vmem:[#allocation12 + $0x60] sm:$0xff] }
  0xd2   :  { %420 = vmatprep.mubr.f32.mxu0 %v12735_v2  ;;  %533 = vmatprep.mubr.f32.mxu1 %v12735_v2 }
  0xd3   :  { %685 = vmatpush1.msra.mxu0 %v580_v1  ;;  %798 = vmatpush1.msra.mxu1 %v582_v3  ;;  %v9250_v1 = vld [vmem:[#allocation12 + $0x70] sm:$0xff]  ;;  %v9254_v3 = vld [vmem:[#allocation12 + $0x48] sm:$0xff] }
  0xd4   :  { %421 = vmatmul.mubr.f32.gmra.mxu0 %v9068_v5  ;;  %534 = vmatmul.mubr.f32.gmra.mxu1 %v9068_v5  ;;  %13161 = vst [vmem:[#allocation32_spill] sm:$0xff] %v9254_v3 }
  0xd5   :  { %686 = vmatprep.subr.mxu0 %v577_v6  ;;  %799 = vmatprep.subr.mxu1 %v579_v7  ;;  %v9256_v6 = vld [vmem:[#allocation12 + $0x58] sm:$0xff]  ;;  %v9262_v7 = vld [vmem:[#allocation12 + $0x40] sm:$0xff] }
  0xd6   :  { %687 = vmatpush1.msra.mxu0 %v576_v8  ;;  %800 = vmatpush1.msra.mxu1 %v578_v9  ;;  %13162 = vst [vmem:[#allocation33_spill] sm:$0xff] %v9256_v6  ;;  %13163 = vst [vmem:[#allocation34_spill] sm:$0xff] %v9262_v7  ;;  %v9264_v8 = vld [vmem:[#allocation12 + $0x50] sm:$0xff]  ;;  %v9272_v9 = vld [vmem:[#allocation12 + $0x38] sm:$0xff] }
  0xd7   :  { %688 = vmatprep.subr.mxu0 %v573_v10  ;;  %801 = vmatprep.subr.mxu1 %v575_v11  ;;  %13164 = vst [vmem:[#allocation35_spill] sm:$0xff] %v9264_v8  ;;  %13166 = vst [vmem:[#allocation37_spill] sm:$0xff] %v9272_v9  ;;  %v9276_v10 = vld [vmem:[#allocation12 + $0x20] sm:$0xff]  ;;  %v9278_v11 = vld [vmem:[#allocation12 + $0x30] sm:$0xff] }
  0xd8   :  { %689 = vmatpush1.msra.mxu0 %v572_v12  ;;  %722 = vmatprep.mubr.f32.mxu0 %v12735_v2  ;;  %13167 = vst [vmem:[#allocation38_spill] sm:$0xff] %v9276_v10  ;;  %13168 = vst [vmem:[#allocation39_spill] sm:$0xff] %v9278_v11  ;;  %v9282_v12 = vld [vmem:[#allocation12 + $0x8] sm:$0xff] }
  0xd9   :  { %802 = vmatpush1.msra.mxu1 %v574_v14  ;;  %835 = vmatprep.mubr.f32.mxu1 %v12735_v2  ;;  %13169 = vst [vmem:[#allocation40_spill] sm:$0xff] %v9282_v12  ;;  %v9284_v14 = vld [vmem:[#allocation12 + $0x18] sm:$0xff] }
  0xda   :  { %723 = vmatmul.mubr.f32.vlgmr.msra.gmra.mxu0 %v9007_v4  ;;  %836 = vmatmul.mubr.f32.vlgmr.msra.gmra.mxu1 %v9007_v4  ;;  %v9102_v4 = vld [vmem:[#allocation12 + $0x1a8] sm:$0xff]  ;;  %13170 = vst [vmem:[#allocation41_spill] sm:$0xff] %v9284_v14 }
  0xdb   :  { %984 = vmatprep.subr.mxu0 %v9075_v15  ;;  %1055 = vmatprep.subr.mxu1 %v9077_v16 }
  0xdc   :  { %985 = vmatpush1.msra.mxu0 %v9080_v17  ;;  %1056 = vmatpush1.msra.mxu1 %v9082_v18 }
  0xdd   :  { %986 = vmatprep.subr.mxu0 %v9086_v19  ;;  %1057 = vmatprep.subr.mxu1 %v9088_v20 }
  0xde   :  { %728 = vmatprep.mubr.f32.mxu0 %v12735_v2  ;;  %841 = vmatprep.mubr.f32.mxu1 %v12735_v2 }
  0xdf   :  { %987 = vmatpush1.msra.mxu0 %v9094_v21  ;;  %1058 = vmatpush1.msra.mxu1 %v9096_v23 }
  0xe0   :  { %729 = vmatmul.mubr.f32.gmra.mxu0 %v9014_v13  ;;  %842 = vmatmul.mubr.f32.gmra.mxu1 %v9014_v13  ;;  %v9130_v13 = vld [vmem:[#allocation12 + $0x168] sm:$0xff] }
  0xe1   :  { %988 = vmatprep.subr.mxu0 %v9102_v4  ;;  %1059 = vmatprep.subr.mxu1 %v9104_v24 }
  0xe2   :  { %989 = vmatpush1.msra.mxu0 %v9108_v25  ;;  %1060 = vmatpush1.msra.mxu1 %v9110_v26 }
  0xe3   :  { %990 = vmatprep.subr.mxu0 %v9114_v27  ;;  %1061 = vmatprep.subr.mxu1 %v9116_v28 }
  0xe4   :  { %734 = vmatprep.mubr.f32.mxu0 %v12735_v2  ;;  %847 = vmatprep.mubr.f32.mxu1 %v12735_v2 }
  0xe5   :  { %991 = vmatpush1.msra.mxu0 %v9122_v29  ;;  %1062 = vmatpush1.msra.mxu1 %v9124_v30 }
  0xe6   :  { %735 = vmatmul.mubr.f32.gmra.mxu0 %v9023_v22  ;;  %848 = vmatmul.mubr.f32.gmra.mxu1 %v9023_v22  ;;  %v9158_v22 = vld [vmem:[#allocation12 + $0x128] sm:$0xff] }
  0xe7   :  { %992 = vmatprep.subr.mxu0 %v9130_v13  ;;  %1063 = vmatprep.subr.mxu1 %v9132_v32 }
  0xe8   :  { %993 = vmatpush1.msra.mxu0 %v9136_v33  ;;  %1064 = vmatpush1.msra.mxu1 %v9138_v34 }
  0xe9   :  { %994 = vmatprep.subr.mxu0 %v9142_v35  ;;  %1065 = vmatprep.subr.mxu1 %v9144_v36 }
  0xea   :  { %740 = vmatprep.mubr.f32.mxu0 %v12735_v2  ;;  %853 = vmatprep.mubr.f32.mxu1 %v12735_v2 }
  0xeb   :  { %995 = vmatpush1.msra.mxu0 %v9150_v37  ;;  %1066 = vmatpush1.msra.mxu1 %v9152_v38 }
  0xec   :  { %741 = vmatmul.mubr.f32.gmra.mxu0 %v9032_v31  ;;  %854 = vmatmul.mubr.f32.gmra.mxu1 %v9032_v31  ;;  %v9186_v31 = vld [vmem:[#allocation12 + $0xe8] sm:$0xff] }
  0xed   :  { %996 = vmatprep.subr.mxu0 %v9158_v22  ;;  %1067 = vmatprep.subr.mxu1 %v9160_v39 }
  0xee   :  { %997 = vmatpush1.msra.mxu0 %v9164_v41  ;;  %1068 = vmatpush1.msra.mxu1 %v9166_v42 }
  0xef   :  { %998 = vmatprep.subr.mxu0 %v9170_v43  ;;  %1069 = vmatprep.subr.mxu1 %v9172_v44 }
  0xf0   :  { %746 = vmatprep.mubr.f32.mxu0 %v12735_v2  ;;  %859 = vmatprep.mubr.f32.mxu1 %v12735_v2 }
  0xf1   :  { %999 = vmatpush1.msra.mxu0 %v9178_v45  ;;  %1070 = vmatpush1.msra.mxu1 %v9180_v46 }
  0xf2   :  { %747 = vmatmul.mubr.f32.gmra.mxu0 %v9041_v40  ;;  %860 = vmatmul.mubr.f32.gmra.mxu1 %v9041_v40  ;;  %v9214_v40 = vld [vmem:[#allocation12 + $0xa8] sm:$0xff] }
  0xf3   :  { %1000 = vmatprep.subr.mxu0 %v9186_v31  ;;  %1071 = vmatprep.subr.mxu1 %v9188_v47 }
  0xf4   :  { %1001 = vmatpush1.msra.mxu0 %v9192_v48  ;;  %1072 = vmatpush1.msra.mxu1 %v9194_v50 }
  0xf5   :  { %1002 = vmatprep.subr.mxu0 %v9198_v51  ;;  %1073 = vmatprep.subr.mxu1 %v9200_v52 }
  0xf6   :  { %752 = vmatprep.mubr.f32.mxu0 %v12735_v2  ;;  %865 = vmatprep.mubr.f32.mxu1 %v12735_v2 }
  0xf7   :  { %1003 = vmatpush1.msra.mxu0 %v9206_v53  ;;  %1074 = vmatpush1.msra.mxu1 %v9208_v54 }
  0xf8   :  { %753 = vmatmul.mubr.f32.gmra.mxu0 %v9050_v49  ;;  %866 = vmatmul.mubr.f32.gmra.mxu1 %v9050_v49  ;;  %v9242_v49 = vld [vmem:[#allocation12 + $0x68] sm:$0xff] }
  0xf9   :  { %1004 = vmatprep.subr.mxu0 %v9214_v40  ;;  %1075 = vmatprep.subr.mxu1 %v9216_v55 }
  0xfa   :  { %1005 = vmatpush1.msra.mxu0 %v9220_v56  ;;  %1076 = vmatpush1.msra.mxu1 %v9222_v57 }
  0xfb   :  { %1006 = vmatprep.subr.mxu0 %v9226_v59  ;;  %1077 = vmatprep.subr.mxu1 %v9228_v60 }
  0xfc   :  { %758 = vmatprep.mubr.f32.mxu0 %v12735_v2  ;;  %871 = vmatprep.mubr.f32.mxu1 %v12735_v2 }
  0xfd   :  { %1007 = vmatpush1.msra.mxu0 %v9234_v61  ;;  %1078 = vmatpush1.msra.mxu1 %v9236_v62 }
  0xfe   :  { %759 = vmatmul.mubr.f32.gmra.mxu0 %v9059_v58  ;;  %872 = vmatmul.mubr.f32.gmra.mxu1 %v9059_v58  ;;  %v9270_v58 = vld [vmem:[#allocation12 + $0x28] sm:$0xff] }
  0xff   :  { %1008 = vmatprep.subr.mxu0 %v9242_v49  ;;  %1079 = vmatprep.subr.mxu1 %v9244_v63  ;;  %13165 = vst [vmem:[#allocation36_spill] sm:$0xff] %v9270_v58 }
 0x100   :  { %1009 = vmatpush1.msra.mxu0 %v9248_v0  ;;  %1080 = vmatpush1.msra.mxu1 %v9250_v1 }
 0x101   :  { %1010 = vmatprep.subr.mxu0 %v9254_v3  ;;  %1081 = vmatprep.subr.mxu1 %v9256_v6  ;;  %v9324_v6 = vld [vmem:[#allocation15 + $0x1b8] sm:$0xff]  ;;  %v9328_v3 = vld [vmem:[#allocation15 + $0x1a0] sm:$0xff] }
 0x102   :  { %764 = vmatprep.mubr.f32.mxu0 %v12735_v2  ;;  %877 = vmatprep.mubr.f32.mxu1 %v12735_v2  ;;  %v9288_v2 = vld [vmem:[#allocation12] sm:$0xff]  ;;  %13183 = vst [vmem:[#allocation53_spill] sm:$0xff] %v9324_v6  ;;  %13184 = vst [vmem:[#allocation54_spill] sm:$0xff] %v9328_v3 }
 0x103   :  { %1011 = vmatpush1.msra.mxu0 %v9262_v7  ;;  %1082 = vmatpush1.msra.mxu1 %v9264_v8  ;;  %13171 = vst [vmem:[#allocation42_spill] sm:$0xff] %v9288_v2  ;;  %v9292_v8 = vld [vmem:[#allocation12 + $0x10] sm:$0xff]  ;;  %v9298_v7 = vld [vmem:[#allocation15 + $0x1e8] sm:$0xff] }
 0x104   :  { %765 = vmatmul.mubr.f32.gmra.mxu0 %v9068_v5  ;;  %878 = vmatmul.mubr.f32.gmra.mxu1 %v9068_v5  ;;  %13172 = vst [vmem:[#allocation43_spill] sm:$0xff] %v9292_v8  ;;  %v13173_v5 = vmov 0.0   ;;  %13174 = vst [vmem:[#allocation44_spill] sm:$0xff] %v9298_v7 }
 0x105   :  { %1012 = vmatprep.subr.mxu0 %v9270_v58  ;;  %1083 = vmatprep.subr.mxu1 %v9272_v9  ;;  %v9300_v58 = vld [vmem:[#allocation15 + $0x1f8] sm:$0xff]  ;;  %v9322_v9 = vld [vmem:[#allocation15 + $0x1a8] sm:$0xff] }
 0x106   :  { %1013 = vmatpush1.msra.mxu0 %v9276_v10  ;;  %1084 = vmatpush1.msra.mxu1 %v9278_v11  ;;  %13175 = vst [vmem:[#allocation45_spill] sm:$0xff] %v9300_v58  ;;  %v9304_v10 = vld [vmem:[#allocation15 + $0x1e0] sm:$0xff]  ;;  %v9306_v11 = vld [vmem:[#allocation15 + $0x1f0] sm:$0xff]  ;;  %13182 = vst [vmem:[#allocation52_spill] sm:$0xff] %v9322_v9 }
 0x107   :  { %1014 = vmatprep.subr.mxu0 %v9282_v12  ;;  %1085 = vmatprep.subr.mxu1 %v9284_v14  ;;  %13176 = vst [vmem:[#allocation46_spill] sm:$0xff] %v9304_v10  ;;  %13177 = vst [vmem:[#allocation47_spill] sm:$0xff] %v9306_v11  ;;  %v9310_v14 = vld [vmem:[#allocation15 + $0x1c8] sm:$0xff]  ;;  %v9316_v12 = vld [vmem:[#allocation15 + $0x1c0] sm:$0xff] }
 0x108   :  { %1015 = vmatpush1.msra.mxu0 %v9288_v2  ;;  %1048 = vmatprep.mubr.f32.mxu0 %v13173_v5  ;;  %13178 = vst [vmem:[#allocation48_spill] sm:$0xff] %v9310_v14  ;;  %v9312_v2 = vld [vmem:[#allocation15 + $0x1d8] sm:$0xff]  ;;  %13180 = vst [vmem:[#allocation50_spill] sm:$0xff] %v9316_v12 }
 0x109   :  { %1086 = vmatpush1.msra.mxu1 %v9292_v8  ;;  %1119 = vmatprep.mubr.f32.mxu1 %v13173_v5  ;;  %13179 = vst [vmem:[#allocation49_spill] sm:$0xff] %v9312_v2  ;;  %v9318_v8 = vld [vmem:[#allocation15 + $0x1d0] sm:$0xff] }
 0x10a   :  { %1049 = vmatmul.mubr.f32.vlgmr.msra.gmra.mxu0 %v13173_v5  ;;  %1120 = vmatmul.mubr.f32.vlgmr.msra.gmra.mxu1 %v13173_v5  ;;  %13181 = vst [vmem:[#allocation51_spill] sm:$0xff] %v9318_v8 }
 0x10b   :  { %1198 = vmatprep.subr.mxu0 %v9298_v7  ;;  %1269 = vmatprep.subr.mxu1 %v9300_v58  ;;  %v9330_v7 = vld [vmem:[#allocation15 + $0x1b0] sm:$0xff]  ;;  %v9334_v58 = vld [vmem:[#allocation15 + $0x188] sm:$0xff] }
 0x10c   :  { %1199 = vmatpush1.msra.mxu0 %v9304_v10  ;;  %1270 = vmatpush1.msra.mxu1 %v9306_v11  ;;  %13185 = vst [vmem:[#allocation55_spill] sm:$0xff] %v9330_v7  ;;  %13186 = vst [vmem:[#allocation56_spill] sm:$0xff] %v9334_v58  ;;  %v9336_v10 = vld [vmem:[#allocation15 + $0x198] sm:$0xff]  ;;  %v9340_v11 = vld [vmem:[#allocation15 + $0x180] sm:$0xff] }
 0x10d   :  { %1200 = vmatprep.subr.mxu0 %v9310_v14  ;;  %1271 = vmatprep.subr.mxu1 %v9312_v2  ;;  %13187 = vst [vmem:[#allocation57_spill] sm:$0xff] %v9336_v10  ;;  %13188 = vst [vmem:[#allocation58_spill] sm:$0xff] %v9340_v11  ;;  %v9342_v14 = vld [vmem:[#allocation15 + $0x190] sm:$0xff]  ;;  %v9346_v2 = vld [vmem:[#allocation15 + $0x168] sm:$0xff] }
 0x10e   :  { %1201 = vmatpush1.msra.mxu0 %v9316_v12  ;;  %1272 = vmatpush1.msra.mxu1 %v9318_v8  ;;  %13189 = vst [vmem:[#allocation59_spill] sm:$0xff] %v9342_v14  ;;  %13190 = vst [vmem:[#allocation60_spill] sm:$0xff] %v9346_v2  ;;  %v9348_v12 = vld [vmem:[#allocation15 + $0x178] sm:$0xff]  ;;  %v9352_v8 = vld [vmem:[#allocation15 + $0x160] sm:$0xff] }
 0x10f   :  { %1202 = vmatprep.subr.mxu0 %v9322_v9  ;;  %1273 = vmatprep.subr.mxu1 %v9324_v6  ;;  %13191 = vst [vmem:[#allocation61_spill] sm:$0xff] %v9348_v12  ;;  %13192 = vst [vmem:[#allocation62_spill] sm:$0xff] %v9352_v8  ;;  %v9354_v9 = vld [vmem:[#allocation15 + $0x170] sm:$0xff]  ;;  %v9358_v6 = vld [vmem:[#allocation15 + $0x148] sm:$0xff] }
 0x110   :  { %1203 = vmatpush1.msra.mxu0 %v9328_v3  ;;  %1274 = vmatpush1.msra.mxu1 %v9330_v7  ;;  %13193 = vst [vmem:[#allocation63_spill] sm:$0xff] %v9354_v9  ;;  %13194 = vst [vmem:[#allocation64_spill] sm:$0xff] %v9358_v6  ;;  %v9360_v3 = vld [vmem:[#allocation15 + $0x158] sm:$0xff]  ;;  %v9364_v7 = vld [vmem:[#allocation15 + $0x140] sm:$0xff] }
 0x111   :  { %1204 = vmatprep.subr.mxu0 %v9334_v58  ;;  %1275 = vmatprep.subr.mxu1 %v9336_v10  ;;  %13195 = vst [vmem:[#allocation65_spill] sm:$0xff] %v9360_v3  ;;  %13196 = vst [vmem:[#allocation66_spill] sm:$0xff] %v9364_v7  ;;  %v9366_v58 = vld [vmem:[#allocation15 + $0x150] sm:$0xff]  ;;  %v9370_v10 = vld [vmem:[#allocation15 + $0x128] sm:$0xff] }
 0x112   :  { %1205 = vmatpush1.msra.mxu0 %v9340_v11  ;;  %1276 = vmatpush1.msra.mxu1 %v9342_v14  ;;  %13197 = vst [vmem:[#allocation67_spill] sm:$0xff] %v9366_v58  ;;  %13198 = vst [vmem:[#allocation68_spill] sm:$0xff] %v9370_v10  ;;  %v9372_v11 = vld [vmem:[#allocation15 + $0x138] sm:$0xff]  ;;  %v9376_v14 = vld [vmem:[#allocation15 + $0x120] sm:$0xff] }
 0x113   :  { %1206 = vmatprep.subr.mxu0 %v9346_v2  ;;  %1277 = vmatprep.subr.mxu1 %v9348_v12  ;;  %13199 = vst [vmem:[#allocation69_spill] sm:$0xff] %v9372_v11  ;;  %13200 = vst [vmem:[#allocation70_spill] sm:$0xff] %v9376_v14  ;;  %v9378_v2 = vld [vmem:[#allocation15 + $0x130] sm:$0xff]  ;;  %v9382_v12 = vld [vmem:[#allocation15 + $0x108] sm:$0xff] }
 0x114   :  { %1207 = vmatpush1.msra.mxu0 %v9352_v8  ;;  %1278 = vmatpush1.msra.mxu1 %v9354_v9  ;;  %13201 = vst [vmem:[#allocation71_spill] sm:$0xff] %v9378_v2  ;;  %13202 = vst [vmem:[#allocation72_spill] sm:$0xff] %v9382_v12  ;;  %v9384_v8 = vld [vmem:[#allocation15 + $0x118] sm:$0xff]  ;;  %v9388_v9 = vld [vmem:[#allocation15 + $0x100] sm:$0xff] }
 0x115   :  { %1208 = vmatprep.subr.mxu0 %v9358_v6  ;;  %1279 = vmatprep.subr.mxu1 %v9360_v3  ;;  %13203 = vst [vmem:[#allocation73_spill] sm:$0xff] %v9384_v8  ;;  %13204 = vst [vmem:[#allocation74_spill] sm:$0xff] %v9388_v9  ;;  %v9390_v6 = vld [vmem:[#allocation15 + $0x110] sm:$0xff]  ;;  %v9394_v3 = vld [vmem:[#allocation15 + $0xe8] sm:$0xff] }
 0x116   :  { %1209 = vmatpush1.msra.mxu0 %v9364_v7  ;;  %1280 = vmatpush1.msra.mxu1 %v9366_v58  ;;  %13205 = vst [vmem:[#allocation75_spill] sm:$0xff] %v9390_v6  ;;  %13206 = vst [vmem:[#allocation76_spill] sm:$0xff] %v9394_v3  ;;  %v9396_v7 = vld [vmem:[#allocation15 + $0xf8] sm:$0xff]  ;;  %v9400_v58 = vld [vmem:[#allocation15 + $0xe0] sm:$0xff] }
 0x117   :  { %1210 = vmatprep.subr.mxu0 %v9370_v10  ;;  %1281 = vmatprep.subr.mxu1 %v9372_v11  ;;  %13207 = vst [vmem:[#allocation77_spill] sm:$0xff] %v9396_v7  ;;  %13208 = vst [vmem:[#allocation78_spill] sm:$0xff] %v9400_v58  ;;  %v9402_v10 = vld [vmem:[#allocation15 + $0xf0] sm:$0xff]  ;;  %v9406_v11 = vld [vmem:[#allocation15 + $0xc8] sm:$0xff] }
 0x118   :  { %1211 = vmatpush1.msra.mxu0 %v9376_v14  ;;  %1282 = vmatpush1.msra.mxu1 %v9378_v2  ;;  %13209 = vst [vmem:[#allocation79_spill] sm:$0xff] %v9402_v10  ;;  %13210 = vst [vmem:[#allocation80_spill] sm:$0xff] %v9406_v11  ;;  %v9408_v14 = vld [vmem:[#allocation15 + $0xd8] sm:$0xff]  ;;  %v9412_v2 = vld [vmem:[#allocation15 + $0xc0] sm:$0xff] }
 0x119   :  { %1212 = vmatprep.subr.mxu0 %v9382_v12  ;;  %1283 = vmatprep.subr.mxu1 %v9384_v8  ;;  %13211 = vst [vmem:[#allocation81_spill] sm:$0xff] %v9408_v14  ;;  %13212 = vst [vmem:[#allocation82_spill] sm:$0xff] %v9412_v2  ;;  %v9414_v12 = vld [vmem:[#allocation15 + $0xd0] sm:$0xff]  ;;  %v9418_v8 = vld [vmem:[#allocation15 + $0xa8] sm:$0xff] }
 0x11a   :  { %1213 = vmatpush1.msra.mxu0 %v9388_v9  ;;  %1284 = vmatpush1.msra.mxu1 %v9390_v6  ;;  %13213 = vst [vmem:[#allocation83_spill] sm:$0xff] %v9414_v12  ;;  %13214 = vst [vmem:[#allocation84_spill] sm:$0xff] %v9418_v8  ;;  %v9420_v9 = vld [vmem:[#allocation15 + $0xb8] sm:$0xff]  ;;  %v9424_v6 = vld [vmem:[#allocation15 + $0xa0] sm:$0xff] }
 0x11b   :  { %1214 = vmatprep.subr.mxu0 %v9394_v3  ;;  %1285 = vmatprep.subr.mxu1 %v9396_v7  ;;  %13215 = vst [vmem:[#allocation85_spill] sm:$0xff] %v9420_v9  ;;  %13216 = vst [vmem:[#allocation86_spill] sm:$0xff] %v9424_v6  ;;  %v9426_v3 = vld [vmem:[#allocation15 + $0xb0] sm:$0xff]  ;;  %v9430_v7 = vld [vmem:[#allocation15 + $0x88] sm:$0xff] }
 0x11c   :  { %1215 = vmatpush1.msra.mxu0 %v9400_v58  ;;  %1286 = vmatpush1.msra.mxu1 %v9402_v10  ;;  %13217 = vst [vmem:[#allocation87_spill] sm:$0xff] %v9426_v3  ;;  %13218 = vst [vmem:[#allocation88_spill] sm:$0xff] %v9430_v7  ;;  %v9432_v58 = vld [vmem:[#allocation15 + $0x98] sm:$0xff]  ;;  %v9436_v10 = vld [vmem:[#allocation15 + $0x80] sm:$0xff] }
 0x11d   :  { %1216 = vmatprep.subr.mxu0 %v9406_v11  ;;  %1287 = vmatprep.subr.mxu1 %v9408_v14  ;;  %13219 = vst [vmem:[#allocation89_spill] sm:$0xff] %v9432_v58  ;;  %13220 = vst [vmem:[#allocation90_spill] sm:$0xff] %v9436_v10  ;;  %v9438_v11 = vld [vmem:[#allocation15 + $0x90] sm:$0xff]  ;;  %v9442_v14 = vld [vmem:[#allocation15 + $0x68] sm:$0xff] }
 0x11e   :  { %1217 = vmatpush1.msra.mxu0 %v9412_v2  ;;  %1288 = vmatpush1.msra.mxu1 %v9414_v12  ;;  %13221 = vst [vmem:[#allocation91_spill] sm:$0xff] %v9438_v11  ;;  %13222 = vst [vmem:[#allocation92_spill] sm:$0xff] %v9442_v14  ;;  %v9444_v2 = vld [vmem:[#allocation15 + $0x78] sm:$0xff]  ;;  %v9448_v12 = vld [vmem:[#allocation15 + $0x60] sm:$0xff] }
 0x11f   :  { %1218 = vmatprep.subr.mxu0 %v9418_v8  ;;  %1289 = vmatprep.subr.mxu1 %v9420_v9  ;;  %13223 = vst [vmem:[#allocation93_spill] sm:$0xff] %v9444_v2  ;;  %13224 = vst [vmem:[#allocation94_spill] sm:$0xff] %v9448_v12  ;;  %v9450_v8 = vld [vmem:[#allocation15 + $0x70] sm:$0xff]  ;;  %v9454_v9 = vld [vmem:[#allocation15 + $0x48] sm:$0xff] }
 0x120   :  { %1219 = vmatpush1.msra.mxu0 %v9424_v6  ;;  %1290 = vmatpush1.msra.mxu1 %v9426_v3  ;;  %13225 = vst [vmem:[#allocation95_spill] sm:$0xff] %v9450_v8  ;;  %v9456_v6 = vld [vmem:[#allocation15 + $0x58] sm:$0xff]  ;;  %v9460_v3 = vld [vmem:[#allocation15 + $0x40] sm:$0xff] }
 0x121   :  { %1220 = vmatprep.subr.mxu0 %v9430_v7  ;;  %1291 = vmatprep.subr.mxu1 %v9432_v58  ;;  %13226 = vst [vmem:[#allocation96_spill] sm:$0xff] %v9456_v6  ;;  %v9462_v7 = vld [vmem:[#allocation15 + $0x50] sm:$0xff]  ;;  %v9466_v58 = vld [vmem:[#allocation15 + $0x28] sm:$0xff] }
 0x122   :  { %1221 = vmatpush1.msra.mxu0 %v9436_v10  ;;  %1292 = vmatpush1.msra.mxu1 %v9438_v11  ;;  %v9468_v10 = vld [vmem:[#allocation15 + $0x38] sm:$0xff]  ;;  %v9472_v11 = vld [vmem:[#allocation15 + $0x20] sm:$0xff] }
 0x123   :  { %1222 = vmatprep.subr.mxu0 %v9442_v14  ;;  %1293 = vmatprep.subr.mxu1 %v9444_v2  ;;  %v9474_v14 = vld [vmem:[#allocation15 + $0x30] sm:$0xff]  ;;  %v9478_v2 = vld [vmem:[#allocation15 + $0x8] sm:$0xff] }
 0x124   :  { %1223 = vmatpush1.msra.mxu0 %v9448_v12  ;;  %1294 = vmatpush1.msra.mxu1 %v9450_v8  ;;  %v9480_v12 = vld [vmem:[#allocation15 + $0x18] sm:$0xff]  ;;  %v9484_v8 = vld [vmem:[#allocation15] sm:$0xff] }
 0x125   :  { %1224 = vmatprep.subr.mxu0 %v9454_v9  ;;  %1295 = vmatprep.subr.mxu1 %v9456_v6  ;;  %v9488_v6 = vld [vmem:[#allocation15 + $0x10] sm:$0xff] }
 0x126   :  { %1225 = vmatpush1.msra.mxu0 %v9460_v3  ;;  %1296 = vmatpush1.msra.mxu1 %v9462_v7 }
 0x127   :  { %1226 = vmatprep.subr.mxu0 %v9466_v58  ;;  %1297 = vmatprep.subr.mxu1 %v9468_v10 }
 0x128   :  { %1227 = vmatpush1.msra.mxu0 %v9472_v11  ;;  %1298 = vmatpush1.msra.mxu1 %v9474_v14 }
 0x129   :  { %1228 = vmatprep.subr.mxu0 %v9478_v2  ;;  %1299 = vmatprep.subr.mxu1 %v9480_v12 }
 0x12a   :  { %1229 = vmatpush1.msra.mxu0 %v9484_v8  ;;  %1262 = vmatprep.mubr.f32.mxu0 %v13173_v5 }
 0x12b   :  { %1300 = vmatpush1.msra.mxu1 %v9488_v6  ;;  %1333 = vmatprep.mubr.f32.mxu1 %v13173_v5 }
 0x12c   :  { %1263 = vmatmul.mubr.f32.vlgmr.msra.gmra.mxu0 %v13173_v5  ;;  %1334 = vmatmul.mubr.f32.vlgmr.msra.gmra.mxu1 %v13173_v5 }
 0x12d   :  { %1462 = vmatprep.subr.mxu0 %v9075_v15  ;;  %1533 = vmatprep.subr.mxu1 %v9077_v16  ;;  %v13227_v15 = vld [vmem:[#allocation32_spill] sm:$0xff]  ;;  %v13228_v16 = vld [vmem:[#allocation33_spill] sm:$0xff] }
 0x12e   :  { %1463 = vmatpush1.msra.mxu0 %v9080_v17  ;;  %1534 = vmatpush1.msra.mxu1 %v9082_v18  ;;  %v13229_v17 = vld [vmem:[#allocation34_spill] sm:$0xff]  ;;  %v13230_v18 = vld [vmem:[#allocation35_spill] sm:$0xff] }
 0x12f   :  { %1464 = vmatprep.subr.mxu0 %v9086_v19  ;;  %1535 = vmatprep.subr.mxu1 %v9088_v20  ;;  %v13231_v19 = vld [vmem:[#allocation36_spill] sm:$0xff]  ;;  %v13232_v20 = vld [vmem:[#allocation37_spill] sm:$0xff] }
 0x130   :  { %1465 = vmatpush1.msra.mxu0 %v9094_v21  ;;  %1536 = vmatpush1.msra.mxu1 %v9096_v23  ;;  %v13233_v21 = vld [vmem:[#allocation38_spill] sm:$0xff]  ;;  %v13234_v23 = vld [vmem:[#allocation39_spill] sm:$0xff] }
 0x131   :  { %1466 = vmatprep.subr.mxu0 %v9102_v4  ;;  %1537 = vmatprep.subr.mxu1 %v9104_v24  ;;  %v13235_v4 = vld [vmem:[#allocation40_spill] sm:$0xff]  ;;  %v13236_v24 = vld [vmem:[#allocation41_spill] sm:$0xff] }
 0x132   :  { %1467 = vmatpush1.msra.mxu0 %v9108_v25  ;;  %1538 = vmatpush1.msra.mxu1 %v9110_v26  ;;  %v13237_v25 = vld [vmem:[#allocation42_spill] sm:$0xff]  ;;  %v13238_v26 = vld [vmem:[#allocation43_spill] sm:$0xff] }
 0x133   :  { %1468 = vmatprep.subr.mxu0 %v9114_v27  ;;  %1539 = vmatprep.subr.mxu1 %v9116_v28  ;;  %v13239_v27 = vld [vmem:[#allocation44_spill] sm:$0xff]  ;;  %v13240_v28 = vld [vmem:[#allocation45_spill] sm:$0xff] }
 0x134   :  { %1469 = vmatpush1.msra.mxu0 %v9122_v29  ;;  %1540 = vmatpush1.msra.mxu1 %v9124_v30  ;;  %v294_v29 = vlaneseq }
 0x135   :  { %1470 = vmatprep.subr.mxu0 %v9130_v13  ;;  %1541 = vmatprep.subr.mxu1 %v9132_v32 }
 0x136   :  { %1471 = vmatpush1.msra.mxu0 %v9136_v33  ;;  %1542 = vmatpush1.msra.mxu1 %v9138_v34  ;;  %v295_v30 = vshrl.u32 %v294_v29, 7 }
 0x137   :  { %1472 = vmatprep.subr.mxu0 %v9142_v35  ;;  %1543 = vmatprep.subr.mxu1 %v9144_v36  ;;  %v292_v35 = vld [vmem:[%s13243_s2] sm:$0xf] }
 0x138   :  { %1473 = vmatpush1.msra.mxu0 %v9150_v37  ;;  %1544 = vmatpush1.msra.mxu1 %v9152_v38  ;;  %v9570_v33 = vsub.s32 0, %v295_v30  ;;  %v9572_v34 = vsub.s32 2, %v295_v30  ;;  %v9581_v38 = vsub.s32 3, %v295_v30 }
 0x139   :  { %1474 = vmatprep.subr.mxu0 %v9158_v22  ;;  %1545 = vmatprep.subr.mxu1 %v9160_v39 }
 0x13a   :  { %1475 = vmatpush1.msra.mxu0 %v9164_v41  ;;  %1546 = vmatpush1.msra.mxu1 %v9166_v42  ;;  %13241 = vst [vmem:[#allocation32_spill] sm:$0xff] %v9570_v33  ;;  %13242 = vst [vmem:[#allocation33_spill] sm:$0xff] %v9572_v34  ;;  %v9584_v22 = vrot.slane %v292_v35, %v9570_v33  ;;  %v9587_v39 = vrot.slane %v292_v35, %v9572_v34 }
 0x13b   :  { %1476 = vmatprep.subr.mxu0 %v9170_v43  ;;  %1547 = vmatprep.subr.mxu1 %v9172_v44  ;;  %13244 = vst [vmem:[#allocation34_spill] sm:$0xff] %v9581_v38  ;;  %v9590_v43 = vrot.slane %v292_v35, %v9581_v38 }
 0x13c   :  { %1477 = vmatpush1.msra.mxu0 %v9178_v45  ;;  %1548 = vmatpush1.msra.mxu1 %v9180_v46 }
 0x13d   :  { %1478 = vmatprep.subr.mxu0 %v9186_v31  ;;  %1549 = vmatprep.subr.mxu1 %v9188_v47 }
 0x13e   :  { %1479 = vmatpush1.msra.mxu0 %v9192_v48  ;;  %1550 = vmatpush1.msra.mxu1 %v9194_v50 }
 0x13f   :  { %1480 = vmatprep.subr.mxu0 %v9198_v51  ;;  %1551 = vmatprep.subr.mxu1 %v9200_v52 }
 0x140   :  { %1481 = vmatpush1.msra.mxu0 %v9206_v53  ;;  %1552 = vmatpush1.msra.mxu1 %v9208_v54 }
 0x141   :  { %1482 = vmatprep.subr.mxu0 %v9214_v40  ;;  %1553 = vmatprep.subr.mxu1 %v9216_v55 }
 0x142   :  { %1483 = vmatpush1.msra.mxu0 %v9220_v56  ;;  %1554 = vmatpush1.msra.mxu1 %v9222_v57 }
 0x143   :  { %1484 = vmatprep.subr.mxu0 %v9226_v59  ;;  %1555 = vmatprep.subr.mxu1 %v9228_v60 }
 0x144   :  { %1485 = vmatpush1.msra.mxu0 %v9234_v61  ;;  %1556 = vmatpush1.msra.mxu1 %v9236_v62 }
 0x145   :  { %1486 = vmatprep.subr.mxu0 %v9242_v49  ;;  %1557 = vmatprep.subr.mxu1 %v9244_v63 }
 0x146   :  { %1487 = vmatpush1.msra.mxu0 %v9248_v0  ;;  %1558 = vmatpush1.msra.mxu1 %v9250_v1 }
 0x147   :  { %1488 = vmatprep.subr.mxu0 %v13227_v15  ;;  %1559 = vmatprep.subr.mxu1 %v13228_v16 }
 0x148   :  { %1489 = vmatpush1.msra.mxu0 %v13229_v17  ;;  %1560 = vmatpush1.msra.mxu1 %v13230_v18  ;;  %v9633_v17 = vsub.s32 1, %v295_v30 }
 0x149   :  { %1490 = vmatprep.subr.mxu0 %v13231_v19  ;;  %1561 = vmatprep.subr.mxu1 %v13232_v20 }
 0x14a   :  { %1491 = vmatpush1.msra.mxu0 %v13233_v21  ;;  %1562 = vmatpush1.msra.mxu1 %v13234_v23  ;;  %13256 = vst [vmem:[#allocation97_spill] sm:$0xff] %v9633_v17  ;;  %v9639_v21 = vrot.slane %v292_v35, %v9633_v17 }
 0x14b   :  { %1492 = vmatprep.subr.mxu0 %v13235_v4  ;;  %1563 = vmatprep.subr.mxu1 %v13236_v24 }
 0x14c   :  { %1493 = vmatpush1.msra.mxu0 %v13237_v25  ;;  %1526 = vmatprep.mubr.f32.mxu0 %v13173_v5 }
 0x14d   :  { %1564 = vmatpush1.msra.mxu1 %v13238_v26  ;;  %1597 = vmatprep.mubr.f32.mxu1 %v13173_v5 }
 0x14e   :  { %1676 = vmatprep.subr.mxu0 %v13239_v27  ;;  %1747 = vmatprep.subr.mxu1 %v13240_v28 }
 0x16a   :  { %v9566_v13 = vpop.f32.mrf.mxu0  ;;  %v9568_v32 = vpop.f32.mrf.mxu1 }
 0x16c   :  { %v9577_v36 = vpop.f32.mrf.mxu0  ;;  %v9579_v37 = vpop.f32.mrf.mxu1 }
 0x170   :  { %v386_v41 = vpop.f32.mrf.mxu0  ;;  %v499_v42 = vpop.f32.mrf.mxu1 }
 0x171   :  { %v9593_v44 = vadd.f32 %v386_v41, %v9584_v22  ;;  %v9596_v45 = vadd.f32 %v499_v42, %v9587_v39 }
 0x172   :  { %v9598_v46 = vpop.f32.mrf.mxu0  ;;  %v501_v31 = vpop.f32.mrf.mxu1 }
 0x173   :  { %v9601_v47 = vadd.f32 %v501_v31, %v9590_v43 }
 0x176   :  { %v392_v48 = vpop.f32.mrf.mxu0  ;;  %v505_v50 = vpop.f32.mrf.mxu1 }
 0x177   :  { %v9604_v51 = vadd.f32 %v392_v48, %v9584_v22  ;;  %v9607_v52 = vadd.f32 %v505_v50, %v9587_v39 }
 0x178   :  { %v9609_v53 = vpop.f32.mrf.mxu0  ;;  %v507_v54 = vpop.f32.mrf.mxu1 }
 0x179   :  { %13245 = vst [vmem:[#allocation35_spill] sm:$0xff] %v9604_v51  ;;  %13246 = vst [vmem:[#allocation36_spill] sm:$0xff] %v9607_v52  ;;  %v9612_v40 = vadd.f32 %v507_v54, %v9590_v43  ;;  %v10012_v52 = vld [vmem:[#allocation12 + $0x68] sm:$0xff]  ;;  %v10018_v51 = vld [vmem:[#allocation12 + $0x60] sm:$0xff] }
 0x17a   :  { %13247 = vst [vmem:[#allocation37_spill] sm:$0xff] %v9609_v53  ;;  %v10020_v53 = vld [vmem:[#allocation12 + $0x70] sm:$0xff] }
 0x17b   :  { %13248 = vst [vmem:[#allocation38_spill] sm:$0xff] %v9612_v40  ;;  %v10014_v40 = vld [vmem:[#allocation12 + $0x78] sm:$0xff] }
 0x17c   :  { %v398_v55 = vpop.f32.mrf.mxu0  ;;  %v511_v56 = vpop.f32.mrf.mxu1 }
 0x17d   :  { %v9615_v57 = vadd.f32 %v398_v55, %v9584_v22  ;;  %v9618_v59 = vadd.f32 %v511_v56, %v9587_v39  ;;  %v636_v55 = vld [vmem:[%s13266_s4] sm:$0xf] }
 0x17e   :  { %v9620_v60 = vpop.f32.mrf.mxu0  ;;  %v513_v61 = vpop.f32.mrf.mxu1 }
 0x17f   :  { %13249 = vst [vmem:[#allocation39_spill] sm:$0xff] %v9615_v57  ;;  %13250 = vst [vmem:[#allocation40_spill] sm:$0xff] %v9618_v59  ;;  %v9623_v62 = vadd.f32 %v513_v61, %v9590_v43  ;;  %v9988_v59 = vld [vmem:[#allocation12 + $0xa8] sm:$0xff]  ;;  %v9994_v57 = vld [vmem:[#allocation12 + $0xa0] sm:$0xff] }
 0x180   :  { %13251 = vst [vmem:[#allocation41_spill] sm:$0xff] %v9620_v60  ;;  %v9996_v60 = vld [vmem:[#allocation12 + $0xb0] sm:$0xff] }
 0x181   :  { %13252 = vst [vmem:[#allocation42_spill] sm:$0xff] %v9623_v62  ;;  %v9990_v62 = vld [vmem:[#allocation12 + $0xb8] sm:$0xff] }
 0x182   :  { %v404_v49 = vpop.f32.mrf.mxu0  ;;  %v517_v63 = vpop.f32.mrf.mxu1 }
 0x183   :  { %v9626_v0 = vadd.f32 %v404_v49, %v9584_v22  ;;  %v9629_v1 = vadd.f32 %v517_v63, %v9587_v39 }
 0x184   :  { %v9631_v15 = vpop.f32.mrf.mxu0  ;;  %v519_v16 = vpop.f32.mrf.mxu1 }
 0x185   :  { %13253 = vst [vmem:[#allocation43_spill] sm:$0xff] %v9626_v0  ;;  %13254 = vst [vmem:[#allocation44_spill] sm:$0xff] %v9629_v1  ;;  %v9636_v18 = vadd.f32 %v519_v16, %v9590_v43  ;;  %v496_v0 = vadd.f32 %v9579_v37, %v9590_v43 }
 0x186   :  { %13255 = vst [vmem:[#allocation45_spill] sm:$0xff] %v9631_v15 }
 0x187   :  { %13257 = vst [vmem:[#allocation98_spill] sm:$0xff] %v9636_v18 }
 0x188   :  { %v410_v19 = vpop.f32.mrf.mxu0  ;;  %v523_v20 = vpop.f32.mrf.mxu1 }
 0x189   :  { %v9642_v23 = vadd.f32 %v410_v19, %v9584_v22  ;;  %v9645_v4 = vadd.f32 %v523_v20, %v9587_v39  ;;  %v9681_v20 = vrot.slane %v636_v55, %v9570_v33 }
 0x18a   :  { %v412_v24 = vpop.f32.mrf.mxu0  ;;  %v525_v25 = vpop.f32.mrf.mxu1 }
 0x18b   :  { %13258 = vst [vmem:[#allocation99_spill] sm:$0xff] %v9642_v23  ;;  %13259 = vst [vmem:[#allocation100_spill] sm:$0xff] %v9645_v4  ;;  %v9648_v26 = vadd.f32 %v412_v24, %v9639_v21  ;;  %v9651_v27 = vadd.f32 %v525_v25, %v9590_v43  ;;  %v9684_v24 = vrot.slane %v636_v55, %v9572_v34 }
 0x18c   :  { %v9687_v25 = vrot.slane %v636_v55, %v9633_v17  ;;  %v381_v23 = vadd.f32 %v9566_v13, %v9584_v22  ;;  %v494_v13 = vadd.f32 %v9568_v32, %v9587_v39 }
 0x18d   :  { %13260 = vst [vmem:[#allocation101_spill] sm:$0xff] %v9648_v26  ;;  %13261 = vst [vmem:[#allocation102_spill] sm:$0xff] %v9651_v27 }
 0x18e   :  { %v416_v28 = vpop.f32.mrf.mxu0  ;;  %v529_v29 = vpop.f32.mrf.mxu1 }
 0x18f   :  { %v9654_v30 = vadd.f32 %v416_v28, %v9584_v22  ;;  %v9657_v35 = vadd.f32 %v529_v29, %v9587_v39  ;;  %v9690_v28 = vrot.slane %v636_v55, %v9581_v38 }
 0x190   :  { %v418_v41 = vpop.f32.mrf.mxu0  ;;  %v531_v42 = vpop.f32.mrf.mxu1 }
 0x191   :  { %13262 = vst [vmem:[#allocation103_spill] sm:$0xff] %v9654_v30  ;;  %13263 = vst [vmem:[#allocation104_spill] sm:$0xff] %v9657_v35  ;;  %v9660_v31 = vadd.f32 %v418_v41, %v9639_v21  ;;  %v9663_v48 = vadd.f32 %v531_v42, %v9590_v43 }
 0x193   :  { %13264 = vst [vmem:[#allocation105_spill] sm:$0xff] %v9660_v31  ;;  %13265 = vst [vmem:[#allocation106_spill] sm:$0xff] %v9663_v48 }
 0x194   :  { %v422_v50 = vpop.f32.mrf.mxu0  ;;  %v535_v54 = vpop.f32.mrf.mxu1 }
 0x195   :  { %v9669_v56 = vadd.f32 %v422_v50, %v9584_v22  ;;  %v9672_v61 = vadd.f32 %v535_v54, %v9587_v39 }
 0x196   :  { %v424_v49 = vpop.f32.mrf.mxu0  ;;  %v537_v63 = vpop.f32.mrf.mxu1 }
 0x197   :  { %13267 = vst [vmem:[#allocation107_spill] sm:$0xff] %v9669_v56  ;;  %13268 = vst [vmem:[#allocation108_spill] sm:$0xff] %v9672_v61  ;;  %v9675_v16 = vadd.f32 %v424_v49, %v9639_v21  ;;  %v9678_v19 = vadd.f32 %v537_v63, %v9590_v43 }
 0x199   :  { %13269 = vst [vmem:[#allocation109_spill] sm:$0xff] %v9675_v16  ;;  %13270 = vst [vmem:[#allocation110_spill] sm:$0xff] %v9678_v19 }
 0x19a   :  { %v724_v29 = vpop.f32.mrf.mxu0  ;;  %v837_v41 = vpop.f32.mrf.mxu1 }
 0x19b   :  { %v9693_v42 = vadd.f32 %v724_v29, %v9681_v20  ;;  %v9696_v50 = vadd.f32 %v837_v41, %v9684_v24 }
 0x19c   :  { %v726_v54 = vpop.f32.mrf.mxu0  ;;  %v839_v49 = vpop.f32.mrf.mxu1 }
 0x19d   :  { %13271 = vst [vmem:[#allocation111_spill] sm:$0xff] %v9693_v42  ;;  %13272 = vst [vmem:[#allocation112_spill] sm:$0xff] %v9696_v50  ;;  %v9699_v63 = vadd.f32 %v726_v54, %v9687_v25  ;;  %v9702_v34 = vadd.f32 %v839_v49, %v9690_v28 }
 0x19f   :  { %13273 = vst [vmem:[#allocation113_spill] sm:$0xff] %v9699_v63  ;;  %13274 = vst [vmem:[#allocation114_spill] sm:$0xff] %v9702_v34 }
 0x1a0   :  { %v730_v17 = vpop.f32.mrf.mxu0  ;;  %v843_v33 = vpop.f32.mrf.mxu1 }
 0x1a1   :  { %v9705_v55 = vadd.f32 %v730_v17, %v9681_v20  ;;  %v9708_v38 = vadd.f32 %v843_v33, %v9684_v24 }
 0x1a2   :  { %v732_v29 = vpop.f32.mrf.mxu0  ;;  %v845_v42 = vpop.f32.mrf.mxu1 }
 0x1a3   :  { %13275 = vst [vmem:[#allocation115_spill] sm:$0xff] %v9705_v55  ;;  %13276 = vst [vmem:[#allocation116_spill] sm:$0xff] %v9708_v38  ;;  %v9711_v41 = vadd.f32 %v732_v29, %v9687_v25  ;;  %v9714_v50 = vadd.f32 %v845_v42, %v9690_v28 }
 0x1a5   :  { %13277 = vst [vmem:[#allocation117_spill] sm:$0xff] %v9711_v41  ;;  %13278 = vst [vmem:[#allocation118_spill] sm:$0xff] %v9714_v50 }
 0x1a6   :  { %v736_v54 = vpop.f32.mrf.mxu0  ;;  %v849_v63 = vpop.f32.mrf.mxu1 }
 0x1a7   :  { %v9717_v49 = vadd.f32 %v736_v54, %v9681_v20  ;;  %v9720_v34 = vadd.f32 %v849_v63, %v9684_v24 }
 0x1a8   :  { %v738_v17 = vpop.f32.mrf.mxu0  ;;  %v851_v19 = vpop.f32.mrf.mxu1 }
 0x1a9   :  { %13279 = vst [vmem:[#allocation119_spill] sm:$0xff] %v9717_v49  ;;  %13280 = vst [vmem:[#allocation120_spill] sm:$0xff] %v9720_v34  ;;  %v9723_v33 = vadd.f32 %v738_v17, %v9687_v25  ;;  %v9726_v16 = vadd.f32 %v851_v19, %v9690_v28 }
 0x1ab   :  { %13281 = vst [vmem:[#allocation121_spill] sm:$0xff] %v9723_v33  ;;  %13282 = vst [vmem:[#allocation122_spill] sm:$0xff] %v9726_v16 }
 0x1ac   :  { %v742_v29 = vpop.f32.mrf.mxu0  ;;  %v855_v61 = vpop.f32.mrf.mxu1 }
 0x1ad   :  { %v9729_v42 = vadd.f32 %v742_v29, %v9681_v20  ;;  %v9732_v56 = vadd.f32 %v855_v61, %v9684_v24 }
 0x1ae   :  { %v744_v54 = vpop.f32.mrf.mxu0  ;;  %v857_v38 = vpop.f32.mrf.mxu1 }
 0x1af   :  { %13283 = vst [vmem:[#allocation123_spill] sm:$0xff] %v9729_v42  ;;  %13284 = vst [vmem:[#allocation124_spill] sm:$0xff] %v9732_v56  ;;  %v9735_v63 = vadd.f32 %v744_v54, %v9687_v25  ;;  %v9738_v50 = vadd.f32 %v857_v38, %v9690_v28 }
 0x1b1   :  { %13285 = vst [vmem:[#allocation125_spill] sm:$0xff] %v9735_v63  ;;  %13286 = vst [vmem:[#allocation126_spill] sm:$0xff] %v9738_v50 }
 0x1b2   :  { %v748_v17 = vpop.f32.mrf.mxu0  ;;  %v861_v41 = vpop.f32.mrf.mxu1 }
 0x1b3   :  { %v9741_v19 = vadd.f32 %v748_v17, %v9681_v20  ;;  %v9744_v55 = vadd.f32 %v861_v41, %v9684_v24 }
 0x1b4   :  { %v750_v29 = vpop.f32.mrf.mxu0  ;;  %v863_v35 = vpop.f32.mrf.mxu1 }
 0x1b5   :  { %13287 = vst [vmem:[#allocation127_spill] sm:$0xff] %v9741_v19  ;;  %13288 = vst [vmem:[#allocation128_spill] sm:$0xff] %v9744_v55  ;;  %v9747_v61 = vadd.f32 %v750_v29, %v9687_v25  ;;  %v9750_v48 = vadd.f32 %v863_v35, %v9690_v28  ;;  %v9984_v19 = vld [vmem:[#allocation12 + $0xd0] sm:$0xff] }
 0x1b7   :  { %13289 = vst [vmem:[#allocation129_spill] sm:$0xff] %v9747_v61  ;;  %13290 = vst [vmem:[#allocation130_spill] sm:$0xff] %v9750_v48  ;;  %v9982_v61 = vld [vmem:[#allocation12 + $0xc0] sm:$0xff] }
 0x1b8   :  { %v754_v54 = vpop.f32.mrf.mxu0  ;;  %v867_v31 = vpop.f32.mrf.mxu1 }
 0x1b9   :  { %v9753_v38 = vadd.f32 %v754_v54, %v9681_v20  ;;  %v9756_v30 = vadd.f32 %v867_v31, %v9684_v24 }
 0x1ba   :  { %v756_v17 = vpop.f32.mrf.mxu0  ;;  %v869_v34 = vpop.f32.mrf.mxu1 }
 0x1bb   :  { %13291 = vst [vmem:[#allocation131_spill] sm:$0xff] %v9753_v38  ;;  %13292 = vst [vmem:[#allocation132_spill] sm:$0xff] %v9756_v30  ;;  %v9759_v41 = vadd.f32 %v756_v17, %v9687_v25  ;;  %v9762_v16 = vadd.f32 %v869_v34, %v9690_v28  ;;  %v10000_v30 = vld [vmem:[#allocation12 + $0x88] sm:$0xff]  ;;  %v10008_v38 = vld [vmem:[#allocation12 + $0x90] sm:$0xff] }
 0x1bd   :  { %13293 = vst [vmem:[#allocation133_spill] sm:$0xff] %v9759_v41  ;;  %13294 = vst [vmem:[#allocation134_spill] sm:$0xff] %v9762_v16  ;;  %v10002_v16 = vld [vmem:[#allocation12 + $0x98] sm:$0xff]  ;;  %v10006_v41 = vld [vmem:[#allocation12 + $0x80] sm:$0xff] }
 0x1be   :  { %v760_v29 = vpop.f32.mrf.mxu0  ;;  %v873_v33 = vpop.f32.mrf.mxu1 }
 0x1bf   :  { %v9765_v35 = vadd.f32 %v760_v29, %v9681_v20  ;;  %v9768_v49 = vadd.f32 %v873_v33, %v9684_v24  ;;  %v383_v29 = vadd.f32 %v9577_v36, %v9639_v21 }
 0x1c0   :  { %v762_v54 = vpop.f32.mrf.mxu0  ;;  %v875_v4 = vpop.f32.mrf.mxu1 }
 0x1c1   :  { %v9771_v31 = vadd.f32 %v762_v54, %v9687_v25  ;;  %v9774_v27 = vadd.f32 %v875_v4, %v9690_v28 }
 0x1c4   :  { %v766_v17 = vpop.f32.mrf.mxu0  ;;  %v879_v34 = vpop.f32.mrf.mxu1 }
 0x1c6   :  { %v768_v26 = vpop.f32.mrf.mxu0  ;;  %v881_v33 = vpop.f32.mrf.mxu1 }
 0x1c7   :  { %v769_v43 = vadd.f32 %v768_v26, %v9687_v25  ;;  %v882_v26 = vadd.f32 %v881_v33, %v9690_v28  ;;  %v13296_v28 = vld [vmem:[#allocation46_spill] sm:$0xff]  ;;  %v13299_v33 = vld [vmem:[#allocation49_spill] sm:$0xff] }
 0x1c8   :  { %13350 = vst [vmem:[#allocation49_spill] sm:$0xff] %v9984_v19 }
 0x1ca   :  { %v1050_v56 = vpop.f32.mrf.mxu0  ;;  %v1121_v54 = vpop.f32.mrf.mxu1 }
 0x1cb   :  { %v1126_v50 = vadd.f32 %v1050_v56, %v381_v23  ;;  %v1128_v22 = vadd.f32 %v1121_v54, %v494_v13 }
 0x1cc   :  { %v1052_v63 = vpop.f32.mrf.mxu0  ;;  %v1123_v4 = vpop.f32.mrf.mxu1 }
 0x1cd   :  { %v7885_v42 = vmul.f32 -1.442695, %v1126_v50  ;;  %v1127_v1 = vadd.f32 %v1052_v63, %v383_v29  ;;  %v1129_v15 = vadd.f32 %v1123_v4, %v496_v0  ;;  %v767_v50 = vadd.f32 %v766_v17, %v9681_v20 }
 0x1ce   :  { %v880_v17 = vadd.f32 %v879_v34, %v9684_v24  ;;  %v13297_v24 = vld [vmem:[#allocation47_spill] sm:$0xff]  ;;  %v13298_v34 = vld [vmem:[#allocation48_spill] sm:$0xff] }
 0x1cf   :  { %8159 = vpow2.f32 %v7885_v42  ;;  %v7886_v18 = vmul.f32 -1.442695, %v1127_v1  ;;  %v7887_v55 = vmul.f32 -1.442695, %v1129_v15  ;;  %13349 = vst [vmem:[#allocation48_spill] sm:$0xff] %v9982_v61 }
 0x1d1   :  { %8161 = vpow2.f32 %v7886_v18 }
 0x1d2   :  { %8163 = vtanh.f32 %v1128_v22 }
 0x1d3   :  { %8165 = vpow2.f32 %v7887_v55 }
 0x1dc   :  { %v8160_v36 = vpop.eup %8159 }
 0x1dd   :  { %v1347_v48 = vadd.f32 1.0, %v8160_v36 }
 0x1de   :  { %v8162_v23 = vpop.eup %8161 }
 0x1df   :  { %8167 = vrcp.f32 %v1347_v48  ;;  %v1353_v56 = vadd.f32 1.0, %v8162_v23  ;;  %v8164_v1 = vpop.eup %8163 }
 0x1e0   :  { %v8166_v18 = vpop.eup %8165 }
 0x1e1   :  { %8169 = vrcp.f32 %v1353_v56  ;;  %v1360_v15 = vadd.f32 1.0, %v8166_v18 }
 0x1ec   :  { %v8168_v42 = vpop.eup %8167  ;;  %v1264_v37 = vpop.f32.mrf.mxu0 }
 0x1ed   :  { %v1364_v0 = vmul.f32 %v8168_v42, %v8164_v1  ;;  %v1340_v32 = vadd.f32 %v1264_v37, %v767_v50  ;;  %v1335_v13 = vpop.f32.mrf.mxu1 }
 0x1ee   :  { %v8170_v39 = vpop.eup %8169  ;;  %v1266_v63 = vpop.f32.mrf.mxu0  ;;  %v1342_v1 = vadd.f32 %v1335_v13, %v880_v17  ;;  %v13310_v13 = vld [vmem:[#allocation60_spill] sm:$0xff] }
 0x1ef   :  { %v1363_v29 = vmul.f32 0.0, %v8170_v39  ;;  %v7888_v54 = vmul.f32 -1.442695, %v1340_v32  ;;  %v1341_v4 = vadd.f32 %v1266_v63, %v769_v43  ;;  %v1337_v20 = vpop.f32.mrf.mxu1  ;;  %v13300_v43 = vld [vmem:[#allocation50_spill] sm:$0xff]  ;;  %v13302_v32 = vld [vmem:[#allocation52_spill] sm:$0xff]  ;;  %v13303_v39 = vld [vmem:[#allocation53_spill] sm:$0xff] }
 0x1f0   :  { %v1343_v25 = vadd.f32 %v1337_v20, %v882_v26  ;;  %v13305_v63 = vld [vmem:[#allocation55_spill] sm:$0xff]  ;;  %v13311_v20 = vld [vmem:[#allocation61_spill] sm:$0xff]  ;;  %v13312_v26 = vld [vmem:[#allocation62_spill] sm:$0xff]  ;;  %13351 = vst [vmem:[#allocation50_spill] sm:$0xff] %v9988_v59 }
 0x1f1   :  { %v9786_v55 = vadd.f32 %v1364_v0, %v1363_v29  ;;  %8171 = vpow2.f32 %v7888_v54  ;;  %v7889_v48 = vmul.f32 -1.442695, %v1341_v4  ;;  %v13301_v0 = vld [vmem:[#allocation51_spill] sm:$0xff]  ;;  %v13306_v29 = vld [vmem:[#allocation56_spill] sm:$0xff]  ;;  %v13307_v54 = vld [vmem:[#allocation57_spill] sm:$0xff]  ;;  %13353 = vst [vmem:[#allocation52_spill] sm:$0xff] %v9994_v57 }
 0x1f2   :  { %8173 = vrcp.f32 %v1360_v15  ;;  %v7890_v22 = vmul.f32 -1.442695, %v1343_v25  ;;  %v13304_v15 = vld [vmem:[#allocation54_spill] sm:$0xff]  ;;  %v13313_v25 = vld [vmem:[#allocation63_spill] sm:$0xff]  ;;  %v13314_v17 = vld [vmem:[#allocation64_spill] sm:$0xff]  ;;  %13352 = vst [vmem:[#allocation51_spill] sm:$0xff] %v9990_v62 }
 0x1f3   :  { %8175 = vtanh.f32 %v9786_v55  ;;  %v13308_v4 = vld [vmem:[#allocation58_spill] sm:$0xff]  ;;  %13354 = vst [vmem:[#allocation53_spill] sm:$0xff] %v9996_v60  ;;  %13355 = vst [vmem:[#allocation54_spill] sm:$0xff] %v10000_v30 }
 0x1f4   :  { %8177 = vpow2.f32 %v7889_v48  ;;  %v13309_v48 = vld [vmem:[#allocation59_spill] sm:$0xff]  ;;  %13356 = vst [vmem:[#allocation55_spill] sm:$0xff] %v10002_v16  ;;  %13357 = vst [vmem:[#allocation56_spill] sm:$0xff] %v10006_v41 }
 0x1f5   :  { %8179 = vpow2.f32 %v7890_v22  ;;  %v13315_v22 = vld [vmem:[#allocation65_spill] sm:$0xff]  ;;  %13358 = vst [vmem:[#allocation57_spill] sm:$0xff] %v10008_v38  ;;  %13359 = vst [vmem:[#allocation58_spill] sm:$0xff] %v10012_v52 }
 0x1f6   :  { %13360 = vst [vmem:[#allocation59_spill] sm:$0xff] %v10014_v40  ;;  %13361 = vst [vmem:[#allocation60_spill] sm:$0xff] %v10018_v51 }
 0x1f7   :  { %13362 = vst [vmem:[#allocation61_spill] sm:$0xff] %v10020_v53 }
 0x1fe   :  { %v8172_v36 = vpop.eup %8171 }
 0x1ff   :  { %v8174_v23 = vpop.eup %8173  ;;  %v1371_v56 = vadd.f32 1.0, %v8172_v36 }
 0x200   :  { %v8176_v18 = vpop.eup %8175 }
 0x201   :  { %v8178_v50 = vpop.eup %8177  ;;  %v9791_v42 = vmul.f32 %v8176_v18, %v8174_v23  ;;  %8181 = vrcp.f32 %v1371_v56  ;;  %v13316_v23 = vld [vmem:[#allocation66_spill] sm:$0xff]  ;;  %v13317_v56 = vld [vmem:[#allocation67_spill] sm:$0xff]  ;;  %v13318_v18 = vld [vmem:[#allocation68_spill] sm:$0xff] }
 0x202   :  { %v1377_v37 = vadd.f32 1.0, %v8178_v50  ;;  %8183 = vtanh.f32 %v1342_v1  ;;  %v8180_v36 = vpop.eup %8179  ;;  %v13319_v50 = vld [vmem:[#allocation69_spill] sm:$0xff] }
 0x203   :  { %13295 = vst [vmem:[#allocation135_spill] sm:$0xff] %v9791_v42  ;;  %1527 = vmatmul.mubr.f32.vlgmr.msra.gmra.mxu0 %v9791_v42  ;;  %1598 = vmatmul.mubr.f32.vlgmr.msra.gmra.mxu1 %v9791_v42  ;;  %v9976_v42 = vld [vmem:[#allocation12 + $0xc8] sm:$0xff] }
 0x204   :  { %8185 = vrcp.f32 %v1377_v37  ;;  %1677 = vmatpush1.msra.mxu0 %v13296_v28  ;;  %1748 = vmatpush1.msra.mxu1 %v13297_v24  ;;  %v13320_v28 = vld [vmem:[#allocation70_spill] sm:$0xff]  ;;  %v13321_v24 = vld [vmem:[#allocation71_spill] sm:$0xff] }
 0x205   :  { %1678 = vmatprep.subr.mxu0 %v13298_v34  ;;  %1749 = vmatprep.subr.mxu1 %v13299_v33  ;;  %v1384_v33 = vadd.f32 1.0, %v8180_v36  ;;  %v13335_v36 = vld [vmem:[#allocation85_spill] sm:$0xff] }
 0x206   :  { %1679 = vmatpush1.msra.mxu0 %v13300_v43  ;;  %1750 = vmatpush1.msra.mxu1 %v13301_v0  ;;  %v13322_v43 = vld [vmem:[#allocation72_spill] sm:$0xff]  ;;  %v13323_v0 = vld [vmem:[#allocation73_spill] sm:$0xff] }
 0x207   :  { %1680 = vmatprep.subr.mxu0 %v13302_v32  ;;  %1751 = vmatprep.subr.mxu1 %v13303_v39  ;;  %8187 = vrcp.f32 %v1384_v33  ;;  %v13345_v33 = vld [vmem:[#allocation95_spill] sm:$0xff] }
 0x208   :  { %1681 = vmatpush1.msra.mxu0 %v13304_v15  ;;  %1752 = vmatpush1.msra.mxu1 %v13305_v63  ;;  %v13324_v15 = vld [vmem:[#allocation74_spill] sm:$0xff]  ;;  %v13325_v63 = vld [vmem:[#allocation75_spill] sm:$0xff] }
 0x209   :  { %1682 = vmatprep.subr.mxu0 %v13306_v29  ;;  %1753 = vmatprep.subr.mxu1 %v13307_v54  ;;  %v13326_v29 = vld [vmem:[#allocation76_spill] sm:$0xff]  ;;  %v13327_v54 = vld [vmem:[#allocation77_spill] sm:$0xff] }
 0x20a   :  { %1683 = vmatpush1.msra.mxu0 %v13308_v4  ;;  %1754 = vmatpush1.msra.mxu1 %v13309_v48  ;;  %v13328_v48 = vld [vmem:[#allocation78_spill] sm:$0xff] }
 0x20b   :  { %1684 = vmatprep.subr.mxu0 %v13310_v13  ;;  %1755 = vmatprep.subr.mxu1 %v13311_v20  ;;  %v13329_v13 = vld [vmem:[#allocation79_spill] sm:$0xff]  ;;  %v13330_v20 = vld [vmem:[#allocation80_spill] sm:$0xff] }
 0x20c   :  { %1685 = vmatpush1.msra.mxu0 %v13312_v26  ;;  %1756 = vmatpush1.msra.mxu1 %v13313_v25  ;;  %v13331_v26 = vld [vmem:[#allocation81_spill] sm:$0xff]  ;;  %v13332_v25 = vld [vmem:[#allocation82_spill] sm:$0xff] }
 0x20d   :  { %1686 = vmatprep.subr.mxu0 %v13314_v17  ;;  %1757 = vmatprep.subr.mxu1 %v13315_v22  ;;  %v13333_v17 = vld [vmem:[#allocation83_spill] sm:$0xff]  ;;  %v13334_v22 = vld [vmem:[#allocation84_spill] sm:$0xff] }
 0x20e   :  { %1687 = vmatpush1.msra.mxu0 %v13316_v23  ;;  %1758 = vmatpush1.msra.mxu1 %v13317_v56  ;;  %v8182_v1 = vpop.eup %8181  ;;  %v13336_v23 = vld [vmem:[#allocation86_spill] sm:$0xff]  ;;  %v13337_v56 = vld [vmem:[#allocation87_spill] sm:$0xff] }
 0x20f   :  { %1688 = vmatprep.subr.mxu0 %v13318_v18  ;;  %1759 = vmatprep.subr.mxu1 %v13319_v50  ;;  %v8184_v37 = vpop.eup %8183  ;;  %v13339_v18 = vld [vmem:[#allocation89_spill] sm:$0xff]  ;;  %v13340_v50 = vld [vmem:[#allocation90_spill] sm:$0xff] }
 0x210   :  { %1689 = vmatpush1.msra.mxu0 %v13320_v28  ;;  %1760 = vmatpush1.msra.mxu1 %v13321_v24  ;;  %v1388_v39 = vmul.f32 %v8184_v37, %v8182_v1  ;;  %v13338_v1 = vld [vmem:[#allocation88_spill] sm:$0xff]  ;;  %v13341_v37 = vld [vmem:[#allocation91_spill] sm:$0xff]  ;;  %v13343_v24 = vld [vmem:[#allocation93_spill] sm:$0xff] }
 0x211   :  { %v8186_v34 = vpop.eup %8185  ;;  %1690 = vmatprep.subr.mxu0 %v13322_v43  ;;  %1761 = vmatprep.subr.mxu1 %v13323_v0  ;;  %v13342_v28 = vld [vmem:[#allocation92_spill] sm:$0xff] }
 0x212   :  { %v1387_v32 = vmul.f32 0.0, %v8186_v34  ;;  %1691 = vmatpush1.msra.mxu0 %v13324_v15  ;;  %1762 = vmatpush1.msra.mxu1 %v13325_v63  ;;  %v13344_v34 = vld [vmem:[#allocation94_spill] sm:$0xff]  ;;  %v13346_v43 = vld [vmem:[#allocation96_spill] sm:$0xff]  ;;  %v9904_v63 = vld [vmem:[#allocation12 + $0x188] sm:$0xff] }
 0x213   :  { %1692 = vmatprep.subr.mxu0 %v13326_v29  ;;  %1763 = vmatprep.subr.mxu1 %v13327_v54  ;;  %v9900_v15 = vld [vmem:[#allocation12 + $0x1b0] sm:$0xff]  ;;  %v9906_v29 = vld [vmem:[#allocation12 + $0x198] sm:$0xff]  ;;  %v9910_v54 = vld [vmem:[#allocation12 + $0x180] sm:$0xff] }
 0x214   :  { %v9827_v4 = vadd.f32 %v1388_v39, %v1387_v32  ;;  %1693 = vmatpush1.msra.mxu0 %v13328_v48  ;;  %1764 = vmatpush1.msra.mxu1 %v13329_v13  ;;  %v8188_v0 = vpop.eup %8187  ;;  %v9894_v32 = vld [vmem:[#allocation12 + $0x1b8] sm:$0xff]  ;;  %v9898_v39 = vld [vmem:[#allocation12 + $0x1a0] sm:$0xff]  ;;  %v9912_v48 = vld [vmem:[#allocation12 + $0x190] sm:$0xff] }
 0x215   :  { %1694 = vmatprep.subr.mxu0 %v13330_v20  ;;  %1765 = vmatprep.subr.mxu1 %v13331_v26  ;;  %v9916_v13 = vld [vmem:[#allocation12 + $0x168] sm:$0xff]  ;;  %v9918_v20 = vld [vmem:[#allocation12 + $0x178] sm:$0xff]  ;;  %v9922_v26 = vld [vmem:[#allocation12 + $0x160] sm:$0xff] }
 0x216   :  { %8189 = vtanh.f32 %v9827_v4  ;;  %1695 = vmatpush1.msra.mxu0 %v13332_v25  ;;  %1766 = vmatpush1.msra.mxu1 %v13333_v17  ;;  %v9924_v25 = vld [vmem:[#allocation12 + $0x170] sm:$0xff]  ;;  %v9928_v17 = vld [vmem:[#allocation12 + $0x148] sm:$0xff] }
 0x217   :  { %1696 = vmatprep.subr.mxu0 %v13334_v22  ;;  %1767 = vmatprep.subr.mxu1 %v13335_v36  ;;  %v9930_v22 = vld [vmem:[#allocation12 + $0x158] sm:$0xff]  ;;  %v9934_v36 = vld [vmem:[#allocation12 + $0x140] sm:$0xff] }
 0x218   :  { %1697 = vmatpush1.msra.mxu0 %v13336_v23  ;;  %1768 = vmatpush1.msra.mxu1 %v13337_v56  ;;  %v9936_v23 = vld [vmem:[#allocation12 + $0x150] sm:$0xff]  ;;  %v9940_v56 = vld [vmem:[#allocation12 + $0x128] sm:$0xff] }
 0x219   :  { %1698 = vmatprep.subr.mxu0 %v13338_v1  ;;  %1769 = vmatprep.subr.mxu1 %v13339_v18  ;;  %v9942_v1 = vld [vmem:[#allocation12 + $0x138] sm:$0xff]  ;;  %v9946_v18 = vld [vmem:[#allocation12 + $0x120] sm:$0xff] }
 0x21a   :  { %1699 = vmatpush1.msra.mxu0 %v13340_v50  ;;  %1770 = vmatpush1.msra.mxu1 %v13341_v37  ;;  %v9948_v50 = vld [vmem:[#allocation12 + $0x130] sm:$0xff]  ;;  %v9952_v37 = vld [vmem:[#allocation12 + $0x108] sm:$0xff] }
 0x21b   :  { %1700 = vmatprep.subr.mxu0 %v13342_v28  ;;  %1771 = vmatprep.subr.mxu1 %v13343_v24  ;;  %v9954_v28 = vld [vmem:[#allocation12 + $0x118] sm:$0xff]  ;;  %v9958_v24 = vld [vmem:[#allocation12 + $0x100] sm:$0xff] }
 0x21c   :  { %1701 = vmatpush1.msra.mxu0 %v13344_v34  ;;  %1772 = vmatpush1.msra.mxu1 %v13345_v33  ;;  %v9960_v34 = vld [vmem:[#allocation12 + $0x110] sm:$0xff]  ;;  %v9964_v33 = vld [vmem:[#allocation12 + $0xe8] sm:$0xff] }
 0x21d   :  { %1702 = vmatprep.subr.mxu0 %v9454_v9  ;;  %1773 = vmatprep.subr.mxu1 %v13346_v43  ;;  %v9880_v9 = vld [vmem:[#allocation12 + $0x1c8] sm:$0xff]  ;;  %v9966_v43 = vld [vmem:[#allocation12 + $0xf8] sm:$0xff] }
 0x21e   :  { %1703 = vmatpush1.msra.mxu0 %v9460_v3  ;;  %1774 = vmatpush1.msra.mxu1 %v9462_v7 }
 0x21f   :  { %1704 = vmatprep.subr.mxu0 %v9466_v58  ;;  %1775 = vmatprep.subr.mxu1 %v9468_v10  ;;  %v9876_v58 = vld [vmem:[#allocation12 + $0x1f0] sm:$0xff]  ;;  %v9882_v10 = vld [vmem:[#allocation12 + $0x1d8] sm:$0xff] }
 0x220   :  { %1705 = vmatpush1.msra.mxu0 %v9472_v11  ;;  %1776 = vmatpush1.msra.mxu1 %v9474_v14  ;;  %v9886_v11 = vld [vmem:[#allocation12 + $0x1c0] sm:$0xff]  ;;  %v9892_v14 = vld [vmem:[#allocation12 + $0x1a8] sm:$0xff] }
 0x221   :  { %1706 = vmatprep.subr.mxu0 %v9478_v2  ;;  %1777 = vmatprep.subr.mxu1 %v9480_v12  ;;  %v9868_v2 = vld [vmem:[#allocation12 + $0x1e8] sm:$0xff]  ;;  %v9888_v12 = vld [vmem:[#allocation12 + $0x1d0] sm:$0xff] }
 0x222   :  { %1707 = vmatpush1.msra.mxu0 %v9484_v8  ;;  %1740 = vmatprep.mubr.f32.mxu0 %v13173_v5  ;;  %v9870_v8 = vld [vmem:[#allocation12 + $0x1f8] sm:$0xff] }
 0x223   :  { %v8190_v3 = vpop.eup %8189  ;;  %1778 = vmatpush1.msra.mxu1 %v9488_v6  ;;  %1811 = vmatprep.mubr.f32.mxu1 %v13173_v5  ;;  %v9874_v6 = vld [vmem:[#allocation12 + $0x1e0] sm:$0xff] }
 0x224   :  { %v9862_v7 = vmul.f32 %v8190_v3, %v8188_v0  ;;  %1940 = vmatprep.subr.mxu0 %v9868_v2  ;;  %2011 = vmatprep.subr.mxu1 %v9870_v8  ;;  %v9970_v0 = vld [vmem:[#allocation12 + $0xe0] sm:$0xff]  ;;  %v9972_v3 = vld [vmem:[#allocation12 + $0xf0] sm:$0xff] }
 0x226   :  { %13347 = vst [vmem:[#allocation46_spill] sm:$0xff] %v9862_v7  ;;  %1741 = vmatmul.mubr.f32.vlgmr.msra.gmra.mxu0 %v9862_v7  ;;  %1812 = vmatmul.mubr.f32.vlgmr.msra.gmra.mxu1 %v9862_v7  ;;  %v9978_v7 = vld [vmem:[#allocation12 + $0xd8] sm:$0xff] }
 0x227   :  { %2004 = vmatprep.mubr.f32.mxu0 %v13173_v5  ;;  %2075 = vmatprep.mubr.f32.mxu1 %v13173_v5  ;;  %13348 = vst [vmem:[#allocation47_spill] sm:$0xff] %v9978_v7 }
 0x228   :  { %1941 = vmatpush1.msra.mxu0 %v9874_v6  ;;  %2012 = vmatpush1.msra.mxu1 %v9876_v58 }
 0x229   :  { %1942 = vmatprep.subr.mxu0 %v9880_v9  ;;  %2013 = vmatprep.subr.mxu1 %v9882_v10 }
 0x22a   :  { %1943 = vmatpush1.msra.mxu0 %v9886_v11  ;;  %2014 = vmatpush1.msra.mxu1 %v9888_v12 }
 0x22b   :  { %1944 = vmatprep.subr.mxu0 %v9892_v14  ;;  %2015 = vmatprep.subr.mxu1 %v9894_v32 }
 0x22c   :  { %1945 = vmatpush1.msra.mxu0 %v9898_v39  ;;  %2016 = vmatpush1.msra.mxu1 %v9900_v15 }
 0x22d   :  { %1946 = vmatprep.subr.mxu0 %v9904_v63  ;;  %2017 = vmatprep.subr.mxu1 %v9906_v29 }
 0x22e   :  { %1947 = vmatpush1.msra.mxu0 %v9910_v54  ;;  %2018 = vmatpush1.msra.mxu1 %v9912_v48 }
 0x22f   :  { %1948 = vmatprep.subr.mxu0 %v9916_v13  ;;  %2019 = vmatprep.subr.mxu1 %v9918_v20 }
 0x230   :  { %1949 = vmatpush1.msra.mxu0 %v9922_v26  ;;  %2020 = vmatpush1.msra.mxu1 %v9924_v25 }
 0x231   :  { %1950 = vmatprep.subr.mxu0 %v9928_v17  ;;  %2021 = vmatprep.subr.mxu1 %v9930_v22 }
 0x232   :  { %1951 = vmatpush1.msra.mxu0 %v9934_v36  ;;  %2022 = vmatpush1.msra.mxu1 %v9936_v23 }
 0x233   :  { %1952 = vmatprep.subr.mxu0 %v9940_v56  ;;  %2023 = vmatprep.subr.mxu1 %v9942_v1 }
 0x234   :  { %1953 = vmatpush1.msra.mxu0 %v9946_v18  ;;  %2024 = vmatpush1.msra.mxu1 %v9948_v50 }
 0x235   :  { %1954 = vmatprep.subr.mxu0 %v9952_v37  ;;  %2025 = vmatprep.subr.mxu1 %v9954_v28 }
 0x236   :  { %1955 = vmatpush1.msra.mxu0 %v9958_v24  ;;  %2026 = vmatpush1.msra.mxu1 %v9960_v34 }
 0x237   :  { %1956 = vmatprep.subr.mxu0 %v9964_v33  ;;  %2027 = vmatprep.subr.mxu1 %v9966_v43 }
 0x238   :  { %1957 = vmatpush1.msra.mxu0 %v9970_v0  ;;  %2028 = vmatpush1.msra.mxu1 %v9972_v3 }
 0x239   :  { %1958 = vmatprep.subr.mxu0 %v9976_v42  ;;  %2029 = vmatprep.subr.mxu1 %v9978_v7 }
 0x23a   :  { %1959 = vmatpush1.msra.mxu0 %v9982_v61  ;;  %2030 = vmatpush1.msra.mxu1 %v9984_v19 }
 0x23b   :  { %1960 = vmatprep.subr.mxu0 %v9988_v59  ;;  %2031 = vmatprep.subr.mxu1 %v9990_v62 }
 0x23c   :  { %1961 = vmatpush1.msra.mxu0 %v9994_v57  ;;  %2032 = vmatpush1.msra.mxu1 %v9996_v60 }
 0x23d   :  { %1962 = vmatprep.subr.mxu0 %v10000_v30  ;;  %2033 = vmatprep.subr.mxu1 %v10002_v16  ;;  %v10024_v16 = vld [vmem:[#allocation12 + $0x48] sm:$0xff] }
 0x23e   :  { %1963 = vmatpush1.msra.mxu0 %v10006_v41  ;;  %2034 = vmatpush1.msra.mxu1 %v10008_v38  ;;  %13363 = vst [vmem:[#allocation62_spill] sm:$0xff] %v10024_v16  ;;  %v10026_v41 = vld [vmem:[#allocation12 + $0x58] sm:$0xff]  ;;  %v10030_v38 = vld [vmem:[#allocation12 + $0x40] sm:$0xff] }
 0x23f   :  { %1964 = vmatprep.subr.mxu0 %v10012_v52  ;;  %2035 = vmatprep.subr.mxu1 %v10014_v40  ;;  %13364 = vst [vmem:[#allocation63_spill] sm:$0xff] %v10026_v41  ;;  %13365 = vst [vmem:[#allocation64_spill] sm:$0xff] %v10030_v38  ;;  %v10032_v52 = vld [vmem:[#allocation12 + $0x50] sm:$0xff]  ;;  %v10036_v40 = vld [vmem:[#allocation12 + $0x28] sm:$0xff] }
 0x240   :  { %1965 = vmatpush1.msra.mxu0 %v10018_v51  ;;  %2036 = vmatpush1.msra.mxu1 %v10020_v53  ;;  %13366 = vst [vmem:[#allocation65_spill] sm:$0xff] %v10032_v52  ;;  %13367 = vst [vmem:[#allocation66_spill] sm:$0xff] %v10036_v40  ;;  %v10038_v51 = vld [vmem:[#allocation12 + $0x38] sm:$0xff]  ;;  %v10042_v53 = vld [vmem:[#allocation12 + $0x20] sm:$0xff] }
 0x241   :  { %1966 = vmatprep.subr.mxu0 %v10024_v16  ;;  %2037 = vmatprep.subr.mxu1 %v10026_v41  ;;  %13368 = vst [vmem:[#allocation67_spill] sm:$0xff] %v10038_v51  ;;  %13369 = vst [vmem:[#allocation68_spill] sm:$0xff] %v10042_v53  ;;  %v10044_v16 = vld [vmem:[#allocation12 + $0x30] sm:$0xff]  ;;  %v10048_v41 = vld [vmem:[#allocation12 + $0x8] sm:$0xff] }
 0x242   :  { %1967 = vmatpush1.msra.mxu0 %v10030_v38  ;;  %2038 = vmatpush1.msra.mxu1 %v10032_v52  ;;  %13370 = vst [vmem:[#allocation69_spill] sm:$0xff] %v10044_v16  ;;  %13371 = vst [vmem:[#allocation70_spill] sm:$0xff] %v10048_v41  ;;  %v10050_v38 = vld [vmem:[#allocation12 + $0x18] sm:$0xff]  ;;  %v10054_v52 = vld [vmem:[#allocation12] sm:$0xff] }
 0x243   :  { %1968 = vmatprep.subr.mxu0 %v10036_v40  ;;  %2039 = vmatprep.subr.mxu1 %v10038_v51  ;;  %13372 = vst [vmem:[#allocation71_spill] sm:$0xff] %v10050_v38  ;;  %13373 = vst [vmem:[#allocation72_spill] sm:$0xff] %v10054_v52  ;;  %v10056_v40 = vld [vmem:[#allocation12 + $0x10] sm:$0xff]  ;;  %v10060_v51 = vld [vmem:[#allocation15 + $0x1e8] sm:$0xff] }
 0x244   :  { %1969 = vmatpush1.msra.mxu0 %v10042_v53  ;;  %2040 = vmatpush1.msra.mxu1 %v10044_v16  ;;  %13374 = vst [vmem:[#allocation73_spill] sm:$0xff] %v10056_v40  ;;  %13375 = vst [vmem:[#allocation74_spill] sm:$0xff] %v10060_v51  ;;  %v10062_v53 = vld [vmem:[#allocation15 + $0x1f8] sm:$0xff] }
 0x245   :  { %1970 = vmatprep.subr.mxu0 %v10048_v41  ;;  %2041 = vmatprep.subr.mxu1 %v10050_v38  ;;  %13376 = vst [vmem:[#allocation75_spill] sm:$0xff] %v10062_v53  ;;  %v389_v38 = vadd.f32 %v9598_v46, %v9639_v21 }
 0x246   :  { %1971 = vmatpush1.msra.mxu0 %v10054_v52  ;;  %2042 = vmatpush1.msra.mxu1 %v10056_v40 }
 0x247   :  { %2154 = vmatprep.subr.mxu0 %v10060_v51  ;;  %2225 = vmatprep.subr.mxu1 %v10062_v53 }
 0x2c3   :  { %v1528_v16 = vpop.f32.mrf.mxu0  ;;  %v1599_v52 = vpop.f32.mrf.mxu1 }
 0x2c4   :  { %v1604_v41 = vadd.f32 %v1528_v16, %v9593_v44  ;;  %v1606_v51 = vadd.f32 %v1599_v52, %v9596_v45 }
 0x2c5   :  { %v1530_v30 = vpop.f32.mrf.mxu0  ;;  %v1601_v62 = vpop.f32.mrf.mxu1 }
 0x2c6   :  { %v7891_v60 = vmul.f32 -1.442695, %v1604_v41  ;;  %v1605_v57 = vadd.f32 %v1530_v30, %v389_v38  ;;  %v1607_v59 = vadd.f32 %v1601_v62, %v9601_v47 }
 0x2c8   :  { %8191 = vpow2.f32 %v7891_v60  ;;  %v7892_v40 = vmul.f32 -1.442695, %v1605_v57  ;;  %v7893_v19 = vmul.f32 -1.442695, %v1607_v59 }
 0x2ca   :  { %8193 = vpow2.f32 %v7892_v40 }
 0x2cb   :  { %8195 = vpow2.f32 %v7893_v19 }
 0x2cc   :  { %8197 = vtanh.f32 %v1606_v51 }
 0x2d5   :  { %v8192_v53 = vpop.eup %8191 }
 0x2d6   :  { %v1825_v61 = vadd.f32 1.0, %v8192_v53 }
 0x2d7   :  { %v8194_v7 = vpop.eup %8193 }
 0x2d8   :  { %8199 = vrcp.f32 %v1825_v61  ;;  %v1831_v44 = vadd.f32 1.0, %v8194_v7  ;;  %v8196_v46 = vpop.eup %8195 }
 0x2d9   :  { %v8198_v30 = vpop.eup %8197  ;;  %v1838_v57 = vadd.f32 1.0, %v8196_v46 }
 0x2da   :  { %8201 = vrcp.f32 %v1831_v44 }
 0x2db   :  { %8203 = vrcp.f32 %v1838_v57  ;;  %v10083_v57 = vld [vmem:[#allocation15 + $0x1f0] sm:$0xff] }
 0x2e5   :  { %v8200_v16 = vpop.eup %8199 }
 0x2e6   :  { %v1842_v60 = vmul.f32 %v8200_v16, %v8198_v30  ;;  %v1742_v40 = vpop.f32.mrf.mxu0  ;;  %v1813_v51 = vpop.f32.mrf.mxu1 }
 0x2e7   :  { %v8202_v38 = vpop.eup %8201  ;;  %v1818_v47 = vadd.f32 %v1742_v40, %v9765_v35  ;;  %v1820_v35 = vadd.f32 %v1813_v51, %v9768_v49  ;;  %v10091_v49 = vld [vmem:[#allocation15 + $0x1c0] sm:$0xff]  ;;  %v10109_v51 = vld [vmem:[#allocation15 + $0x188] sm:$0xff] }
 0x2e8   :  { %v1841_v59 = vmul.f32 %v8202_v38, %v9786_v55  ;;  %v1744_v45 = vpop.f32.mrf.mxu0  ;;  %v1815_v61 = vpop.f32.mrf.mxu1  ;;  %v10085_v38 = vld [vmem:[#allocation15 + $0x1c8] sm:$0xff]  ;;  %13381 = vst [vmem:[#allocation80_spill] sm:$0xff] %v10109_v51 }
 0x2e9   :  { %v7894_v52 = vmul.f32 -1.442695, %v1818_v47  ;;  %v1819_v53 = vadd.f32 %v1744_v45, %v9771_v31  ;;  %v1821_v41 = vadd.f32 %v1815_v61, %v9774_v27  ;;  %v8204_v55 = vpop.eup %8203  ;;  %v10087_v27 = vld [vmem:[#allocation15 + $0x1d8] sm:$0xff]  ;;  %v10093_v47 = vld [vmem:[#allocation15 + $0x1d0] sm:$0xff]  ;;  %v10115_v61 = vld [vmem:[#allocation15 + $0x180] sm:$0xff] }
 0x2ea   :  { %v10074_v62 = vadd.f32 %v1842_v60, %v1841_v59  ;;  %v10081_v60 = vld [vmem:[#allocation15 + $0x1e0] sm:$0xff]  ;;  %v10097_v59 = vld [vmem:[#allocation15 + $0x1a8] sm:$0xff]  ;;  %v10099_v45 = vld [vmem:[#allocation15 + $0x1b8] sm:$0xff]  ;;  %13383 = vst [vmem:[#allocation82_spill] sm:$0xff] %v10115_v61 }
 0x2eb   :  { %8205 = vpow2.f32 %v7894_v52  ;;  %v7895_v19 = vmul.f32 -1.442695, %v1819_v53  ;;  %v7896_v7 = vmul.f32 -1.442695, %v1821_v41  ;;  %13378 = vst [vmem:[#allocation77_spill] sm:$0xff] %v10099_v45  ;;  %v10103_v52 = vld [vmem:[#allocation15 + $0x1a0] sm:$0xff] }
 0x2ec   :  { %8207 = vtanh.f32 %v10074_v62  ;;  %13379 = vst [vmem:[#allocation78_spill] sm:$0xff] %v10103_v52  ;;  %v10105_v53 = vld [vmem:[#allocation15 + $0x1b0] sm:$0xff] }
 0x2ed   :  { %8209 = vpow2.f32 %v7895_v19  ;;  %13380 = vst [vmem:[#allocation79_spill] sm:$0xff] %v10105_v53  ;;  %v10111_v19 = vld [vmem:[#allocation15 + $0x198] sm:$0xff]  ;;  %v10117_v41 = vld [vmem:[#allocation15 + $0x190] sm:$0xff] }
 0x2ee   :  { %8211 = vtanh.f32 %v1820_v35  ;;  %13382 = vst [vmem:[#allocation81_spill] sm:$0xff] %v10111_v19  ;;  %13384 = vst [vmem:[#allocation83_spill] sm:$0xff] %v10117_v41  ;;  %v10121_v35 = vld [vmem:[#allocation15 + $0x168] sm:$0xff] }
 0x2ef   :  { %8213 = vpow2.f32 %v7896_v7  ;;  %13385 = vst [vmem:[#allocation84_spill] sm:$0xff] %v10121_v35  ;;  %v10123_v7 = vld [vmem:[#allocation15 + $0x178] sm:$0xff] }
 0x2f0   :  { %13386 = vst [vmem:[#allocation85_spill] sm:$0xff] %v10123_v7 }
 0x2f8   :  { %v8206_v44 = vpop.eup %8205 }
 0x2f9   :  { %v8208_v46 = vpop.eup %8207  ;;  %v1849_v30 = vadd.f32 1.0, %v8206_v44  ;;  %v10129_v44 = vld [vmem:[#allocation15 + $0x170] sm:$0xff] }
 0x2fa   :  { %v8210_v31 = vpop.eup %8209  ;;  %v10079_v16 = vmul.f32 %v8208_v46, %v8204_v55  ;;  %v10127_v55 = vld [vmem:[#allocation15 + $0x160] sm:$0xff]  ;;  %13388 = vst [vmem:[#allocation87_spill] sm:$0xff] %v10129_v44  ;;  %v10133_v46 = vld [vmem:[#allocation15 + $0x148] sm:$0xff] }
 0x2fb   :  { %8215 = vrcp.f32 %v1849_v30  ;;  %v1855_v40 = vadd.f32 1.0, %v8210_v31  ;;  %13387 = vst [vmem:[#allocation86_spill] sm:$0xff] %v10127_v55  ;;  %13389 = vst [vmem:[#allocation88_spill] sm:$0xff] %v10133_v46  ;;  %v10135_v30 = vld [vmem:[#allocation15 + $0x158] sm:$0xff]  ;;  %v10139_v31 = vld [vmem:[#allocation15 + $0x140] sm:$0xff] }
 0x2fc   :  { %13377 = vst [vmem:[#allocation76_spill] sm:$0xff] %v10079_v16  ;;  %2005 = vmatmul.mubr.f32.vlgmr.msra.gmra.mxu0 %v10079_v16  ;;  %2076 = vmatmul.mubr.f32.vlgmr.msra.gmra.mxu1 %v10079_v16  ;;  %13390 = vst [vmem:[#allocation89_spill] sm:$0xff] %v10135_v30  ;;  %v10145_v16 = vld [vmem:[#allocation15 + $0x128] sm:$0xff] }
 0x2fd   :  { %8217 = vrcp.f32 %v1855_v40  ;;  %2155 = vmatpush1.msra.mxu0 %v10081_v60  ;;  %2226 = vmatpush1.msra.mxu1 %v10083_v57  ;;  %13391 = vst [vmem:[#allocation90_spill] sm:$0xff] %v10139_v31  ;;  %v10141_v40 = vld [vmem:[#allocation15 + $0x150] sm:$0xff]  ;;  %13393 = vst [vmem:[#allocation92_spill] sm:$0xff] %v10145_v16 }
 0x2fe   :  { %2156 = vmatprep.subr.mxu0 %v10085_v38  ;;  %2227 = vmatprep.subr.mxu1 %v10087_v27  ;;  %13392 = vst [vmem:[#allocation91_spill] sm:$0xff] %v10141_v40 }
 0x2ff   :  { %2157 = vmatpush1.msra.mxu0 %v10091_v49  ;;  %2228 = vmatpush1.msra.mxu1 %v10093_v47 }
 0x300   :  { %2158 = vmatprep.subr.mxu0 %v10097_v59  ;;  %2229 = vmatprep.subr.mxu1 %v10099_v45 }
 0x301   :  { %2159 = vmatpush1.msra.mxu0 %v10103_v52  ;;  %2230 = vmatpush1.msra.mxu1 %v10105_v53 }
 0x302   :  { %2160 = vmatprep.subr.mxu0 %v10109_v51  ;;  %2231 = vmatprep.subr.mxu1 %v10111_v19 }
 0x303   :  { %2161 = vmatpush1.msra.mxu0 %v10115_v61  ;;  %2232 = vmatpush1.msra.mxu1 %v10117_v41  ;;  %v10147_v61 = vld [vmem:[#allocation15 + $0x138] sm:$0xff]  ;;  %v8212_v41 = vpop.eup %8211 }
 0x304   :  { %2162 = vmatprep.subr.mxu0 %v10121_v35  ;;  %2233 = vmatprep.subr.mxu1 %v10123_v7  ;;  %13394 = vst [vmem:[#allocation93_spill] sm:$0xff] %v10147_v61  ;;  %v10151_v35 = vld [vmem:[#allocation15 + $0x120] sm:$0xff]  ;;  %v10153_v7 = vld [vmem:[#allocation15 + $0x130] sm:$0xff]  ;;  %v8214_v19 = vpop.eup %8213 }
 0x305   :  { %2163 = vmatpush1.msra.mxu0 %v10127_v55  ;;  %2234 = vmatpush1.msra.mxu1 %v10129_v44  ;;  %13395 = vst [vmem:[#allocation94_spill] sm:$0xff] %v10153_v7  ;;  %v10157_v55 = vld [vmem:[#allocation15 + $0x108] sm:$0xff]  ;;  %v10159_v44 = vld [vmem:[#allocation15 + $0x118] sm:$0xff]  ;;  %v1862_v45 = vadd.f32 1.0, %v8214_v19  ;;  %v10188_v19 = vld [vmem:[#allocation15 + $0xc0] sm:$0xff] }
 0x306   :  { %2164 = vmatprep.subr.mxu0 %v10133_v46  ;;  %2235 = vmatprep.subr.mxu1 %v10135_v30  ;;  %13396 = vst [vmem:[#allocation95_spill] sm:$0xff] %v10157_v55  ;;  %13397 = vst [vmem:[#allocation96_spill] sm:$0xff] %v10159_v44  ;;  %v10163_v46 = vld [vmem:[#allocation15 + $0x100] sm:$0xff]  ;;  %v10165_v30 = vld [vmem:[#allocation15 + $0x110] sm:$0xff] }
 0x307   :  { %2165 = vmatpush1.msra.mxu0 %v10139_v31  ;;  %2236 = vmatpush1.msra.mxu1 %v10141_v40  ;;  %v10169_v31 = vld [vmem:[#allocation15 + $0xe8] sm:$0xff]  ;;  %v10171_v40 = vld [vmem:[#allocation15 + $0xf8] sm:$0xff]  ;;  %13402 = vst [vmem:[#allocation140_spill] sm:$0xff] %v10188_v19  ;;  %8219 = vrcp.f32 %v1862_v45  ;;  %v10215_v45 = vld [vmem:[#allocation15 + $0x80] sm:$0xff] }
 0x308   :  { %v8216_v51 = vpop.eup %8215  ;;  %2166 = vmatprep.subr.mxu0 %v10145_v16  ;;  %2237 = vmatprep.subr.mxu1 %v10147_v61  ;;  %13398 = vst [vmem:[#allocation136_spill] sm:$0xff] %v10169_v31  ;;  %13399 = vst [vmem:[#allocation137_spill] sm:$0xff] %v10171_v40  ;;  %v10175_v61 = vld [vmem:[#allocation15 + $0xe0] sm:$0xff]  ;;  %v10177_v16 = vld [vmem:[#allocation15 + $0xf0] sm:$0xff] }
 0x309   :  { %v1866_v53 = vmul.f32 %v8216_v51, %v8212_v41  ;;  %2167 = vmatpush1.msra.mxu0 %v10151_v35  ;;  %2238 = vmatpush1.msra.mxu1 %v10153_v7  ;;  %v10182_v41 = vld [vmem:[#allocation15 + $0xc8] sm:$0xff]  ;;  %v10184_v7 = vld [vmem:[#allocation15 + $0xd8] sm:$0xff]  ;;  %13410 = vst [vmem:[#allocation148_spill] sm:$0xff] %v10215_v45 }
 0x30a   :  { %v8218_v52 = vpop.eup %8217  ;;  %2168 = vmatprep.subr.mxu0 %v10157_v55  ;;  %2239 = vmatprep.subr.mxu1 %v10159_v44  ;;  %13400 = vst [vmem:[#allocation138_spill] sm:$0xff] %v10182_v41  ;;  %13401 = vst [vmem:[#allocation139_spill] sm:$0xff] %v10184_v7  ;;  %v10190_v44 = vld [vmem:[#allocation15 + $0xd0] sm:$0xff] }
 0x30b   :  { %v1865_v51 = vmul.f32 %v8218_v52, %v9827_v4  ;;  %2169 = vmatpush1.msra.mxu0 %v10163_v46  ;;  %2240 = vmatpush1.msra.mxu1 %v10165_v30  ;;  %13403 = vst [vmem:[#allocation141_spill] sm:$0xff] %v10190_v44  ;;  %v10196_v4 = vld [vmem:[#allocation15 + $0xa8] sm:$0xff]  ;;  %v10198_v52 = vld [vmem:[#allocation15 + $0xb8] sm:$0xff] }
 0x30c   :  { %2170 = vmatprep.subr.mxu0 %v10169_v31  ;;  %2241 = vmatprep.subr.mxu1 %v10171_v40  ;;  %13404 = vst [vmem:[#allocation142_spill] sm:$0xff] %v10196_v4  ;;  %13405 = vst [vmem:[#allocation143_spill] sm:$0xff] %v10198_v52  ;;  %v10202_v40 = vld [vmem:[#allocation15 + $0xa0] sm:$0xff]  ;;  %v10204_v31 = vld [vmem:[#allocation15 + $0xb0] sm:$0xff] }
 0x30d   :  { %v10192_v55 = vadd.f32 %v1866_v53, %v1865_v51  ;;  %2171 = vmatpush1.msra.mxu0 %v10175_v61  ;;  %2242 = vmatpush1.msra.mxu1 %v10177_v16  ;;  %13406 = vst [vmem:[#allocation144_spill] sm:$0xff] %v10202_v40  ;;  %13407 = vst [vmem:[#allocation145_spill] sm:$0xff] %v10204_v31  ;;  %v10208_v53 = vld [vmem:[#allocation15 + $0x88] sm:$0xff]  ;;  %v10210_v51 = vld [vmem:[#allocation15 + $0x98] sm:$0xff] }
 0x30e   :  { %2172 = vmatprep.subr.mxu0 %v10182_v41  ;;  %2243 = vmatprep.subr.mxu1 %v10184_v7  ;;  %13408 = vst [vmem:[#allocation146_spill] sm:$0xff] %v10208_v53  ;;  %13409 = vst [vmem:[#allocation147_spill] sm:$0xff] %v10210_v51  ;;  %v10217_v7 = vld [vmem:[#allocation15 + $0x90] sm:$0xff]  ;;  %v10227_v41 = vld [vmem:[#allocation15 + $0x60] sm:$0xff] }
 0x30f   :  { %2173 = vmatpush1.msra.mxu0 %v10188_v19  ;;  %2244 = vmatpush1.msra.mxu1 %v10190_v44  ;;  %8221 = vtanh.f32 %v10192_v55  ;;  %13411 = vst [vmem:[#allocation149_spill] sm:$0xff] %v10217_v7  ;;  %v10221_v19 = vld [vmem:[#allocation15 + $0x68] sm:$0xff]  ;;  %v10223_v44 = vld [vmem:[#allocation15 + $0x78] sm:$0xff]  ;;  %13414 = vst [vmem:[#allocation152_spill] sm:$0xff] %v10227_v41 }
 0x310   :  { %2174 = vmatprep.subr.mxu0 %v10196_v4  ;;  %2245 = vmatprep.subr.mxu1 %v10198_v52  ;;  %13412 = vst [vmem:[#allocation150_spill] sm:$0xff] %v10221_v19  ;;  %13413 = vst [vmem:[#allocation151_spill] sm:$0xff] %v10223_v44  ;;  %v10229_v4 = vld [vmem:[#allocation15 + $0x70] sm:$0xff]  ;;  %v10233_v52 = vld [vmem:[#allocation15 + $0x48] sm:$0xff] }
 0x311   :  { %2175 = vmatpush1.msra.mxu0 %v10202_v40  ;;  %2246 = vmatpush1.msra.mxu1 %v10204_v31  ;;  %13415 = vst [vmem:[#allocation153_spill] sm:$0xff] %v10229_v4  ;;  %v10235_v40 = vld [vmem:[#allocation15 + $0x58] sm:$0xff]  ;;  %v10239_v31 = vld [vmem:[#allocation15 + $0x40] sm:$0xff] }
 0x312   :  { %2176 = vmatprep.subr.mxu0 %v10208_v53  ;;  %2247 = vmatprep.subr.mxu1 %v10210_v51  ;;  %13416 = vst [vmem:[#allocation154_spill] sm:$0xff] %v10235_v40  ;;  %v10241_v53 = vld [vmem:[#allocation15 + $0x50] sm:$0xff]  ;;  %v10245_v51 = vld [vmem:[#allocation15 + $0x28] sm:$0xff] }
 0x313   :  { %2177 = vmatpush1.msra.mxu0 %v10215_v45  ;;  %2248 = vmatpush1.msra.mxu1 %v10217_v7  ;;  %13417 = vst [vmem:[#allocation155_spill] sm:$0xff] %v10241_v53  ;;  %13418 = vst [vmem:[#allocation156_spill] sm:$0xff] %v10245_v51  ;;  %v10247_v45 = vld [vmem:[#allocation15 + $0x38] sm:$0xff]  ;;  %v10251_v7 = vld [vmem:[#allocation15 + $0x20] sm:$0xff] }
 0x314   :  { %2178 = vmatprep.subr.mxu0 %v10221_v19  ;;  %2249 = vmatprep.subr.mxu1 %v10223_v44  ;;  %13419 = vst [vmem:[#allocation157_spill] sm:$0xff] %v10247_v45  ;;  %v10253_v19 = vld [vmem:[#allocation15 + $0x30] sm:$0xff]  ;;  %v10257_v44 = vld [vmem:[#allocation15 + $0x8] sm:$0xff] }
 0x315   :  { %2179 = vmatpush1.msra.mxu0 %v10227_v41  ;;  %2250 = vmatpush1.msra.mxu1 %v10229_v4  ;;  %v10259_v41 = vld [vmem:[#allocation15 + $0x18] sm:$0xff]  ;;  %v10263_v4 = vld [vmem:[#allocation15] sm:$0xff] }
 0x316   :  { %2180 = vmatprep.subr.mxu0 %v10233_v52  ;;  %2251 = vmatprep.subr.mxu1 %v10235_v40  ;;  %v10267_v40 = vld [vmem:[#allocation15 + $0x10] sm:$0xff] }
 0x317   :  { %2181 = vmatpush1.msra.mxu0 %v10239_v31  ;;  %2252 = vmatpush1.msra.mxu1 %v10241_v53  ;;  %v8220_v53 = vpop.eup %8219 }
 0x318   :  { %2182 = vmatprep.subr.mxu0 %v10245_v51  ;;  %2253 = vmatprep.subr.mxu1 %v10247_v45 }
 0x319   :  { %2183 = vmatpush1.msra.mxu0 %v10251_v7  ;;  %2254 = vmatpush1.msra.mxu1 %v10253_v19 }
 0x31a   :  { %2184 = vmatprep.subr.mxu0 %v10257_v44  ;;  %2255 = vmatprep.subr.mxu1 %v10259_v41 }
 0x31b   :  { %2185 = vmatpush1.msra.mxu0 %v10263_v4  ;;  %2218 = vmatprep.mubr.f32.mxu0 %v13173_v5 }
 0x31c   :  { %v8222_v51 = vpop.eup %8221  ;;  %2256 = vmatpush1.msra.mxu1 %v10267_v40  ;;  %2289 = vmatprep.mubr.f32.mxu1 %v13173_v5 }
 0x31d   :  { %v10275_v45 = vmul.f32 %v8222_v51, %v8220_v53  ;;  %2418 = vmatprep.subr.mxu0 %v9868_v2  ;;  %2489 = vmatprep.subr.mxu1 %v9870_v8  ;;  %v13421_v2 = vld [vmem:[#allocation47_spill] sm:$0xff]  ;;  %v13422_v8 = vld [vmem:[#allocation48_spill] sm:$0xff] }
 0x31f   :  { %13420 = vst [vmem:[#allocation158_spill] sm:$0xff] %v10275_v45  ;;  %2219 = vmatmul.mubr.f32.vlgmr.msra.gmra.mxu0 %v10275_v45  ;;  %2290 = vmatmul.mubr.f32.vlgmr.msra.gmra.mxu1 %v10275_v45  ;;  %v10612_v45 = vld [vmem:[#allocation12 + $0x20] sm:$0xff] }
 0x320   :  { %2419 = vmatpush1.msra.mxu0 %v9874_v6  ;;  %2490 = vmatpush1.msra.mxu1 %v9876_v58  ;;  %v13423_v6 = vld [vmem:[#allocation49_spill] sm:$0xff]  ;;  %v13424_v58 = vld [vmem:[#allocation50_spill] sm:$0xff] }
 0x321   :  { %2420 = vmatprep.subr.mxu0 %v9880_v9  ;;  %2491 = vmatprep.subr.mxu1 %v9882_v10  ;;  %v13425_v9 = vld [vmem:[#allocation51_spill] sm:$0xff]  ;;  %v13426_v10 = vld [vmem:[#allocation52_spill] sm:$0xff] }
 0x322   :  { %2421 = vmatpush1.msra.mxu0 %v9886_v11  ;;  %2492 = vmatpush1.msra.mxu1 %v9888_v12  ;;  %v13427_v11 = vld [vmem:[#allocation53_spill] sm:$0xff]  ;;  %v13428_v12 = vld [vmem:[#allocation54_spill] sm:$0xff] }
 0x323   :  { %2422 = vmatprep.subr.mxu0 %v9892_v14  ;;  %2493 = vmatprep.subr.mxu1 %v9894_v32  ;;  %v13429_v14 = vld [vmem:[#allocation55_spill] sm:$0xff]  ;;  %v13430_v32 = vld [vmem:[#allocation56_spill] sm:$0xff] }
 0x324   :  { %2423 = vmatpush1.msra.mxu0 %v9898_v39  ;;  %2494 = vmatpush1.msra.mxu1 %v9900_v15  ;;  %v13432_v39 = vld [vmem:[#allocation58_spill] sm:$0xff]  ;;  %v13433_v15 = vld [vmem:[#allocation59_spill] sm:$0xff] }
 0x325   :  { %2424 = vmatprep.subr.mxu0 %v9904_v63  ;;  %2495 = vmatprep.subr.mxu1 %v9906_v29  ;;  %v13434_v63 = vld [vmem:[#allocation60_spill] sm:$0xff]  ;;  %v13435_v29 = vld [vmem:[#allocation61_spill] sm:$0xff] }
 0x326   :  { %2425 = vmatpush1.msra.mxu0 %v9910_v54  ;;  %2496 = vmatpush1.msra.mxu1 %v9912_v48  ;;  %v13436_v54 = vld [vmem:[#allocation62_spill] sm:$0xff]  ;;  %v13437_v48 = vld [vmem:[#allocation63_spill] sm:$0xff] }
 0x327   :  { %2426 = vmatprep.subr.mxu0 %v9916_v13  ;;  %2497 = vmatprep.subr.mxu1 %v9918_v20  ;;  %v13438_v13 = vld [vmem:[#allocation64_spill] sm:$0xff]  ;;  %v13439_v20 = vld [vmem:[#allocation65_spill] sm:$0xff] }
 0x328   :  { %2427 = vmatpush1.msra.mxu0 %v9922_v26  ;;  %2498 = vmatpush1.msra.mxu1 %v9924_v25  ;;  %v13440_v26 = vld [vmem:[#allocation66_spill] sm:$0xff]  ;;  %v13441_v25 = vld [vmem:[#allocation67_spill] sm:$0xff] }
 0x329   :  { %2428 = vmatprep.subr.mxu0 %v9928_v17  ;;  %2499 = vmatprep.subr.mxu1 %v9930_v22  ;;  %v13442_v17 = vld [vmem:[#allocation68_spill] sm:$0xff]  ;;  %v13443_v22 = vld [vmem:[#allocation69_spill] sm:$0xff]  ;;  %13519 = vst [vmem:[#allocation66_spill] sm:$0xff] %v10612_v45 }
 0x32a   :  { %2429 = vmatpush1.msra.mxu0 %v9934_v36  ;;  %2500 = vmatpush1.msra.mxu1 %v9936_v23  ;;  %v13444_v36 = vld [vmem:[#allocation70_spill] sm:$0xff]  ;;  %v13445_v23 = vld [vmem:[#allocation71_spill] sm:$0xff] }
 0x32b   :  { %2430 = vmatprep.subr.mxu0 %v9940_v56  ;;  %2501 = vmatprep.subr.mxu1 %v9942_v1  ;;  %v13446_v56 = vld [vmem:[#allocation72_spill] sm:$0xff]  ;;  %v13447_v1 = vld [vmem:[#allocation73_spill] sm:$0xff] }
 0x32c   :  { %2431 = vmatpush1.msra.mxu0 %v9946_v18  ;;  %2502 = vmatpush1.msra.mxu1 %v9948_v50  ;;  %v13448_v18 = vld [vmem:[#allocation74_spill] sm:$0xff]  ;;  %v13449_v50 = vld [vmem:[#allocation75_spill] sm:$0xff] }
 0x32d   :  { %2432 = vmatprep.subr.mxu0 %v9952_v37  ;;  %2503 = vmatprep.subr.mxu1 %v9954_v28  ;;  %v13450_v28 = vld [vmem:[#allocation37_spill] sm:$0xff] }
 0x32e   :  { %2433 = vmatpush1.msra.mxu0 %v9958_v24  ;;  %2504 = vmatpush1.msra.mxu1 %v9960_v34  ;;  %v395_v24 = vadd.f32 %v13450_v28, %v9639_v21  ;;  %v13451_v34 = vld [vmem:[#allocation35_spill] sm:$0xff]  ;;  %v13457_v28 = vld [vmem:[#allocation132_spill] sm:$0xff] }
 0x32f   :  { %2434 = vmatprep.subr.mxu0 %v9964_v33  ;;  %2505 = vmatprep.subr.mxu1 %v9966_v43 }
 0x330   :  { %2435 = vmatpush1.msra.mxu0 %v9970_v0  ;;  %2506 = vmatpush1.msra.mxu1 %v9972_v3 }
 0x331   :  { %2436 = vmatprep.subr.mxu0 %v9976_v42  ;;  %2507 = vmatprep.subr.mxu1 %v13421_v2  ;;  %v13431_v42 = vld [vmem:[#allocation57_spill] sm:$0xff] }
 0x332   :  { %2437 = vmatpush1.msra.mxu0 %v13422_v8  ;;  %2508 = vmatpush1.msra.mxu1 %v13423_v6  ;;  %v13452_v8 = vld [vmem:[#allocation38_spill] sm:$0xff] }
 0x333   :  { %2438 = vmatprep.subr.mxu0 %v13424_v58  ;;  %2509 = vmatprep.subr.mxu1 %v13425_v9  ;;  %v13453_v9 = vld [vmem:[#allocation36_spill] sm:$0xff] }
 0x334   :  { %2439 = vmatpush1.msra.mxu0 %v13426_v10  ;;  %2510 = vmatpush1.msra.mxu1 %v13427_v11 }
 0x335   :  { %2440 = vmatprep.subr.mxu0 %v13428_v12  ;;  %2511 = vmatprep.subr.mxu1 %v13429_v14 }
 0x336   :  { %2441 = vmatpush1.msra.mxu0 %v13430_v32  ;;  %2512 = vmatpush1.msra.mxu1 %v13431_v42 }
 0x337   :  { %2442 = vmatprep.subr.mxu0 %v13432_v39  ;;  %2513 = vmatprep.subr.mxu1 %v13433_v15 }
 0x338   :  { %2443 = vmatpush1.msra.mxu0 %v13434_v63  ;;  %2514 = vmatpush1.msra.mxu1 %v13435_v29 }
 0x339   :  { %2444 = vmatprep.subr.mxu0 %v13436_v54  ;;  %2515 = vmatprep.subr.mxu1 %v13437_v48 }
 0x33a   :  { %2445 = vmatpush1.msra.mxu0 %v13438_v13  ;;  %2516 = vmatpush1.msra.mxu1 %v13439_v20  ;;  %v13454_v13 = vld [vmem:[#allocation131_spill] sm:$0xff] }
 0x33b   :  { %2446 = vmatprep.subr.mxu0 %v13440_v26  ;;  %2517 = vmatprep.subr.mxu1 %v13441_v25 }
 0x33c   :  { %2447 = vmatpush1.msra.mxu0 %v13442_v17  ;;  %2518 = vmatpush1.msra.mxu1 %v13443_v22  ;;  %v13455_v22 = vld [vmem:[#allocation133_spill] sm:$0xff] }
 0x33d   :  { %2448 = vmatprep.subr.mxu0 %v13444_v36  ;;  %2519 = vmatprep.subr.mxu1 %v13445_v23 }
 0x33e   :  { %2449 = vmatpush1.msra.mxu0 %v13446_v56  ;;  %2482 = vmatprep.mubr.f32.mxu0 %v13173_v5 }
 0x33f   :  { %2520 = vmatpush1.msra.mxu1 %v13447_v1  ;;  %2553 = vmatprep.mubr.f32.mxu1 %v13173_v5 }
 0x340   :  { %2632 = vmatprep.subr.mxu0 %v13448_v18  ;;  %2703 = vmatprep.subr.mxu1 %v13449_v50  ;;  %v13456_v50 = vld [vmem:[#allocation134_spill] sm:$0xff] }
 0x3bc   :  { %v2006_v37 = vpop.f32.mrf.mxu0  ;;  %v2077_v53 = vpop.f32.mrf.mxu1 }
 0x3bd   :  { %v2082_v33 = vadd.f32 %v2006_v37, %v13451_v34  ;;  %v2084_v10 = vadd.f32 %v2077_v53, %v13453_v9 }
 0x3be   :  { %v2008_v43 = vpop.f32.mrf.mxu0  ;;  %v2079_v2 = vpop.f32.mrf.mxu1 }
 0x3bf   :  { %v7897_v0 = vmul.f32 -1.442695, %v2082_v33  ;;  %v2083_v3 = vadd.f32 %v2008_v43, %v395_v24  ;;  %v2085_v6 = vadd.f32 %v2079_v2, %v13452_v8  ;;  %v13459_v2 = vld [vmem:[#allocation77_spill] sm:$0xff]  ;;  %v13460_v8 = vld [vmem:[#allocation78_spill] sm:$0xff] }
 0x3c1   :  { %8223 = vpow2.f32 %v7897_v0  ;;  %v7898_v51 = vmul.f32 -1.442695, %v2083_v3  ;;  %v7899_v58 = vmul.f32 -1.442695, %v2085_v6  ;;  %v13461_v6 = vld [vmem:[#allocation79_spill] sm:$0xff] }
 0x3c3   :  { %8225 = vpow2.f32 %v7898_v51 }
 0x3c4   :  { %8227 = vpow2.f32 %v7899_v58  ;;  %v13462_v58 = vld [vmem:[#allocation80_spill] sm:$0xff] }
 0x3c5   :  { %8229 = vtanh.f32 %v2084_v10  ;;  %v13470_v10 = vld [vmem:[#allocation88_spill] sm:$0xff] }
 0x3ce   :  { %v8224_v11 = vpop.eup %8223 }
 0x3cf   :  { %v2303_v12 = vadd.f32 1.0, %v8224_v11  ;;  %v13471_v11 = vld [vmem:[#allocation89_spill] sm:$0xff] }
 0x3d0   :  { %v8226_v14 = vpop.eup %8225 }
 0x3d1   :  { %8231 = vrcp.f32 %v2303_v12  ;;  %v2309_v32 = vadd.f32 1.0, %v8226_v14  ;;  %v8228_v42 = vpop.eup %8227  ;;  %v13472_v14 = vld [vmem:[#allocation90_spill] sm:$0xff] }
 0x3d2   :  { %v8230_v39 = vpop.eup %8229  ;;  %v2316_v29 = vadd.f32 1.0, %v8228_v42 }
 0x3d3   :  { %8233 = vrcp.f32 %v2309_v32  ;;  %v13473_v32 = vld [vmem:[#allocation91_spill] sm:$0xff] }
 0x3d4   :  { %8235 = vrcp.f32 %v2316_v29  ;;  %v13476_v29 = vld [vmem:[#allocation94_spill] sm:$0xff] }
 0x3de   :  { %v8232_v15 = vpop.eup %8231 }
 0x3df   :  { %v2320_v63 = vmul.f32 %v8232_v15, %v8230_v39  ;;  %v2220_v54 = vpop.f32.mrf.mxu0  ;;  %v2291_v56 = vpop.f32.mrf.mxu1  ;;  %v13474_v39 = vld [vmem:[#allocation92_spill] sm:$0xff]  ;;  %v13475_v15 = vld [vmem:[#allocation93_spill] sm:$0xff] }
 0x3e0   :  { %v8234_v48 = vpop.eup %8233  ;;  %v2296_v20 = vadd.f32 %v2220_v54, %v13454_v13  ;;  %v2298_v24 = vadd.f32 %v2291_v56, %v13457_v28  ;;  %v13477_v13 = vld [vmem:[#allocation95_spill] sm:$0xff]  ;;  %v13493_v28 = vld [vmem:[#allocation150_spill] sm:$0xff] }
 0x3e1   :  { %v2319_v26 = vmul.f32 %v8234_v48, %v10074_v62  ;;  %v2222_v25 = vpop.f32.mrf.mxu0  ;;  %v2293_v18 = vpop.f32.mrf.mxu1  ;;  %v13486_v56 = vld [vmem:[#allocation143_spill] sm:$0xff] }
 0x3e2   :  { %v7900_v17 = vmul.f32 -1.442695, %v2296_v20  ;;  %v2297_v36 = vadd.f32 %v2222_v25, %v13455_v22  ;;  %v2299_v37 = vadd.f32 %v2293_v18, %v13456_v50  ;;  %v8236_v62 = vpop.eup %8235  ;;  %v13478_v20 = vld [vmem:[#allocation96_spill] sm:$0xff]  ;;  %v13490_v18 = vld [vmem:[#allocation147_spill] sm:$0xff] }
 0x3e3   :  { %v10355_v23 = vadd.f32 %v2320_v63, %v2319_v26  ;;  %v13479_v25 = vld [vmem:[#allocation136_spill] sm:$0xff] }
 0x3e4   :  { %8237 = vpow2.f32 %v7900_v17  ;;  %v7901_v1 = vmul.f32 -1.442695, %v2297_v36  ;;  %v7902_v34 = vmul.f32 -1.442695, %v2299_v37  ;;  %v13480_v17 = vld [vmem:[#allocation137_spill] sm:$0xff]  ;;  %v13482_v36 = vld [vmem:[#allocation139_spill] sm:$0xff] }
 0x3e5   :  { %8239 = vtanh.f32 %v10355_v23  ;;  %v13491_v50 = vld [vmem:[#allocation148_spill] sm:$0xff]  ;;  %v13492_v37 = vld [vmem:[#allocation149_spill] sm:$0xff] }
 0x3e6   :  { %8241 = vpow2.f32 %v7901_v1  ;;  %v13487_v1 = vld [vmem:[#allocation144_spill] sm:$0xff] }
 0x3e7   :  { %8243 = vtanh.f32 %v2298_v24  ;;  %v13494_v24 = vld [vmem:[#allocation151_spill] sm:$0xff] }
 0x3e8   :  { %8245 = vpow2.f32 %v7902_v34  ;;  %v13495_v34 = vld [vmem:[#allocation152_spill] sm:$0xff] }
 0x3f1   :  { %v8238_v33 = vpop.eup %8237 }
 0x3f2   :  { %v8240_v43 = vpop.eup %8239  ;;  %v2327_v0 = vadd.f32 1.0, %v8238_v33  ;;  %v13497_v33 = vld [vmem:[#allocation154_spill] sm:$0xff] }
 0x3f3   :  { %v8242_v3 = vpop.eup %8241  ;;  %v10360_v53 = vmul.f32 %v8240_v43, %v8236_v62  ;;  %v13496_v62 = vld [vmem:[#allocation153_spill] sm:$0xff]  ;;  %v13498_v43 = vld [vmem:[#allocation155_spill] sm:$0xff] }
 0x3f4   :  { %8247 = vrcp.f32 %v2327_v0  ;;  %v2333_v51 = vadd.f32 1.0, %v8242_v3  ;;  %v8244_v9 = vpop.eup %8243  ;;  %v13499_v0 = vld [vmem:[#allocation156_spill] sm:$0xff]  ;;  %v13500_v3 = vld [vmem:[#allocation157_spill] sm:$0xff] }
 0x3f5   :  { %13458 = vst [vmem:[#allocation47_spill] sm:$0xff] %v10360_v53  ;;  %2483 = vmatmul.mubr.f32.vlgmr.msra.gmra.mxu0 %v10360_v53  ;;  %2554 = vmatmul.mubr.f32.vlgmr.msra.gmra.mxu1 %v10360_v53  ;;  %v8246_v12 = vpop.eup %8245  ;;  %v10608_v53 = vld [vmem:[#allocation12 + $0x38] sm:$0xff] }
 0x3f6   :  { %8249 = vrcp.f32 %v2333_v51  ;;  %2633 = vmatpush1.msra.mxu0 %v10081_v60  ;;  %2704 = vmatpush1.msra.mxu1 %v10083_v57  ;;  %v13463_v60 = vld [vmem:[#allocation81_spill] sm:$0xff]  ;;  %v13464_v57 = vld [vmem:[#allocation82_spill] sm:$0xff]  ;;  %v2340_v48 = vadd.f32 1.0, %v8246_v12  ;;  %13518 = vst [vmem:[#allocation65_spill] sm:$0xff] %v10608_v53 }
 0x3f7   :  { %2634 = vmatprep.subr.mxu0 %v10085_v38  ;;  %2705 = vmatprep.subr.mxu1 %v10087_v27  ;;  %v13465_v38 = vld [vmem:[#allocation83_spill] sm:$0xff]  ;;  %v13466_v27 = vld [vmem:[#allocation84_spill] sm:$0xff]  ;;  %v10498_v12 = vld [vmem:[#allocation12 + $0x148] sm:$0xff] }
 0x3f8   :  { %2635 = vmatpush1.msra.mxu0 %v10091_v49  ;;  %2706 = vmatpush1.msra.mxu1 %v10093_v47  ;;  %v13467_v49 = vld [vmem:[#allocation85_spill] sm:$0xff]  ;;  %v13468_v47 = vld [vmem:[#allocation86_spill] sm:$0xff]  ;;  %8251 = vrcp.f32 %v2340_v48  ;;  %v10524_v48 = vld [vmem:[#allocation12 + $0x118] sm:$0xff] }
 0x3f9   :  { %2636 = vmatprep.subr.mxu0 %v10097_v59  ;;  %2707 = vmatprep.subr.mxu1 %v13459_v2  ;;  %v13469_v59 = vld [vmem:[#allocation87_spill] sm:$0xff]  ;;  %v10456_v2 = vld [vmem:[#allocation12 + $0x1c0] sm:$0xff] }
 0x3fa   :  { %2637 = vmatpush1.msra.mxu0 %v13460_v8  ;;  %2708 = vmatpush1.msra.mxu1 %v13461_v6  ;;  %v10458_v8 = vld [vmem:[#allocation12 + $0x1d0] sm:$0xff]  ;;  %v10462_v6 = vld [vmem:[#allocation12 + $0x1a8] sm:$0xff] }
 0x3fb   :  { %2638 = vmatprep.subr.mxu0 %v13462_v58  ;;  %2709 = vmatprep.subr.mxu1 %v13463_v60  ;;  %v10464_v58 = vld [vmem:[#allocation12 + $0x1b8] sm:$0xff]  ;;  %v10468_v60 = vld [vmem:[#allocation12 + $0x1a0] sm:$0xff] }
 0x3fc   :  { %2639 = vmatpush1.msra.mxu0 %v13464_v57  ;;  %2710 = vmatpush1.msra.mxu1 %v13465_v38  ;;  %v10470_v57 = vld [vmem:[#allocation12 + $0x1b0] sm:$0xff]  ;;  %v10474_v38 = vld [vmem:[#allocation12 + $0x188] sm:$0xff] }
 0x3fd   :  { %2640 = vmatprep.subr.mxu0 %v13466_v27  ;;  %2711 = vmatprep.subr.mxu1 %v13467_v49  ;;  %v10476_v27 = vld [vmem:[#allocation12 + $0x198] sm:$0xff]  ;;  %v10480_v49 = vld [vmem:[#allocation12 + $0x180] sm:$0xff] }
 0x3fe   :  { %2641 = vmatpush1.msra.mxu0 %v13468_v47  ;;  %2712 = vmatpush1.msra.mxu1 %v13469_v59  ;;  %v10482_v47 = vld [vmem:[#allocation12 + $0x190] sm:$0xff]  ;;  %v10486_v59 = vld [vmem:[#allocation12 + $0x168] sm:$0xff] }
 0x3ff   :  { %2642 = vmatprep.subr.mxu0 %v13470_v10  ;;  %2713 = vmatprep.subr.mxu1 %v13471_v11  ;;  %v10492_v10 = vld [vmem:[#allocation12 + $0x160] sm:$0xff]  ;;  %v10494_v11 = vld [vmem:[#allocation12 + $0x170] sm:$0xff] }
 0x400   :  { %2643 = vmatpush1.msra.mxu0 %v13472_v14  ;;  %2714 = vmatpush1.msra.mxu1 %v13473_v32  ;;  %v10500_v14 = vld [vmem:[#allocation12 + $0x158] sm:$0xff]  ;;  %v10504_v32 = vld [vmem:[#allocation12 + $0x140] sm:$0xff] }
 0x401   :  { %v8248_v42 = vpop.eup %8247  ;;  %2644 = vmatprep.subr.mxu0 %v13474_v39  ;;  %2715 = vmatprep.subr.mxu1 %v13475_v15  ;;  %v10510_v39 = vld [vmem:[#allocation12 + $0x128] sm:$0xff]  ;;  %v10512_v15 = vld [vmem:[#allocation12 + $0x138] sm:$0xff] }
 0x402   :  { %v2344_v63 = vmul.f32 %v8248_v42, %v8244_v9  ;;  %2645 = vmatpush1.msra.mxu0 %v10151_v35  ;;  %2716 = vmatpush1.msra.mxu1 %v13476_v29  ;;  %v13481_v35 = vld [vmem:[#allocation138_spill] sm:$0xff]  ;;  %v10488_v9 = vld [vmem:[#allocation12 + $0x178] sm:$0xff] }
 0x403   :  { %v8250_v54 = vpop.eup %8249  ;;  %2646 = vmatprep.subr.mxu0 %v13477_v13  ;;  %2717 = vmatprep.subr.mxu1 %v13478_v20  ;;  %v10506_v42 = vld [vmem:[#allocation12 + $0x150] sm:$0xff]  ;;  %v10528_v13 = vld [vmem:[#allocation12 + $0x100] sm:$0xff] }
 0x404   :  { %v2343_v26 = vmul.f32 %v8250_v54, %v10192_v55  ;;  %2647 = vmatpush1.msra.mxu0 %v10163_v46  ;;  %2718 = vmatpush1.msra.mxu1 %v10165_v30  ;;  %v13483_v55 = vld [vmem:[#allocation140_spill] sm:$0xff]  ;;  %v13484_v46 = vld [vmem:[#allocation141_spill] sm:$0xff]  ;;  %v13485_v30 = vld [vmem:[#allocation142_spill] sm:$0xff] }
 0x405   :  { %2648 = vmatprep.subr.mxu0 %v13479_v25  ;;  %2719 = vmatprep.subr.mxu1 %v13480_v17  ;;  %v8252_v51 = vpop.eup %8251  ;;  %v10518_v29 = vld [vmem:[#allocation12 + $0x130] sm:$0xff]  ;;  %v10522_v54 = vld [vmem:[#allocation12 + $0x108] sm:$0xff]  ;;  %v10536_v25 = vld [vmem:[#allocation12 + $0xf8] sm:$0xff] }
 0x406   :  { %v10397_v22 = vadd.f32 %v2344_v63, %v2343_v26  ;;  %2649 = vmatpush1.msra.mxu0 %v10175_v61  ;;  %2720 = vmatpush1.msra.mxu1 %v10177_v16  ;;  %v13488_v61 = vld [vmem:[#allocation145_spill] sm:$0xff]  ;;  %v13489_v16 = vld [vmem:[#allocation146_spill] sm:$0xff]  ;;  %v10516_v63 = vld [vmem:[#allocation12 + $0x120] sm:$0xff] }
 0x407   :  { %2650 = vmatprep.subr.mxu0 %v13481_v35  ;;  %2721 = vmatprep.subr.mxu1 %v13482_v36  ;;  %v10530_v20 = vld [vmem:[#allocation12 + $0x110] sm:$0xff]  ;;  %v10534_v26 = vld [vmem:[#allocation12 + $0xe8] sm:$0xff]  ;;  %v10540_v17 = vld [vmem:[#allocation12 + $0xe0] sm:$0xff] }
 0x408   :  { %2651 = vmatpush1.msra.mxu0 %v13483_v55  ;;  %2722 = vmatpush1.msra.mxu1 %v13484_v46  ;;  %8253 = vtanh.f32 %v10397_v22  ;;  %v10542_v35 = vld [vmem:[#allocation12 + $0xf0] sm:$0xff]  ;;  %v10546_v36 = vld [vmem:[#allocation12 + $0xc8] sm:$0xff]  ;;  %v10548_v55 = vld [vmem:[#allocation12 + $0xd8] sm:$0xff] }
 0x409   :  { %2652 = vmatprep.subr.mxu0 %v13485_v30  ;;  %2723 = vmatprep.subr.mxu1 %v13486_v56  ;;  %v10552_v46 = vld [vmem:[#allocation12 + $0xc0] sm:$0xff]  ;;  %v10554_v30 = vld [vmem:[#allocation12 + $0xd0] sm:$0xff]  ;;  %v10558_v56 = vld [vmem:[#allocation12 + $0xa8] sm:$0xff] }
 0x40a   :  { %2653 = vmatpush1.msra.mxu0 %v13487_v1  ;;  %2724 = vmatpush1.msra.mxu1 %v13488_v61  ;;  %v10560_v1 = vld [vmem:[#allocation12 + $0xb8] sm:$0xff]  ;;  %v10564_v61 = vld [vmem:[#allocation12 + $0xa0] sm:$0xff] }
 0x40b   :  { %2654 = vmatprep.subr.mxu0 %v13489_v16  ;;  %2725 = vmatprep.subr.mxu1 %v13490_v18  ;;  %13502 = vst [vmem:[#allocation49_spill] sm:$0xff] %v10560_v1  ;;  %13503 = vst [vmem:[#allocation50_spill] sm:$0xff] %v10564_v61  ;;  %v10566_v16 = vld [vmem:[#allocation12 + $0xb0] sm:$0xff]  ;;  %v10570_v18 = vld [vmem:[#allocation12 + $0x88] sm:$0xff] }
 0x40c   :  { %2655 = vmatpush1.msra.mxu0 %v13491_v50  ;;  %2726 = vmatpush1.msra.mxu1 %v13492_v37  ;;  %13504 = vst [vmem:[#allocation51_spill] sm:$0xff] %v10566_v16  ;;  %13505 = vst [vmem:[#allocation52_spill] sm:$0xff] %v10570_v18  ;;  %v10572_v50 = vld [vmem:[#allocation12 + $0x98] sm:$0xff]  ;;  %v10576_v37 = vld [vmem:[#allocation12 + $0x80] sm:$0xff] }
 0x40d   :  { %2656 = vmatprep.subr.mxu0 %v13493_v28  ;;  %2727 = vmatprep.subr.mxu1 %v13494_v24  ;;  %13506 = vst [vmem:[#allocation53_spill] sm:$0xff] %v10572_v50  ;;  %13507 = vst [vmem:[#allocation54_spill] sm:$0xff] %v10576_v37  ;;  %v10578_v28 = vld [vmem:[#allocation12 + $0x90] sm:$0xff]  ;;  %v10582_v24 = vld [vmem:[#allocation12 + $0x68] sm:$0xff] }
 0x40e   :  { %2657 = vmatpush1.msra.mxu0 %v13495_v34  ;;  %2728 = vmatpush1.msra.mxu1 %v13496_v62  ;;  %13508 = vst [vmem:[#allocation55_spill] sm:$0xff] %v10578_v28  ;;  %13509 = vst [vmem:[#allocation56_spill] sm:$0xff] %v10582_v24  ;;  %v10584_v34 = vld [vmem:[#allocation12 + $0x78] sm:$0xff]  ;;  %v10588_v62 = vld [vmem:[#allocation12 + $0x60] sm:$0xff] }
 0x40f   :  { %2658 = vmatprep.subr.mxu0 %v10233_v52  ;;  %2729 = vmatprep.subr.mxu1 %v13497_v33  ;;  %13510 = vst [vmem:[#allocation57_spill] sm:$0xff] %v10584_v34  ;;  %13511 = vst [vmem:[#allocation58_spill] sm:$0xff] %v10588_v62  ;;  %v10590_v33 = vld [vmem:[#allocation12 + $0x70] sm:$0xff] }
 0x410   :  { %2659 = vmatpush1.msra.mxu0 %v10239_v31  ;;  %2730 = vmatpush1.msra.mxu1 %v13498_v43  ;;  %13512 = vst [vmem:[#allocation59_spill] sm:$0xff] %v10590_v33  ;;  %v10594_v43 = vld [vmem:[#allocation12 + $0x48] sm:$0xff] }
 0x411   :  { %2660 = vmatprep.subr.mxu0 %v13499_v0  ;;  %2731 = vmatprep.subr.mxu1 %v13500_v3  ;;  %13513 = vst [vmem:[#allocation60_spill] sm:$0xff] %v10594_v43  ;;  %v10596_v0 = vld [vmem:[#allocation12 + $0x58] sm:$0xff]  ;;  %v10600_v3 = vld [vmem:[#allocation12 + $0x40] sm:$0xff] }
 0x412   :  { %2661 = vmatpush1.msra.mxu0 %v10251_v7  ;;  %2732 = vmatpush1.msra.mxu1 %v10253_v19  ;;  %v10438_v7 = vld [vmem:[#allocation12 + $0x1e8] sm:$0xff]  ;;  %13514 = vst [vmem:[#allocation61_spill] sm:$0xff] %v10596_v0  ;;  %13515 = vst [vmem:[#allocation62_spill] sm:$0xff] %v10600_v3 }
 0x413   :  { %2662 = vmatprep.subr.mxu0 %v10257_v44  ;;  %2733 = vmatprep.subr.mxu1 %v10259_v41  ;;  %v10440_v44 = vld [vmem:[#allocation12 + $0x1f8] sm:$0xff]  ;;  %v10446_v41 = vld [vmem:[#allocation12 + $0x1f0] sm:$0xff]  ;;  %v10450_v19 = vld [vmem:[#allocation12 + $0x1c8] sm:$0xff] }
 0x414   :  { %2663 = vmatpush1.msra.mxu0 %v10263_v4  ;;  %2696 = vmatprep.mubr.f32.mxu0 %v13173_v5  ;;  %v10452_v4 = vld [vmem:[#allocation12 + $0x1d8] sm:$0xff] }
 0x415   :  { %v8254_v31 = vpop.eup %8253  ;;  %2734 = vmatpush1.msra.mxu1 %v10267_v40  ;;  %2767 = vmatprep.mubr.f32.mxu1 %v13173_v5  ;;  %v10444_v40 = vld [vmem:[#allocation12 + $0x1e0] sm:$0xff] }
 0x416   :  { %v10432_v52 = vmul.f32 %v8254_v31, %v8252_v51  ;;  %2896 = vmatprep.subr.mxu0 %v10438_v7  ;;  %2967 = vmatprep.subr.mxu1 %v10440_v44  ;;  %v10602_v51 = vld [vmem:[#allocation12 + $0x50] sm:$0xff]  ;;  %v10606_v31 = vld [vmem:[#allocation12 + $0x28] sm:$0xff] }
 0x417   :  { %13516 = vst [vmem:[#allocation63_spill] sm:$0xff] %v10602_v51  ;;  %13517 = vst [vmem:[#allocation64_spill] sm:$0xff] %v10606_v31 }
 0x418   :  { %13501 = vst [vmem:[#allocation48_spill] sm:$0xff] %v10432_v52  ;;  %2697 = vmatmul.mubr.f32.vlgmr.msra.gmra.mxu0 %v10432_v52  ;;  %2768 = vmatmul.mubr.f32.vlgmr.msra.gmra.mxu1 %v10432_v52  ;;  %v10614_v52 = vld [vmem:[#allocation12 + $0x30] sm:$0xff] }
 0x419   :  { %2960 = vmatprep.mubr.f32.mxu0 %v13173_v5  ;;  %3031 = vmatprep.mubr.f32.mxu1 %v13173_v5  ;;  %13520 = vst [vmem:[#allocation67_spill] sm:$0xff] %v10614_v52 }
 0x41a   :  { %2897 = vmatpush1.msra.mxu0 %v10444_v40  ;;  %2968 = vmatpush1.msra.mxu1 %v10446_v41 }
 0x41b   :  { %2898 = vmatprep.subr.mxu0 %v10450_v19  ;;  %2969 = vmatprep.subr.mxu1 %v10452_v4 }
 0x41c   :  { %2899 = vmatpush1.msra.mxu0 %v10456_v2  ;;  %2970 = vmatpush1.msra.mxu1 %v10458_v8 }
 0x41d   :  { %2900 = vmatprep.subr.mxu0 %v10462_v6  ;;  %2971 = vmatprep.subr.mxu1 %v10464_v58 }
 0x41e   :  { %2901 = vmatpush1.msra.mxu0 %v10468_v60  ;;  %2972 = vmatpush1.msra.mxu1 %v10470_v57 }
 0x41f   :  { %2902 = vmatprep.subr.mxu0 %v10474_v38  ;;  %2973 = vmatprep.subr.mxu1 %v10476_v27 }
 0x420   :  { %2903 = vmatpush1.msra.mxu0 %v10480_v49  ;;  %2974 = vmatpush1.msra.mxu1 %v10482_v47 }
 0x421   :  { %2904 = vmatprep.subr.mxu0 %v10486_v59  ;;  %2975 = vmatprep.subr.mxu1 %v10488_v9 }
 0x422   :  { %2905 = vmatpush1.msra.mxu0 %v10492_v10  ;;  %2976 = vmatpush1.msra.mxu1 %v10494_v11 }
 0x423   :  { %2906 = vmatprep.subr.mxu0 %v10498_v12  ;;  %2977 = vmatprep.subr.mxu1 %v10500_v14 }
 0x424   :  { %2907 = vmatpush1.msra.mxu0 %v10504_v32  ;;  %2978 = vmatpush1.msra.mxu1 %v10506_v42 }
 0x425   :  { %2908 = vmatprep.subr.mxu0 %v10510_v39  ;;  %2979 = vmatprep.subr.mxu1 %v10512_v15 }
 0x426   :  { %2909 = vmatpush1.msra.mxu0 %v10516_v63  ;;  %2980 = vmatpush1.msra.mxu1 %v10518_v29 }
 0x427   :  { %2910 = vmatprep.subr.mxu0 %v10522_v54  ;;  %2981 = vmatprep.subr.mxu1 %v10524_v48 }
 0x428   :  { %2911 = vmatpush1.msra.mxu0 %v10528_v13  ;;  %2982 = vmatpush1.msra.mxu1 %v10530_v20 }
 0x429   :  { %2912 = vmatprep.subr.mxu0 %v10534_v26  ;;  %2983 = vmatprep.subr.mxu1 %v10536_v25 }
 0x42a   :  { %2913 = vmatpush1.msra.mxu0 %v10540_v17  ;;  %2984 = vmatpush1.msra.mxu1 %v10542_v35 }
 0x42b   :  { %2914 = vmatprep.subr.mxu0 %v10546_v36  ;;  %2985 = vmatprep.subr.mxu1 %v10548_v55 }
 0x42c   :  { %2915 = vmatpush1.msra.mxu0 %v10552_v46  ;;  %2986 = vmatpush1.msra.mxu1 %v10554_v30 }
 0x42d   :  { %2916 = vmatprep.subr.mxu0 %v10558_v56  ;;  %2987 = vmatprep.subr.mxu1 %v10560_v1 }
 0x42e   :  { %2917 = vmatpush1.msra.mxu0 %v10564_v61  ;;  %2988 = vmatpush1.msra.mxu1 %v10566_v16 }
 0x42f   :  { %2918 = vmatprep.subr.mxu0 %v10570_v18  ;;  %2989 = vmatprep.subr.mxu1 %v10572_v50 }
 0x430   :  { %2919 = vmatpush1.msra.mxu0 %v10576_v37  ;;  %2990 = vmatpush1.msra.mxu1 %v10578_v28  ;;  %v13529_v37 = vld [vmem:[#allocation42_spill] sm:$0xff] }
 0x431   :  { %2920 = vmatprep.subr.mxu0 %v10582_v24  ;;  %2991 = vmatprep.subr.mxu1 %v10584_v34 }
 0x432   :  { %2921 = vmatpush1.msra.mxu0 %v10588_v62  ;;  %2992 = vmatpush1.msra.mxu1 %v10590_v33 }
 0x433   :  { %2922 = vmatprep.subr.mxu0 %v10594_v43  ;;  %2993 = vmatprep.subr.mxu1 %v10596_v0  ;;  %v10618_v0 = vld [vmem:[#allocation12 + $0x8] sm:$0xff]  ;;  %v13528_v43 = vld [vmem:[#allocation39_spill] sm:$0xff] }
 0x434   :  { %2923 = vmatpush1.msra.mxu0 %v10600_v3  ;;  %2994 = vmatpush1.msra.mxu1 %v10602_v51  ;;  %13521 = vst [vmem:[#allocation68_spill] sm:$0xff] %v10618_v0  ;;  %v10620_v3 = vld [vmem:[#allocation12 + $0x18] sm:$0xff]  ;;  %v10624_v51 = vld [vmem:[#allocation12] sm:$0xff] }
 0x435   :  { %2924 = vmatprep.subr.mxu0 %v10606_v31  ;;  %2995 = vmatprep.subr.mxu1 %v10608_v53  ;;  %13522 = vst [vmem:[#allocation69_spill] sm:$0xff] %v10620_v3  ;;  %13523 = vst [vmem:[#allocation70_spill] sm:$0xff] %v10624_v51  ;;  %v10626_v31 = vld [vmem:[#allocation12 + $0x10] sm:$0xff]  ;;  %v10630_v53 = vld [vmem:[#allocation15 + $0x1e8] sm:$0xff] }
 0x436   :  { %2925 = vmatpush1.msra.mxu0 %v10612_v45  ;;  %2996 = vmatpush1.msra.mxu1 %v10614_v52  ;;  %13524 = vst [vmem:[#allocation71_spill] sm:$0xff] %v10626_v31  ;;  %13525 = vst [vmem:[#allocation72_spill] sm:$0xff] %v10630_v53  ;;  %v10632_v45 = vld [vmem:[#allocation15 + $0x1f8] sm:$0xff] }
 0x437   :  { %2926 = vmatprep.subr.mxu0 %v10618_v0  ;;  %2997 = vmatprep.subr.mxu1 %v10620_v3  ;;  %13526 = vst [vmem:[#allocation73_spill] sm:$0xff] %v10632_v45  ;;  %v13527_v0 = vld [vmem:[#allocation41_spill] sm:$0xff] }
 0x438   :  { %2927 = vmatpush1.msra.mxu0 %v10624_v51  ;;  %2998 = vmatpush1.msra.mxu1 %v10626_v31  ;;  %v401_v3 = vadd.f32 %v13527_v0, %v9639_v21 }
 0x439   :  { %3110 = vmatprep.subr.mxu0 %v10630_v53  ;;  %3181 = vmatprep.subr.mxu1 %v10632_v45  ;;  %v13530_v53 = vld [vmem:[#allocation40_spill] sm:$0xff] }
 0x4b5   :  { %v2484_v52 = vpop.f32.mrf.mxu0  ;;  %v2555_v51 = vpop.f32.mrf.mxu1 }
 0x4b6   :  { %v2560_v33 = vadd.f32 %v2484_v52, %v13528_v43  ;;  %v2562_v16 = vadd.f32 %v2555_v51, %v13530_v53 }
 0x4b7   :  { %v2486_v62 = vpop.f32.mrf.mxu0  ;;  %v2557_v28 = vpop.f32.mrf.mxu1 }
 0x4b8   :  { %v7903_v34 = vmul.f32 -1.442695, %v2560_v33  ;;  %v2561_v24 = vadd.f32 %v2486_v62, %v401_v3  ;;  %v2563_v50 = vadd.f32 %v2557_v28, %v13529_v37 }
 0x4ba   :  { %8255 = vpow2.f32 %v7903_v34  ;;  %v7904_v31 = vmul.f32 -1.442695, %v2561_v24  ;;  %v7905_v18 = vmul.f32 -1.442695, %v2563_v50 }
 0x4bc   :  { %8257 = vpow2.f32 %v7904_v31  ;;  %v13531_v31 = vld [vmem:[#allocation127_spill] sm:$0xff] }
 0x4bd   :  { %8259 = vpow2.f32 %v7905_v18 }
 0x4be   :  { %8261 = vtanh.f32 %v2562_v16 }
 0x4c7   :  { %v8256_v45 = vpop.eup %8255 }
 0x4c8   :  { %v2781_v61 = vadd.f32 1.0, %v8256_v45  ;;  %v13532_v45 = vld [vmem:[#allocation129_spill] sm:$0xff] }
 0x4c9   :  { %v8258_v1 = vpop.eup %8257 }
 0x4ca   :  { %8263 = vrcp.f32 %v2781_v61  ;;  %v2787_v52 = vadd.f32 1.0, %v8258_v1  ;;  %v8260_v33 = vpop.eup %8259 }
 0x4cb   :  { %v8262_v62 = vpop.eup %8261  ;;  %v2794_v24 = vadd.f32 1.0, %v8260_v33 }
 0x4cc   :  { %8265 = vrcp.f32 %v2787_v52  ;;  %v13533_v52 = vld [vmem:[#allocation130_spill] sm:$0xff] }
 0x4cd   :  { %8267 = vrcp.f32 %v2794_v24 }
 0x4d7   :  { %v8264_v43 = vpop.eup %8263 }
 0x4d8   :  { %v2798_v34 = vmul.f32 %v8264_v43, %v8262_v62  ;;  %v2698_v0 = vpop.f32.mrf.mxu0  ;;  %v2769_v1 = vpop.f32.mrf.mxu1  ;;  %v13534_v62 = vld [vmem:[#allocation128_spill] sm:$0xff] }
 0x4d9   :  { %v8266_v3 = vpop.eup %8265  ;;  %v2774_v37 = vadd.f32 %v2698_v0, %v13531_v31  ;;  %v2776_v43 = vadd.f32 %v2769_v1, %v13534_v62  ;;  %v10661_v1 = vld [vmem:[#allocation15 + $0x1c0] sm:$0xff]  ;;  %v10675_v62 = vld [vmem:[#allocation15 + $0x1b0] sm:$0xff] }
 0x4da   :  { %v2797_v50 = vmul.f32 %v8266_v3, %v10355_v23  ;;  %v2700_v53 = vpop.f32.mrf.mxu0  ;;  %v2771_v16 = vpop.f32.mrf.mxu1  ;;  %13537 = vst [vmem:[#allocation37_spill] sm:$0xff] %v10661_v1  ;;  %13542 = vst [vmem:[#allocation133_spill] sm:$0xff] %v10675_v62 }
 0x4db   :  { %v7906_v28 = vmul.f32 -1.442695, %v2774_v37  ;;  %v2775_v18 = vadd.f32 %v2700_v53, %v13532_v45  ;;  %v2777_v33 = vadd.f32 %v2771_v16, %v13533_v52  ;;  %v8268_v23 = vpop.eup %8267  ;;  %v10653_v53 = vld [vmem:[#allocation15 + $0x1f0] sm:$0xff]  ;;  %v10655_v45 = vld [vmem:[#allocation15 + $0x1c8] sm:$0xff]  ;;  %v10669_v52 = vld [vmem:[#allocation15 + $0x1b8] sm:$0xff] }
 0x4dc   :  { %v10644_v51 = vadd.f32 %v2798_v34, %v2797_v50  ;;  %v10651_v50 = vld [vmem:[#allocation15 + $0x1e0] sm:$0xff]  ;;  %v10667_v16 = vld [vmem:[#allocation15 + $0x1a8] sm:$0xff]  ;;  %13540 = vst [vmem:[#allocation36_spill] sm:$0xff] %v10669_v52 }
 0x4dd   :  { %8269 = vpow2.f32 %v7906_v28  ;;  %v7907_v61 = vmul.f32 -1.442695, %v2775_v18  ;;  %v7908_v0 = vmul.f32 -1.442695, %v2777_v33  ;;  %v10657_v18 = vld [vmem:[#allocation15 + $0x1d8] sm:$0xff]  ;;  %13539 = vst [vmem:[#allocation38_spill] sm:$0xff] %v10667_v16 }
 0x4de   :  { %8271 = vtanh.f32 %v10644_v51  ;;  %13536 = vst [vmem:[#allocation75_spill] sm:$0xff] %v10657_v18  ;;  %v10673_v33 = vld [vmem:[#allocation15 + $0x1a0] sm:$0xff] }
 0x4df   :  { %8273 = vpow2.f32 %v7907_v61  ;;  %v10663_v61 = vld [vmem:[#allocation15 + $0x1d0] sm:$0xff]  ;;  %13541 = vst [vmem:[#allocation131_spill] sm:$0xff] %v10673_v33 }
 0x4e0   :  { %8275 = vtanh.f32 %v2776_v43  ;;  %13538 = vst [vmem:[#allocation35_spill] sm:$0xff] %v10663_v61  ;;  %v10679_v43 = vld [vmem:[#allocation15 + $0x188] sm:$0xff] }
 0x4e1   :  { %8277 = vpow2.f32 %v7908_v0  ;;  %13543 = vst [vmem:[#allocation134_spill] sm:$0xff] %v10679_v43  ;;  %v10681_v0 = vld [vmem:[#allocation15 + $0x198] sm:$0xff] }
 0x4e2   :  { %13544 = vst [vmem:[#allocation132_spill] sm:$0xff] %v10681_v0 }
 0x4ea   :  { %v8270_v3 = vpop.eup %8269 }
 0x4eb   :  { %v8272_v31 = vpop.eup %8271  ;;  %v2805_v37 = vadd.f32 1.0, %v8270_v3  ;;  %v10687_v3 = vld [vmem:[#allocation15 + $0x190] sm:$0xff] }
 0x4ec   :  { %v8274_v34 = vpop.eup %8273  ;;  %v10649_v24 = vmul.f32 %v8272_v31, %v8268_v23  ;;  %v10685_v23 = vld [vmem:[#allocation15 + $0x180] sm:$0xff]  ;;  %13546 = vst [vmem:[#allocation78_spill] sm:$0xff] %v10687_v3  ;;  %v10691_v31 = vld [vmem:[#allocation15 + $0x168] sm:$0xff] }
 0x4ed   :  { %8279 = vrcp.f32 %v2805_v37  ;;  %v2811_v28 = vadd.f32 1.0, %v8274_v34  ;;  %13545 = vst [vmem:[#allocation77_spill] sm:$0xff] %v10685_v23  ;;  %13547 = vst [vmem:[#allocation79_spill] sm:$0xff] %v10691_v31  ;;  %v10693_v37 = vld [vmem:[#allocation15 + $0x178] sm:$0xff]  ;;  %v10697_v34 = vld [vmem:[#allocation15 + $0x160] sm:$0xff] }
 0x4ee   :  { %13535 = vst [vmem:[#allocation74_spill] sm:$0xff] %v10649_v24  ;;  %2961 = vmatmul.mubr.f32.vlgmr.msra.gmra.mxu0 %v10649_v24  ;;  %3032 = vmatmul.mubr.f32.vlgmr.msra.gmra.mxu1 %v10649_v24  ;;  %13548 = vst [vmem:[#allocation80_spill] sm:$0xff] %v10693_v37  ;;  %v10703_v24 = vld [vmem:[#allocation15 + $0x148] sm:$0xff] }
 0x4ef   :  { %8281 = vrcp.f32 %v2811_v28  ;;  %3111 = vmatpush1.msra.mxu0 %v10651_v50  ;;  %3182 = vmatpush1.msra.mxu1 %v10653_v53  ;;  %13549 = vst [vmem:[#allocation81_spill] sm:$0xff] %v10697_v34  ;;  %v10699_v28 = vld [vmem:[#allocation15 + $0x170] sm:$0xff]  ;;  %13551 = vst [vmem:[#allocation83_spill] sm:$0xff] %v10703_v24 }
 0x4f0   :  { %3112 = vmatprep.subr.mxu0 %v10655_v45  ;;  %3183 = vmatprep.subr.mxu1 %v10657_v18  ;;  %13550 = vst [vmem:[#allocation82_spill] sm:$0xff] %v10699_v28 }
 0x4f1   :  { %3113 = vmatpush1.msra.mxu0 %v10661_v1  ;;  %3184 = vmatpush1.msra.mxu1 %v10663_v61 }
 0x4f2   :  { %3114 = vmatprep.subr.mxu0 %v10667_v16  ;;  %3185 = vmatprep.subr.mxu1 %v10669_v52 }
 0x4f3   :  { %3115 = vmatpush1.msra.mxu0 %v10673_v33  ;;  %3186 = vmatpush1.msra.mxu1 %v10675_v62  ;;  %v10705_v33 = vld [vmem:[#allocation15 + $0x158] sm:$0xff]  ;;  %v10709_v62 = vld [vmem:[#allocation15 + $0x140] sm:$0xff] }
 0x4f4   :  { %3116 = vmatprep.subr.mxu0 %v10679_v43  ;;  %3187 = vmatprep.subr.mxu1 %v10681_v0  ;;  %13552 = vst [vmem:[#allocation84_spill] sm:$0xff] %v10705_v33  ;;  %13553 = vst [vmem:[#allocation85_spill] sm:$0xff] %v10709_v62  ;;  %v10711_v43 = vld [vmem:[#allocation15 + $0x150] sm:$0xff]  ;;  %v10715_v0 = vld [vmem:[#allocation15 + $0x128] sm:$0xff] }
 0x4f5   :  { %3117 = vmatpush1.msra.mxu0 %v10685_v23  ;;  %3188 = vmatpush1.msra.mxu1 %v10687_v3  ;;  %13554 = vst [vmem:[#allocation86_spill] sm:$0xff] %v10711_v43  ;;  %13555 = vst [vmem:[#allocation87_spill] sm:$0xff] %v10715_v0  ;;  %v10717_v23 = vld [vmem:[#allocation15 + $0x138] sm:$0xff]  ;;  %v8276_v3 = vpop.eup %8275 }
 0x4f6   :  { %3118 = vmatprep.subr.mxu0 %v10691_v31  ;;  %3189 = vmatprep.subr.mxu1 %v10693_v37  ;;  %13556 = vst [vmem:[#allocation88_spill] sm:$0xff] %v10717_v23  ;;  %v10721_v31 = vld [vmem:[#allocation15 + $0x120] sm:$0xff]  ;;  %v10723_v37 = vld [vmem:[#allocation15 + $0x130] sm:$0xff]  ;;  %v8278_v52 = vpop.eup %8277 }
 0x4f7   :  { %3119 = vmatpush1.msra.mxu0 %v10697_v34  ;;  %3190 = vmatpush1.msra.mxu1 %v10699_v28  ;;  %13557 = vst [vmem:[#allocation89_spill] sm:$0xff] %v10723_v37  ;;  %v10727_v34 = vld [vmem:[#allocation15 + $0x108] sm:$0xff]  ;;  %v10729_v28 = vld [vmem:[#allocation15 + $0x118] sm:$0xff]  ;;  %v2818_v18 = vadd.f32 1.0, %v8278_v52  ;;  %v10758_v52 = vld [vmem:[#allocation15 + $0xc0] sm:$0xff] }
 0x4f8   :  { %3120 = vmatprep.subr.mxu0 %v10703_v24  ;;  %3191 = vmatprep.subr.mxu1 %v10705_v33  ;;  %13558 = vst [vmem:[#allocation90_spill] sm:$0xff] %v10727_v34  ;;  %13559 = vst [vmem:[#allocation91_spill] sm:$0xff] %v10729_v28  ;;  %v10733_v24 = vld [vmem:[#allocation15 + $0x100] sm:$0xff]  ;;  %v10735_v33 = vld [vmem:[#allocation15 + $0x110] sm:$0xff] }
 0x4f9   :  { %3121 = vmatpush1.msra.mxu0 %v10709_v62  ;;  %3192 = vmatpush1.msra.mxu1 %v10711_v43  ;;  %v10739_v62 = vld [vmem:[#allocation15 + $0xe8] sm:$0xff]  ;;  %v10741_v43 = vld [vmem:[#allocation15 + $0xf8] sm:$0xff]  ;;  %13564 = vst [vmem:[#allocation96_spill] sm:$0xff] %v10758_v52  ;;  %8283 = vrcp.f32 %v2818_v18  ;;  %v10785_v18 = vld [vmem:[#allocation15 + $0x80] sm:$0xff] }
 0x4fa   :  { %v8280_v16 = vpop.eup %8279  ;;  %3122 = vmatprep.subr.mxu0 %v10715_v0  ;;  %3193 = vmatprep.subr.mxu1 %v10717_v23  ;;  %13560 = vst [vmem:[#allocation92_spill] sm:$0xff] %v10739_v62  ;;  %13561 = vst [vmem:[#allocation93_spill] sm:$0xff] %v10741_v43  ;;  %v10745_v23 = vld [vmem:[#allocation15 + $0xe0] sm:$0xff]  ;;  %v10747_v0 = vld [vmem:[#allocation15 + $0xf0] sm:$0xff] }
 0x4fb   :  { %v2822_v61 = vmul.f32 %v8280_v16, %v8276_v3  ;;  %3123 = vmatpush1.msra.mxu0 %v10721_v31  ;;  %3194 = vmatpush1.msra.mxu1 %v10723_v37  ;;  %v10752_v3 = vld [vmem:[#allocation15 + $0xc8] sm:$0xff]  ;;  %v10754_v37 = vld [vmem:[#allocation15 + $0xd8] sm:$0xff]  ;;  %13572 = vst [vmem:[#allocation143_spill] sm:$0xff] %v10785_v18 }
 0x4fc   :  { %v8282_v1 = vpop.eup %8281  ;;  %3124 = vmatprep.subr.mxu0 %v10727_v34  ;;  %3195 = vmatprep.subr.mxu1 %v10729_v28  ;;  %13562 = vst [vmem:[#allocation94_spill] sm:$0xff] %v10752_v3  ;;  %13563 = vst [vmem:[#allocation95_spill] sm:$0xff] %v10754_v37  ;;  %v10760_v28 = vld [vmem:[#allocation15 + $0xd0] sm:$0xff] }
 0x4fd   :  { %v2821_v16 = vmul.f32 %v8282_v1, %v10397_v22  ;;  %3125 = vmatpush1.msra.mxu0 %v10733_v24  ;;  %3196 = vmatpush1.msra.mxu1 %v10735_v33  ;;  %13565 = vst [vmem:[#allocation136_spill] sm:$0xff] %v10760_v28  ;;  %v10766_v22 = vld [vmem:[#allocation15 + $0xa8] sm:$0xff]  ;;  %v10768_v1 = vld [vmem:[#allocation15 + $0xb8] sm:$0xff] }
 0x4fe   :  { %3126 = vmatprep.subr.mxu0 %v10739_v62  ;;  %3197 = vmatprep.subr.mxu1 %v10741_v43  ;;  %13566 = vst [vmem:[#allocation137_spill] sm:$0xff] %v10766_v22  ;;  %13567 = vst [vmem:[#allocation138_spill] sm:$0xff] %v10768_v1  ;;  %v10772_v43 = vld [vmem:[#allocation15 + $0xa0] sm:$0xff]  ;;  %v10774_v62 = vld [vmem:[#allocation15 + $0xb0] sm:$0xff] }
 0x4ff   :  { %v10762_v34 = vadd.f32 %v2822_v61, %v2821_v16  ;;  %3127 = vmatpush1.msra.mxu0 %v10745_v23  ;;  %3198 = vmatpush1.msra.mxu1 %v10747_v0  ;;  %13568 = vst [vmem:[#allocation139_spill] sm:$0xff] %v10772_v43  ;;  %13569 = vst [vmem:[#allocation140_spill] sm:$0xff] %v10774_v62  ;;  %v10778_v61 = vld [vmem:[#allocation15 + $0x88] sm:$0xff]  ;;  %v10780_v16 = vld [vmem:[#allocation15 + $0x98] sm:$0xff] }
 0x500   :  { %3128 = vmatprep.subr.mxu0 %v10752_v3  ;;  %3199 = vmatprep.subr.mxu1 %v10754_v37  ;;  %13570 = vst [vmem:[#allocation141_spill] sm:$0xff] %v10778_v61  ;;  %13571 = vst [vmem:[#allocation142_spill] sm:$0xff] %v10780_v16  ;;  %v10787_v37 = vld [vmem:[#allocation15 + $0x90] sm:$0xff]  ;;  %v10797_v3 = vld [vmem:[#allocation15 + $0x60] sm:$0xff] }
 0x501   :  { %3129 = vmatpush1.msra.mxu0 %v10758_v52  ;;  %3200 = vmatpush1.msra.mxu1 %v10760_v28  ;;  %8285 = vtanh.f32 %v10762_v34  ;;  %13573 = vst [vmem:[#allocation144_spill] sm:$0xff] %v10787_v37  ;;  %v10791_v52 = vld [vmem:[#allocation15 + $0x68] sm:$0xff]  ;;  %v10793_v28 = vld [vmem:[#allocation15 + $0x78] sm:$0xff]  ;;  %13576 = vst [vmem:[#allocation147_spill] sm:$0xff] %v10797_v3 }
 0x502   :  { %3130 = vmatprep.subr.mxu0 %v10766_v22  ;;  %3201 = vmatprep.subr.mxu1 %v10768_v1  ;;  %13574 = vst [vmem:[#allocation145_spill] sm:$0xff] %v10791_v52  ;;  %13575 = vst [vmem:[#allocation146_spill] sm:$0xff] %v10793_v28  ;;  %v10799_v22 = vld [vmem:[#allocation15 + $0x70] sm:$0xff]  ;;  %v10803_v1 = vld [vmem:[#allocation15 + $0x48] sm:$0xff] }
 0x503   :  { %3131 = vmatpush1.msra.mxu0 %v10772_v43  ;;  %3202 = vmatpush1.msra.mxu1 %v10774_v62  ;;  %13577 = vst [vmem:[#allocation148_spill] sm:$0xff] %v10799_v22  ;;  %v10805_v43 = vld [vmem:[#allocation15 + $0x58] sm:$0xff]  ;;  %v10809_v62 = vld [vmem:[#allocation15 + $0x40] sm:$0xff] }
 0x504   :  { %3132 = vmatprep.subr.mxu0 %v10778_v61  ;;  %3203 = vmatprep.subr.mxu1 %v10780_v16  ;;  %13578 = vst [vmem:[#allocation149_spill] sm:$0xff] %v10805_v43  ;;  %v10811_v61 = vld [vmem:[#allocation15 + $0x50] sm:$0xff]  ;;  %v10815_v16 = vld [vmem:[#allocation15 + $0x28] sm:$0xff] }
 0x505   :  { %3133 = vmatpush1.msra.mxu0 %v10785_v18  ;;  %3204 = vmatpush1.msra.mxu1 %v10787_v37  ;;  %13579 = vst [vmem:[#allocation150_spill] sm:$0xff] %v10811_v61  ;;  %13580 = vst [vmem:[#allocation151_spill] sm:$0xff] %v10815_v16  ;;  %v10817_v18 = vld [vmem:[#allocation15 + $0x38] sm:$0xff]  ;;  %v10821_v37 = vld [vmem:[#allocation15 + $0x20] sm:$0xff] }
 0x506   :  { %3134 = vmatprep.subr.mxu0 %v10791_v52  ;;  %3205 = vmatprep.subr.mxu1 %v10793_v28  ;;  %13581 = vst [vmem:[#allocation152_spill] sm:$0xff] %v10817_v18  ;;  %v10823_v52 = vld [vmem:[#allocation15 + $0x30] sm:$0xff]  ;;  %v10827_v28 = vld [vmem:[#allocation15 + $0x8] sm:$0xff] }
 0x507   :  { %3135 = vmatpush1.msra.mxu0 %v10797_v3  ;;  %3206 = vmatpush1.msra.mxu1 %v10799_v22  ;;  %v10829_v3 = vld [vmem:[#allocation15 + $0x18] sm:$0xff]  ;;  %v10833_v22 = vld [vmem:[#allocation15] sm:$0xff] }
 0x508   :  { %3136 = vmatprep.subr.mxu0 %v10803_v1  ;;  %3207 = vmatprep.subr.mxu1 %v10805_v43  ;;  %v10837_v43 = vld [vmem:[#allocation15 + $0x10] sm:$0xff] }
 0x509   :  { %3137 = vmatpush1.msra.mxu0 %v10809_v62  ;;  %3208 = vmatpush1.msra.mxu1 %v10811_v61  ;;  %v8284_v61 = vpop.eup %8283 }
 0x50a   :  { %3138 = vmatprep.subr.mxu0 %v10815_v16  ;;  %3209 = vmatprep.subr.mxu1 %v10817_v18 }
 0x50b   :  { %3139 = vmatpush1.msra.mxu0 %v10821_v37  ;;  %3210 = vmatpush1.msra.mxu1 %v10823_v52 }
 0x50c   :  { %3140 = vmatprep.subr.mxu0 %v10827_v28  ;;  %3211 = vmatprep.subr.mxu1 %v10829_v3 }
 0x50d   :  { %3141 = vmatpush1.msra.mxu0 %v10833_v22  ;;  %3174 = vmatprep.mubr.f32.mxu0 %v13173_v5 }
 0x50e   :  { %v8286_v16 = vpop.eup %8285  ;;  %3212 = vmatpush1.msra.mxu1 %v10837_v43  ;;  %3245 = vmatprep.mubr.f32.mxu1 %v13173_v5 }
 0x50f   :  { %v10845_v18 = vmul.f32 %v8286_v16, %v8284_v61  ;;  %3374 = vmatprep.subr.mxu0 %v10438_v7  ;;  %3445 = vmatprep.subr.mxu1 %v10440_v44  ;;  %v13583_v7 = vld [vmem:[#allocation49_spill] sm:$0xff]  ;;  %v13584_v44 = vld [vmem:[#allocation50_spill] sm:$0xff] }
 0x511   :  { %13582 = vst [vmem:[#allocation153_spill] sm:$0xff] %v10845_v18  ;;  %3175 = vmatmul.mubr.f32.vlgmr.msra.gmra.mxu0 %v10845_v18  ;;  %3246 = vmatmul.mubr.f32.vlgmr.msra.gmra.mxu1 %v10845_v18  ;;  %v11184_v18 = vld [vmem:[#allocation12 + $0x30] sm:$0xff] }
 0x512   :  { %3375 = vmatpush1.msra.mxu0 %v10444_v40  ;;  %3446 = vmatpush1.msra.mxu1 %v10446_v41  ;;  %v13585_v40 = vld [vmem:[#allocation51_spill] sm:$0xff]  ;;  %v13586_v41 = vld [vmem:[#allocation52_spill] sm:$0xff] }
 0x513   :  { %3376 = vmatprep.subr.mxu0 %v10450_v19  ;;  %3447 = vmatprep.subr.mxu1 %v10452_v4  ;;  %v13587_v19 = vld [vmem:[#allocation53_spill] sm:$0xff]  ;;  %v13588_v4 = vld [vmem:[#allocation54_spill] sm:$0xff] }
 0x514   :  { %3377 = vmatpush1.msra.mxu0 %v10456_v2  ;;  %3448 = vmatpush1.msra.mxu1 %v10458_v8  ;;  %v13589_v2 = vld [vmem:[#allocation55_spill] sm:$0xff]  ;;  %v13590_v8 = vld [vmem:[#allocation56_spill] sm:$0xff] }
 0x515   :  { %3378 = vmatprep.subr.mxu0 %v10462_v6  ;;  %3449 = vmatprep.subr.mxu1 %v10464_v58  ;;  %v13591_v6 = vld [vmem:[#allocation57_spill] sm:$0xff]  ;;  %v13592_v58 = vld [vmem:[#allocation58_spill] sm:$0xff]  ;;  %13681 = vst [vmem:[#allocation56_spill] sm:$0xff] %v11184_v18 }
 0x516   :  { %3379 = vmatpush1.msra.mxu0 %v10468_v60  ;;  %3450 = vmatpush1.msra.mxu1 %v10470_v57  ;;  %v13593_v60 = vld [vmem:[#allocation59_spill] sm:$0xff]  ;;  %v13594_v57 = vld [vmem:[#allocation60_spill] sm:$0xff] }
 0x517   :  { %3380 = vmatprep.subr.mxu0 %v10474_v38  ;;  %3451 = vmatprep.subr.mxu1 %v10476_v27  ;;  %v13595_v38 = vld [vmem:[#allocation61_spill] sm:$0xff]  ;;  %v13596_v27 = vld [vmem:[#allocation62_spill] sm:$0xff] }
 0x518   :  { %3381 = vmatpush1.msra.mxu0 %v10480_v49  ;;  %3452 = vmatpush1.msra.mxu1 %v10482_v47  ;;  %v13597_v49 = vld [vmem:[#allocation63_spill] sm:$0xff]  ;;  %v13598_v47 = vld [vmem:[#allocation64_spill] sm:$0xff] }
 0x519   :  { %3382 = vmatprep.subr.mxu0 %v10486_v59  ;;  %3453 = vmatprep.subr.mxu1 %v10488_v9  ;;  %v13599_v59 = vld [vmem:[#allocation65_spill] sm:$0xff]  ;;  %v13600_v9 = vld [vmem:[#allocation66_spill] sm:$0xff] }
 0x51a   :  { %3383 = vmatpush1.msra.mxu0 %v10492_v10  ;;  %3454 = vmatpush1.msra.mxu1 %v10494_v11  ;;  %v13601_v10 = vld [vmem:[#allocation67_spill] sm:$0xff]  ;;  %v13602_v11 = vld [vmem:[#allocation68_spill] sm:$0xff] }
 0x51b   :  { %3384 = vmatprep.subr.mxu0 %v10498_v12  ;;  %3455 = vmatprep.subr.mxu1 %v10500_v14  ;;  %v13603_v12 = vld [vmem:[#allocation69_spill] sm:$0xff]  ;;  %v13604_v14 = vld [vmem:[#allocation70_spill] sm:$0xff] }
 0x51c   :  { %3385 = vmatpush1.msra.mxu0 %v10504_v32  ;;  %3456 = vmatpush1.msra.mxu1 %v10506_v42  ;;  %v13605_v32 = vld [vmem:[#allocation71_spill] sm:$0xff]  ;;  %v13606_v42 = vld [vmem:[#allocation72_spill] sm:$0xff] }
 0x51d   :  { %3386 = vmatprep.subr.mxu0 %v10510_v39  ;;  %3457 = vmatprep.subr.mxu1 %v10512_v15  ;;  %v13607_v39 = vld [vmem:[#allocation73_spill] sm:$0xff] }
 0x51e   :  { %3387 = vmatpush1.msra.mxu0 %v10516_v63  ;;  %3458 = vmatpush1.msra.mxu1 %v10518_v29  ;;  %v13608_v63 = vld [vmem:[#allocation45_spill] sm:$0xff] }
 0x51f   :  { %3388 = vmatprep.subr.mxu0 %v10522_v54  ;;  %3459 = vmatprep.subr.mxu1 %v10524_v48  ;;  %v407_v29 = vadd.f32 %v13608_v63, %v9639_v21  ;;  %v13609_v54 = vld [vmem:[#allocation43_spill] sm:$0xff] }
 0x520   :  { %3389 = vmatpush1.msra.mxu0 %v10528_v13  ;;  %3460 = vmatpush1.msra.mxu1 %v10530_v20 }
 0x521   :  { %3390 = vmatprep.subr.mxu0 %v10534_v26  ;;  %3461 = vmatprep.subr.mxu1 %v10536_v25 }
 0x522   :  { %3391 = vmatpush1.msra.mxu0 %v10540_v17  ;;  %3462 = vmatpush1.msra.mxu1 %v10542_v35 }
 0x523   :  { %3392 = vmatprep.subr.mxu0 %v10546_v36  ;;  %3463 = vmatprep.subr.mxu1 %v10548_v55  ;;  %v13610_v36 = vld [vmem:[#allocation98_spill] sm:$0xff] }
 0x524   :  { %3393 = vmatpush1.msra.mxu0 %v10552_v46  ;;  %3464 = vmatpush1.msra.mxu1 %v10554_v30  ;;  %v13611_v30 = vld [vmem:[#allocation44_spill] sm:$0xff] }
 0x525   :  { %3394 = vmatprep.subr.mxu0 %v10558_v56  ;;  %3465 = vmatprep.subr.mxu1 %v13583_v7 }
 0x526   :  { %3395 = vmatpush1.msra.mxu0 %v13584_v44  ;;  %3466 = vmatpush1.msra.mxu1 %v13585_v40 }
 0x527   :  { %3396 = vmatprep.subr.mxu0 %v13586_v41  ;;  %3467 = vmatprep.subr.mxu1 %v13587_v19 }
 0x528   :  { %3397 = vmatpush1.msra.mxu0 %v13588_v4  ;;  %3468 = vmatpush1.msra.mxu1 %v13589_v2 }
 0x529   :  { %3398 = vmatprep.subr.mxu0 %v13590_v8  ;;  %3469 = vmatprep.subr.mxu1 %v13591_v6  ;;  %v13612_v6 = vld [vmem:[#allocation123_spill] sm:$0xff] }
 0x52a   :  { %3399 = vmatpush1.msra.mxu0 %v13592_v58  ;;  %3470 = vmatpush1.msra.mxu1 %v13593_v60 }
 0x52b   :  { %3400 = vmatprep.subr.mxu0 %v13594_v57  ;;  %3471 = vmatprep.subr.mxu1 %v13595_v38 }
 0x52c   :  { %3401 = vmatpush1.msra.mxu0 %v13596_v27  ;;  %3472 = vmatpush1.msra.mxu1 %v13597_v49  ;;  %v13613_v27 = vld [vmem:[#allocation125_spill] sm:$0xff] }
 0x52d   :  { %3402 = vmatprep.subr.mxu0 %v13598_v47  ;;  %3473 = vmatprep.subr.mxu1 %v13599_v59 }
 0x52e   :  { %3403 = vmatpush1.msra.mxu0 %v13600_v9  ;;  %3474 = vmatpush1.msra.mxu1 %v13601_v10 }
 0x52f   :  { %3404 = vmatprep.subr.mxu0 %v13602_v11  ;;  %3475 = vmatprep.subr.mxu1 %v13603_v12  ;;  %v13614_v11 = vld [vmem:[#allocation126_spill] sm:$0xff] }
 0x530   :  { %3405 = vmatpush1.msra.mxu0 %v13604_v14  ;;  %3438 = vmatprep.mubr.f32.mxu0 %v13173_v5  ;;  %v13615_v14 = vld [vmem:[#allocation124_spill] sm:$0xff] }
 0x531   :  { %3476 = vmatpush1.msra.mxu1 %v13605_v32  ;;  %3509 = vmatprep.mubr.f32.mxu1 %v13173_v5 }
 0x532   :  { %3588 = vmatprep.subr.mxu0 %v13606_v42  ;;  %3659 = vmatprep.subr.mxu1 %v13607_v39 }
 0x5ae   :  { %v2962_v15 = vpop.f32.mrf.mxu0  ;;  %v3033_v25 = vpop.f32.mrf.mxu1 }
 0x5af   :  { %v3038_v48 = vadd.f32 %v2962_v15, %v13609_v54  ;;  %v3040_v56 = vadd.f32 %v3033_v25, %v13611_v30  ;;  %v13620_v25 = vld [vmem:[#allocation38_spill] sm:$0xff]  ;;  %v13629_v30 = vld [vmem:[#allocation80_spill] sm:$0xff] }
 0x5b0   :  { %v2964_v13 = vpop.f32.mrf.mxu0  ;;  %v3035_v35 = vpop.f32.mrf.mxu1 }
 0x5b1   :  { %v7909_v20 = vmul.f32 -1.442695, %v3038_v48  ;;  %v3039_v26 = vadd.f32 %v2964_v13, %v407_v29  ;;  %v3041_v55 = vadd.f32 %v3035_v35, %v13610_v36  ;;  %v13617_v13 = vld [vmem:[#allocation75_spill] sm:$0xff]  ;;  %v13623_v36 = vld [vmem:[#allocation133_spill] sm:$0xff] }
 0x5b2   :  { %v13622_v35 = vld [vmem:[#allocation131_spill] sm:$0xff] }
 0x5b3   :  { %8287 = vpow2.f32 %v7909_v20  ;;  %v7910_v17 = vmul.f32 -1.442695, %v3039_v26  ;;  %v7911_v46 = vmul.f32 -1.442695, %v3041_v55  ;;  %v13618_v20 = vld [vmem:[#allocation37_spill] sm:$0xff]  ;;  %v13619_v26 = vld [vmem:[#allocation35_spill] sm:$0xff] }
 0x5b4   :  { %v13624_v55 = vld [vmem:[#allocation134_spill] sm:$0xff] }
 0x5b5   :  { %8289 = vpow2.f32 %v7910_v17  ;;  %v13621_v17 = vld [vmem:[#allocation36_spill] sm:$0xff] }
 0x5b6   :  { %8291 = vpow2.f32 %v7911_v46  ;;  %v13628_v46 = vld [vmem:[#allocation79_spill] sm:$0xff] }
 0x5b7   :  { %8293 = vtanh.f32 %v3040_v56  ;;  %v13630_v56 = vld [vmem:[#allocation81_spill] sm:$0xff] }
 0x5c0   :  { %v8288_v61 = vpop.eup %8287 }
 0x5c1   :  { %v3259_v16 = vadd.f32 1.0, %v8288_v61  ;;  %v13631_v61 = vld [vmem:[#allocation82_spill] sm:$0xff] }
 0x5c2   :  { %v8290_v7 = vpop.eup %8289 }
 0x5c3   :  { %8295 = vrcp.f32 %v3259_v16  ;;  %v3265_v21 = vadd.f32 1.0, %v8290_v7  ;;  %v8292_v44 = vpop.eup %8291  ;;  %v13632_v7 = vld [vmem:[#allocation83_spill] sm:$0xff] }
 0x5c4   :  { %v8294_v40 = vpop.eup %8293  ;;  %v3272_v4 = vadd.f32 1.0, %v8292_v44 }
 0x5c5   :  { %8297 = vrcp.f32 %v3265_v21  ;;  %v13633_v21 = vld [vmem:[#allocation84_spill] sm:$0xff] }
 0x5c6   :  { %8299 = vrcp.f32 %v3272_v4  ;;  %v13636_v4 = vld [vmem:[#allocation87_spill] sm:$0xff] }
 0x5d0   :  { %v8296_v41 = vpop.eup %8295 }
 0x5d1   :  { %v3276_v19 = vmul.f32 %v8296_v41, %v8294_v40  ;;  %v3176_v2 = vpop.f32.mrf.mxu0  ;;  %v3247_v59 = vpop.f32.mrf.mxu1  ;;  %v13634_v40 = vld [vmem:[#allocation85_spill] sm:$0xff]  ;;  %v13635_v41 = vld [vmem:[#allocation86_spill] sm:$0xff] }
 0x5d2   :  { %v8298_v8 = vpop.eup %8297  ;;  %v3252_v58 = vadd.f32 %v3176_v2, %v13612_v6  ;;  %v3254_v32 = vadd.f32 %v3247_v59, %v13615_v14  ;;  %v13637_v2 = vld [vmem:[#allocation88_spill] sm:$0xff]  ;;  %v13638_v6 = vld [vmem:[#allocation89_spill] sm:$0xff]  ;;  %v13652_v14 = vld [vmem:[#allocation142_spill] sm:$0xff] }
 0x5d3   :  { %v3275_v60 = vmul.f32 %v8298_v8, %v10644_v51  ;;  %v3178_v57 = vpop.f32.mrf.mxu0  ;;  %v3249_v10 = vpop.f32.mrf.mxu1  ;;  %v13642_v59 = vld [vmem:[#allocation93_spill] sm:$0xff] }
 0x5d4   :  { %v7912_v38 = vmul.f32 -1.442695, %v3252_v58  ;;  %v3253_v49 = vadd.f32 %v3178_v57, %v13613_v27  ;;  %v3255_v12 = vadd.f32 %v3249_v10, %v13614_v11  ;;  %v8300_v51 = vpop.eup %8299  ;;  %v13639_v57 = vld [vmem:[#allocation90_spill] sm:$0xff]  ;;  %v13644_v10 = vld [vmem:[#allocation95_spill] sm:$0xff] }
 0x5d5   :  { %v10925_v47 = vadd.f32 %v3276_v19, %v3275_v60  ;;  %v13648_v11 = vld [vmem:[#allocation138_spill] sm:$0xff] }
 0x5d6   :  { %8301 = vpow2.f32 %v7912_v38  ;;  %v7913_v9 = vmul.f32 -1.442695, %v3253_v49  ;;  %v7914_v42 = vmul.f32 -1.442695, %v3255_v12  ;;  %v13640_v38 = vld [vmem:[#allocation91_spill] sm:$0xff]  ;;  %v13641_v49 = vld [vmem:[#allocation92_spill] sm:$0xff] }
 0x5d7   :  { %8303 = vtanh.f32 %v10925_v47  ;;  %v13649_v12 = vld [vmem:[#allocation139_spill] sm:$0xff] }
 0x5d8   :  { %8305 = vpow2.f32 %v7913_v9 }
 0x5d9   :  { %8307 = vtanh.f32 %v3254_v32  ;;  %v13653_v32 = vld [vmem:[#allocation143_spill] sm:$0xff] }
 0x5da   :  { %8309 = vpow2.f32 %v7914_v42  ;;  %v13654_v42 = vld [vmem:[#allocation144_spill] sm:$0xff] }
 0x5e3   :  { %v8302_v39 = vpop.eup %8301 }
 0x5e4   :  { %v8304_v15 = vpop.eup %8303  ;;  %v3283_v63 = vadd.f32 1.0, %v8302_v39  ;;  %v13656_v39 = vld [vmem:[#allocation146_spill] sm:$0xff] }
 0x5e5   :  { %v8306_v29 = vpop.eup %8305  ;;  %v10930_v54 = vmul.f32 %v8304_v15, %v8300_v51  ;;  %v13655_v51 = vld [vmem:[#allocation145_spill] sm:$0xff]  ;;  %v13657_v15 = vld [vmem:[#allocation147_spill] sm:$0xff] }
 0x5e6   :  { %8311 = vrcp.f32 %v3283_v63  ;;  %v3289_v48 = vadd.f32 1.0, %v8306_v29  ;;  %v8308_v16 = vpop.eup %8307  ;;  %v13658_v63 = vld [vmem:[#allocation148_spill] sm:$0xff]  ;;  %v13659_v29 = vld [vmem:[#allocation149_spill] sm:$0xff] }
 0x5e7   :  { %13616 = vst [vmem:[#allocation154_spill] sm:$0xff] %v10930_v54  ;;  %3439 = vmatmul.mubr.f32.vlgmr.msra.gmra.mxu0 %v10930_v54  ;;  %3510 = vmatmul.mubr.f32.vlgmr.msra.gmra.mxu1 %v10930_v54  ;;  %v8310_v44 = vpop.eup %8309  ;;  %v11182_v54 = vld [vmem:[#allocation12 + $0x20] sm:$0xff] }
 0x5e8   :  { %8313 = vrcp.f32 %v3289_v48  ;;  %3589 = vmatpush1.msra.mxu0 %v10651_v50  ;;  %3660 = vmatpush1.msra.mxu1 %v10653_v53  ;;  %v13625_v50 = vld [vmem:[#allocation132_spill] sm:$0xff]  ;;  %v13626_v53 = vld [vmem:[#allocation77_spill] sm:$0xff]  ;;  %v3296_v60 = vadd.f32 1.0, %v8310_v44  ;;  %v13660_v48 = vld [vmem:[#allocation150_spill] sm:$0xff]  ;;  %13680 = vst [vmem:[#allocation55_spill] sm:$0xff] %v11182_v54 }
 0x5e9   :  { %3590 = vmatprep.subr.mxu0 %v10655_v45  ;;  %3661 = vmatprep.subr.mxu1 %v13617_v13  ;;  %v13627_v45 = vld [vmem:[#allocation78_spill] sm:$0xff]  ;;  %v13661_v13 = vld [vmem:[#allocation151_spill] sm:$0xff] }
 0x5ea   :  { %3591 = vmatpush1.msra.mxu0 %v13618_v20  ;;  %3662 = vmatpush1.msra.mxu1 %v13619_v26  ;;  %8315 = vrcp.f32 %v3296_v60  ;;  %v13662_v20 = vld [vmem:[#allocation152_spill] sm:$0xff]  ;;  %v11070_v44 = vld [vmem:[#allocation12 + $0x158] sm:$0xff] }
 0x5eb   :  { %3592 = vmatprep.subr.mxu0 %v13620_v25  ;;  %3663 = vmatprep.subr.mxu1 %v13621_v17  ;;  %v11026_v25 = vld [vmem:[#allocation12 + $0x1c0] sm:$0xff]  ;;  %v11028_v17 = vld [vmem:[#allocation12 + $0x1d0] sm:$0xff] }
 0x5ec   :  { %3593 = vmatpush1.msra.mxu0 %v13622_v35  ;;  %3664 = vmatpush1.msra.mxu1 %v13623_v36  ;;  %v11032_v35 = vld [vmem:[#allocation12 + $0x1a8] sm:$0xff]  ;;  %v11034_v36 = vld [vmem:[#allocation12 + $0x1b8] sm:$0xff]  ;;  %v11098_v60 = vld [vmem:[#allocation12 + $0x100] sm:$0xff] }
 0x5ed   :  { %3594 = vmatprep.subr.mxu0 %v13624_v55  ;;  %3665 = vmatprep.subr.mxu1 %v13625_v50  ;;  %v11038_v55 = vld [vmem:[#allocation12 + $0x1a0] sm:$0xff]  ;;  %v11040_v50 = vld [vmem:[#allocation12 + $0x1b0] sm:$0xff] }
 0x5ee   :  { %3595 = vmatpush1.msra.mxu0 %v13626_v53  ;;  %3666 = vmatpush1.msra.mxu1 %v13627_v45  ;;  %v11044_v53 = vld [vmem:[#allocation12 + $0x188] sm:$0xff]  ;;  %v11046_v45 = vld [vmem:[#allocation12 + $0x198] sm:$0xff] }
 0x5ef   :  { %3596 = vmatprep.subr.mxu0 %v13628_v46  ;;  %3667 = vmatprep.subr.mxu1 %v13629_v30  ;;  %v11050_v46 = vld [vmem:[#allocation12 + $0x180] sm:$0xff]  ;;  %v11052_v30 = vld [vmem:[#allocation12 + $0x190] sm:$0xff] }
 0x5f0   :  { %3597 = vmatpush1.msra.mxu0 %v13630_v56  ;;  %3668 = vmatpush1.msra.mxu1 %v13631_v61  ;;  %v11056_v56 = vld [vmem:[#allocation12 + $0x168] sm:$0xff]  ;;  %v11058_v61 = vld [vmem:[#allocation12 + $0x178] sm:$0xff] }
 0x5f1   :  { %3598 = vmatprep.subr.mxu0 %v13632_v7  ;;  %3669 = vmatprep.subr.mxu1 %v13633_v21  ;;  %v11064_v7 = vld [vmem:[#allocation12 + $0x170] sm:$0xff]  ;;  %v11068_v21 = vld [vmem:[#allocation12 + $0x148] sm:$0xff] }
 0x5f2   :  { %3599 = vmatpush1.msra.mxu0 %v13634_v40  ;;  %3670 = vmatpush1.msra.mxu1 %v13635_v41  ;;  %v11074_v40 = vld [vmem:[#allocation12 + $0x140] sm:$0xff]  ;;  %v11076_v41 = vld [vmem:[#allocation12 + $0x150] sm:$0xff] }
 0x5f3   :  { %v8312_v19 = vpop.eup %8311  ;;  %3600 = vmatprep.subr.mxu0 %v13636_v4  ;;  %3671 = vmatprep.subr.mxu1 %v13637_v2  ;;  %v11082_v4 = vld [vmem:[#allocation12 + $0x138] sm:$0xff]  ;;  %v11086_v2 = vld [vmem:[#allocation12 + $0x120] sm:$0xff] }
 0x5f4   :  { %v3300_v8 = vmul.f32 %v8312_v19, %v8308_v16  ;;  %3601 = vmatpush1.msra.mxu0 %v10721_v31  ;;  %3672 = vmatpush1.msra.mxu1 %v13638_v6  ;;  %v13643_v31 = vld [vmem:[#allocation94_spill] sm:$0xff]  ;;  %v11062_v16 = vld [vmem:[#allocation12 + $0x160] sm:$0xff]  ;;  %v11080_v19 = vld [vmem:[#allocation12 + $0x128] sm:$0xff] }
 0x5f5   :  { %v8314_v58 = vpop.eup %8313  ;;  %3602 = vmatprep.subr.mxu0 %v13639_v57  ;;  %3673 = vmatprep.subr.mxu1 %v13640_v38  ;;  %v11092_v6 = vld [vmem:[#allocation12 + $0x108] sm:$0xff]  ;;  %v11100_v57 = vld [vmem:[#allocation12 + $0x110] sm:$0xff] }
 0x5f6   :  { %v3299_v27 = vmul.f32 %v8314_v58, %v10762_v34  ;;  %3603 = vmatpush1.msra.mxu0 %v10733_v24  ;;  %3674 = vmatpush1.msra.mxu1 %v10735_v33  ;;  %v13645_v34 = vld [vmem:[#allocation96_spill] sm:$0xff]  ;;  %v13647_v33 = vld [vmem:[#allocation137_spill] sm:$0xff]  ;;  %v11094_v58 = vld [vmem:[#allocation12 + $0x118] sm:$0xff] }
 0x5f7   :  { %3604 = vmatprep.subr.mxu0 %v13641_v49  ;;  %3675 = vmatprep.subr.mxu1 %v13642_v59  ;;  %v13646_v24 = vld [vmem:[#allocation136_spill] sm:$0xff]  ;;  %v8316_v26 = vpop.eup %8315  ;;  %v11104_v38 = vld [vmem:[#allocation12 + $0xe8] sm:$0xff]  ;;  %v11112_v59 = vld [vmem:[#allocation12 + $0xf0] sm:$0xff] }
 0x5f8   :  { %v10967_v9 = vadd.f32 %v3300_v8, %v3299_v27  ;;  %3605 = vmatpush1.msra.mxu0 %v10745_v23  ;;  %3676 = vmatpush1.msra.mxu1 %v10747_v0  ;;  %v13650_v23 = vld [vmem:[#allocation140_spill] sm:$0xff]  ;;  %v13651_v0 = vld [vmem:[#allocation141_spill] sm:$0xff]  ;;  %v11088_v8 = vld [vmem:[#allocation12 + $0x130] sm:$0xff] }
 0x5f9   :  { %3606 = vmatprep.subr.mxu0 %v13643_v31  ;;  %3677 = vmatprep.subr.mxu1 %v13644_v10  ;;  %v11106_v27 = vld [vmem:[#allocation12 + $0xf8] sm:$0xff]  ;;  %v11110_v49 = vld [vmem:[#allocation12 + $0xe0] sm:$0xff]  ;;  %v11116_v31 = vld [vmem:[#allocation12 + $0xc8] sm:$0xff] }
 0x5fa   :  { %3607 = vmatpush1.msra.mxu0 %v13645_v34  ;;  %3678 = vmatpush1.msra.mxu1 %v13646_v24  ;;  %8317 = vtanh.f32 %v10967_v9  ;;  %v11118_v10 = vld [vmem:[#allocation12 + $0xd8] sm:$0xff]  ;;  %v11122_v34 = vld [vmem:[#allocation12 + $0xc0] sm:$0xff]  ;;  %v11124_v24 = vld [vmem:[#allocation12 + $0xd0] sm:$0xff] }
 0x5fb   :  { %3608 = vmatprep.subr.mxu0 %v13647_v33  ;;  %3679 = vmatprep.subr.mxu1 %v13648_v11  ;;  %v11128_v33 = vld [vmem:[#allocation12 + $0xa8] sm:$0xff]  ;;  %v11130_v11 = vld [vmem:[#allocation12 + $0xb8] sm:$0xff] }
 0x5fc   :  { %3609 = vmatpush1.msra.mxu0 %v13649_v12  ;;  %3680 = vmatpush1.msra.mxu1 %v13650_v23  ;;  %v11134_v12 = vld [vmem:[#allocation12 + $0xa0] sm:$0xff]  ;;  %v11136_v23 = vld [vmem:[#allocation12 + $0xb0] sm:$0xff] }
 0x5fd   :  { %3610 = vmatprep.subr.mxu0 %v13651_v0  ;;  %3681 = vmatprep.subr.mxu1 %v13652_v14  ;;  %13664 = vst [vmem:[#allocation156_spill] sm:$0xff] %v11134_v12  ;;  %13665 = vst [vmem:[#allocation157_spill] sm:$0xff] %v11136_v23  ;;  %v11140_v0 = vld [vmem:[#allocation12 + $0x88] sm:$0xff]  ;;  %v11142_v14 = vld [vmem:[#allocation12 + $0x98] sm:$0xff] }
 0x5fe   :  { %3611 = vmatpush1.msra.mxu0 %v13653_v32  ;;  %3682 = vmatpush1.msra.mxu1 %v13654_v42  ;;  %13666 = vst [vmem:[#allocation41_spill] sm:$0xff] %v11140_v0  ;;  %13667 = vst [vmem:[#allocation39_spill] sm:$0xff] %v11142_v14  ;;  %v11146_v32 = vld [vmem:[#allocation12 + $0x80] sm:$0xff]  ;;  %v11148_v42 = vld [vmem:[#allocation12 + $0x90] sm:$0xff] }
 0x5ff   :  { %3612 = vmatprep.subr.mxu0 %v13655_v51  ;;  %3683 = vmatprep.subr.mxu1 %v13656_v39  ;;  %13668 = vst [vmem:[#allocation42_spill] sm:$0xff] %v11146_v32  ;;  %13669 = vst [vmem:[#allocation40_spill] sm:$0xff] %v11148_v42  ;;  %v11152_v51 = vld [vmem:[#allocation12 + $0x68] sm:$0xff]  ;;  %v11154_v39 = vld [vmem:[#allocation12 + $0x78] sm:$0xff] }
 0x600   :  { %3613 = vmatpush1.msra.mxu0 %v13657_v15  ;;  %3684 = vmatpush1.msra.mxu1 %v13658_v63  ;;  %13670 = vst [vmem:[#allocation127_spill] sm:$0xff] %v11152_v51  ;;  %13671 = vst [vmem:[#allocation129_spill] sm:$0xff] %v11154_v39  ;;  %v11158_v15 = vld [vmem:[#allocation12 + $0x60] sm:$0xff]  ;;  %v11160_v63 = vld [vmem:[#allocation12 + $0x70] sm:$0xff] }
 0x601   :  { %3614 = vmatprep.subr.mxu0 %v10803_v1  ;;  %3685 = vmatprep.subr.mxu1 %v13659_v29  ;;  %13672 = vst [vmem:[#allocation130_spill] sm:$0xff] %v11158_v15  ;;  %13673 = vst [vmem:[#allocation128_spill] sm:$0xff] %v11160_v63  ;;  %v11164_v29 = vld [vmem:[#allocation12 + $0x48] sm:$0xff] }
 0x602   :  { %3615 = vmatpush1.msra.mxu0 %v10809_v62  ;;  %3686 = vmatpush1.msra.mxu1 %v13660_v48  ;;  %13674 = vst [vmem:[#allocation49_spill] sm:$0xff] %v11164_v29  ;;  %v11166_v48 = vld [vmem:[#allocation12 + $0x58] sm:$0xff] }
 0x603   :  { %3616 = vmatprep.subr.mxu0 %v13661_v13  ;;  %3687 = vmatprep.subr.mxu1 %v13662_v20  ;;  %13675 = vst [vmem:[#allocation50_spill] sm:$0xff] %v11166_v48  ;;  %v11170_v13 = vld [vmem:[#allocation12 + $0x40] sm:$0xff]  ;;  %v11172_v20 = vld [vmem:[#allocation12 + $0x50] sm:$0xff] }
 0x604   :  { %3617 = vmatpush1.msra.mxu0 %v10821_v37  ;;  %3688 = vmatpush1.msra.mxu1 %v10823_v52  ;;  %v11008_v37 = vld [vmem:[#allocation12 + $0x1e8] sm:$0xff]  ;;  %13676 = vst [vmem:[#allocation51_spill] sm:$0xff] %v11170_v13  ;;  %13677 = vst [vmem:[#allocation52_spill] sm:$0xff] %v11172_v20 }
 0x605   :  { %3618 = vmatprep.subr.mxu0 %v10827_v28  ;;  %3689 = vmatprep.subr.mxu1 %v10829_v3  ;;  %v11010_v28 = vld [vmem:[#allocation12 + $0x1f8] sm:$0xff]  ;;  %v11016_v3 = vld [vmem:[#allocation12 + $0x1f0] sm:$0xff]  ;;  %v11020_v52 = vld [vmem:[#allocation12 + $0x1c8] sm:$0xff] }
 0x606   :  { %3619 = vmatpush1.msra.mxu0 %v10833_v22  ;;  %3652 = vmatprep.mubr.f32.mxu0 %v13173_v5  ;;  %v11022_v22 = vld [vmem:[#allocation12 + $0x1d8] sm:$0xff] }
 0x607   :  { %v8318_v62 = vpop.eup %8317  ;;  %3690 = vmatpush1.msra.mxu1 %v10837_v43  ;;  %3723 = vmatprep.mubr.f32.mxu1 %v13173_v5  ;;  %v11014_v43 = vld [vmem:[#allocation12 + $0x1e0] sm:$0xff] }
 0x608   :  { %v11002_v1 = vmul.f32 %v8318_v62, %v8316_v26  ;;  %3852 = vmatprep.subr.mxu0 %v11008_v37  ;;  %3923 = vmatprep.subr.mxu1 %v11010_v28  ;;  %v11176_v26 = vld [vmem:[#allocation12 + $0x28] sm:$0xff]  ;;  %v11178_v62 = vld [vmem:[#allocation12 + $0x38] sm:$0xff] }
 0x609   :  { %13678 = vst [vmem:[#allocation53_spill] sm:$0xff] %v11176_v26  ;;  %13679 = vst [vmem:[#allocation54_spill] sm:$0xff] %v11178_v62 }
 0x60a   :  { %13663 = vst [vmem:[#allocation155_spill] sm:$0xff] %v11002_v1  ;;  %3653 = vmatmul.mubr.f32.vlgmr.msra.gmra.mxu0 %v11002_v1  ;;  %3724 = vmatmul.mubr.f32.vlgmr.msra.gmra.mxu1 %v11002_v1  ;;  %v11188_v1 = vld [vmem:[#allocation12 + $0x8] sm:$0xff] }
 0x60b   :  { %3916 = vmatprep.mubr.f32.mxu0 %v13173_v5  ;;  %3987 = vmatprep.mubr.f32.mxu1 %v13173_v5  ;;  %13682 = vst [vmem:[#allocation57_spill] sm:$0xff] %v11188_v1 }
 0x60c   :  { %3853 = vmatpush1.msra.mxu0 %v11014_v43  ;;  %3924 = vmatpush1.msra.mxu1 %v11016_v3 }
 0x60d   :  { %3854 = vmatprep.subr.mxu0 %v11020_v52  ;;  %3925 = vmatprep.subr.mxu1 %v11022_v22 }
 0x60e   :  { %3855 = vmatpush1.msra.mxu0 %v11026_v25  ;;  %3926 = vmatpush1.msra.mxu1 %v11028_v17 }
 0x60f   :  { %3856 = vmatprep.subr.mxu0 %v11032_v35  ;;  %3927 = vmatprep.subr.mxu1 %v11034_v36 }
 0x610   :  { %3857 = vmatpush1.msra.mxu0 %v11038_v55  ;;  %3928 = vmatpush1.msra.mxu1 %v11040_v50 }
 0x611   :  { %3858 = vmatprep.subr.mxu0 %v11044_v53  ;;  %3929 = vmatprep.subr.mxu1 %v11046_v45 }
 0x612   :  { %3859 = vmatpush1.msra.mxu0 %v11050_v46  ;;  %3930 = vmatpush1.msra.mxu1 %v11052_v30 }
 0x613   :  { %3860 = vmatprep.subr.mxu0 %v11056_v56  ;;  %3931 = vmatprep.subr.mxu1 %v11058_v61 }
 0x614   :  { %3861 = vmatpush1.msra.mxu0 %v11062_v16  ;;  %3932 = vmatpush1.msra.mxu1 %v11064_v7 }
 0x615   :  { %3862 = vmatprep.subr.mxu0 %v11068_v21  ;;  %3933 = vmatprep.subr.mxu1 %v11070_v44 }
 0x616   :  { %3863 = vmatpush1.msra.mxu0 %v11074_v40  ;;  %3934 = vmatpush1.msra.mxu1 %v11076_v41 }
 0x617   :  { %3864 = vmatprep.subr.mxu0 %v11080_v19  ;;  %3935 = vmatprep.subr.mxu1 %v11082_v4 }
 0x618   :  { %3865 = vmatpush1.msra.mxu0 %v11086_v2  ;;  %3936 = vmatpush1.msra.mxu1 %v11088_v8 }
 0x619   :  { %3866 = vmatprep.subr.mxu0 %v11092_v6  ;;  %3937 = vmatprep.subr.mxu1 %v11094_v58 }
 0x61a   :  { %3867 = vmatpush1.msra.mxu0 %v11098_v60  ;;  %3938 = vmatpush1.msra.mxu1 %v11100_v57 }
 0x61b   :  { %3868 = vmatprep.subr.mxu0 %v11104_v38  ;;  %3939 = vmatprep.subr.mxu1 %v11106_v27 }
 0x61c   :  { %3869 = vmatpush1.msra.mxu0 %v11110_v49  ;;  %3940 = vmatpush1.msra.mxu1 %v11112_v59 }
 0x61d   :  { %3870 = vmatprep.subr.mxu0 %v11116_v31  ;;  %3941 = vmatprep.subr.mxu1 %v11118_v10 }
 0x61e   :  { %3871 = vmatpush1.msra.mxu0 %v11122_v34  ;;  %3942 = vmatpush1.msra.mxu1 %v11124_v24 }
 0x61f   :  { %3872 = vmatprep.subr.mxu0 %v11128_v33  ;;  %3943 = vmatprep.subr.mxu1 %v11130_v11 }
 0x620   :  { %3873 = vmatpush1.msra.mxu0 %v11134_v12  ;;  %3944 = vmatpush1.msra.mxu1 %v11136_v23  ;;  %v13692_v12 = vld [vmem:[#allocation119_spill] sm:$0xff] }
 0x621   :  { %3874 = vmatprep.subr.mxu0 %v11140_v0  ;;  %3945 = vmatprep.subr.mxu1 %v11142_v14  ;;  %v13691_v14 = vld [vmem:[#allocation100_spill] sm:$0xff] }
 0x622   :  { %3875 = vmatpush1.msra.mxu0 %v11146_v32  ;;  %3946 = vmatpush1.msra.mxu1 %v11148_v42 }
 0x623   :  { %3876 = vmatprep.subr.mxu0 %v11152_v51  ;;  %3947 = vmatprep.subr.mxu1 %v11154_v39  ;;  %v13690_v51 = vld [vmem:[#allocation102_spill] sm:$0xff] }
 0x624   :  { %3877 = vmatpush1.msra.mxu0 %v11158_v15  ;;  %3948 = vmatpush1.msra.mxu1 %v11160_v63  ;;  %v13689_v63 = vld [vmem:[#allocation101_spill] sm:$0xff] }
 0x625   :  { %3878 = vmatprep.subr.mxu0 %v11164_v29  ;;  %3949 = vmatprep.subr.mxu1 %v11166_v48 }
 0x626   :  { %3879 = vmatpush1.msra.mxu0 %v11170_v13  ;;  %3950 = vmatpush1.msra.mxu1 %v11172_v20  ;;  %v11190_v13 = vld [vmem:[#allocation12 + $0x18] sm:$0xff]  ;;  %v11194_v20 = vld [vmem:[#allocation12] sm:$0xff] }
 0x627   :  { %3880 = vmatprep.subr.mxu0 %v11176_v26  ;;  %3951 = vmatprep.subr.mxu1 %v11178_v62  ;;  %13683 = vst [vmem:[#allocation58_spill] sm:$0xff] %v11190_v13  ;;  %13684 = vst [vmem:[#allocation59_spill] sm:$0xff] %v11194_v20  ;;  %v11196_v26 = vld [vmem:[#allocation12 + $0x10] sm:$0xff]  ;;  %v11200_v62 = vld [vmem:[#allocation15 + $0x1e8] sm:$0xff] }
 0x628   :  { %3881 = vmatpush1.msra.mxu0 %v11182_v54  ;;  %3952 = vmatpush1.msra.mxu1 %v11184_v18  ;;  %13685 = vst [vmem:[#allocation60_spill] sm:$0xff] %v11196_v26  ;;  %13686 = vst [vmem:[#allocation61_spill] sm:$0xff] %v11200_v62  ;;  %v11202_v54 = vld [vmem:[#allocation15 + $0x1f8] sm:$0xff] }
 0x629   :  { %3882 = vmatprep.subr.mxu0 %v11188_v1  ;;  %3953 = vmatprep.subr.mxu1 %v11190_v13  ;;  %13687 = vst [vmem:[#allocation62_spill] sm:$0xff] %v11202_v54  ;;  %v13688_v1 = vld [vmem:[#allocation99_spill] sm:$0xff] }
 0x62a   :  { %3883 = vmatpush1.msra.mxu0 %v11194_v20  ;;  %3954 = vmatpush1.msra.mxu1 %v11196_v26 }
 0x62b   :  { %4066 = vmatprep.subr.mxu0 %v11200_v62  ;;  %4137 = vmatprep.subr.mxu1 %v11202_v54 }
 0x6a7   :  { %v3440_v18 = vpop.f32.mrf.mxu0  ;;  %v3511_v39 = vpop.f32.mrf.mxu1 }
 0x6a8   :  { %v3516_v48 = vadd.f32 %v3440_v18, %v13688_v1  ;;  %v3518_v0 = vadd.f32 %v3511_v39, %v13691_v14 }
 0x6a9   :  { %v3442_v13 = vpop.f32.mrf.mxu0  ;;  %v3513_v26 = vpop.f32.mrf.mxu1 }
 0x6aa   :  { %v7915_v29 = vmul.f32 -1.442695, %v3516_v48  ;;  %v3517_v15 = vadd.f32 %v3442_v13, %v13689_v63  ;;  %v3519_v42 = vadd.f32 %v3513_v26, %v13690_v51  ;;  %v13693_v26 = vld [vmem:[#allocation121_spill] sm:$0xff] }
 0x6ac   :  { %8319 = vpow2.f32 %v7915_v29  ;;  %v7916_v20 = vmul.f32 -1.442695, %v3517_v15  ;;  %v7917_v32 = vmul.f32 -1.442695, %v3519_v42 }
 0x6ae   :  { %8321 = vpow2.f32 %v7916_v20 }
 0x6af   :  { %8323 = vpow2.f32 %v7917_v32 }
 0x6b0   :  { %8325 = vtanh.f32 %v3518_v0 }
 0x6b9   :  { %v8320_v62 = vpop.eup %8319 }
 0x6ba   :  { %v3737_v23 = vadd.f32 1.0, %v8320_v62 }
 0x6bb   :  { %v8322_v54 = vpop.eup %8321 }
 0x6bc   :  { %8327 = vrcp.f32 %v3737_v23  ;;  %v3743_v18 = vadd.f32 1.0, %v8322_v54  ;;  %v8324_v1 = vpop.eup %8323 }
 0x6bd   :  { %v8326_v63 = vpop.eup %8325  ;;  %v3750_v15 = vadd.f32 1.0, %v8324_v1 }
 0x6be   :  { %8329 = vrcp.f32 %v3743_v18  ;;  %v13694_v18 = vld [vmem:[#allocation122_spill] sm:$0xff] }
 0x6bf   :  { %8331 = vrcp.f32 %v3750_v15 }
 0x6c9   :  { %v8328_v48 = vpop.eup %8327 }
 0x6ca   :  { %v3754_v29 = vmul.f32 %v8328_v48, %v8326_v63  ;;  %v3654_v13 = vpop.f32.mrf.mxu0  ;;  %v3725_v54 = vpop.f32.mrf.mxu1  ;;  %v13695_v63 = vld [vmem:[#allocation120_spill] sm:$0xff] }
 0x6cb   :  { %v8330_v20 = vpop.eup %8329  ;;  %v3730_v51 = vadd.f32 %v3654_v13, %v13692_v12  ;;  %v3732_v12 = vadd.f32 %v3725_v54, %v13695_v63  ;;  %v11230_v54 = vld [vmem:[#allocation15 + $0x1c0] sm:$0xff]  ;;  %v11244_v63 = vld [vmem:[#allocation15 + $0x1b0] sm:$0xff] }
 0x6cc   :  { %v3753_v42 = vmul.f32 %v8330_v20, %v10925_v47  ;;  %v3656_v14 = vpop.f32.mrf.mxu0  ;;  %v3727_v0 = vpop.f32.mrf.mxu1  ;;  %13698 = vst [vmem:[#allocation65_spill] sm:$0xff] %v11230_v54  ;;  %13703 = vst [vmem:[#allocation70_spill] sm:$0xff] %v11244_v63 }
 0x6cd   :  { %v7918_v39 = vmul.f32 -1.442695, %v3730_v51  ;;  %v3731_v32 = vadd.f32 %v3656_v14, %v13693_v26  ;;  %v3733_v1 = vadd.f32 %v3727_v0, %v13694_v18  ;;  %v8332_v47 = vpop.eup %8331  ;;  %v11222_v14 = vld [vmem:[#allocation15 + $0x1f0] sm:$0xff]  ;;  %v11224_v26 = vld [vmem:[#allocation15 + $0x1c8] sm:$0xff]  ;;  %v11238_v18 = vld [vmem:[#allocation15 + $0x1b8] sm:$0xff] }
 0x6ce   :  { %v11213_v62 = vadd.f32 %v3754_v29, %v3753_v42  ;;  %v11220_v42 = vld [vmem:[#allocation15 + $0x1e0] sm:$0xff]  ;;  %v11236_v0 = vld [vmem:[#allocation15 + $0x1a8] sm:$0xff]  ;;  %13701 = vst [vmem:[#allocation68_spill] sm:$0xff] %v11238_v18 }
 0x6cf   :  { %8333 = vpow2.f32 %v7918_v39  ;;  %v7919_v23 = vmul.f32 -1.442695, %v3731_v32  ;;  %v7920_v48 = vmul.f32 -1.442695, %v3733_v1  ;;  %v11226_v32 = vld [vmem:[#allocation15 + $0x1d8] sm:$0xff]  ;;  %13700 = vst [vmem:[#allocation67_spill] sm:$0xff] %v11236_v0 }
 0x6d0   :  { %8335 = vtanh.f32 %v11213_v62  ;;  %13697 = vst [vmem:[#allocation64_spill] sm:$0xff] %v11226_v32  ;;  %v11242_v1 = vld [vmem:[#allocation15 + $0x1a0] sm:$0xff] }
 0x6d1   :  { %8337 = vpow2.f32 %v7919_v23  ;;  %v11232_v23 = vld [vmem:[#allocation15 + $0x1d0] sm:$0xff]  ;;  %13702 = vst [vmem:[#allocation69_spill] sm:$0xff] %v11242_v1 }
 0x6d2   :  { %8339 = vtanh.f32 %v3732_v12  ;;  %13699 = vst [vmem:[#allocation66_spill] sm:$0xff] %v11232_v23  ;;  %v11248_v12 = vld [vmem:[#allocation15 + $0x188] sm:$0xff] }
 0x6d3   :  { %8341 = vpow2.f32 %v7920_v48  ;;  %13704 = vst [vmem:[#allocation71_spill] sm:$0xff] %v11248_v12  ;;  %v11250_v48 = vld [vmem:[#allocation15 + $0x198] sm:$0xff] }
 0x6d4   :  { %13705 = vst [vmem:[#allocation72_spill] sm:$0xff] %v11250_v48 }
 0x6dc   :  { %v8334_v13 = vpop.eup %8333 }
 0x6dd   :  { %v8336_v20 = vpop.eup %8335  ;;  %v3761_v51 = vadd.f32 1.0, %v8334_v13  ;;  %v11256_v13 = vld [vmem:[#allocation15 + $0x190] sm:$0xff] }
 0x6de   :  { %v8338_v29 = vpop.eup %8337  ;;  %v11218_v15 = vmul.f32 %v8336_v20, %v8332_v47  ;;  %v11254_v47 = vld [vmem:[#allocation15 + $0x180] sm:$0xff]  ;;  %13707 = vst [vmem:[#allocation45_spill] sm:$0xff] %v11256_v13  ;;  %v11260_v20 = vld [vmem:[#allocation15 + $0x168] sm:$0xff] }
 0x6df   :  { %8343 = vrcp.f32 %v3761_v51  ;;  %v3767_v39 = vadd.f32 1.0, %v8338_v29  ;;  %13706 = vst [vmem:[#allocation73_spill] sm:$0xff] %v11254_v47  ;;  %13708 = vst [vmem:[#allocation43_spill] sm:$0xff] %v11260_v20  ;;  %v11262_v51 = vld [vmem:[#allocation15 + $0x178] sm:$0xff]  ;;  %v11266_v29 = vld [vmem:[#allocation15 + $0x160] sm:$0xff] }
 0x6e0   :  { %13696 = vst [vmem:[#allocation63_spill] sm:$0xff] %v11218_v15  ;;  %3917 = vmatmul.mubr.f32.vlgmr.msra.gmra.mxu0 %v11218_v15  ;;  %3988 = vmatmul.mubr.f32.vlgmr.msra.gmra.mxu1 %v11218_v15  ;;  %13709 = vst [vmem:[#allocation98_spill] sm:$0xff] %v11262_v51  ;;  %v11272_v15 = vld [vmem:[#allocation15 + $0x148] sm:$0xff] }
 0x6e1   :  { %8345 = vrcp.f32 %v3767_v39  ;;  %4067 = vmatpush1.msra.mxu0 %v11220_v42  ;;  %4138 = vmatpush1.msra.mxu1 %v11222_v14  ;;  %13710 = vst [vmem:[#allocation44_spill] sm:$0xff] %v11266_v29  ;;  %v11268_v39 = vld [vmem:[#allocation15 + $0x170] sm:$0xff]  ;;  %13712 = vst [vmem:[#allocation125_spill] sm:$0xff] %v11272_v15 }
 0x6e2   :  { %4068 = vmatprep.subr.mxu0 %v11224_v26  ;;  %4139 = vmatprep.subr.mxu1 %v11226_v32  ;;  %13711 = vst [vmem:[#allocation123_spill] sm:$0xff] %v11268_v39 }
 0x6e3   :  { %4069 = vmatpush1.msra.mxu0 %v11230_v54  ;;  %4140 = vmatpush1.msra.mxu1 %v11232_v23 }
 0x6e4   :  { %4070 = vmatprep.subr.mxu0 %v11236_v0  ;;  %4141 = vmatprep.subr.mxu1 %v11238_v18 }
 0x6e5   :  { %4071 = vmatpush1.msra.mxu0 %v11242_v1  ;;  %4142 = vmatpush1.msra.mxu1 %v11244_v63  ;;  %v11274_v1 = vld [vmem:[#allocation15 + $0x158] sm:$0xff]  ;;  %v11278_v63 = vld [vmem:[#allocation15 + $0x140] sm:$0xff] }
 0x6e6   :  { %4072 = vmatprep.subr.mxu0 %v11248_v12  ;;  %4143 = vmatprep.subr.mxu1 %v11250_v48  ;;  %13713 = vst [vmem:[#allocation126_spill] sm:$0xff] %v11274_v1  ;;  %13714 = vst [vmem:[#allocation124_spill] sm:$0xff] %v11278_v63  ;;  %v11280_v12 = vld [vmem:[#allocation15 + $0x150] sm:$0xff]  ;;  %v11284_v48 = vld [vmem:[#allocation15 + $0x128] sm:$0xff] }
 0x6e7   :  { %4073 = vmatpush1.msra.mxu0 %v11254_v47  ;;  %4144 = vmatpush1.msra.mxu1 %v11256_v13  ;;  %13715 = vst [vmem:[#allocation75_spill] sm:$0xff] %v11280_v12  ;;  %13716 = vst [vmem:[#allocation37_spill] sm:$0xff] %v11284_v48  ;;  %v11286_v47 = vld [vmem:[#allocation15 + $0x138] sm:$0xff]  ;;  %v8340_v13 = vpop.eup %8339 }
 0x6e8   :  { %4074 = vmatprep.subr.mxu0 %v11260_v20  ;;  %4145 = vmatprep.subr.mxu1 %v11262_v51  ;;  %13717 = vst [vmem:[#allocation35_spill] sm:$0xff] %v11286_v47  ;;  %v11290_v20 = vld [vmem:[#allocation15 + $0x120] sm:$0xff]  ;;  %v11292_v51 = vld [vmem:[#allocation15 + $0x130] sm:$0xff]  ;;  %v8342_v18 = vpop.eup %8341 }
 0x6e9   :  { %4075 = vmatpush1.msra.mxu0 %v11266_v29  ;;  %4146 = vmatpush1.msra.mxu1 %v11268_v39  ;;  %13718 = vst [vmem:[#allocation38_spill] sm:$0xff] %v11292_v51  ;;  %v11296_v29 = vld [vmem:[#allocation15 + $0x108] sm:$0xff]  ;;  %v11298_v39 = vld [vmem:[#allocation15 + $0x118] sm:$0xff]  ;;  %v3774_v32 = vadd.f32 1.0, %v8342_v18  ;;  %v11327_v18 = vld [vmem:[#allocation15 + $0xc0] sm:$0xff] }
 0x6ea   :  { %4076 = vmatprep.subr.mxu0 %v11272_v15  ;;  %4147 = vmatprep.subr.mxu1 %v11274_v1  ;;  %13719 = vst [vmem:[#allocation36_spill] sm:$0xff] %v11296_v29  ;;  %13720 = vst [vmem:[#allocation131_spill] sm:$0xff] %v11298_v39  ;;  %v11302_v15 = vld [vmem:[#allocation15 + $0x100] sm:$0xff]  ;;  %v11304_v1 = vld [vmem:[#allocation15 + $0x110] sm:$0xff] }
 0x6eb   :  { %4077 = vmatpush1.msra.mxu0 %v11278_v63  ;;  %4148 = vmatpush1.msra.mxu1 %v11280_v12  ;;  %v11308_v63 = vld [vmem:[#allocation15 + $0xe8] sm:$0xff]  ;;  %v11310_v12 = vld [vmem:[#allocation15 + $0xf8] sm:$0xff]  ;;  %13725 = vst [vmem:[#allocation78_spill] sm:$0xff] %v11327_v18  ;;  %8347 = vrcp.f32 %v3774_v32  ;;  %v11354_v32 = vld [vmem:[#allocation15 + $0x80] sm:$0xff] }
 0x6ec   :  { %v8344_v0 = vpop.eup %8343  ;;  %4078 = vmatprep.subr.mxu0 %v11284_v48  ;;  %4149 = vmatprep.subr.mxu1 %v11286_v47  ;;  %13721 = vst [vmem:[#allocation133_spill] sm:$0xff] %v11308_v63  ;;  %13722 = vst [vmem:[#allocation134_spill] sm:$0xff] %v11310_v12  ;;  %v11314_v47 = vld [vmem:[#allocation15 + $0xe0] sm:$0xff]  ;;  %v11316_v48 = vld [vmem:[#allocation15 + $0xf0] sm:$0xff] }
 0x6ed   :  { %v3778_v23 = vmul.f32 %v8344_v0, %v8340_v13  ;;  %4079 = vmatpush1.msra.mxu0 %v11290_v20  ;;  %4150 = vmatpush1.msra.mxu1 %v11292_v51  ;;  %v11321_v13 = vld [vmem:[#allocation15 + $0xc8] sm:$0xff]  ;;  %v11323_v51 = vld [vmem:[#allocation15 + $0xd8] sm:$0xff]  ;;  %13733 = vst [vmem:[#allocation86_spill] sm:$0xff] %v11354_v32 }
 0x6ee   :  { %v8346_v54 = vpop.eup %8345  ;;  %4080 = vmatprep.subr.mxu0 %v11296_v29  ;;  %4151 = vmatprep.subr.mxu1 %v11298_v39  ;;  %13723 = vst [vmem:[#allocation132_spill] sm:$0xff] %v11321_v13  ;;  %13724 = vst [vmem:[#allocation77_spill] sm:$0xff] %v11323_v51  ;;  %v11329_v39 = vld [vmem:[#allocation15 + $0xd0] sm:$0xff] }
 0x6ef   :  { %v3777_v0 = vmul.f32 %v8346_v54, %v10967_v9  ;;  %4081 = vmatpush1.msra.mxu0 %v11302_v15  ;;  %4152 = vmatpush1.msra.mxu1 %v11304_v1  ;;  %13726 = vst [vmem:[#allocation79_spill] sm:$0xff] %v11329_v39  ;;  %v11335_v9 = vld [vmem:[#allocation15 + $0xa8] sm:$0xff]  ;;  %v11337_v54 = vld [vmem:[#allocation15 + $0xb8] sm:$0xff] }
 0x6f0   :  { %4082 = vmatprep.subr.mxu0 %v11308_v63  ;;  %4153 = vmatprep.subr.mxu1 %v11310_v12  ;;  %13727 = vst [vmem:[#allocation80_spill] sm:$0xff] %v11335_v9  ;;  %13728 = vst [vmem:[#allocation81_spill] sm:$0xff] %v11337_v54  ;;  %v11341_v12 = vld [vmem:[#allocation15 + $0xa0] sm:$0xff]  ;;  %v11343_v63 = vld [vmem:[#allocation15 + $0xb0] sm:$0xff] }
 0x6f1   :  { %v11331_v29 = vadd.f32 %v3778_v23, %v3777_v0  ;;  %4083 = vmatpush1.msra.mxu0 %v11314_v47  ;;  %4154 = vmatpush1.msra.mxu1 %v11316_v48  ;;  %13729 = vst [vmem:[#allocation82_spill] sm:$0xff] %v11341_v12  ;;  %13730 = vst [vmem:[#allocation83_spill] sm:$0xff] %v11343_v63  ;;  %v11347_v23 = vld [vmem:[#allocation15 + $0x88] sm:$0xff]  ;;  %v11349_v0 = vld [vmem:[#allocation15 + $0x98] sm:$0xff] }
 0x6f2   :  { %4084 = vmatprep.subr.mxu0 %v11321_v13  ;;  %4155 = vmatprep.subr.mxu1 %v11323_v51  ;;  %13731 = vst [vmem:[#allocation84_spill] sm:$0xff] %v11347_v23  ;;  %13732 = vst [vmem:[#allocation85_spill] sm:$0xff] %v11349_v0  ;;  %v11356_v51 = vld [vmem:[#allocation15 + $0x90] sm:$0xff]  ;;  %v11366_v13 = vld [vmem:[#allocation15 + $0x60] sm:$0xff] }
 0x6f3   :  { %4085 = vmatpush1.msra.mxu0 %v11327_v18  ;;  %4156 = vmatpush1.msra.mxu1 %v11329_v39  ;;  %8349 = vtanh.f32 %v11331_v29  ;;  %13734 = vst [vmem:[#allocation87_spill] sm:$0xff] %v11356_v51  ;;  %v11360_v18 = vld [vmem:[#allocation15 + $0x68] sm:$0xff]  ;;  %v11362_v39 = vld [vmem:[#allocation15 + $0x78] sm:$0xff]  ;;  %13737 = vst [vmem:[#allocation90_spill] sm:$0xff] %v11366_v13 }
 0x6f4   :  { %4086 = vmatprep.subr.mxu0 %v11335_v9  ;;  %4157 = vmatprep.subr.mxu1 %v11337_v54  ;;  %13735 = vst [vmem:[#allocation88_spill] sm:$0xff] %v11360_v18  ;;  %13736 = vst [vmem:[#allocation89_spill] sm:$0xff] %v11362_v39  ;;  %v11368_v9 = vld [vmem:[#allocation15 + $0x70] sm:$0xff]  ;;  %v11372_v54 = vld [vmem:[#allocation15 + $0x48] sm:$0xff] }
 0x6f5   :  { %4087 = vmatpush1.msra.mxu0 %v11341_v12  ;;  %4158 = vmatpush1.msra.mxu1 %v11343_v63  ;;  %13738 = vst [vmem:[#allocation91_spill] sm:$0xff] %v11368_v9  ;;  %v11374_v12 = vld [vmem:[#allocation15 + $0x58] sm:$0xff]  ;;  %v11378_v63 = vld [vmem:[#allocation15 + $0x40] sm:$0xff] }
 0x6f6   :  { %4088 = vmatprep.subr.mxu0 %v11347_v23  ;;  %4159 = vmatprep.subr.mxu1 %v11349_v0  ;;  %13739 = vst [vmem:[#allocation92_spill] sm:$0xff] %v11374_v12  ;;  %v11380_v23 = vld [vmem:[#allocation15 + $0x50] sm:$0xff]  ;;  %v11384_v0 = vld [vmem:[#allocation15 + $0x28] sm:$0xff] }
 0x6f7   :  { %4089 = vmatpush1.msra.mxu0 %v11354_v32  ;;  %4160 = vmatpush1.msra.mxu1 %v11356_v51  ;;  %13740 = vst [vmem:[#allocation93_spill] sm:$0xff] %v11380_v23  ;;  %13741 = vst [vmem:[#allocation94_spill] sm:$0xff] %v11384_v0  ;;  %v11386_v32 = vld [vmem:[#allocation15 + $0x38] sm:$0xff]  ;;  %v11390_v51 = vld [vmem:[#allocation15 + $0x20] sm:$0xff] }
 0x6f8   :  { %4090 = vmatprep.subr.mxu0 %v11360_v18  ;;  %4161 = vmatprep.subr.mxu1 %v11362_v39  ;;  %13742 = vst [vmem:[#allocation95_spill] sm:$0xff] %v11386_v32  ;;  %v11392_v18 = vld [vmem:[#allocation15 + $0x30] sm:$0xff]  ;;  %v11396_v39 = vld [vmem:[#allocation15 + $0x8] sm:$0xff] }
 0x6f9   :  { %4091 = vmatpush1.msra.mxu0 %v11366_v13  ;;  %4162 = vmatpush1.msra.mxu1 %v11368_v9  ;;  %v11398_v13 = vld [vmem:[#allocation15 + $0x18] sm:$0xff]  ;;  %v11402_v9 = vld [vmem:[#allocation15] sm:$0xff] }
 0x6fa   :  { %4092 = vmatprep.subr.mxu0 %v11372_v54  ;;  %4163 = vmatprep.subr.mxu1 %v11374_v12  ;;  %v11406_v12 = vld [vmem:[#allocation15 + $0x10] sm:$0xff] }
 0x6fb   :  { %4093 = vmatpush1.msra.mxu0 %v11378_v63  ;;  %4164 = vmatpush1.msra.mxu1 %v11380_v23  ;;  %v8348_v23 = vpop.eup %8347 }
 0x6fc   :  { %4094 = vmatprep.subr.mxu0 %v11384_v0  ;;  %4165 = vmatprep.subr.mxu1 %v11386_v32 }
 0x6fd   :  { %4095 = vmatpush1.msra.mxu0 %v11390_v51  ;;  %4166 = vmatpush1.msra.mxu1 %v11392_v18 }
 0x6fe   :  { %4096 = vmatprep.subr.mxu0 %v11396_v39  ;;  %4167 = vmatprep.subr.mxu1 %v11398_v13 }
 0x6ff   :  { %4097 = vmatpush1.msra.mxu0 %v11402_v9  ;;  %4130 = vmatprep.mubr.f32.mxu0 %v13173_v5 }
 0x700   :  { %v8350_v0 = vpop.eup %8349  ;;  %4168 = vmatpush1.msra.mxu1 %v11406_v12  ;;  %4201 = vmatprep.mubr.f32.mxu1 %v13173_v5 }
 0x701   :  { %v11414_v32 = vmul.f32 %v8350_v0, %v8348_v23  ;;  %4330 = vmatprep.subr.mxu0 %v11008_v37  ;;  %4401 = vmatprep.subr.mxu1 %v11010_v28  ;;  %v13743_v37 = vld [vmem:[#allocation156_spill] sm:$0xff]  ;;  %v13744_v28 = vld [vmem:[#allocation157_spill] sm:$0xff] }
 0x703   :  { %4131 = vmatmul.mubr.f32.vlgmr.msra.gmra.mxu0 %v11414_v32  ;;  %4202 = vmatmul.mubr.f32.vlgmr.msra.gmra.mxu1 %v11414_v32 }
 0x704   :  { %4331 = vmatpush1.msra.mxu0 %v11014_v43  ;;  %4402 = vmatpush1.msra.mxu1 %v11016_v3  ;;  %v13745_v43 = vld [vmem:[#allocation41_spill] sm:$0xff]  ;;  %v13746_v3 = vld [vmem:[#allocation39_spill] sm:$0xff] }
 0x705   :  { %4332 = vmatprep.subr.mxu0 %v11020_v52  ;;  %4403 = vmatprep.subr.mxu1 %v11022_v22  ;;  %v13747_v52 = vld [vmem:[#allocation42_spill] sm:$0xff]  ;;  %v13748_v22 = vld [vmem:[#allocation40_spill] sm:$0xff] }
 0x706   :  { %4333 = vmatpush1.msra.mxu0 %v11026_v25  ;;  %4404 = vmatpush1.msra.mxu1 %v11028_v17  ;;  %v13749_v25 = vld [vmem:[#allocation127_spill] sm:$0xff]  ;;  %v13750_v17 = vld [vmem:[#allocation129_spill] sm:$0xff] }
 0x707   :  { %4334 = vmatprep.subr.mxu0 %v11032_v35  ;;  %4405 = vmatprep.subr.mxu1 %v11034_v36  ;;  %v13751_v35 = vld [vmem:[#allocation130_spill] sm:$0xff]  ;;  %v13752_v36 = vld [vmem:[#allocation128_spill] sm:$0xff] }
 0x708   :  { %4335 = vmatpush1.msra.mxu0 %v11038_v55  ;;  %4406 = vmatpush1.msra.mxu1 %v11040_v50  ;;  %v13753_v55 = vld [vmem:[#allocation49_spill] sm:$0xff]  ;;  %v13754_v50 = vld [vmem:[#allocation50_spill] sm:$0xff] }
 0x709   :  { %4336 = vmatprep.subr.mxu0 %v11044_v53  ;;  %4407 = vmatprep.subr.mxu1 %v11046_v45  ;;  %v13755_v53 = vld [vmem:[#allocation51_spill] sm:$0xff]  ;;  %v13756_v45 = vld [vmem:[#allocation52_spill] sm:$0xff] }
 0x70a   :  { %4337 = vmatpush1.msra.mxu0 %v11050_v46  ;;  %4408 = vmatpush1.msra.mxu1 %v11052_v30  ;;  %v13757_v46 = vld [vmem:[#allocation53_spill] sm:$0xff]  ;;  %v13758_v30 = vld [vmem:[#allocation54_spill] sm:$0xff] }
 0x70b   :  { %4338 = vmatprep.subr.mxu0 %v11056_v56  ;;  %4409 = vmatprep.subr.mxu1 %v11058_v61  ;;  %v13759_v56 = vld [vmem:[#allocation55_spill] sm:$0xff]  ;;  %v13760_v61 = vld [vmem:[#allocation56_spill] sm:$0xff] }
 0x70c   :  { %4339 = vmatpush1.msra.mxu0 %v11062_v16  ;;  %4410 = vmatpush1.msra.mxu1 %v11064_v7  ;;  %v13761_v16 = vld [vmem:[#allocation57_spill] sm:$0xff]  ;;  %v13762_v7 = vld [vmem:[#allocation58_spill] sm:$0xff] }
 0x70d   :  { %4340 = vmatprep.subr.mxu0 %v11068_v21  ;;  %4411 = vmatprep.subr.mxu1 %v11070_v44  ;;  %v13763_v21 = vld [vmem:[#allocation59_spill] sm:$0xff]  ;;  %v13764_v44 = vld [vmem:[#allocation60_spill] sm:$0xff] }
 0x70e   :  { %4341 = vmatpush1.msra.mxu0 %v11074_v40  ;;  %4412 = vmatpush1.msra.mxu1 %v11076_v41  ;;  %v13765_v40 = vld [vmem:[#allocation61_spill] sm:$0xff]  ;;  %v13766_v41 = vld [vmem:[#allocation62_spill] sm:$0xff] }
 0x70f   :  { %4342 = vmatprep.subr.mxu0 %v11080_v19  ;;  %4413 = vmatprep.subr.mxu1 %v11082_v4  ;;  %v13767_v4 = vld [vmem:[#allocation103_spill] sm:$0xff] }
 0x710   :  { %4343 = vmatpush1.msra.mxu0 %v11086_v2  ;;  %4414 = vmatpush1.msra.mxu1 %v11088_v8 }
 0x711   :  { %4344 = vmatprep.subr.mxu0 %v11092_v6  ;;  %4415 = vmatprep.subr.mxu1 %v11094_v58  ;;  %v13768_v58 = vld [vmem:[#allocation105_spill] sm:$0xff] }
 0x712   :  { %4345 = vmatpush1.msra.mxu0 %v11098_v60  ;;  %4416 = vmatpush1.msra.mxu1 %v11100_v57 }
 0x713   :  { %4346 = vmatprep.subr.mxu0 %v11104_v38  ;;  %4417 = vmatprep.subr.mxu1 %v11106_v27 }
 0x714   :  { %4347 = vmatpush1.msra.mxu0 %v11110_v49  ;;  %4418 = vmatpush1.msra.mxu1 %v11112_v59  ;;  %v13769_v49 = vld [vmem:[#allocation106_spill] sm:$0xff] }
 0x715   :  { %4348 = vmatprep.subr.mxu0 %v11116_v31  ;;  %4419 = vmatprep.subr.mxu1 %v11118_v10  ;;  %v13770_v10 = vld [vmem:[#allocation104_spill] sm:$0xff] }
 0x716   :  { %4349 = vmatpush1.msra.mxu0 %v11122_v34  ;;  %4420 = vmatpush1.msra.mxu1 %v11124_v24 }
 0x717   :  { %4350 = vmatprep.subr.mxu0 %v11128_v33  ;;  %4421 = vmatprep.subr.mxu1 %v11130_v11 }
 0x718   :  { %4351 = vmatpush1.msra.mxu0 %v13743_v37  ;;  %4422 = vmatpush1.msra.mxu1 %v13744_v28 }
 0x719   :  { %4352 = vmatprep.subr.mxu0 %v13745_v43  ;;  %4423 = vmatprep.subr.mxu1 %v13746_v3 }
 0x71a   :  { %4353 = vmatpush1.msra.mxu0 %v13747_v52  ;;  %4424 = vmatpush1.msra.mxu1 %v13748_v22 }
 0x71b   :  { %4354 = vmatprep.subr.mxu0 %v13749_v25  ;;  %4425 = vmatprep.subr.mxu1 %v13750_v17  ;;  %v13771_v25 = vld [vmem:[#allocation115_spill] sm:$0xff] }
 0x71c   :  { %4355 = vmatpush1.msra.mxu0 %v13751_v35  ;;  %4426 = vmatpush1.msra.mxu1 %v13752_v36 }
 0x71d   :  { %4356 = vmatprep.subr.mxu0 %v13753_v55  ;;  %4427 = vmatprep.subr.mxu1 %v13754_v50  ;;  %v13772_v50 = vld [vmem:[#allocation117_spill] sm:$0xff] }
 0x71e   :  { %4357 = vmatpush1.msra.mxu0 %v13755_v53  ;;  %4428 = vmatpush1.msra.mxu1 %v13756_v45 }
 0x71f   :  { %4358 = vmatprep.subr.mxu0 %v13757_v46  ;;  %4429 = vmatprep.subr.mxu1 %v13758_v30 }
 0x720   :  { %4359 = vmatpush1.msra.mxu0 %v13759_v56  ;;  %4430 = vmatpush1.msra.mxu1 %v13760_v61  ;;  %v13773_v61 = vld [vmem:[#allocation118_spill] sm:$0xff] }
 0x721   :  { %4360 = vmatprep.subr.mxu0 %v13761_v16  ;;  %4431 = vmatprep.subr.mxu1 %v13762_v7  ;;  %v13774_v7 = vld [vmem:[#allocation116_spill] sm:$0xff] }
 0x722   :  { %4361 = vmatpush1.msra.mxu0 %v13763_v21  ;;  %4394 = vmatprep.mubr.f32.mxu0 %v13173_v5 }
 0x723   :  { %4432 = vmatpush1.msra.mxu1 %v13764_v44  ;;  %4465 = vmatprep.mubr.f32.mxu1 %v13173_v5 }
 0x724   :  { %4544 = vmatprep.subr.mxu0 %v13765_v40  ;;  %4615 = vmatprep.subr.mxu1 %v13766_v41 }
 0x7a0   :  { %v3918_v19 = vpop.f32.mrf.mxu0  ;;  %v3989_v57 = vpop.f32.mrf.mxu1 }
 0x7a1   :  { %v3994_v2 = vadd.f32 %v3918_v19, %v13767_v4  ;;  %v3996_v34 = vadd.f32 %v3989_v57, %v13770_v10  ;;  %v13778_v57 = vld [vmem:[#allocation67_spill] sm:$0xff]  ;;  %v13787_v10 = vld [vmem:[#allocation98_spill] sm:$0xff] }
 0x7a2   :  { %v3920_v8 = vpop.f32.mrf.mxu0  ;;  %v3991_v27 = vpop.f32.mrf.mxu1 }
 0x7a3   :  { %v7921_v6 = vmul.f32 -1.442695, %v3994_v2  ;;  %v3995_v60 = vadd.f32 %v3920_v8, %v13768_v58  ;;  %v3997_v59 = vadd.f32 %v3991_v27, %v13769_v49  ;;  %v13776_v58 = vld [vmem:[#allocation65_spill] sm:$0xff]  ;;  %v13781_v49 = vld [vmem:[#allocation70_spill] sm:$0xff] }
 0x7a4   :  { %v13780_v27 = vld [vmem:[#allocation69_spill] sm:$0xff] }
 0x7a5   :  { %8351 = vpow2.f32 %v7921_v6  ;;  %v7922_v38 = vmul.f32 -1.442695, %v3995_v60  ;;  %v7923_v31 = vmul.f32 -1.442695, %v3997_v59  ;;  %v13775_v6 = vld [vmem:[#allocation64_spill] sm:$0xff]  ;;  %v13777_v60 = vld [vmem:[#allocation66_spill] sm:$0xff] }
 0x7a6   :  { %v13782_v59 = vld [vmem:[#allocation71_spill] sm:$0xff] }
 0x7a7   :  { %8353 = vpow2.f32 %v7922_v38  ;;  %v13779_v38 = vld [vmem:[#allocation68_spill] sm:$0xff] }
 0x7a8   :  { %8355 = vpow2.f32 %v7923_v31  ;;  %v13786_v31 = vld [vmem:[#allocation43_spill] sm:$0xff] }
 0x7a9   :  { %8357 = vtanh.f32 %v3996_v34  ;;  %v13788_v34 = vld [vmem:[#allocation44_spill] sm:$0xff] }
 0x7b2   :  { %v8352_v24 = vpop.eup %8351 }
 0x7b3   :  { %v4215_v33 = vadd.f32 1.0, %v8352_v24  ;;  %v13789_v24 = vld [vmem:[#allocation123_spill] sm:$0xff] }
 0x7b4   :  { %v8354_v11 = vpop.eup %8353 }
 0x7b5   :  { %8359 = vrcp.f32 %v4215_v33  ;;  %v4221_v23 = vadd.f32 1.0, %v8354_v11  ;;  %v8356_v0 = vpop.eup %8355  ;;  %v13790_v11 = vld [vmem:[#allocation125_spill] sm:$0xff] }
 0x7b6   :  { %v8358_v37 = vpop.eup %8357  ;;  %v4228_v3 = vadd.f32 1.0, %v8356_v0 }
 0x7b7   :  { %8361 = vrcp.f32 %v4221_v23  ;;  %v13791_v23 = vld [vmem:[#allocation126_spill] sm:$0xff] }
 0x7b8   :  { %8363 = vrcp.f32 %v4228_v3  ;;  %v13794_v3 = vld [vmem:[#allocation37_spill] sm:$0xff] }
 0x7c2   :  { %v8360_v28 = vpop.eup %8359 }
 0x7c3   :  { %v4232_v43 = vmul.f32 %v8360_v28, %v8358_v37  ;;  %v4132_v52 = vpop.f32.mrf.mxu0  ;;  %v4203_v46 = vpop.f32.mrf.mxu1  ;;  %v13792_v37 = vld [vmem:[#allocation124_spill] sm:$0xff]  ;;  %v13793_v28 = vld [vmem:[#allocation75_spill] sm:$0xff] }
 0x7c4   :  { %v8362_v22 = vpop.eup %8361  ;;  %v4208_v17 = vadd.f32 %v4132_v52, %v13771_v25  ;;  %v4210_v21 = vadd.f32 %v4203_v46, %v13774_v7  ;;  %v13795_v52 = vld [vmem:[#allocation35_spill] sm:$0xff]  ;;  %v13796_v25 = vld [vmem:[#allocation38_spill] sm:$0xff]  ;;  %v13810_v7 = vld [vmem:[#allocation85_spill] sm:$0xff] }
 0x7c5   :  { %v4231_v35 = vmul.f32 %v8362_v22, %v11213_v62  ;;  %v4134_v36 = vpop.f32.mrf.mxu0  ;;  %v4205_v56 = vpop.f32.mrf.mxu1  ;;  %v13800_v46 = vld [vmem:[#allocation134_spill] sm:$0xff] }
 0x7c6   :  { %v7924_v55 = vmul.f32 -1.442695, %v4208_v17  ;;  %v4209_v53 = vadd.f32 %v4134_v36, %v13772_v50  ;;  %v4211_v16 = vadd.f32 %v4205_v56, %v13773_v61  ;;  %v8364_v62 = vpop.eup %8363  ;;  %v13797_v36 = vld [vmem:[#allocation36_spill] sm:$0xff]  ;;  %v13802_v56 = vld [vmem:[#allocation77_spill] sm:$0xff] }
 0x7c7   :  { %v11493_v45 = vadd.f32 %v4232_v43, %v4231_v35  ;;  %v13806_v61 = vld [vmem:[#allocation81_spill] sm:$0xff] }
 0x7c8   :  { %8365 = vpow2.f32 %v7924_v55  ;;  %v7925_v30 = vmul.f32 -1.442695, %v4209_v53  ;;  %v7926_v44 = vmul.f32 -1.442695, %v4211_v16  ;;  %v13798_v55 = vld [vmem:[#allocation131_spill] sm:$0xff]  ;;  %v13799_v53 = vld [vmem:[#allocation133_spill] sm:$0xff] }
 0x7c9   :  { %8367 = vtanh.f32 %v11493_v45  ;;  %v13807_v16 = vld [vmem:[#allocation82_spill] sm:$0xff] }
 0x7ca   :  { %8369 = vpow2.f32 %v7925_v30 }
 0x7cb   :  { %8371 = vtanh.f32 %v4210_v21  ;;  %v13811_v21 = vld [vmem:[#allocation86_spill] sm:$0xff] }
 0x7cc   :  { %8373 = vpow2.f32 %v7926_v44  ;;  %v13812_v44 = vld [vmem:[#allocation87_spill] sm:$0xff] }
 0x7d5   :  { %v8366_v40 = vpop.eup %8365 }
 0x7d6   :  { %v8368_v41 = vpop.eup %8367  ;;  %v4239_v19 = vadd.f32 1.0, %v8366_v40  ;;  %v13814_v40 = vld [vmem:[#allocation89_spill] sm:$0xff] }
 0x7d7   :  { %v8370_v4 = vpop.eup %8369  ;;  %v11498_v2 = vmul.f32 %v8368_v41, %v8364_v62  ;;  %v13813_v62 = vld [vmem:[#allocation88_spill] sm:$0xff]  ;;  %v13815_v41 = vld [vmem:[#allocation90_spill] sm:$0xff] }
 0x7d8   :  { %8375 = vrcp.f32 %v4239_v19  ;;  %v4245_v8 = vadd.f32 1.0, %v8370_v4  ;;  %v8372_v33 = vpop.eup %8371  ;;  %v13816_v19 = vld [vmem:[#allocation91_spill] sm:$0xff]  ;;  %v13817_v4 = vld [vmem:[#allocation92_spill] sm:$0xff] }
 0x7d9   :  { %4395 = vmatmul.mubr.f32.vlgmr.msra.gmra.mxu0 %v11498_v2  ;;  %4466 = vmatmul.mubr.f32.vlgmr.msra.gmra.mxu1 %v11498_v2  ;;  %v8374_v0 = vpop.eup %8373 }
 0x7da   :  { %8377 = vrcp.f32 %v4245_v8  ;;  %4545 = vmatpush1.msra.mxu0 %v11220_v42  ;;  %4616 = vmatpush1.msra.mxu1 %v11222_v14  ;;  %v13783_v42 = vld [vmem:[#allocation72_spill] sm:$0xff]  ;;  %v13784_v14 = vld [vmem:[#allocation73_spill] sm:$0xff]  ;;  %v4252_v35 = vadd.f32 1.0, %v8374_v0  ;;  %v4863_v0 = vld [vmem:[#allocation18 + $0x158] sm:$0xff] }
 0x7db   :  { %4546 = vmatprep.subr.mxu0 %v11224_v26  ;;  %4617 = vmatprep.subr.mxu1 %v13775_v6  ;;  %v13785_v26 = vld [vmem:[#allocation45_spill] sm:$0xff]  ;;  %v13819_v6 = vld [vmem:[#allocation94_spill] sm:$0xff] }
 0x7dc   :  { %4547 = vmatpush1.msra.mxu0 %v13776_v58  ;;  %4618 = vmatpush1.msra.mxu1 %v13777_v60  ;;  %8379 = vrcp.f32 %v4252_v35  ;;  %v13818_v8 = vld [vmem:[#allocation93_spill] sm:$0xff]  ;;  %v13820_v58 = vld [vmem:[#allocation95_spill] sm:$0xff] }
 0x7dd   :  { %4548 = vmatprep.subr.mxu0 %v13778_v57  ;;  %4619 = vmatprep.subr.mxu1 %v13779_v38  ;;  %v4876_v57 = vld [vmem:[#allocation18 + $0x1c0] sm:$0xff]  ;;  %v4878_v38 = vld [vmem:[#allocation18 + $0x1d0] sm:$0xff]  ;;  %v4855_v35 = vld [vmem:[#allocation18 + $0x118] sm:$0xff] }
 0x7de   :  { %4549 = vmatpush1.msra.mxu0 %v13780_v27  ;;  %4620 = vmatpush1.msra.mxu1 %v13781_v49  ;;  %v4873_v27 = vld [vmem:[#allocation18 + $0x1a8] sm:$0xff]  ;;  %v4875_v49 = vld [vmem:[#allocation18 + $0x1b8] sm:$0xff] }
 0x7df   :  { %4550 = vmatprep.subr.mxu0 %v13782_v59  ;;  %4621 = vmatprep.subr.mxu1 %v13783_v42  ;;  %v4872_v59 = vld [vmem:[#allocation18 + $0x1a0] sm:$0xff]  ;;  %v4874_v42 = vld [vmem:[#allocation18 + $0x1b0] sm:$0xff] }
 0x7e0   :  { %4551 = vmatpush1.msra.mxu0 %v13784_v14  ;;  %4622 = vmatpush1.msra.mxu1 %v13785_v26  ;;  %v4869_v14 = vld [vmem:[#allocation18 + $0x188] sm:$0xff]  ;;  %v4871_v26 = vld [vmem:[#allocation18 + $0x198] sm:$0xff] }
 0x7e1   :  { %4552 = vmatprep.subr.mxu0 %v13786_v31  ;;  %4623 = vmatprep.subr.mxu1 %v13787_v10  ;;  %v4868_v31 = vld [vmem:[#allocation18 + $0x180] sm:$0xff]  ;;  %v4870_v10 = vld [vmem:[#allocation18 + $0x190] sm:$0xff] }
 0x7e2   :  { %4553 = vmatpush1.msra.mxu0 %v13788_v34  ;;  %4624 = vmatpush1.msra.mxu1 %v13789_v24  ;;  %v4865_v34 = vld [vmem:[#allocation18 + $0x168] sm:$0xff]  ;;  %v4867_v24 = vld [vmem:[#allocation18 + $0x178] sm:$0xff] }
 0x7e3   :  { %4554 = vmatprep.subr.mxu0 %v13790_v11  ;;  %4625 = vmatprep.subr.mxu1 %v13791_v23  ;;  %v4866_v11 = vld [vmem:[#allocation18 + $0x170] sm:$0xff]  ;;  %v4861_v23 = vld [vmem:[#allocation18 + $0x148] sm:$0xff] }
 0x7e4   :  { %4555 = vmatpush1.msra.mxu0 %v13792_v37  ;;  %4626 = vmatpush1.msra.mxu1 %v13793_v28  ;;  %v4860_v37 = vld [vmem:[#allocation18 + $0x140] sm:$0xff]  ;;  %v4862_v28 = vld [vmem:[#allocation18 + $0x150] sm:$0xff] }
 0x7e5   :  { %v8376_v43 = vpop.eup %8375  ;;  %4556 = vmatprep.subr.mxu0 %v13794_v3  ;;  %4627 = vmatprep.subr.mxu1 %v13795_v52  ;;  %v4859_v3 = vld [vmem:[#allocation18 + $0x138] sm:$0xff]  ;;  %v4856_v52 = vld [vmem:[#allocation18 + $0x120] sm:$0xff] }
 0x7e6   :  { %v4256_v22 = vmul.f32 %v8376_v43, %v8372_v33  ;;  %4557 = vmatpush1.msra.mxu0 %v11290_v20  ;;  %4628 = vmatpush1.msra.mxu1 %v13796_v25  ;;  %v13801_v20 = vld [vmem:[#allocation132_spill] sm:$0xff]  ;;  %v4857_v43 = vld [vmem:[#allocation18 + $0x128] sm:$0xff] }
 0x7e7   :  { %v8378_v17 = vpop.eup %8377  ;;  %4558 = vmatprep.subr.mxu0 %v13797_v36  ;;  %4629 = vmatprep.subr.mxu1 %v13798_v55  ;;  %v4864_v33 = vld [vmem:[#allocation18 + $0x160] sm:$0xff]  ;;  %v4853_v25 = vld [vmem:[#allocation18 + $0x108] sm:$0xff]  ;;  %v4854_v55 = vld [vmem:[#allocation18 + $0x110] sm:$0xff] }
 0x7e8   :  { %v4255_v50 = vmul.f32 %v8378_v17, %v11331_v29  ;;  %4559 = vmatpush1.msra.mxu0 %v11302_v15  ;;  %4630 = vmatpush1.msra.mxu1 %v11304_v1  ;;  %v13803_v29 = vld [vmem:[#allocation78_spill] sm:$0xff]  ;;  %v13804_v15 = vld [vmem:[#allocation79_spill] sm:$0xff]  ;;  %v13805_v1 = vld [vmem:[#allocation80_spill] sm:$0xff] }
 0x7e9   :  { %4560 = vmatprep.subr.mxu0 %v13799_v53  ;;  %4631 = vmatprep.subr.mxu1 %v13800_v46  ;;  %v8380_v60 = vpop.eup %8379  ;;  %v4852_v17 = vld [vmem:[#allocation18 + $0x100] sm:$0xff]  ;;  %v4849_v36 = vld [vmem:[#allocation18 + $0xe8] sm:$0xff]  ;;  %v4851_v53 = vld [vmem:[#allocation18 + $0xf8] sm:$0xff] }
 0x7ea   :  { %v11535_v30 = vadd.f32 %v4256_v22, %v4255_v50  ;;  %4561 = vmatpush1.msra.mxu0 %v11314_v47  ;;  %4632 = vmatpush1.msra.mxu1 %v11316_v48  ;;  %v13808_v47 = vld [vmem:[#allocation83_spill] sm:$0xff]  ;;  %v13809_v48 = vld [vmem:[#allocation84_spill] sm:$0xff]  ;;  %v4858_v22 = vld [vmem:[#allocation18 + $0x130] sm:$0xff] }
 0x7eb   :  { %4562 = vmatprep.subr.mxu0 %v13801_v20  ;;  %4633 = vmatprep.subr.mxu1 %v13802_v56  ;;  %v4848_v50 = vld [vmem:[#allocation18 + $0xe0] sm:$0xff]  ;;  %v4845_v46 = vld [vmem:[#allocation18 + $0xc8] sm:$0xff]  ;;  %v4850_v20 = vld [vmem:[#allocation18 + $0xf0] sm:$0xff] }
 0x7ec   :  { %4563 = vmatpush1.msra.mxu0 %v13803_v29  ;;  %4634 = vmatpush1.msra.mxu1 %v13804_v15  ;;  %8381 = vtanh.f32 %v11535_v30  ;;  %v4844_v56 = vld [vmem:[#allocation18 + $0xc0] sm:$0xff]  ;;  %v4847_v29 = vld [vmem:[#allocation18 + $0xd8] sm:$0xff]  ;;  %v4841_v15 = vld [vmem:[#allocation18 + $0xa8] sm:$0xff] }
 0x7ed   :  { %4564 = vmatprep.subr.mxu0 %v13805_v1  ;;  %4635 = vmatprep.subr.mxu1 %v13806_v61  ;;  %v4846_v1 = vld [vmem:[#allocation18 + $0xd0] sm:$0xff]  ;;  %v4843_v61 = vld [vmem:[#allocation18 + $0xb8] sm:$0xff] }
 0x7ee   :  { %4565 = vmatpush1.msra.mxu0 %v13807_v16  ;;  %4636 = vmatpush1.msra.mxu1 %v13808_v47  ;;  %v4840_v16 = vld [vmem:[#allocation18 + $0xa0] sm:$0xff]  ;;  %v4842_v47 = vld [vmem:[#allocation18 + $0xb0] sm:$0xff] }
 0x7ef   :  { %4566 = vmatprep.subr.mxu0 %v13809_v48  ;;  %4637 = vmatprep.subr.mxu1 %v13810_v7  ;;  %v4837_v48 = vld [vmem:[#allocation18 + $0x88] sm:$0xff]  ;;  %v4839_v7 = vld [vmem:[#allocation18 + $0x98] sm:$0xff] }
 0x7f0   :  { %4567 = vmatpush1.msra.mxu0 %v13811_v21  ;;  %4638 = vmatpush1.msra.mxu1 %v13812_v44  ;;  %v4836_v21 = vld [vmem:[#allocation18 + $0x80] sm:$0xff]  ;;  %v4838_v44 = vld [vmem:[#allocation18 + $0x90] sm:$0xff] }
 0x7f1   :  { %4568 = vmatprep.subr.mxu0 %v13813_v62  ;;  %4639 = vmatprep.subr.mxu1 %v13814_v40  ;;  %v4833_v62 = vld [vmem:[#allocation18 + $0x68] sm:$0xff]  ;;  %v4835_v40 = vld [vmem:[#allocation18 + $0x78] sm:$0xff] }
 0x7f2   :  { %4569 = vmatpush1.msra.mxu0 %v13815_v41  ;;  %4640 = vmatpush1.msra.mxu1 %v13816_v19  ;;  %v4832_v41 = vld [vmem:[#allocation18 + $0x60] sm:$0xff]  ;;  %v4834_v19 = vld [vmem:[#allocation18 + $0x70] sm:$0xff] }
 0x7f3   :  { %4570 = vmatprep.subr.mxu0 %v11372_v54  ;;  %4641 = vmatprep.subr.mxu1 %v13817_v4  ;;  %v4829_v4 = vld [vmem:[#allocation18 + $0x48] sm:$0xff] }
 0x7f4   :  { %4571 = vmatpush1.msra.mxu0 %v11378_v63  ;;  %4642 = vmatpush1.msra.mxu1 %v13818_v8  ;;  %v4831_v8 = vld [vmem:[#allocation18 + $0x58] sm:$0xff] }
 0x7f5   :  { %4572 = vmatprep.subr.mxu0 %v13819_v6  ;;  %4643 = vmatprep.subr.mxu1 %v13820_v58  ;;  %v4828_v6 = vld [vmem:[#allocation18 + $0x40] sm:$0xff]  ;;  %v4830_v58 = vld [vmem:[#allocation18 + $0x50] sm:$0xff] }
 0x7f6   :  { %4573 = vmatpush1.msra.mxu0 %v11390_v51  ;;  %4644 = vmatpush1.msra.mxu1 %v11392_v18  ;;  %v4881_v51 = vld [vmem:[#allocation18 + $0x1e8] sm:$0xff]  ;;  %v4882_v18 = vld [vmem:[#allocation18 + $0x1f0] sm:$0xff] }
 0x7f7   :  { %4574 = vmatprep.subr.mxu0 %v11396_v39  ;;  %4645 = vmatprep.subr.mxu1 %v11398_v13  ;;  %v4883_v39 = vld [vmem:[#allocation18 + $0x1f8] sm:$0xff]  ;;  %v4880_v13 = vld [vmem:[#allocation18 + $0x1e0] sm:$0xff] }
 0x7f8   :  { %4575 = vmatpush1.msra.mxu0 %v11402_v9  ;;  %4608 = vmatprep.mubr.f32.mxu0 %v13173_v5  ;;  %v4879_v9 = vld [vmem:[#allocation18 + $0x1d8] sm:$0xff] }
 0x7f9   :  { %v8382_v63 = vpop.eup %8381  ;;  %4646 = vmatpush1.msra.mxu1 %v11406_v12  ;;  %4679 = vmatprep.mubr.f32.mxu1 %v13173_v5  ;;  %v4877_v12 = vld [vmem:[#allocation18 + $0x1c8] sm:$0xff] }
 0x7fa   :  { %v11570_v54 = vmul.f32 %v8382_v63, %v8380_v60  ;;  %4884 = vmatprep.subr.mxu0 %v4881_v51  ;;  %4997 = vmatprep.subr.mxu1 %v4883_v39  ;;  %v4825_v60 = vld [vmem:[#allocation18 + $0x28] sm:$0xff]  ;;  %v4827_v63 = vld [vmem:[#allocation18 + $0x38] sm:$0xff]  ;;  %v4824_v51 = vld [vmem:[#allocation18 + $0x20] sm:$0xff] }
 0x7fb   :  { %v4826_v39 = vld [vmem:[#allocation18 + $0x30] sm:$0xff] }
 0x7fc   :  { %4609 = vmatmul.mubr.f32.vlgmr.msra.gmra.mxu0 %v11570_v54  ;;  %4680 = vmatmul.mubr.f32.vlgmr.msra.gmra.mxu1 %v11570_v54 }
 0x7fd   :  { %4948 = vmatprep.mubr.f32.mxu0 %v13173_v5  ;;  %5061 = vmatprep.mubr.f32.mxu1 %v13173_v5 }
 0x7fe   :  { %4885 = vmatpush1.msra.mxu0 %v4880_v13  ;;  %4998 = vmatpush1.msra.mxu1 %v4882_v18  ;;  %v4821_v13 = vld [vmem:[#allocation18 + $0x8] sm:$0xff]  ;;  %v4823_v18 = vld [vmem:[#allocation18 + $0x18] sm:$0xff] }
 0x7ff   :  { %4886 = vmatprep.subr.mxu0 %v4877_v12  ;;  %4999 = vmatprep.subr.mxu1 %v4879_v9  ;;  %v4820_v12 = vld [vmem:[#allocation18] sm:$0xff]  ;;  %v4822_v9 = vld [vmem:[#allocation18 + $0x10] sm:$0xff] }
 0x800   :  { %4887 = vmatpush1.msra.mxu0 %v4876_v57  ;;  %5000 = vmatpush1.msra.mxu1 %v4878_v38  ;;  %v4809_v57 = vld [vmem:[#allocation17 + $0x1e8] sm:$0xff]  ;;  %v4811_v38 = vld [vmem:[#allocation17 + $0x1f8] sm:$0xff] }
 0x801   :  { %4888 = vmatprep.subr.mxu0 %v4873_v27  ;;  %5001 = vmatprep.subr.mxu1 %v4875_v49 }
 0x802   :  { %4889 = vmatpush1.msra.mxu0 %v4872_v59  ;;  %5002 = vmatpush1.msra.mxu1 %v4874_v42  ;;  %v13821_v59 = vld [vmem:[#allocation107_spill] sm:$0xff] }
 0x803   :  { %4890 = vmatprep.subr.mxu0 %v4869_v14  ;;  %5003 = vmatprep.subr.mxu1 %v4871_v26  ;;  %v13822_v14 = vld [vmem:[#allocation108_spill] sm:$0xff] }
 0x804   :  { %4891 = vmatpush1.msra.mxu0 %v4868_v31  ;;  %5004 = vmatpush1.msra.mxu1 %v4870_v10 }
 0x805   :  { %4892 = vmatprep.subr.mxu0 %v4865_v34  ;;  %5005 = vmatprep.subr.mxu1 %v4867_v24  ;;  %v13823_v24 = vld [vmem:[#allocation109_spill] sm:$0xff] }
 0x806   :  { %4893 = vmatpush1.msra.mxu0 %v4864_v33  ;;  %5006 = vmatpush1.msra.mxu1 %v4866_v11  ;;  %v13824_v11 = vld [vmem:[#allocation110_spill] sm:$0xff] }
 0x807   :  { %4894 = vmatprep.subr.mxu0 %v4861_v23  ;;  %5007 = vmatprep.subr.mxu1 %v4863_v0 }
 0x808   :  { %4895 = vmatpush1.msra.mxu0 %v4860_v37  ;;  %5008 = vmatpush1.msra.mxu1 %v4862_v28 }
 0x809   :  { %4896 = vmatprep.subr.mxu0 %v4857_v43  ;;  %5009 = vmatprep.subr.mxu1 %v4859_v3 }
 0x80a   :  { %4897 = vmatpush1.msra.mxu0 %v4856_v52  ;;  %5010 = vmatpush1.msra.mxu1 %v4858_v22 }
 0x80b   :  { %4898 = vmatprep.subr.mxu0 %v4853_v25  ;;  %5011 = vmatprep.subr.mxu1 %v4855_v35 }
 0x80c   :  { %4899 = vmatpush1.msra.mxu0 %v4852_v17  ;;  %5012 = vmatpush1.msra.mxu1 %v4854_v55 }
 0x80d   :  { %4900 = vmatprep.subr.mxu0 %v4849_v36  ;;  %5013 = vmatprep.subr.mxu1 %v4851_v53  ;;  %v13825_v53 = vld [vmem:[#allocation111_spill] sm:$0xff] }
 0x80e   :  { %4901 = vmatpush1.msra.mxu0 %v4848_v50  ;;  %5014 = vmatpush1.msra.mxu1 %v4850_v20 }
 0x80f   :  { %4902 = vmatprep.subr.mxu0 %v4845_v46  ;;  %5015 = vmatprep.subr.mxu1 %v4847_v29 }
 0x810   :  { %4903 = vmatpush1.msra.mxu0 %v4844_v56  ;;  %5016 = vmatpush1.msra.mxu1 %v4846_v1 }
 0x811   :  { %4904 = vmatprep.subr.mxu0 %v4841_v15  ;;  %5017 = vmatprep.subr.mxu1 %v4843_v61  ;;  %v13826_v15 = vld [vmem:[#allocation113_spill] sm:$0xff] }
 0x812   :  { %4905 = vmatpush1.msra.mxu0 %v4840_v16  ;;  %5018 = vmatpush1.msra.mxu1 %v4842_v47 }
 0x813   :  { %4906 = vmatprep.subr.mxu0 %v4837_v48  ;;  %5019 = vmatprep.subr.mxu1 %v4839_v7  ;;  %v13827_v7 = vld [vmem:[#allocation114_spill] sm:$0xff] }
 0x814   :  { %4907 = vmatpush1.msra.mxu0 %v4836_v21  ;;  %5020 = vmatpush1.msra.mxu1 %v4838_v44  ;;  %v13828_v44 = vld [vmem:[#allocation112_spill] sm:$0xff] }
 0x815   :  { %4908 = vmatprep.subr.mxu0 %v4833_v62  ;;  %5021 = vmatprep.subr.mxu1 %v4835_v40 }
 0x816   :  { %4909 = vmatpush1.msra.mxu0 %v4832_v41  ;;  %5022 = vmatpush1.msra.mxu1 %v4834_v19 }
 0x817   :  { %4910 = vmatprep.subr.mxu0 %v4829_v4  ;;  %5023 = vmatprep.subr.mxu1 %v4831_v8 }
 0x818   :  { %4911 = vmatpush1.msra.mxu0 %v4828_v6  ;;  %5024 = vmatpush1.msra.mxu1 %v4830_v58 }
 0x819   :  { %4912 = vmatprep.subr.mxu0 %v4825_v60  ;;  %5025 = vmatprep.subr.mxu1 %v4827_v63 }
 0x81a   :  { %4913 = vmatpush1.msra.mxu0 %v4824_v51  ;;  %5026 = vmatpush1.msra.mxu1 %v4826_v39 }
 0x81b   :  { %4914 = vmatprep.subr.mxu0 %v4821_v13  ;;  %5027 = vmatprep.subr.mxu1 %v4823_v18 }
 0x81c   :  { %4915 = vmatpush1.msra.mxu0 %v4820_v12  ;;  %5028 = vmatpush1.msra.mxu1 %v4822_v9 }
 0x81d   :  { %5110 = vmatprep.subr.mxu0 %v4809_v57  ;;  %5223 = vmatprep.subr.mxu1 %v4811_v38 }
 0x899   :  { %v4396_v27 = vpop.f32.mrf.mxu0  ;;  %v4467_v49 = vpop.f32.mrf.mxu1 }
 0x89a   :  { %v4472_v42 = vadd.f32 %v4396_v27, %v13821_v59  ;;  %v4474_v26 = vadd.f32 %v4467_v49, %v13822_v14  ;;  %v4808_v49 = vld [vmem:[#allocation17 + $0x1e0] sm:$0xff]  ;;  %v4810_v59 = vld [vmem:[#allocation17 + $0x1f0] sm:$0xff]  ;;  %v4807_v14 = vld [vmem:[#allocation17 + $0x1d8] sm:$0xff] }
 0x89b   :  { %v4398_v31 = vpop.f32.mrf.mxu0  ;;  %v4469_v10 = vpop.f32.mrf.mxu1 }
 0x89c   :  { %v7927_v34 = vmul.f32 -1.442695, %v4472_v42  ;;  %v4473_v33 = vadd.f32 %v4398_v31, %v13823_v24  ;;  %v4475_v23 = vadd.f32 %v4469_v10, %v13824_v11  ;;  %v4805_v42 = vld [vmem:[#allocation17 + $0x1c8] sm:$0xff]  ;;  %v4806_v10 = vld [vmem:[#allocation17 + $0x1d0] sm:$0xff]  ;;  %v4796_v11 = vld [vmem:[#allocation17 + $0x180] sm:$0xff] }
 0x89d   :  { %v4801_v31 = vld [vmem:[#allocation17 + $0x1a8] sm:$0xff] }
 0x89e   :  { %8383 = vpow2.f32 %v7927_v34  ;;  %v7928_v0 = vmul.f32 -1.442695, %v4473_v33  ;;  %v7929_v37 = vmul.f32 -1.442695, %v4475_v23  ;;  %v4803_v34 = vld [vmem:[#allocation17 + $0x1b8] sm:$0xff]  ;;  %v4797_v24 = vld [vmem:[#allocation17 + $0x188] sm:$0xff] }
 0x89f   :  { %v4802_v33 = vld [vmem:[#allocation17 + $0x1b0] sm:$0xff]  ;;  %v4799_v23 = vld [vmem:[#allocation17 + $0x198] sm:$0xff] }
 0x8a0   :  { %8385 = vpow2.f32 %v7928_v0  ;;  %v4793_v0 = vld [vmem:[#allocation17 + $0x168] sm:$0xff] }
 0x8a1   :  { %8387 = vpow2.f32 %v7929_v37  ;;  %v4798_v37 = vld [vmem:[#allocation17 + $0x190] sm:$0xff] }
 0x8a2   :  { %8389 = vtanh.f32 %v4474_v26  ;;  %v4804_v26 = vld [vmem:[#allocation17 + $0x1c0] sm:$0xff] }
 0x8ab   :  { %v8384_v28 = vpop.eup %8383 }
 0x8ac   :  { %v4693_v43 = vadd.f32 1.0, %v8384_v28  ;;  %v4792_v28 = vld [vmem:[#allocation17 + $0x160] sm:$0xff] }
 0x8ad   :  { %v8386_v3 = vpop.eup %8385 }
 0x8ae   :  { %8391 = vrcp.f32 %v4693_v43  ;;  %v4699_v52 = vadd.f32 1.0, %v8386_v3  ;;  %v8388_v22 = vpop.eup %8387  ;;  %v4795_v43 = vld [vmem:[#allocation17 + $0x178] sm:$0xff]  ;;  %v4789_v3 = vld [vmem:[#allocation17 + $0x148] sm:$0xff] }
 0x8af   :  { %v8390_v25 = vpop.eup %8389  ;;  %v4706_v36 = vadd.f32 1.0, %v8388_v22  ;;  %v4791_v22 = vld [vmem:[#allocation17 + $0x158] sm:$0xff] }
 0x8b0   :  { %8393 = vrcp.f32 %v4699_v52  ;;  %v4788_v52 = vld [vmem:[#allocation17 + $0x140] sm:$0xff] }
 0x8b1   :  { %8395 = vrcp.f32 %v4706_v36  ;;  %v4787_v36 = vld [vmem:[#allocation17 + $0x138] sm:$0xff] }
 0x8bb   :  { %v8392_v17 = vpop.eup %8391 }
 0x8bc   :  { %v4710_v35 = vmul.f32 %v8392_v17, %v8390_v25  ;;  %v4610_v55 = vpop.f32.mrf.mxu0  ;;  %v4681_v16 = vpop.f32.mrf.mxu1  ;;  %v4785_v25 = vld [vmem:[#allocation17 + $0x128] sm:$0xff]  ;;  %v4790_v17 = vld [vmem:[#allocation17 + $0x150] sm:$0xff] }
 0x8bd   :  { %v8394_v50 = vpop.eup %8393  ;;  %v4686_v46 = vadd.f32 %v4610_v55, %v13825_v53  ;;  %v4688_v62 = vadd.f32 %v4681_v16, %v13828_v44  ;;  %v4781_v55 = vld [vmem:[#allocation17 + $0x108] sm:$0xff]  ;;  %v4780_v53 = vld [vmem:[#allocation17 + $0x100] sm:$0xff]  ;;  %v4778_v16 = vld [vmem:[#allocation17 + $0xf0] sm:$0xff] }
 0x8be   :  { %v4709_v20 = vmul.f32 %v8394_v50, %v11493_v45  ;;  %v4612_v56 = vpop.f32.mrf.mxu0  ;;  %v4683_v48 = vpop.f32.mrf.mxu1  ;;  %v13829_v50 = vld [vmem:[#allocation155_spill] sm:$0xff]  ;;  %v4768_v44 = vld [vmem:[#allocation17 + $0xa0] sm:$0xff] }
 0x8bf   :  { %v7930_v29 = vmul.f32 -1.442695, %v4686_v46  ;;  %v4687_v1 = vadd.f32 %v4612_v56, %v13826_v15  ;;  %v4689_v21 = vadd.f32 %v4683_v48, %v13827_v7  ;;  %v8396_v41 = vpop.eup %8395  ;;  %v4783_v46 = vld [vmem:[#allocation17 + $0x118] sm:$0xff]  ;;  %v4782_v56 = vld [vmem:[#allocation17 + $0x110] sm:$0xff]  ;;  %v4769_v7 = vld [vmem:[#allocation17 + $0xa8] sm:$0xff] }
 0x8c0   :  { %v4711_v61 = vadd.f32 %v4710_v35, %v4709_v20  ;;  %v4784_v35 = vld [vmem:[#allocation17 + $0x120] sm:$0xff]  ;;  %v4777_v20 = vld [vmem:[#allocation17 + $0xe8] sm:$0xff]  ;;  %v4779_v15 = vld [vmem:[#allocation17 + $0xf8] sm:$0xff] }
 0x8c1   :  { %8397 = vpow2.f32 %v7930_v29  ;;  %v7931_v47 = vmul.f32 -1.442695, %v4687_v1  ;;  %v7932_v40 = vmul.f32 -1.442695, %v4689_v21  ;;  %v4776_v29 = vld [vmem:[#allocation17 + $0xe0] sm:$0xff]  ;;  %v4773_v1 = vld [vmem:[#allocation17 + $0xc8] sm:$0xff] }
 0x8c2   :  { %8399 = vtanh.f32 %v4711_v61  ;;  %v13830_v61 = vld [vmem:[#allocation153_spill] sm:$0xff]  ;;  %v4775_v48 = vld [vmem:[#allocation17 + $0xd8] sm:$0xff]  ;;  %v4774_v21 = vld [vmem:[#allocation17 + $0xd0] sm:$0xff] }
 0x8c3   :  { %8401 = vpow2.f32 %v7931_v47  ;;  %v4772_v47 = vld [vmem:[#allocation17 + $0xc0] sm:$0xff] }
 0x8c4   :  { %8403 = vtanh.f32 %v4688_v62  ;;  %v4771_v62 = vld [vmem:[#allocation17 + $0xb8] sm:$0xff] }
 0x8c5   :  { %8405 = vpow2.f32 %v7932_v40  ;;  %v4765_v40 = vld [vmem:[#allocation17 + $0x88] sm:$0xff] }
 0x8ce   :  { %v8398_v19 = vpop.eup %8397 }
 0x8cf   :  { %v8400_v45 = vpop.eup %8399  ;;  %v4717_v4 = vadd.f32 1.0, %v8398_v19  ;;  %v4770_v19 = vld [vmem:[#allocation17 + $0xb0] sm:$0xff] }
 0x8d0   :  { %v8402_v8 = vpop.eup %8401  ;;  %v11585_v6 = vmul.f32 %v8400_v45, %v8396_v41  ;;  %v13831_v41 = vld [vmem:[#allocation48_spill] sm:$0xff] }
 0x8d1   :  { %8407 = vrcp.f32 %v4717_v4  ;;  %v4723_v58 = vadd.f32 1.0, %v8402_v8  ;;  %v8404_v60 = vpop.eup %8403  ;;  %v4764_v45 = vld [vmem:[#allocation17 + $0x80] sm:$0xff]  ;;  %v4767_v4 = vld [vmem:[#allocation17 + $0x98] sm:$0xff]  ;;  %v4761_v8 = vld [vmem:[#allocation17 + $0x68] sm:$0xff] }
 0x8d2   :  { %v8406_v63 = vpop.eup %8405 }
 0x8d3   :  { %8409 = vrcp.f32 %v4723_v58  ;;  %v4730_v18 = vadd.f32 1.0, %v8406_v63  ;;  %v4766_v58 = vld [vmem:[#allocation17 + $0x90] sm:$0xff]  ;;  %v4763_v63 = vld [vmem:[#allocation17 + $0x78] sm:$0xff] }
 0x8d5   :  { %8411 = vrcp.f32 %v4730_v18  ;;  %v4756_v18 = vld [vmem:[#allocation17 + $0x40] sm:$0xff] }
 0x8de   :  { %v8408_v51 = vpop.eup %8407 }
 0x8df   :  { %v4734_v39 = vmul.f32 %v8408_v51, %v8404_v60  ;;  %v4760_v60 = vld [vmem:[#allocation17 + $0x60] sm:$0xff]  ;;  %v4757_v51 = vld [vmem:[#allocation17 + $0x48] sm:$0xff] }
 0x8e0   :  { %v8410_v13 = vpop.eup %8409 }
 0x8e1   :  { %v4733_v12 = vmul.f32 %v8410_v13, %v11535_v30  ;;  %v4800_v30 = vld [vmem:[#allocation17 + $0x1a0] sm:$0xff]  ;;  %v4762_v13 = vld [vmem:[#allocation17 + $0x70] sm:$0xff] }
 0x8e2   :  { %v8412_v57 = vpop.eup %8411 }
 0x8e3   :  { %v4735_v9 = vadd.f32 %v4734_v39, %v4733_v12  ;;  %v13832_v39 = vld [vmem:[#allocation158_spill] sm:$0xff]  ;;  %v4759_v12 = vld [vmem:[#allocation17 + $0x58] sm:$0xff] }
 0x8e5   :  { %8413 = vtanh.f32 %v4735_v9  ;;  %v4753_v9 = vld [vmem:[#allocation17 + $0x28] sm:$0xff] }
 0x8f2   :  { %v8414_v38 = vpop.eup %8413 }
 0x8f3   :  { %v4737_v27 = vmul.f32 %v8414_v38, %v8412_v57  ;;  %v4758_v57 = vld [vmem:[#allocation17 + $0x50] sm:$0xff]  ;;  %v4752_v38 = vld [vmem:[#allocation17 + $0x20] sm:$0xff] }
 0x8f5   :  { %4949 = vmatmul.mubr.f32.vlgmr.msra.gmra.mxu0 %v4737_v27  ;;  %5062 = vmatmul.mubr.f32.vlgmr.msra.gmra.mxu1 %v4737_v27  ;;  %v4755_v27 = vld [vmem:[#allocation17 + $0x38] sm:$0xff] }
 0x8f6   :  { %5111 = vmatpush1.msra.mxu0 %v4808_v49  ;;  %5224 = vmatpush1.msra.mxu1 %v4810_v59  ;;  %v4749_v49 = vld [vmem:[#allocation17 + $0x8] sm:$0xff]  ;;  %v13833_v59 = vld [vmem:[#allocation46_spill] sm:$0xff] }
 0x8f7   :  { %5112 = vmatprep.subr.mxu0 %v4805_v42  ;;  %5225 = vmatprep.subr.mxu1 %v4807_v14  ;;  %v4754_v42 = vld [vmem:[#allocation17 + $0x30] sm:$0xff]  ;;  %v4748_v14 = vld [vmem:[#allocation17] sm:$0xff] }
 0x8f8   :  { %5113 = vmatpush1.msra.mxu0 %v4804_v26  ;;  %4954 = vmatprep.mubr.f32.mxu0 %v13173_v5  ;;  %v4751_v26 = vld [vmem:[#allocation17 + $0x18] sm:$0xff] }
 0x8f9   :  { %5067 = vmatprep.mubr.f32.mxu1 %v13173_v5  ;;  %5114 = vmatprep.subr.mxu0 %v4801_v31  ;;  %v4750_v31 = vld [vmem:[#allocation17 + $0x10] sm:$0xff] }
 0x8fa   :  { %5226 = vmatpush1.msra.mxu1 %v4806_v10  ;;  %4955 = vmatmul.mubr.f32.gmra.mxu0 %v11570_v54  ;;  %v11616_v10 = vld [vmem:[#allocation20 + $0x1e8] sm:$0xff] }
 0x8fb   :  { %5068 = vmatmul.mubr.f32.gmra.mxu1 %v11570_v54  ;;  %5115 = vmatpush1.msra.mxu0 %v4800_v30  ;;  %v4794_v54 = vld [vmem:[#allocation17 + $0x170] sm:$0xff]  ;;  %v11619_v30 = vld [vmem:[#allocation20 + $0x1e0] sm:$0xff] }
 0x8fc   :  { %5227 = vmatprep.subr.mxu1 %v4803_v34  ;;  %5116 = vmatprep.subr.mxu0 %v4797_v24  ;;  %v11622_v34 = vld [vmem:[#allocation20 + $0x1f8] sm:$0xff]  ;;  %v11624_v24 = vld [vmem:[#allocation20 + $0x1c8] sm:$0xff] }
 0x8fd   :  { %5228 = vmatpush1.msra.mxu1 %v4802_v33  ;;  %5117 = vmatpush1.msra.mxu0 %v4796_v11  ;;  %v13834_v33 = vld [vmem:[#allocation135_spill] sm:$0xff]  ;;  %v11628_v11 = vld [vmem:[#allocation20 + $0x1f0] sm:$0xff] }
 0x8fe   :  { %5229 = vmatprep.subr.mxu1 %v4799_v23  ;;  %4960 = vmatprep.mubr.f32.mxu0 %v13173_v5  ;;  %v11630_v23 = vld [vmem:[#allocation20 + $0x1c0] sm:$0xff] }
 0x8ff   :  { %5073 = vmatprep.mubr.f32.mxu1 %v13173_v5  ;;  %5118 = vmatprep.subr.mxu0 %v4793_v0  ;;  %v11634_v0 = vld [vmem:[#allocation20 + $0x1d8] sm:$0xff] }
 0x900   :  { %5230 = vmatpush1.msra.mxu1 %v4798_v37  ;;  %4961 = vmatmul.mubr.f32.gmra.mxu0 %v11414_v32  ;;  %v11638_v37 = vld [vmem:[#allocation20 + $0x1a8] sm:$0xff] }
 0x901   :  { %5074 = vmatmul.mubr.f32.gmra.mxu1 %v11414_v32  ;;  %5119 = vmatpush1.msra.mxu0 %v4792_v28  ;;  %v4786_v32 = vld [vmem:[#allocation17 + $0x130] sm:$0xff] }
 0x902   :  { %5231 = vmatprep.subr.mxu1 %v4795_v43  ;;  %5120 = vmatprep.subr.mxu0 %v4789_v3  ;;  %v11642_v28 = vld [vmem:[#allocation20 + $0x1d0] sm:$0xff]  ;;  %v11646_v43 = vld [vmem:[#allocation20 + $0x1a0] sm:$0xff]  ;;  %v11650_v3 = vld [vmem:[#allocation20 + $0x1b8] sm:$0xff] }
 0x903   :  { %5232 = vmatpush1.msra.mxu1 %v4794_v54  ;;  %5121 = vmatpush1.msra.mxu0 %v4788_v52  ;;  %v11652_v54 = vld [vmem:[#allocation20 + $0x188] sm:$0xff]  ;;  %v13835_v52 = vld [vmem:[#allocation76_spill] sm:$0xff] }
 0x904   :  { %5233 = vmatprep.subr.mxu1 %v4791_v22  ;;  %4966 = vmatprep.mubr.f32.mxu0 %v13173_v5  ;;  %v11656_v22 = vld [vmem:[#allocation20 + $0x1b0] sm:$0xff] }
 0x905   :  { %5079 = vmatprep.mubr.f32.mxu1 %v13173_v5  ;;  %5122 = vmatprep.subr.mxu0 %v4785_v25  ;;  %v11658_v25 = vld [vmem:[#allocation20 + $0x180] sm:$0xff] }
 0x906   :  { %5234 = vmatpush1.msra.mxu1 %v4790_v17  ;;  %4967 = vmatmul.mubr.f32.gmra.mxu0 %v13829_v50  ;;  %13836 = vst [vmem:[#allocation96_spill] sm:$0xff] %v11658_v25  ;;  %v11662_v17 = vld [vmem:[#allocation20 + $0x198] sm:$0xff] }
 0x907   :  { %5080 = vmatmul.mubr.f32.gmra.mxu1 %v13829_v50  ;;  %5123 = vmatpush1.msra.mxu0 %v4784_v35  ;;  %13837 = vst [vmem:[#allocation136_spill] sm:$0xff] %v11662_v17  ;;  %v11666_v35 = vld [vmem:[#allocation20 + $0x168] sm:$0xff]  ;;  %v11678_v50 = vld [vmem:[#allocation20 + $0x178] sm:$0xff] }
 0x908   :  { %5235 = vmatprep.subr.mxu1 %v4787_v36  ;;  %5124 = vmatprep.subr.mxu0 %v4781_v55  ;;  %13838 = vst [vmem:[#allocation137_spill] sm:$0xff] %v11666_v35  ;;  %v11670_v36 = vld [vmem:[#allocation20 + $0x190] sm:$0xff]  ;;  %v11674_v55 = vld [vmem:[#allocation20 + $0x160] sm:$0xff]  ;;  %13841 = vst [vmem:[#allocation140_spill] sm:$0xff] %v11678_v50 }
 0x909   :  { %5236 = vmatpush1.msra.mxu1 %v4786_v32  ;;  %5125 = vmatpush1.msra.mxu0 %v4780_v53  ;;  %13839 = vst [vmem:[#allocation138_spill] sm:$0xff] %v11670_v36  ;;  %13840 = vst [vmem:[#allocation139_spill] sm:$0xff] %v11674_v55  ;;  %v11680_v32 = vld [vmem:[#allocation20 + $0x148] sm:$0xff]  ;;  %v13843_v53 = vld [vmem:[#allocation47_spill] sm:$0xff] }
 0x90a   :  { %5237 = vmatprep.subr.mxu1 %v4783_v46  ;;  %4972 = vmatprep.mubr.f32.mxu0 %v13173_v5  ;;  %13842 = vst [vmem:[#allocation141_spill] sm:$0xff] %v11680_v32  ;;  %v11684_v46 = vld [vmem:[#allocation20 + $0x170] sm:$0xff] }
 0x90b   :  { %5085 = vmatprep.mubr.f32.mxu1 %v13173_v5  ;;  %5126 = vmatprep.subr.mxu0 %v4777_v20  ;;  %13844 = vst [vmem:[#allocation142_spill] sm:$0xff] %v11684_v46  ;;  %v11686_v20 = vld [vmem:[#allocation20 + $0x140] sm:$0xff] }
 0x90c   :  { %5238 = vmatpush1.msra.mxu1 %v4782_v56  ;;  %4973 = vmatmul.mubr.f32.gmra.mxu0 %v13830_v61  ;;  %13845 = vst [vmem:[#allocation143_spill] sm:$0xff] %v11686_v20  ;;  %v11690_v56 = vld [vmem:[#allocation20 + $0x158] sm:$0xff] }
 0x90d   :  { %5086 = vmatmul.mubr.f32.gmra.mxu1 %v13830_v61  ;;  %5127 = vmatpush1.msra.mxu0 %v4776_v29  ;;  %13846 = vst [vmem:[#allocation144_spill] sm:$0xff] %v11690_v56  ;;  %v11694_v29 = vld [vmem:[#allocation20 + $0x128] sm:$0xff]  ;;  %v11706_v61 = vld [vmem:[#allocation20 + $0x138] sm:$0xff] }
 0x90e   :  { %5239 = vmatprep.subr.mxu1 %v4779_v15  ;;  %5128 = vmatprep.subr.mxu0 %v4773_v1  ;;  %13847 = vst [vmem:[#allocation145_spill] sm:$0xff] %v11694_v29  ;;  %v11698_v15 = vld [vmem:[#allocation20 + $0x150] sm:$0xff]  ;;  %v11702_v1 = vld [vmem:[#allocation20 + $0x120] sm:$0xff]  ;;  %13850 = vst [vmem:[#allocation148_spill] sm:$0xff] %v11706_v61 }
 0x90f   :  { %5240 = vmatpush1.msra.mxu1 %v4778_v16  ;;  %5129 = vmatpush1.msra.mxu0 %v4772_v47  ;;  %13848 = vst [vmem:[#allocation146_spill] sm:$0xff] %v11698_v15  ;;  %13849 = vst [vmem:[#allocation147_spill] sm:$0xff] %v11702_v1  ;;  %v11708_v16 = vld [vmem:[#allocation20 + $0x108] sm:$0xff]  ;;  %v13852_v47 = vld [vmem:[#allocation74_spill] sm:$0xff] }
 0x910   :  { %5241 = vmatprep.subr.mxu1 %v4775_v48  ;;  %4978 = vmatprep.mubr.f32.mxu0 %v13173_v5  ;;  %13851 = vst [vmem:[#allocation149_spill] sm:$0xff] %v11708_v16  ;;  %v11712_v48 = vld [vmem:[#allocation20 + $0x130] sm:$0xff] }
 0x911   :  { %5091 = vmatprep.mubr.f32.mxu1 %v13173_v5  ;;  %5130 = vmatprep.subr.mxu0 %v4769_v7  ;;  %13853 = vst [vmem:[#allocation150_spill] sm:$0xff] %v11712_v48  ;;  %v11714_v7 = vld [vmem:[#allocation20 + $0x100] sm:$0xff] }
 0x912   :  { %5242 = vmatpush1.msra.mxu1 %v4774_v21  ;;  %4979 = vmatmul.mubr.f32.gmra.mxu0 %v13831_v41  ;;  %13854 = vst [vmem:[#allocation151_spill] sm:$0xff] %v11714_v7  ;;  %v11718_v21 = vld [vmem:[#allocation20 + $0x118] sm:$0xff] }
 0x913   :  { %5092 = vmatmul.mubr.f32.gmra.mxu1 %v13831_v41  ;;  %5131 = vmatpush1.msra.mxu0 %v4768_v44  ;;  %13855 = vst [vmem:[#allocation152_spill] sm:$0xff] %v11718_v21  ;;  %v11722_v44 = vld [vmem:[#allocation20 + $0xe8] sm:$0xff]  ;;  %v11734_v41 = vld [vmem:[#allocation20 + $0xf8] sm:$0xff] }
 0x914   :  { %5243 = vmatprep.subr.mxu1 %v4771_v62  ;;  %5132 = vmatprep.subr.mxu0 %v4765_v40  ;;  %13856 = vst [vmem:[#allocation99_spill] sm:$0xff] %v11722_v44  ;;  %v11726_v62 = vld [vmem:[#allocation20 + $0x110] sm:$0xff]  ;;  %v11730_v40 = vld [vmem:[#allocation20 + $0xe0] sm:$0xff]  ;;  %13859 = vst [vmem:[#allocation100_spill] sm:$0xff] %v11734_v41 }
 0x915   :  { %5244 = vmatpush1.msra.mxu1 %v4770_v19  ;;  %5133 = vmatpush1.msra.mxu0 %v4764_v45  ;;  %13857 = vst [vmem:[#allocation101_spill] sm:$0xff] %v11726_v62  ;;  %13858 = vst [vmem:[#allocation102_spill] sm:$0xff] %v11730_v40  ;;  %v11736_v19 = vld [vmem:[#allocation20 + $0xc8] sm:$0xff]  ;;  %v13861_v45 = vld [vmem:[#allocation154_spill] sm:$0xff] }
 0x916   :  { %5245 = vmatprep.subr.mxu1 %v4767_v4  ;;  %4984 = vmatprep.mubr.f32.mxu0 %v13173_v5  ;;  %13860 = vst [vmem:[#allocation119_spill] sm:$0xff] %v11736_v19  ;;  %v11740_v4 = vld [vmem:[#allocation20 + $0xf0] sm:$0xff] }
 0x917   :  { %5097 = vmatprep.mubr.f32.mxu1 %v13173_v5  ;;  %5134 = vmatprep.subr.mxu0 %v4761_v8  ;;  %13862 = vst [vmem:[#allocation121_spill] sm:$0xff] %v11740_v4  ;;  %v11742_v8 = vld [vmem:[#allocation20 + $0xc0] sm:$0xff] }
 0x918   :  { %5246 = vmatpush1.msra.mxu1 %v4766_v58  ;;  %4985 = vmatmul.mubr.f32.gmra.mxu0 %v13832_v39  ;;  %13863 = vst [vmem:[#allocation122_spill] sm:$0xff] %v11742_v8  ;;  %v11746_v58 = vld [vmem:[#allocation20 + $0xd8] sm:$0xff] }
 0x919   :  { %5098 = vmatmul.mubr.f32.gmra.mxu1 %v13832_v39  ;;  %5135 = vmatpush1.msra.mxu0 %v4760_v60  ;;  %13864 = vst [vmem:[#allocation120_spill] sm:$0xff] %v11746_v58  ;;  %v11750_v60 = vld [vmem:[#allocation20 + $0xa8] sm:$0xff]  ;;  %v11762_v39 = vld [vmem:[#allocation20 + $0xb8] sm:$0xff] }
 0x91a   :  { %5247 = vmatprep.subr.mxu1 %v4763_v63  ;;  %5136 = vmatprep.subr.mxu0 %v4757_v51  ;;  %13865 = vst [vmem:[#allocation156_spill] sm:$0xff] %v11750_v60  ;;  %v11754_v63 = vld [vmem:[#allocation20 + $0xd0] sm:$0xff]  ;;  %v11758_v51 = vld [vmem:[#allocation20 + $0xa0] sm:$0xff]  ;;  %13868 = vst [vmem:[#allocation39_spill] sm:$0xff] %v11762_v39 }
 0x91b   :  { %5248 = vmatpush1.msra.mxu1 %v4762_v13  ;;  %5137 = vmatpush1.msra.mxu0 %v4756_v18  ;;  %13866 = vst [vmem:[#allocation157_spill] sm:$0xff] %v11754_v63  ;;  %13867 = vst [vmem:[#allocation41_spill] sm:$0xff] %v11758_v51  ;;  %v11764_v13 = vld [vmem:[#allocation20 + $0x88] sm:$0xff]  ;;  %v13870_v18 = vld [vmem:[#allocation63_spill] sm:$0xff] }
 0x91c   :  { %5249 = vmatprep.subr.mxu1 %v4759_v12  ;;  %4990 = vmatprep.mubr.f32.mxu0 %v13173_v5  ;;  %13869 = vst [vmem:[#allocation42_spill] sm:$0xff] %v11764_v13  ;;  %v11768_v12 = vld [vmem:[#allocation20 + $0xb0] sm:$0xff] }
 0x91d   :  { %5103 = vmatprep.mubr.f32.mxu1 %v13173_v5  ;;  %5138 = vmatprep.subr.mxu0 %v4753_v9  ;;  %13871 = vst [vmem:[#allocation40_spill] sm:$0xff] %v11768_v12  ;;  %v11770_v9 = vld [vmem:[#allocation20 + $0x80] sm:$0xff] }
 0x91e   :  { %5250 = vmatpush1.msra.mxu1 %v4758_v57  ;;  %4991 = vmatmul.mubr.f32.gmra.mxu0 %v13833_v59  ;;  %13872 = vst [vmem:[#allocation127_spill] sm:$0xff] %v11770_v9  ;;  %v11774_v57 = vld [vmem:[#allocation20 + $0x98] sm:$0xff] }
 0x91f   :  { %5104 = vmatmul.mubr.f32.gmra.mxu1 %v13833_v59  ;;  %5139 = vmatpush1.msra.mxu0 %v4752_v38  ;;  %13873 = vst [vmem:[#allocation129_spill] sm:$0xff] %v11774_v57  ;;  %v11778_v38 = vld [vmem:[#allocation20 + $0x68] sm:$0xff]  ;;  %v11790_v59 = vld [vmem:[#allocation20 + $0x78] sm:$0xff] }
 0x920   :  { %5251 = vmatprep.subr.mxu1 %v4755_v27  ;;  %5140 = vmatprep.subr.mxu0 %v4749_v49  ;;  %13874 = vst [vmem:[#allocation130_spill] sm:$0xff] %v11778_v38  ;;  %v11782_v27 = vld [vmem:[#allocation20 + $0x90] sm:$0xff]  ;;  %v11786_v49 = vld [vmem:[#allocation20 + $0x60] sm:$0xff]  ;;  %13877 = vst [vmem:[#allocation50_spill] sm:$0xff] %v11790_v59 }
 0x921   :  { %5252 = vmatpush1.msra.mxu1 %v4754_v42  ;;  %5141 = vmatpush1.msra.mxu0 %v4748_v14  ;;  %13875 = vst [vmem:[#allocation128_spill] sm:$0xff] %v11782_v27  ;;  %13876 = vst [vmem:[#allocation49_spill] sm:$0xff] %v11786_v49  ;;  %v11792_v42 = vld [vmem:[#allocation20 + $0x48] sm:$0xff]  ;;  %v11796_v14 = vld [vmem:[#allocation20 + $0x70] sm:$0xff] }
 0x922   :  { %5253 = vmatprep.subr.mxu1 %v4751_v26  ;;  %5174 = vmatprep.mubr.f32.mxu0 %v13173_v5  ;;  %13878 = vst [vmem:[#allocation51_spill] sm:$0xff] %v11792_v42  ;;  %13879 = vst [vmem:[#allocation52_spill] sm:$0xff] %v11796_v14  ;;  %v11798_v26 = vld [vmem:[#allocation20 + $0x40] sm:$0xff] }
 0x923   :  { %5254 = vmatpush1.msra.mxu1 %v4750_v31  ;;  %5287 = vmatprep.mubr.f32.mxu1 %v13173_v5  ;;  %13880 = vst [vmem:[#allocation53_spill] sm:$0xff] %v11798_v26  ;;  %v11802_v31 = vld [vmem:[#allocation20 + $0x58] sm:$0xff] }
 0x924   :  { %5490 = vmatprep.subr.mxu0 %v11616_v10  ;;  %5175 = vmatmul.mubr.f32.vlgmr.msra.gmra.mxu0 %v13834_v33  ;;  %13881 = vst [vmem:[#allocation54_spill] sm:$0xff] %v11802_v31 }
 0x925   :  { %5288 = vmatmul.mubr.f32.vlgmr.msra.gmra.mxu1 %v13834_v33  ;;  %5491 = vmatpush1.msra.mxu0 %v11619_v30  ;;  %v11806_v33 = vld [vmem:[#allocation20 + $0x28] sm:$0xff] }
 0x926   :  { %5561 = vmatprep.subr.mxu1 %v11622_v34  ;;  %5492 = vmatprep.subr.mxu0 %v11624_v24  ;;  %13882 = vst [vmem:[#allocation55_spill] sm:$0xff] %v11806_v33 }
 0x927   :  { %5562 = vmatpush1.msra.mxu1 %v11628_v11  ;;  %5493 = vmatpush1.msra.mxu0 %v11630_v23 }
 0x928   :  { %5563 = vmatprep.subr.mxu1 %v11634_v0  ;;  %5180 = vmatprep.mubr.f32.mxu0 %v13173_v5 }
 0x929   :  { %5293 = vmatprep.mubr.f32.mxu1 %v13173_v5  ;;  %5494 = vmatprep.subr.mxu0 %v11638_v37 }
 0x92a   :  { %5564 = vmatpush1.msra.mxu1 %v11642_v28  ;;  %5181 = vmatmul.mubr.f32.gmra.mxu0 %v13835_v52 }
 0x92b   :  { %5294 = vmatmul.mubr.f32.gmra.mxu1 %v13835_v52  ;;  %5495 = vmatpush1.msra.mxu0 %v11646_v43  ;;  %v11810_v52 = vld [vmem:[#allocation20 + $0x50] sm:$0xff] }
 0x92c   :  { %5565 = vmatprep.subr.mxu1 %v11650_v3  ;;  %5496 = vmatprep.subr.mxu0 %v11652_v54  ;;  %13883 = vst [vmem:[#allocation56_spill] sm:$0xff] %v11810_v52 }
 0x92d   :  { %5566 = vmatpush1.msra.mxu1 %v11656_v22  ;;  %5497 = vmatpush1.msra.mxu0 %v11658_v25 }
 0x92e   :  { %5567 = vmatprep.subr.mxu1 %v11662_v17  ;;  %5186 = vmatprep.mubr.f32.mxu0 %v13173_v5 }
 0x92f   :  { %5299 = vmatprep.mubr.f32.mxu1 %v13173_v5  ;;  %5498 = vmatprep.subr.mxu0 %v11666_v35 }
 0x930   :  { %5568 = vmatpush1.msra.mxu1 %v11670_v36  ;;  %5187 = vmatmul.mubr.f32.gmra.mxu0 %v13843_v53 }
 0x931   :  { %5300 = vmatmul.mubr.f32.gmra.mxu1 %v13843_v53  ;;  %5499 = vmatpush1.msra.mxu0 %v11674_v55  ;;  %v11818_v53 = vld [vmem:[#allocation20 + $0x38] sm:$0xff] }
 0x932   :  { %5569 = vmatprep.subr.mxu1 %v11678_v50  ;;  %5500 = vmatprep.subr.mxu0 %v11680_v32  ;;  %13885 = vst [vmem:[#allocation58_spill] sm:$0xff] %v11818_v53 }
 0x933   :  { %5570 = vmatpush1.msra.mxu1 %v11684_v46  ;;  %5501 = vmatpush1.msra.mxu0 %v11686_v20 }
 0x934   :  { %5571 = vmatprep.subr.mxu1 %v11690_v56  ;;  %5192 = vmatprep.mubr.f32.mxu0 %v13173_v5 }
 0x935   :  { %5305 = vmatprep.mubr.f32.mxu1 %v13173_v5  ;;  %5502 = vmatprep.subr.mxu0 %v11694_v29 }
 0x936   :  { %5572 = vmatpush1.msra.mxu1 %v11698_v15  ;;  %5193 = vmatmul.mubr.f32.gmra.mxu0 %v13852_v47 }
 0x937   :  { %5306 = vmatmul.mubr.f32.gmra.mxu1 %v13852_v47  ;;  %5503 = vmatpush1.msra.mxu0 %v11702_v1  ;;  %v11820_v47 = vld [vmem:[#allocation20 + $0x8] sm:$0xff] }
 0x938   :  { %5573 = vmatprep.subr.mxu1 %v11706_v61  ;;  %5504 = vmatprep.subr.mxu0 %v11708_v16  ;;  %13886 = vst [vmem:[#allocation59_spill] sm:$0xff] %v11820_v47 }
 0x939   :  { %5574 = vmatpush1.msra.mxu1 %v11712_v48  ;;  %5505 = vmatpush1.msra.mxu0 %v11714_v7 }
 0x93a   :  { %5575 = vmatprep.subr.mxu1 %v11718_v21  ;;  %5198 = vmatprep.mubr.f32.mxu0 %v13173_v5 }
 0x93b   :  { %5311 = vmatprep.mubr.f32.mxu1 %v13173_v5  ;;  %5506 = vmatprep.subr.mxu0 %v11722_v44 }
 0x93c   :  { %5576 = vmatpush1.msra.mxu1 %v11726_v62  ;;  %5199 = vmatmul.mubr.f32.gmra.mxu0 %v13861_v45 }
 0x93d   :  { %5312 = vmatmul.mubr.f32.gmra.mxu1 %v13861_v45  ;;  %5507 = vmatpush1.msra.mxu0 %v11730_v40  ;;  %v11824_v45 = vld [vmem:[#allocation20 + $0x30] sm:$0xff] }
 0x93e   :  { %5577 = vmatprep.subr.mxu1 %v11734_v41  ;;  %5508 = vmatprep.subr.mxu0 %v11736_v19  ;;  %13887 = vst [vmem:[#allocation60_spill] sm:$0xff] %v11824_v45 }
 0x93f   :  { %5578 = vmatpush1.msra.mxu1 %v11740_v4  ;;  %5509 = vmatpush1.msra.mxu0 %v11742_v8 }
 0x940   :  { %5579 = vmatprep.subr.mxu1 %v11746_v58  ;;  %5204 = vmatprep.mubr.f32.mxu0 %v13173_v5 }
 0x941   :  { %5317 = vmatprep.mubr.f32.mxu1 %v13173_v5  ;;  %5510 = vmatprep.subr.mxu0 %v11750_v60 }
 0x942   :  { %5580 = vmatpush1.msra.mxu1 %v11754_v63  ;;  %5205 = vmatmul.mubr.f32.gmra.mxu0 %v13870_v18 }
 0x943   :  { %5318 = vmatmul.mubr.f32.gmra.mxu1 %v13870_v18  ;;  %5511 = vmatpush1.msra.mxu0 %v11758_v51  ;;  %v11826_v18 = vld [vmem:[#allocation20] sm:$0xff] }
 0x944   :  { %5581 = vmatprep.subr.mxu1 %v11762_v39  ;;  %5512 = vmatprep.subr.mxu0 %v11764_v13  ;;  %13888 = vst [vmem:[#allocation61_spill] sm:$0xff] %v11826_v18 }
 0x945   :  { %5582 = vmatpush1.msra.mxu1 %v11768_v12  ;;  %5513 = vmatpush1.msra.mxu0 %v11770_v9 }
 0x946   :  { %5583 = vmatprep.subr.mxu1 %v11774_v57  ;;  %5210 = vmatprep.mubr.f32.mxu0 %v13173_v5 }
 0x947   :  { %5323 = vmatprep.mubr.f32.mxu1 %v13173_v5  ;;  %5514 = vmatprep.subr.mxu0 %v11778_v38 }
 0x948   :  { %5584 = vmatpush1.msra.mxu1 %v11782_v27  ;;  %5211 = vmatmul.mubr.f32.gmra.mxu0 %v11498_v2 }
 0x949   :  { %5324 = vmatmul.mubr.f32.gmra.mxu1 %v11498_v2  ;;  %5515 = vmatpush1.msra.mxu0 %v11786_v49  ;;  %v11814_v2 = vld [vmem:[#allocation20 + $0x20] sm:$0xff] }
 0x94a   :  { %5585 = vmatprep.subr.mxu1 %v11790_v59  ;;  %5516 = vmatprep.subr.mxu0 %v11792_v42  ;;  %13884 = vst [vmem:[#allocation57_spill] sm:$0xff] %v11814_v2 }
 0x94b   :  { %5586 = vmatpush1.msra.mxu1 %v11796_v14  ;;  %5517 = vmatpush1.msra.mxu0 %v11798_v26  ;;  %v11830_v26 = vld [vmem:[#allocation20 + $0x18] sm:$0xff] }
 0x94c   :  { %5587 = vmatprep.subr.mxu1 %v11802_v31  ;;  %5216 = vmatprep.mubr.f32.mxu0 %v13173_v5  ;;  %13889 = vst [vmem:[#allocation62_spill] sm:$0xff] %v11830_v26 }
 0x94d   :  { %5329 = vmatprep.mubr.f32.mxu1 %v13173_v5  ;;  %5518 = vmatprep.subr.mxu0 %v11806_v33  ;;  %v11834_v33 = vld [vmem:[#allocation20 + $0x10] sm:$0xff] }
 0x94e   :  { %5588 = vmatpush1.msra.mxu1 %v11810_v52  ;;  %5217 = vmatmul.mubr.f32.gmra.mxu0 %v11585_v6  ;;  %13890 = vst [vmem:[#allocation103_spill] sm:$0xff] %v11834_v33 }
 0x94f   :  { %5330 = vmatmul.mubr.f32.gmra.mxu1 %v11585_v6  ;;  %5519 = vmatpush1.msra.mxu0 %v11814_v2  ;;  %v13891_v6 = vld [vmem:[#allocation53_spill] sm:$0xff] }
 0x950   :  { %5589 = vmatprep.subr.mxu1 %v11818_v53  ;;  %5520 = vmatprep.subr.mxu0 %v11820_v47 }
 0x951   :  { %5590 = vmatpush1.msra.mxu1 %v11824_v45  ;;  %5521 = vmatpush1.msra.mxu0 %v11826_v18 }
 0x952   :  { %5591 = vmatprep.subr.mxu1 %v11830_v26  ;;  %5554 = vmatprep.mubr.f32.mxu0 %v13173_v5 }
 0x953   :  { %5592 = vmatpush1.msra.mxu1 %v11834_v33  ;;  %5625 = vmatprep.mubr.f32.mxu1 %v13173_v5 }
 0x954   :  { %5555 = vmatmul.mubr.f32.vlgmr.msra.gmra.mxu0 %v13173_v5  ;;  %5626 = vmatmul.mubr.f32.vlgmr.msra.gmra.mxu1 %v13173_v5 }
 0x955   :  { %5729 = vmatprep.subr.mxu0 %v11616_v10  ;;  %5800 = vmatprep.subr.mxu1 %v11622_v34 }
 0x956   :  { %5730 = vmatpush1.msra.mxu0 %v11619_v30  ;;  %5801 = vmatpush1.msra.mxu1 %v11628_v11 }
 0x957   :  { %5731 = vmatprep.subr.mxu0 %v11624_v24  ;;  %5802 = vmatprep.subr.mxu1 %v11634_v0 }
 0x958   :  { %5732 = vmatpush1.msra.mxu0 %v11630_v23  ;;  %5803 = vmatpush1.msra.mxu1 %v11642_v28 }
 0x959   :  { %5733 = vmatprep.subr.mxu0 %v11638_v37  ;;  %5804 = vmatprep.subr.mxu1 %v11650_v3 }
 0x95a   :  { %5734 = vmatpush1.msra.mxu0 %v11646_v43  ;;  %5805 = vmatpush1.msra.mxu1 %v11656_v22 }
 0x95b   :  { %5735 = vmatprep.subr.mxu0 %v11652_v54  ;;  %5806 = vmatprep.subr.mxu1 %v11662_v17  ;;  %v13897_v17 = vld [vmem:[#allocation34_spill] sm:$0xff] }
 0x95c   :  { %5736 = vmatpush1.msra.mxu0 %v11658_v25  ;;  %5807 = vmatpush1.msra.mxu1 %v11670_v36 }
 0x95d   :  { %5737 = vmatprep.subr.mxu0 %v11666_v35  ;;  %5808 = vmatprep.subr.mxu1 %v11678_v50  ;;  %v13895_v50 = vld [vmem:[#allocation97_spill] sm:$0xff] }
 0x95e   :  { %5738 = vmatpush1.msra.mxu0 %v11674_v55  ;;  %5809 = vmatpush1.msra.mxu1 %v11684_v46 }
 0x95f   :  { %5739 = vmatprep.subr.mxu0 %v11680_v32  ;;  %5810 = vmatprep.subr.mxu1 %v11690_v56  ;;  %v13894_v56 = vld [vmem:[#allocation33_spill] sm:$0xff] }
 0x960   :  { %5740 = vmatpush1.msra.mxu0 %v11686_v20  ;;  %5811 = vmatpush1.msra.mxu1 %v11698_v15 }
 0x961   :  { %5741 = vmatprep.subr.mxu0 %v11694_v29  ;;  %5812 = vmatprep.subr.mxu1 %v11706_v61  ;;  %v13893_v61 = vld [vmem:[#allocation32_spill] sm:$0xff] }
 0x962   :  { %5742 = vmatpush1.msra.mxu0 %v11702_v1  ;;  %5813 = vmatpush1.msra.mxu1 %v11712_v48 }
 0x963   :  { %5743 = vmatprep.subr.mxu0 %v11708_v16  ;;  %5814 = vmatprep.subr.mxu1 %v11718_v21  ;;  %v5336_v21 = vld [vmem:[%s12718_s10] sm:$0xf] }
 0x964   :  { %5744 = vmatpush1.msra.mxu0 %v11714_v7  ;;  %5815 = vmatpush1.msra.mxu1 %v11726_v62  ;;  %v11962_v29 = vrot.slane %v5336_v21, %v13893_v61  ;;  %v11965_v32 = vrot.slane %v5336_v21, %v13894_v56  ;;  %v11968_v35 = vrot.slane %v5336_v21, %v13895_v50 }
 0x965   :  { %5745 = vmatprep.subr.mxu0 %v11722_v44  ;;  %5816 = vmatprep.subr.mxu1 %v11734_v41 }
 0x966   :  { %5746 = vmatpush1.msra.mxu0 %v11730_v40  ;;  %5817 = vmatpush1.msra.mxu1 %v11740_v4 }
 0x967   :  { %5747 = vmatprep.subr.mxu0 %v11736_v19  ;;  %5818 = vmatprep.subr.mxu1 %v11746_v58 }
 0x968   :  { %5748 = vmatpush1.msra.mxu0 %v11742_v8  ;;  %5819 = vmatpush1.msra.mxu1 %v11754_v63 }
 0x969   :  { %5749 = vmatprep.subr.mxu0 %v11750_v60  ;;  %5820 = vmatprep.subr.mxu1 %v11762_v39 }
 0x96a   :  { %5750 = vmatpush1.msra.mxu0 %v11758_v51  ;;  %5821 = vmatpush1.msra.mxu1 %v11768_v12 }
 0x96b   :  { %5751 = vmatprep.subr.mxu0 %v11764_v13  ;;  %5822 = vmatprep.subr.mxu1 %v11774_v57  ;;  %v13892_v57 = vld [vmem:[#allocation55_spill] sm:$0xff] }
 0x96c   :  { %5752 = vmatpush1.msra.mxu0 %v11770_v9  ;;  %5823 = vmatpush1.msra.mxu1 %v11782_v27 }
 0x96d   :  { %5753 = vmatprep.subr.mxu0 %v11778_v38  ;;  %5824 = vmatprep.subr.mxu1 %v11790_v59 }
 0x96e   :  { %5754 = vmatpush1.msra.mxu0 %v11786_v49  ;;  %5825 = vmatpush1.msra.mxu1 %v11796_v14 }
 0x96f   :  { %5755 = vmatprep.subr.mxu0 %v11792_v42  ;;  %5826 = vmatprep.subr.mxu1 %v11802_v31 }
 0x970   :  { %5756 = vmatpush1.msra.mxu0 %v13891_v6  ;;  %5827 = vmatpush1.msra.mxu1 %v11810_v52 }
 0x971   :  { %5757 = vmatprep.subr.mxu0 %v13892_v57  ;;  %5828 = vmatprep.subr.mxu1 %v11818_v53 }
 0x972   :  { %5758 = vmatpush1.msra.mxu0 %v11814_v2  ;;  %5829 = vmatpush1.msra.mxu1 %v11824_v45 }
 0x973   :  { %5759 = vmatprep.subr.mxu0 %v11820_v47  ;;  %5830 = vmatprep.subr.mxu1 %v11830_v26 }
 0x974   :  { %5760 = vmatpush1.msra.mxu0 %v11826_v18  ;;  %5793 = vmatprep.mubr.f32.mxu0 %v13173_v5 }
 0x975   :  { %5831 = vmatpush1.msra.mxu1 %v11834_v33  ;;  %5864 = vmatprep.mubr.f32.mxu1 %v13173_v5 }
 0x976   :  { %5968 = vmatprep.subr.mxu0 %v11616_v10  ;;  %6039 = vmatprep.subr.mxu1 %v11622_v34 }
 0x9b5   :  { %v11912_v53 = vpop.f32.mrf.mxu0  ;;  %v11914_v2 = vpop.f32.mrf.mxu1 }
 0x9b7   :  { %v11916_v45 = vpop.f32.mrf.mxu0  ;;  %v11918_v47 = vpop.f32.mrf.mxu1 }
 0x9ba   :  { %v4956_v26 = vpop.f32.mrf.mxu0 }
 0x9bb   :  { %v5069_v18 = vpop.f32.mrf.mxu1 }
 0x9bc   :  { %v4958_v57 = vpop.f32.mrf.mxu0 }
 0x9bd   :  { %v5071_v52 = vpop.f32.mrf.mxu1 }
 0x9c0   :  { %v4962_v6 = vpop.f32.mrf.mxu0 }
 0x9c1   :  { %v5075_v33 = vpop.f32.mrf.mxu1 }
 0x9c2   :  { %v4964_v31 = vpop.f32.mrf.mxu0 }
 0x9c3   :  { %v5077_v5 = vpop.f32.mrf.mxu1 }
 0x9c6   :  { %v4968_v42 = vpop.f32.mrf.mxu0 }
 0x9c7   :  { %v5081_v10 = vpop.f32.mrf.mxu1 }
 0x9c8   :  { %v4970_v14 = vpop.f32.mrf.mxu0 }
 0x9c9   :  { %v5083_v34 = vpop.f32.mrf.mxu1 }
 0x9cc   :  { %v4974_v49 = vpop.f32.mrf.mxu0 }
 0x9cd   :  { %v11920_v59 = vpop.f32.mrf.mxu1 }
 0x9ce   :  { %v11922_v38 = vpop.f32.mrf.mxu0 }
 0x9cf   :  { %v11924_v27 = vpop.f32.mrf.mxu1 }
 0x9d2   :  { %v11926_v9 = vpop.f32.mrf.mxu0 }
 0x9d3   :  { %v11928_v13 = vpop.f32.mrf.mxu1 }
 0x9d4   :  { %v11930_v12 = vpop.f32.mrf.mxu0 }
 0x9d5   :  { %v11932_v51 = vpop.f32.mrf.mxu1 }
 0x9d8   :  { %v11934_v39 = vpop.f32.mrf.mxu0 }
 0x9d9   :  { %v11936_v60 = vpop.f32.mrf.mxu1 }
 0x9da   :  { %v11938_v63 = vpop.f32.mrf.mxu0 }
 0x9db   :  { %v11940_v8 = vpop.f32.mrf.mxu1 }
 0x9de   :  { %v11942_v58 = vpop.f32.mrf.mxu0 }
 0x9df   :  { %v11944_v19 = vpop.f32.mrf.mxu1 }
 0x9e0   :  { %v11946_v4 = vpop.f32.mrf.mxu0 }
 0x9e1   :  { %v11948_v40 = vpop.f32.mrf.mxu1 }
 0x9e4   :  { %v11950_v41 = vpop.f32.mrf.mxu0 }
 0x9e5   :  { %v11952_v44 = vpop.f32.mrf.mxu1 }
 0x9e6   :  { %v11954_v62 = vpop.f32.mrf.mxu0 }
 0x9e7   :  { %v11956_v7 = vpop.f32.mrf.mxu1 }
 0x9ea   :  { %v5182_v16 = vpop.f32.mrf.mxu0 }
 0x9eb   :  { %v5183_v48 = vadd.f32 %v5182_v16, %v4956_v26  ;;  %v5295_v1 = vpop.f32.mrf.mxu1  ;;  %v11974_v16 = vrot.slane %v5336_v21, %v13897_v17 }
 0x9ec   :  { %v5296_v15 = vadd.f32 %v5295_v1, %v5069_v18  ;;  %v5184_v20 = vpop.f32.mrf.mxu0 }
 0x9ed   :  { %v5185_v46 = vadd.f32 %v5184_v20, %v4958_v57  ;;  %v5297_v55 = vpop.f32.mrf.mxu1  ;;  %v11971_v36 = vadd.f32 %v11962_v29, %v5183_v48 }
 0x9ee   :  { %v5298_v25 = vadd.f32 %v5297_v55, %v5071_v52  ;;  %v11977_v61 = vadd.f32 %v11965_v32, %v5296_v15 }
 0x9ef   :  { %13896 = vst [vmem:[#allocation105_spill] sm:$0xff] %v11971_v36  ;;  %v11980_v1 = vadd.f32 %v11968_v35, %v5185_v46 }
 0x9f0   :  { %v5188_v56 = vpop.f32.mrf.mxu0  ;;  %v11983_v20 = vadd.f32 %v11974_v16, %v5298_v25 }
 0x9f1   :  { %v5189_v57 = vadd.f32 %v5188_v56, %v4962_v6  ;;  %v5301_v50 = vpop.f32.mrf.mxu1 }
 0x9f2   :  { %v5302_v26 = vadd.f32 %v5301_v50, %v5075_v33  ;;  %v5190_v18 = vpop.f32.mrf.mxu0 }
 0x9f3   :  { %v5191_v48 = vadd.f32 %v5190_v18, %v4964_v31  ;;  %v5303_v36 = vpop.f32.mrf.mxu1  ;;  %v11986_v55 = vadd.f32 %v11962_v29, %v5189_v57 }
 0x9f4   :  { %v5304_v17 = vadd.f32 %v5303_v36, %v5077_v5  ;;  %v11989_v15 = vadd.f32 %v11965_v32, %v5302_v26 }
 0x9f5   :  { %v11992_v46 = vadd.f32 %v11968_v35, %v5191_v48 }
 0x9f6   :  { %v5194_v21 = vpop.f32.mrf.mxu0  ;;  %v11995_v25 = vadd.f32 %v11974_v16, %v5304_v17 }
 0x9f7   :  { %v5195_v52 = vadd.f32 %v5194_v21, %v4968_v42  ;;  %v5307_v6 = vpop.f32.mrf.mxu1 }
 0x9f8   :  { %v5308_v33 = vadd.f32 %v5307_v6, %v5081_v10  ;;  %v5196_v56 = vpop.f32.mrf.mxu0 }
 0x9f9   :  { %v5197_v31 = vadd.f32 %v5196_v56, %v4970_v14  ;;  %v5309_v50 = vpop.f32.mrf.mxu1  ;;  %v11998_v57 = vadd.f32 %v11962_v29, %v5195_v52 }
 0x9fa   :  { %v5310_v5 = vadd.f32 %v5309_v50, %v5083_v34  ;;  %v12001_v36 = vadd.f32 %v11965_v32, %v5308_v33 }
 0x9fb   :  { %13898 = vst [vmem:[#allocation106_spill] sm:$0xff] %v11998_v57  ;;  %v12004_v26 = vadd.f32 %v11968_v35, %v5197_v31  ;;  %v12335_v57 = vld [vmem:[#allocation20 + $0x38] sm:$0xff] }
 0x9fc   :  { %13899 = vst [vmem:[#allocation104_spill] sm:$0xff] %v12001_v36  ;;  %v5200_v18 = vpop.f32.mrf.mxu0  ;;  %v12007_v48 = vadd.f32 %v11974_v16, %v5310_v5  ;;  %v12327_v36 = vld [vmem:[#allocation20 + $0x40] sm:$0xff]  ;;  %13985 = vst [vmem:[#allocation78_spill] sm:$0xff] %v12335_v57 }
 0x9fd   :  { %13900 = vst [vmem:[#allocation115_spill] sm:$0xff] %v12004_v26  ;;  %v5201_v42 = vadd.f32 %v5200_v18, %v4974_v49  ;;  %v5313_v17 = vpop.f32.mrf.mxu1  ;;  %13982 = vst [vmem:[#allocation134_spill] sm:$0xff] %v12327_v36  ;;  %v12333_v26 = vld [vmem:[#allocation20 + $0x28] sm:$0xff] }
 0x9fe   :  { %13901 = vst [vmem:[#allocation117_spill] sm:$0xff] %v12007_v48  ;;  %v5314_v10 = vadd.f32 %v5313_v17, %v11920_v59  ;;  %v5202_v14 = vpop.f32.mrf.mxu0  ;;  %v12329_v48 = vld [vmem:[#allocation20 + $0x50] sm:$0xff]  ;;  %13984 = vst [vmem:[#allocation77_spill] sm:$0xff] %v12333_v26 }
 0x9ff   :  { %v5203_v21 = vadd.f32 %v5202_v14, %v11922_v38  ;;  %v5315_v52 = vpop.f32.mrf.mxu1  ;;  %v12012_v34 = vadd.f32 %v11962_v29, %v5201_v42  ;;  %13983 = vst [vmem:[#allocation132_spill] sm:$0xff] %v12329_v48 }
 0xa00   :  { %v5316_v6 = vadd.f32 %v5315_v52, %v11924_v27  ;;  %v12016_v33 = vadd.f32 %v11965_v32, %v5314_v10 }
 0xa01   :  { %13902 = vst [vmem:[#allocation118_spill] sm:$0xff] %v12012_v34  ;;  %v12019_v56 = vadd.f32 %v11968_v35, %v5203_v21  ;;  %v12323_v34 = vld [vmem:[#allocation20 + $0x58] sm:$0xff] }
 0xa02   :  { %13903 = vst [vmem:[#allocation116_spill] sm:$0xff] %v12016_v33  ;;  %v5206_v31 = vpop.f32.mrf.mxu0  ;;  %v12022_v49 = vadd.f32 %v11974_v16, %v5316_v6  ;;  %v12315_v33 = vld [vmem:[#allocation20 + $0x60] sm:$0xff]  ;;  %13981 = vst [vmem:[#allocation133_spill] sm:$0xff] %v12323_v34 }
 0xa03   :  { %13904 = vst [vmem:[#allocation64_spill] sm:$0xff] %v12019_v56  ;;  %v5207_v59 = vadd.f32 %v5206_v31, %v11926_v9  ;;  %v5319_v50 = vpop.f32.mrf.mxu1  ;;  %13978 = vst [vmem:[#allocation38_spill] sm:$0xff] %v12315_v33  ;;  %v12321_v56 = vld [vmem:[#allocation20 + $0x48] sm:$0xff] }
 0xa04   :  { %13905 = vst [vmem:[#allocation65_spill] sm:$0xff] %v12022_v49  ;;  %v5320_v38 = vadd.f32 %v5319_v50, %v11928_v13  ;;  %v5208_v5 = vpop.f32.mrf.mxu0  ;;  %v12317_v49 = vld [vmem:[#allocation20 + $0x70] sm:$0xff]  ;;  %13980 = vst [vmem:[#allocation131_spill] sm:$0xff] %v12321_v56 }
 0xa05   :  { %v5209_v18 = vadd.f32 %v5208_v5, %v11930_v12  ;;  %v5321_v42 = vpop.f32.mrf.mxu1  ;;  %v12028_v27 = vadd.f32 %v11962_v29, %v5207_v59  ;;  %13979 = vst [vmem:[#allocation36_spill] sm:$0xff] %v12317_v49 }
 0xa06   :  { %v5322_v17 = vadd.f32 %v5321_v42, %v11932_v51  ;;  %v12032_v10 = vadd.f32 %v11965_v32, %v5320_v38 }
 0xa07   :  { %13906 = vst [vmem:[#allocation66_spill] sm:$0xff] %v12028_v27  ;;  %v12035_v14 = vadd.f32 %v11968_v35, %v5209_v18  ;;  %v12311_v27 = vld [vmem:[#allocation20 + $0x78] sm:$0xff] }
 0xa08   :  { %13907 = vst [vmem:[#allocation67_spill] sm:$0xff] %v12032_v10  ;;  %v5212_v21 = vpop.f32.mrf.mxu0  ;;  %v12038_v9 = vadd.f32 %v11974_v16, %v5322_v17  ;;  %v12303_v10 = vld [vmem:[#allocation20 + $0x80] sm:$0xff]  ;;  %13977 = vst [vmem:[#allocation35_spill] sm:$0xff] %v12311_v27 }
 0xa09   :  { %13908 = vst [vmem:[#allocation68_spill] sm:$0xff] %v12035_v14  ;;  %v5213_v13 = vadd.f32 %v5212_v21, %v11934_v39  ;;  %v5325_v52 = vpop.f32.mrf.mxu1  ;;  %v12309_v14 = vld [vmem:[#allocation20 + $0x68] sm:$0xff] }
 0xa0a   :  { %13909 = vst [vmem:[#allocation69_spill] sm:$0xff] %v12038_v9  ;;  %v5326_v12 = vadd.f32 %v5325_v52, %v11936_v60  ;;  %v5214_v6 = vpop.f32.mrf.mxu0  ;;  %v5177_v60 = vadd.f32 %v11950_v41, %v11912_v53  ;;  %v12305_v9 = vld [vmem:[#allocation20 + $0x90] sm:$0xff]  ;;  %13976 = vst [vmem:[#allocation37_spill] sm:$0xff] %v12309_v14 }
 0xa0b   :  { %v5215_v31 = vadd.f32 %v5214_v6, %v11938_v63  ;;  %v5327_v59 = vpop.f32.mrf.mxu1  ;;  %v12044_v51 = vadd.f32 %v11962_v29, %v5213_v13  ;;  %13975 = vst [vmem:[#allocation75_spill] sm:$0xff] %v12305_v9 }
 0xa0c   :  { %v5328_v50 = vadd.f32 %v5327_v59, %v11940_v8  ;;  %v12048_v38 = vadd.f32 %v11965_v32, %v5326_v12  ;;  %v5179_v8 = vadd.f32 %v11954_v62, %v11916_v45  ;;  %v5358_v41 = vadd.f32 %v11962_v29, %v5177_v60 }
 0xa0d   :  { %13910 = vst [vmem:[#allocation70_spill] sm:$0xff] %v12044_v51  ;;  %v12051_v5 = vadd.f32 %v11968_v35, %v5215_v31  ;;  %v12299_v51 = vld [vmem:[#allocation20 + $0x98] sm:$0xff] }
 0xa0e   :  { %13911 = vst [vmem:[#allocation71_spill] sm:$0xff] %v12048_v38  ;;  %v5218_v18 = vpop.f32.mrf.mxu0  ;;  %v12054_v39 = vadd.f32 %v11974_v16, %v5328_v50  ;;  %v12291_v38 = vld [vmem:[#allocation20 + $0xa0] sm:$0xff] }
 0xa0f   :  { %13912 = vst [vmem:[#allocation72_spill] sm:$0xff] %v12051_v5  ;;  %v5219_v63 = vadd.f32 %v5218_v18, %v11942_v58  ;;  %v5331_v42 = vpop.f32.mrf.mxu1  ;;  %v12297_v5 = vld [vmem:[#allocation20 + $0x88] sm:$0xff] }
 0xa10   :  { %13913 = vst [vmem:[#allocation73_spill] sm:$0xff] %v12054_v39  ;;  %v5332_v17 = vadd.f32 %v5331_v42, %v11944_v19  ;;  %v5220_v21 = vpop.f32.mrf.mxu0  ;;  %v5290_v42 = vadd.f32 %v11952_v44, %v11914_v2  ;;  %v12293_v39 = vld [vmem:[#allocation20 + $0xb0] sm:$0xff] }
 0xa11   :  { %v5221_v13 = vadd.f32 %v5220_v21, %v11946_v4  ;;  %v5333_v52 = vpop.f32.mrf.mxu1  ;;  %v12064_v12 = vadd.f32 %v11962_v29, %v5219_v63  ;;  %v5359_v4 = vadd.f32 %v11968_v35, %v5179_v8  ;;  %v5292_v63 = vadd.f32 %v11956_v7, %v11918_v47 }
 0xa12   :  { %v5334_v6 = vadd.f32 %v5333_v52, %v11948_v40  ;;  %v12068_v31 = vadd.f32 %v11965_v32, %v5332_v17  ;;  %v5360_v21 = vadd.f32 %v11965_v32, %v5290_v42  ;;  %v13936_v42 = vld [vmem:[#allocation151_spill] sm:$0xff] }
 0xa13   :  { %13914 = vst [vmem:[#allocation45_spill] sm:$0xff] %v12064_v12  ;;  %v12072_v58 = vadd.f32 %v11968_v35, %v5221_v13  ;;  %v5361_v60 = vadd.f32 %v11974_v16, %v5292_v63  ;;  %v13933_v63 = vld [vmem:[#allocation150_spill] sm:$0xff] }
 0xa14   :  { %13915 = vst [vmem:[#allocation43_spill] sm:$0xff] %v12068_v31  ;;  %v5556_v19 = vpop.f32.mrf.mxu0  ;;  %v12075_v53 = vadd.f32 %v11974_v16, %v5334_v6  ;;  %v5627_v40 = vpop.f32.mrf.mxu1  ;;  %v12273_v31 = vld [vmem:[#allocation20 + $0xc8] sm:$0xff]  ;;  %v12281_v12 = vld [vmem:[#allocation20 + $0xd0] sm:$0xff] }
 0xa15   :  { %13916 = vst [vmem:[#allocation98_spill] sm:$0xff] %v12072_v58  ;;  %v5632_v62 = vadd.f32 %v5556_v19, %v5358_v41  ;;  %v5634_v13 = vadd.f32 %v5627_v40, %v5360_v21  ;;  %v13931_v40 = vld [vmem:[#allocation148_spill] sm:$0xff]  ;;  %v13938_v21 = vld [vmem:[#allocation99_spill] sm:$0xff] }
 0xa16   :  { %13917 = vst [vmem:[#allocation44_spill] sm:$0xff] %v12075_v53  ;;  %v5558_v45 = vpop.f32.mrf.mxu0  ;;  %v5629_v29 = vpop.f32.mrf.mxu1  ;;  %v12277_v53 = vld [vmem:[#allocation20 + $0xd8] sm:$0xff]  ;;  %v12279_v58 = vld [vmem:[#allocation20 + $0xc0] sm:$0xff] }
 0xa17   :  { %v7933_v59 = vmul.f32 -1.442695, %v5632_v62  ;;  %v5633_v50 = vadd.f32 %v5558_v45, %v5359_v4  ;;  %v5635_v17 = vadd.f32 %v5629_v29, %v5361_v60  ;;  %v13934_v29 = vld [vmem:[#allocation149_spill] sm:$0xff]  ;;  %v13935_v60 = vld [vmem:[#allocation152_spill] sm:$0xff] }
 0xa19   :  { %8415 = vpow2.f32 %v7933_v59  ;;  %v7934_v18 = vmul.f32 -1.442695, %v5633_v50  ;;  %v7935_v35 = vmul.f32 -1.442695, %v5635_v17  ;;  %v13930_v50 = vld [vmem:[#allocation145_spill] sm:$0xff] }
 0xa1a   :  { %v13937_v17 = vld [vmem:[#allocation101_spill] sm:$0xff] }
 0xa1b   :  { %8417 = vpow2.f32 %v7934_v18  ;;  %v13932_v18 = vld [vmem:[#allocation147_spill] sm:$0xff] }
 0xa1c   :  { %8419 = vpow2.f32 %v7935_v35  ;;  %v13939_v35 = vld [vmem:[#allocation100_spill] sm:$0xff] }
 0xa26   :  { %v8416_v8 = vpop.eup %8415 }
 0xa27   :  { %v5639_v52 = vadd.f32 1.0, %v8416_v8  ;;  %v13940_v8 = vld [vmem:[#allocation102_spill] sm:$0xff] }
 0xa28   :  { %v8418_v6 = vpop.eup %8417 }
 0xa29   :  { %8421 = vrcp.f32 %v5639_v52  ;;  %v5645_v41 = vadd.f32 1.0, %v8418_v6  ;;  %v8420_v7 = vpop.eup %8419  ;;  %v13942_v52 = vld [vmem:[#allocation119_spill] sm:$0xff]  ;;  %v13943_v6 = vld [vmem:[#allocation120_spill] sm:$0xff] }
 0xa2a   :  { %8423 = vtanh.f32 %v5634_v13  ;;  %v5652_v62 = vadd.f32 1.0, %v8420_v7  ;;  %v13941_v13 = vld [vmem:[#allocation121_spill] sm:$0xff] }
 0xa2b   :  { %8425 = vrcp.f32 %v5645_v41  ;;  %v13944_v41 = vld [vmem:[#allocation122_spill] sm:$0xff]  ;;  %v13945_v7 = vld [vmem:[#allocation157_spill] sm:$0xff] }
 0xa2c   :  { %8427 = vrcp.f32 %v5652_v62  ;;  %v13949_v62 = vld [vmem:[#allocation40_spill] sm:$0xff] }
 0xa36   :  { %v8422_v47 = vpop.eup %8421 }
 0xa37   :  { %v8424_v19 = vpop.eup %8423 }
 0xa38   :  { %v8426_v16 = vpop.eup %8425  ;;  %v5656_v44 = vmul.f32 %v8424_v19, %v8422_v47  ;;  %v13946_v47 = vld [vmem:[#allocation156_spill] sm:$0xff]  ;;  %v13947_v19 = vld [vmem:[#allocation39_spill] sm:$0xff] }
 0xa39   :  { %v5655_v4 = vmul.f32 0.0, %v8426_v16  ;;  %v8428_v32 = vpop.eup %8427  ;;  %v13948_v16 = vld [vmem:[#allocation41_spill] sm:$0xff] }
 0xa3b   :  { %v12084_v2 = vadd.f32 %v5656_v44, %v5655_v4  ;;  %v13950_v4 = vld [vmem:[#allocation42_spill] sm:$0xff]  ;;  %v13951_v44 = vld [vmem:[#allocation129_spill] sm:$0xff] }
 0xa3d   :  { %8429 = vtanh.f32 %v12084_v2 }
 0xa4a   :  { %v8430_v45 = vpop.eup %8429 }
 0xa4b   :  { %v12087_v59 = vmul.f32 %v8430_v45, %v8428_v32  ;;  %v13952_v32 = vld [vmem:[#allocation127_spill] sm:$0xff]  ;;  %v13953_v45 = vld [vmem:[#allocation128_spill] sm:$0xff] }
 0xa4d   :  { %13918 = vst [vmem:[#allocation123_spill] sm:$0xff] %v12087_v59  ;;  %5794 = vmatmul.mubr.f32.vlgmr.msra.gmra.mxu0 %v12087_v59  ;;  %5865 = vmatmul.mubr.f32.vlgmr.msra.gmra.mxu1 %v12087_v59  ;;  %v12287_v59 = vld [vmem:[#allocation20 + $0xb8] sm:$0xff] }
 0xa4e   :  { %5969 = vmatpush1.msra.mxu0 %v11619_v30  ;;  %6040 = vmatpush1.msra.mxu1 %v11628_v11  ;;  %v13919_v30 = vld [vmem:[#allocation136_spill] sm:$0xff] }
 0xa4f   :  { %5970 = vmatprep.subr.mxu0 %v11624_v24  ;;  %6041 = vmatprep.subr.mxu1 %v11634_v0  ;;  %v13920_v11 = vld [vmem:[#allocation96_spill] sm:$0xff]  ;;  %v13921_v24 = vld [vmem:[#allocation138_spill] sm:$0xff]  ;;  %v13922_v0 = vld [vmem:[#allocation137_spill] sm:$0xff] }
 0xa50   :  { %5971 = vmatpush1.msra.mxu0 %v11630_v23  ;;  %6042 = vmatpush1.msra.mxu1 %v11642_v28  ;;  %v13923_v23 = vld [vmem:[#allocation140_spill] sm:$0xff]  ;;  %v13924_v28 = vld [vmem:[#allocation139_spill] sm:$0xff] }
 0xa51   :  { %5972 = vmatprep.subr.mxu0 %v11638_v37  ;;  %6043 = vmatprep.subr.mxu1 %v11650_v3  ;;  %v13925_v37 = vld [vmem:[#allocation142_spill] sm:$0xff]  ;;  %v13926_v3 = vld [vmem:[#allocation141_spill] sm:$0xff] }
 0xa52   :  { %5973 = vmatpush1.msra.mxu0 %v11646_v43  ;;  %6044 = vmatpush1.msra.mxu1 %v11656_v22  ;;  %v13927_v43 = vld [vmem:[#allocation144_spill] sm:$0xff]  ;;  %v13928_v22 = vld [vmem:[#allocation143_spill] sm:$0xff] }
 0xa53   :  { %5974 = vmatprep.subr.mxu0 %v11652_v54  ;;  %6045 = vmatprep.subr.mxu1 %v13919_v30  ;;  %v13929_v54 = vld [vmem:[#allocation146_spill] sm:$0xff] }
 0xa54   :  { %5975 = vmatpush1.msra.mxu0 %v13920_v11  ;;  %6046 = vmatpush1.msra.mxu1 %v13921_v24  ;;  %v13954_v30 = vld [vmem:[#allocation130_spill] sm:$0xff]  ;;  %v13956_v24 = vld [vmem:[#allocation49_spill] sm:$0xff] }
 0xa55   :  { %5976 = vmatprep.subr.mxu0 %v13922_v0  ;;  %6047 = vmatprep.subr.mxu1 %v13923_v23  ;;  %v13955_v11 = vld [vmem:[#allocation50_spill] sm:$0xff]  ;;  %v13957_v0 = vld [vmem:[#allocation52_spill] sm:$0xff]  ;;  %v13958_v23 = vld [vmem:[#allocation51_spill] sm:$0xff] }
 0xa56   :  { %5977 = vmatpush1.msra.mxu0 %v13924_v28  ;;  %6048 = vmatpush1.msra.mxu1 %v13925_v37  ;;  %v13959_v28 = vld [vmem:[#allocation54_spill] sm:$0xff]  ;;  %v13960_v37 = vld [vmem:[#allocation53_spill] sm:$0xff] }
 0xa57   :  { %5978 = vmatprep.subr.mxu0 %v13926_v3  ;;  %6049 = vmatprep.subr.mxu1 %v13927_v43  ;;  %v13961_v3 = vld [vmem:[#allocation56_spill] sm:$0xff]  ;;  %v13962_v43 = vld [vmem:[#allocation55_spill] sm:$0xff] }
 0xa58   :  { %5979 = vmatpush1.msra.mxu0 %v13928_v22  ;;  %6050 = vmatpush1.msra.mxu1 %v13929_v54  ;;  %v13963_v22 = vld [vmem:[#allocation58_spill] sm:$0xff]  ;;  %v13964_v54 = vld [vmem:[#allocation57_spill] sm:$0xff] }
 0xa59   :  { %5980 = vmatprep.subr.mxu0 %v13930_v50  ;;  %6051 = vmatprep.subr.mxu1 %v13931_v40  ;;  %v13965_v50 = vld [vmem:[#allocation60_spill] sm:$0xff]  ;;  %v13966_v40 = vld [vmem:[#allocation59_spill] sm:$0xff] }
 0xa5a   :  { %5981 = vmatpush1.msra.mxu0 %v13932_v18  ;;  %6052 = vmatpush1.msra.mxu1 %v13933_v63  ;;  %v13967_v18 = vld [vmem:[#allocation62_spill] sm:$0xff]  ;;  %v13968_v63 = vld [vmem:[#allocation61_spill] sm:$0xff] }
 0xa5b   :  { %5982 = vmatprep.subr.mxu0 %v13934_v29  ;;  %6053 = vmatprep.subr.mxu1 %v13935_v60  ;;  %v13969_v29 = vmov 0.0   ;;  %v13970_v60 = vld [vmem:[#allocation103_spill] sm:$0xff] }
 0xa5c   :  { %5983 = vmatpush1.msra.mxu0 %v13936_v42  ;;  %6054 = vmatpush1.msra.mxu1 %v13937_v17  ;;  %v13971_v17 = vld [vmem:[#allocation105_spill] sm:$0xff] }
 0xa5d   :  { %5984 = vmatprep.subr.mxu0 %v13938_v21  ;;  %6055 = vmatprep.subr.mxu1 %v13939_v35 }
 0xa5e   :  { %5985 = vmatpush1.msra.mxu0 %v13940_v8  ;;  %6056 = vmatpush1.msra.mxu1 %v13941_v13 }
 0xa5f   :  { %5986 = vmatprep.subr.mxu0 %v13942_v52  ;;  %6057 = vmatprep.subr.mxu1 %v13943_v6 }
 0xa60   :  { %5987 = vmatpush1.msra.mxu0 %v13944_v41  ;;  %6058 = vmatpush1.msra.mxu1 %v13945_v7 }
 0xa61   :  { %5988 = vmatprep.subr.mxu0 %v13946_v47  ;;  %6059 = vmatprep.subr.mxu1 %v13947_v19 }
 0xa62   :  { %5989 = vmatpush1.msra.mxu0 %v13948_v16  ;;  %6060 = vmatpush1.msra.mxu1 %v13949_v62 }
 0xa63   :  { %5990 = vmatprep.subr.mxu0 %v13950_v4  ;;  %6061 = vmatprep.subr.mxu1 %v13951_v44 }
 0xa64   :  { %5991 = vmatpush1.msra.mxu0 %v13952_v32  ;;  %6062 = vmatpush1.msra.mxu1 %v13953_v45 }
 0xa65   :  { %5992 = vmatprep.subr.mxu0 %v13954_v30  ;;  %6063 = vmatprep.subr.mxu1 %v13955_v11 }
 0xa66   :  { %5993 = vmatpush1.msra.mxu0 %v13956_v24  ;;  %6064 = vmatpush1.msra.mxu1 %v13957_v0 }
 0xa67   :  { %5994 = vmatprep.subr.mxu0 %v13958_v23  ;;  %6065 = vmatprep.subr.mxu1 %v13959_v28 }
 0xa68   :  { %5995 = vmatpush1.msra.mxu0 %v13960_v37  ;;  %6066 = vmatpush1.msra.mxu1 %v13961_v3  ;;  %v12169_v37 = vld [vmem:[#allocation20 + $0x1e8] sm:$0xff]  ;;  %v12175_v3 = vld [vmem:[#allocation20 + $0x1e0] sm:$0xff] }
 0xa69   :  { %5996 = vmatprep.subr.mxu0 %v13962_v43  ;;  %6067 = vmatprep.subr.mxu1 %v13963_v22  ;;  %13973 = vst [vmem:[#allocation126_spill] sm:$0xff] %v12169_v37  ;;  %v12177_v43 = vld [vmem:[#allocation20 + $0x1f0] sm:$0xff]  ;;  %v12181_v22 = vld [vmem:[#allocation20 + $0x1c8] sm:$0xff] }
 0xa6a   :  { %5997 = vmatpush1.msra.mxu0 %v13964_v54  ;;  %6068 = vmatpush1.msra.mxu1 %v13965_v50  ;;  %v12183_v54 = vld [vmem:[#allocation20 + $0x1d8] sm:$0xff]  ;;  %v12187_v50 = vld [vmem:[#allocation20 + $0x1c0] sm:$0xff] }
 0xa6b   :  { %5998 = vmatprep.subr.mxu0 %v13966_v40  ;;  %6069 = vmatprep.subr.mxu1 %v13967_v18  ;;  %v12189_v40 = vld [vmem:[#allocation20 + $0x1d0] sm:$0xff]  ;;  %v12193_v18 = vld [vmem:[#allocation20 + $0x1a8] sm:$0xff] }
 0xa6c   :  { %5999 = vmatpush1.msra.mxu0 %v13968_v63  ;;  %6032 = vmatprep.mubr.f32.mxu0 %v13969_v29  ;;  %v12195_v63 = vld [vmem:[#allocation20 + $0x1b8] sm:$0xff] }
 0xa6d   :  { %6070 = vmatpush1.msra.mxu1 %v13970_v60  ;;  %6103 = vmatprep.mubr.f32.mxu1 %v13969_v29  ;;  %v12199_v60 = vld [vmem:[#allocation20 + $0x1a0] sm:$0xff] }
 0xa6e   :  { %6207 = vmatprep.subr.mxu0 %v12169_v37 }
 0xb0d   :  { %v5795_v42 = vpop.f32.mrf.mxu0  ;;  %v5866_v52 = vpop.f32.mrf.mxu1 }
 0xb0e   :  { %v5871_v21 = vadd.f32 %v5795_v42, %v13971_v17  ;;  %v5873_v47 = vadd.f32 %v5866_v52, %v11977_v61  ;;  %v12201_v42 = vld [vmem:[#allocation20 + $0x1b0] sm:$0xff]  ;;  %v12205_v17 = vld [vmem:[#allocation20 + $0x188] sm:$0xff]  ;;  %v12219_v52 = vld [vmem:[#allocation20 + $0x178] sm:$0xff] }
 0xb0f   :  { %v5797_v35 = vpop.f32.mrf.mxu0  ;;  %v5868_v41 = vpop.f32.mrf.mxu1 }
 0xb10   :  { %v7936_v8 = vmul.f32 -1.442695, %v5871_v21  ;;  %v5872_v13 = vadd.f32 %v5797_v35, %v11980_v1  ;;  %v5874_v7 = vadd.f32 %v5868_v41, %v11983_v20  ;;  %v12207_v21 = vld [vmem:[#allocation20 + $0x198] sm:$0xff]  ;;  %v12211_v35 = vld [vmem:[#allocation20 + $0x180] sm:$0xff]  ;;  %v12225_v41 = vld [vmem:[#allocation20 + $0x170] sm:$0xff] }
 0xb12   :  { %8431 = vpow2.f32 %v7936_v8  ;;  %v7937_v6 = vmul.f32 -1.442695, %v5872_v13  ;;  %v7938_v19 = vmul.f32 -1.442695, %v5874_v7  ;;  %v12213_v8 = vld [vmem:[#allocation20 + $0x190] sm:$0xff]  ;;  %v12217_v13 = vld [vmem:[#allocation20 + $0x168] sm:$0xff] }
 0xb13   :  { %v12229_v7 = vld [vmem:[#allocation20 + $0x148] sm:$0xff] }
 0xb14   :  { %8433 = vpow2.f32 %v7937_v6  ;;  %v12223_v6 = vld [vmem:[#allocation20 + $0x160] sm:$0xff] }
 0xb15   :  { %8435 = vtanh.f32 %v5873_v47  ;;  %v12231_v47 = vld [vmem:[#allocation20 + $0x158] sm:$0xff] }
 0xb16   :  { %8437 = vpow2.f32 %v7938_v19  ;;  %v12235_v19 = vld [vmem:[#allocation20 + $0x140] sm:$0xff] }
 0xb1f   :  { %v8432_v16 = vpop.eup %8431 }
 0xb20   :  { %v5878_v62 = vadd.f32 1.0, %v8432_v16  ;;  %v12237_v16 = vld [vmem:[#allocation20 + $0x150] sm:$0xff] }
 0xb21   :  { %v8434_v4 = vpop.eup %8433 }
 0xb22   :  { %8439 = vrcp.f32 %v5878_v62  ;;  %v5884_v44 = vadd.f32 1.0, %v8434_v4  ;;  %v8436_v32 = vpop.eup %8435  ;;  %v12241_v62 = vld [vmem:[#allocation20 + $0x128] sm:$0xff]  ;;  %v12243_v4 = vld [vmem:[#allocation20 + $0x138] sm:$0xff] }
 0xb23   :  { %v8438_v1 = vpop.eup %8437 }
 0xb24   :  { %8441 = vrcp.f32 %v5884_v44  ;;  %v5891_v24 = vadd.f32 1.0, %v8438_v1  ;;  %v12247_v44 = vld [vmem:[#allocation20 + $0x120] sm:$0xff]  ;;  %v12253_v1 = vld [vmem:[#allocation20 + $0x108] sm:$0xff] }
 0xb26   :  { %8443 = vrcp.f32 %v5891_v24  ;;  %v12263_v24 = vld [vmem:[#allocation20 + $0xe8] sm:$0xff] }
 0xb2f   :  { %v8440_v45 = vpop.eup %8439 }
 0xb30   :  { %v5895_v30 = vmul.f32 %v8440_v45, %v8436_v32  ;;  %v12249_v32 = vld [vmem:[#allocation20 + $0x130] sm:$0xff]  ;;  %v12255_v45 = vld [vmem:[#allocation20 + $0x118] sm:$0xff] }
 0xb31   :  { %v8442_v11 = vpop.eup %8441 }
 0xb32   :  { %v5894_v0 = vmul.f32 %v8442_v11, %v12084_v2  ;;  %v12171_v2 = vld [vmem:[#allocation20 + $0x1f8] sm:$0xff]  ;;  %v12261_v11 = vld [vmem:[#allocation20 + $0x110] sm:$0xff] }
 0xb33   :  { %v8444_v61 = vpop.eup %8443  ;;  %13974 = vst [vmem:[#allocation124_spill] sm:$0xff] %v12171_v2  ;;  %6278 = vmatprep.subr.mxu1 %v12171_v2 }
 0xb34   :  { %v12160_v20 = vadd.f32 %v5895_v30, %v5894_v0  ;;  %v12257_v30 = vld [vmem:[#allocation20 + $0x100] sm:$0xff]  ;;  %v12265_v0 = vld [vmem:[#allocation20 + $0xf8] sm:$0xff] }
 0xb36   :  { %8445 = vtanh.f32 %v12160_v20 }
 0xb43   :  { %v8446_v23 = vpop.eup %8445 }
 0xb44   :  { %v12163_v28 = vmul.f32 %v8446_v23, %v8444_v61  ;;  %v12269_v61 = vld [vmem:[#allocation20 + $0xe0] sm:$0xff]  ;;  %v12271_v23 = vld [vmem:[#allocation20 + $0xf0] sm:$0xff] }
 0xb46   :  { %13972 = vst [vmem:[#allocation125_spill] sm:$0xff] %v12163_v28  ;;  %6033 = vmatmul.mubr.f32.vlgmr.msra.gmra.mxu0 %v12163_v28  ;;  %6104 = vmatmul.mubr.f32.vlgmr.msra.gmra.mxu1 %v12163_v28  ;;  %v12285_v28 = vld [vmem:[#allocation20 + $0xa8] sm:$0xff] }
 0xb47   :  { %6271 = vmatprep.mubr.f32.mxu0 %v13969_v29  ;;  %6342 = vmatprep.mubr.f32.mxu1 %v13969_v29  ;;  %v12339_v29 = vld [vmem:[#allocation20 + $0x20] sm:$0xff] }
 0xb48   :  { %6208 = vmatpush1.msra.mxu0 %v12175_v3  ;;  %6279 = vmatpush1.msra.mxu1 %v12177_v43  ;;  %13986 = vst [vmem:[#allocation79_spill] sm:$0xff] %v12339_v29 }
 0xb49   :  { %6209 = vmatprep.subr.mxu0 %v12181_v22  ;;  %6280 = vmatprep.subr.mxu1 %v12183_v54 }
 0xb4a   :  { %6210 = vmatpush1.msra.mxu0 %v12187_v50  ;;  %6281 = vmatpush1.msra.mxu1 %v12189_v40 }
 0xb4b   :  { %6211 = vmatprep.subr.mxu0 %v12193_v18  ;;  %6282 = vmatprep.subr.mxu1 %v12195_v63 }
 0xb4c   :  { %6212 = vmatpush1.msra.mxu0 %v12199_v60  ;;  %6283 = vmatpush1.msra.mxu1 %v12201_v42 }
 0xb4d   :  { %6213 = vmatprep.subr.mxu0 %v12205_v17  ;;  %6284 = vmatprep.subr.mxu1 %v12207_v21 }
 0xb4e   :  { %6214 = vmatpush1.msra.mxu0 %v12211_v35  ;;  %6285 = vmatpush1.msra.mxu1 %v12213_v8 }
 0xb4f   :  { %6215 = vmatprep.subr.mxu0 %v12217_v13  ;;  %6286 = vmatprep.subr.mxu1 %v12219_v52 }
 0xb50   :  { %6216 = vmatpush1.msra.mxu0 %v12223_v6  ;;  %6287 = vmatpush1.msra.mxu1 %v12225_v41 }
 0xb51   :  { %6217 = vmatprep.subr.mxu0 %v12229_v7  ;;  %6288 = vmatprep.subr.mxu1 %v12231_v47 }
 0xb52   :  { %6218 = vmatpush1.msra.mxu0 %v12235_v19  ;;  %6289 = vmatpush1.msra.mxu1 %v12237_v16 }
 0xb53   :  { %6219 = vmatprep.subr.mxu0 %v12241_v62  ;;  %6290 = vmatprep.subr.mxu1 %v12243_v4 }
 0xb54   :  { %6220 = vmatpush1.msra.mxu0 %v12247_v44  ;;  %6291 = vmatpush1.msra.mxu1 %v12249_v32 }
 0xb55   :  { %6221 = vmatprep.subr.mxu0 %v12253_v1  ;;  %6292 = vmatprep.subr.mxu1 %v12255_v45 }
 0xb56   :  { %6222 = vmatpush1.msra.mxu0 %v12257_v30  ;;  %6293 = vmatpush1.msra.mxu1 %v12261_v11 }
 0xb57   :  { %6223 = vmatprep.subr.mxu0 %v12263_v24  ;;  %6294 = vmatprep.subr.mxu1 %v12265_v0 }
 0xb58   :  { %6224 = vmatpush1.msra.mxu0 %v12269_v61  ;;  %6295 = vmatpush1.msra.mxu1 %v12271_v23 }
 0xb59   :  { %6225 = vmatprep.subr.mxu0 %v12273_v31  ;;  %6296 = vmatprep.subr.mxu1 %v12277_v53 }
 0xb5a   :  { %6226 = vmatpush1.msra.mxu0 %v12279_v58  ;;  %6297 = vmatpush1.msra.mxu1 %v12281_v12 }
 0xb5b   :  { %6227 = vmatprep.subr.mxu0 %v12285_v28  ;;  %6298 = vmatprep.subr.mxu1 %v12287_v59 }
 0xb5c   :  { %6228 = vmatpush1.msra.mxu0 %v12291_v38  ;;  %6299 = vmatpush1.msra.mxu1 %v12293_v39 }
 0xb5d   :  { %6229 = vmatprep.subr.mxu0 %v12297_v5  ;;  %6300 = vmatprep.subr.mxu1 %v12299_v51 }
 0xb5e   :  { %6230 = vmatpush1.msra.mxu0 %v12303_v10  ;;  %6301 = vmatpush1.msra.mxu1 %v12305_v9 }
 0xb5f   :  { %6231 = vmatprep.subr.mxu0 %v12309_v14  ;;  %6302 = vmatprep.subr.mxu1 %v12311_v27  ;;  %v12341_v14 = vld [vmem:[#allocation20 + $0x30] sm:$0xff]  ;;  %v12345_v27 = vld [vmem:[#allocation20 + $0x8] sm:$0xff] }
 0xb60   :  { %6232 = vmatpush1.msra.mxu0 %v12315_v33  ;;  %6303 = vmatpush1.msra.mxu1 %v12317_v49  ;;  %13987 = vst [vmem:[#allocation80_spill] sm:$0xff] %v12341_v14  ;;  %13988 = vst [vmem:[#allocation81_spill] sm:$0xff] %v12345_v27  ;;  %v12347_v33 = vld [vmem:[#allocation20 + $0x18] sm:$0xff]  ;;  %v12351_v49 = vld [vmem:[#allocation20] sm:$0xff] }
 0xb61   :  { %6233 = vmatprep.subr.mxu0 %v12321_v56  ;;  %6304 = vmatprep.subr.mxu1 %v12323_v34  ;;  %13989 = vst [vmem:[#allocation82_spill] sm:$0xff] %v12347_v33  ;;  %13990 = vst [vmem:[#allocation83_spill] sm:$0xff] %v12351_v49  ;;  %v12353_v56 = vld [vmem:[#allocation20 + $0x10] sm:$0xff] }
 0xb62   :  { %6234 = vmatpush1.msra.mxu0 %v12327_v36  ;;  %6305 = vmatpush1.msra.mxu1 %v12329_v48  ;;  %13991 = vst [vmem:[#allocation84_spill] sm:$0xff] %v12353_v56 }
 0xb63   :  { %6235 = vmatprep.subr.mxu0 %v12333_v26  ;;  %6306 = vmatprep.subr.mxu1 %v12335_v57 }
 0xb64   :  { %6236 = vmatpush1.msra.mxu0 %v12339_v29  ;;  %6307 = vmatpush1.msra.mxu1 %v12341_v14 }
 0xb65   :  { %6237 = vmatprep.subr.mxu0 %v12345_v27  ;;  %6308 = vmatprep.subr.mxu1 %v12347_v33 }
 0xb66   :  { %6238 = vmatpush1.msra.mxu0 %v12351_v49  ;;  %6309 = vmatpush1.msra.mxu1 %v12353_v56 }
 0xb67   :  { %6446 = vmatprep.subr.mxu0 %v12169_v37  ;;  %6517 = vmatprep.subr.mxu1 %v12171_v2 }
 0xc06   :  { %v6034_v57 = vpop.f32.mrf.mxu0  ;;  %v6105_v14 = vpop.f32.mrf.mxu1 }
 0xc07   :  { %v6110_v26 = vadd.f32 %v6034_v57, %v11986_v55  ;;  %v6112_v56 = vadd.f32 %v6105_v14, %v11989_v15  ;;  %v13995_v14 = vld [vmem:[#allocation35_spill] sm:$0xff] }
 0xc08   :  { %v6036_v48 = vpop.f32.mrf.mxu0  ;;  %v6107_v33 = vpop.f32.mrf.mxu1 }
 0xc09   :  { %v7939_v36 = vmul.f32 -1.442695, %v6110_v26  ;;  %v6111_v29 = vadd.f32 %v6036_v48, %v11992_v46  ;;  %v6113_v49 = vadd.f32 %v6107_v33, %v11995_v25 }
 0xc0b   :  { %8447 = vpow2.f32 %v7939_v36  ;;  %v7940_v27 = vmul.f32 -1.442695, %v6111_v29  ;;  %v7941_v34 = vmul.f32 -1.442695, %v6113_v49  ;;  %v13994_v49 = vld [vmem:[#allocation37_spill] sm:$0xff] }
 0xc0d   :  { %8449 = vpow2.f32 %v7940_v27 }
 0xc0e   :  { %8451 = vtanh.f32 %v6112_v56 }
 0xc0f   :  { %8453 = vpow2.f32 %v7941_v34  ;;  %v13993_v34 = vld [vmem:[#allocation75_spill] sm:$0xff] }
 0xc18   :  { %v8448_v37 = vpop.eup %8447 }
 0xc19   :  { %v6117_v9 = vadd.f32 1.0, %v8448_v37  ;;  %v13998_v37 = vld [vmem:[#allocation131_spill] sm:$0xff] }
 0xc1a   :  { %v8450_v2 = vpop.eup %8449 }
 0xc1b   :  { %8455 = vrcp.f32 %v6117_v9  ;;  %v6123_v55 = vadd.f32 1.0, %v8450_v2  ;;  %v8452_v57 = vpop.eup %8451  ;;  %v13996_v9 = vld [vmem:[#allocation38_spill] sm:$0xff]  ;;  %v13999_v2 = vld [vmem:[#allocation133_spill] sm:$0xff] }
 0xc1c   :  { %v8454_v46 = vpop.eup %8453 }
 0xc1d   :  { %8457 = vrcp.f32 %v6123_v55  ;;  %v6130_v27 = vadd.f32 1.0, %v8454_v46  ;;  %v14000_v55 = vld [vmem:[#allocation134_spill] sm:$0xff]  ;;  %v14002_v46 = vld [vmem:[#allocation77_spill] sm:$0xff] }
 0xc1f   :  { %8459 = vrcp.f32 %v6130_v27  ;;  %v14006_v27 = vld [vmem:[#allocation81_spill] sm:$0xff] }
 0xc28   :  { %v8456_v36 = vpop.eup %8455 }
 0xc29   :  { %v6134_v26 = vmul.f32 %v8456_v36, %v8452_v57  ;;  %v14001_v57 = vld [vmem:[#allocation132_spill] sm:$0xff]  ;;  %v14003_v36 = vld [vmem:[#allocation78_spill] sm:$0xff] }
 0xc2a   :  { %v8458_v48 = vpop.eup %8457 }
 0xc2b   :  { %v6133_v29 = vmul.f32 %v8458_v48, %v12160_v20  ;;  %v13997_v20 = vld [vmem:[#allocation36_spill] sm:$0xff] }
 0xc2c   :  { %v8460_v15 = vpop.eup %8459  ;;  %v14005_v48 = vld [vmem:[#allocation80_spill] sm:$0xff] }
 0xc2d   :  { %v12368_v25 = vadd.f32 %v6134_v26, %v6133_v29  ;;  %v14004_v26 = vld [vmem:[#allocation79_spill] sm:$0xff]  ;;  %v14007_v29 = vld [vmem:[#allocation82_spill] sm:$0xff] }
 0xc2f   :  { %8461 = vtanh.f32 %v12368_v25 }
 0xc3c   :  { %v8462_v33 = vpop.eup %8461 }
 0xc3d   :  { %v12371_v56 = vmul.f32 %v8462_v33, %v8460_v15  ;;  %v14008_v15 = vld [vmem:[#allocation83_spill] sm:$0xff]  ;;  %v14009_v33 = vmov 0.0  }
 0xc3f   :  { %13992 = vst [vmem:[#allocation85_spill] sm:$0xff] %v12371_v56  ;;  %6272 = vmatmul.mubr.f32.vlgmr.msra.gmra.mxu0 %v12371_v56  ;;  %6343 = vmatmul.mubr.f32.vlgmr.msra.gmra.mxu1 %v12371_v56  ;;  %v14010_v56 = vld [vmem:[#allocation84_spill] sm:$0xff] }
 0xc40   :  { %6447 = vmatpush1.msra.mxu0 %v12175_v3  ;;  %6518 = vmatpush1.msra.mxu1 %v12177_v43 }
 0xc41   :  { %6448 = vmatprep.subr.mxu0 %v12181_v22  ;;  %6519 = vmatprep.subr.mxu1 %v12183_v54 }
 0xc42   :  { %6449 = vmatpush1.msra.mxu0 %v12187_v50  ;;  %6520 = vmatpush1.msra.mxu1 %v12189_v40 }
 0xc43   :  { %6450 = vmatprep.subr.mxu0 %v12193_v18  ;;  %6521 = vmatprep.subr.mxu1 %v12195_v63 }
 0xc44   :  { %6451 = vmatpush1.msra.mxu0 %v12199_v60  ;;  %6522 = vmatpush1.msra.mxu1 %v12201_v42 }
 0xc45   :  { %6452 = vmatprep.subr.mxu0 %v12205_v17  ;;  %6523 = vmatprep.subr.mxu1 %v12207_v21 }
 0xc46   :  { %6453 = vmatpush1.msra.mxu0 %v12211_v35  ;;  %6524 = vmatpush1.msra.mxu1 %v12213_v8 }
 0xc47   :  { %6454 = vmatprep.subr.mxu0 %v12217_v13  ;;  %6525 = vmatprep.subr.mxu1 %v12219_v52 }
 0xc48   :  { %6455 = vmatpush1.msra.mxu0 %v12223_v6  ;;  %6526 = vmatpush1.msra.mxu1 %v12225_v41 }
 0xc49   :  { %6456 = vmatprep.subr.mxu0 %v12229_v7  ;;  %6527 = vmatprep.subr.mxu1 %v12231_v47 }
 0xc4a   :  { %6457 = vmatpush1.msra.mxu0 %v12235_v19  ;;  %6528 = vmatpush1.msra.mxu1 %v12237_v16 }
 0xc4b   :  { %6458 = vmatprep.subr.mxu0 %v12241_v62  ;;  %6529 = vmatprep.subr.mxu1 %v12243_v4 }
 0xc4c   :  { %6459 = vmatpush1.msra.mxu0 %v12247_v44  ;;  %6530 = vmatpush1.msra.mxu1 %v12249_v32 }
 0xc4d   :  { %6460 = vmatprep.subr.mxu0 %v12253_v1  ;;  %6531 = vmatprep.subr.mxu1 %v12255_v45 }
 0xc4e   :  { %6461 = vmatpush1.msra.mxu0 %v12257_v30  ;;  %6532 = vmatpush1.msra.mxu1 %v12261_v11 }
 0xc4f   :  { %6462 = vmatprep.subr.mxu0 %v12263_v24  ;;  %6533 = vmatprep.subr.mxu1 %v12265_v0 }
 0xc50   :  { %6463 = vmatpush1.msra.mxu0 %v12269_v61  ;;  %6534 = vmatpush1.msra.mxu1 %v12271_v23 }
 0xc51   :  { %6464 = vmatprep.subr.mxu0 %v12273_v31  ;;  %6535 = vmatprep.subr.mxu1 %v12277_v53 }
 0xc52   :  { %6465 = vmatpush1.msra.mxu0 %v12279_v58  ;;  %6536 = vmatpush1.msra.mxu1 %v12281_v12 }
 0xc53   :  { %6466 = vmatprep.subr.mxu0 %v12285_v28  ;;  %6537 = vmatprep.subr.mxu1 %v12287_v59 }
 0xc54   :  { %6467 = vmatpush1.msra.mxu0 %v12291_v38  ;;  %6538 = vmatpush1.msra.mxu1 %v12293_v39 }
 0xc55   :  { %6468 = vmatprep.subr.mxu0 %v12297_v5  ;;  %6539 = vmatprep.subr.mxu1 %v12299_v51 }
 0xc56   :  { %6469 = vmatpush1.msra.mxu0 %v12303_v10  ;;  %6540 = vmatpush1.msra.mxu1 %v13993_v34 }
 0xc57   :  { %6470 = vmatprep.subr.mxu0 %v13994_v49  ;;  %6541 = vmatprep.subr.mxu1 %v13995_v14  ;;  %v14016_v14 = vld [vmem:[#allocation104_spill] sm:$0xff] }
 0xc58   :  { %6471 = vmatpush1.msra.mxu0 %v13996_v9  ;;  %6542 = vmatpush1.msra.mxu1 %v13997_v20  ;;  %v14015_v9 = vld [vmem:[#allocation117_spill] sm:$0xff] }
 0xc59   :  { %6472 = vmatprep.subr.mxu0 %v13998_v37  ;;  %6543 = vmatprep.subr.mxu1 %v13999_v2 }
 0xc5a   :  { %6473 = vmatpush1.msra.mxu0 %v14000_v55  ;;  %6544 = vmatpush1.msra.mxu1 %v14001_v57  ;;  %v14011_v57 = vld [vmem:[#allocation126_spill] sm:$0xff] }
 0xc5b   :  { %6474 = vmatprep.subr.mxu0 %v14002_v46  ;;  %6545 = vmatprep.subr.mxu1 %v14003_v36  ;;  %v14012_v46 = vld [vmem:[#allocation124_spill] sm:$0xff] }
 0xc5c   :  { %6475 = vmatpush1.msra.mxu0 %v14004_v26  ;;  %6546 = vmatpush1.msra.mxu1 %v14005_v48  ;;  %v14013_v26 = vld [vmem:[#allocation106_spill] sm:$0xff] }
 0xc5d   :  { %6476 = vmatprep.subr.mxu0 %v14006_v27  ;;  %6547 = vmatprep.subr.mxu1 %v14007_v29  ;;  %v14014_v27 = vld [vmem:[#allocation115_spill] sm:$0xff] }
 0xc5e   :  { %6477 = vmatpush1.msra.mxu0 %v14008_v15  ;;  %6510 = vmatprep.mubr.f32.mxu0 %v14009_v33 }
 0xc5f   :  { %6548 = vmatpush1.msra.mxu1 %v14010_v56  ;;  %6581 = vmatprep.mubr.f32.mxu1 %v14009_v33 }
 0xc60   :  { %6685 = vmatprep.subr.mxu0 %v14011_v57  ;;  %6756 = vmatprep.subr.mxu1 %v14012_v46 }
 0xcff   :  { %v6273_v36 = vpop.f32.mrf.mxu0  ;;  %v6344_v29 = vpop.f32.mrf.mxu1 }
 0xd00   :  { %v6349_v55 = vadd.f32 %v6273_v36, %v14013_v26  ;;  %v6351_v33 = vadd.f32 %v6344_v29, %v14016_v14  ;;  %v14023_v29 = vld [vmem:[#allocation131_spill] sm:$0xff] }
 0xd01   :  { %v6275_v48 = vpop.f32.mrf.mxu0  ;;  %v6346_v20 = vpop.f32.mrf.mxu1 }
 0xd02   :  { %v7942_v2 = vmul.f32 -1.442695, %v6349_v55  ;;  %v6350_v37 = vadd.f32 %v6275_v48, %v14014_v27  ;;  %v6352_v56 = vadd.f32 %v6346_v20, %v14015_v9 }
 0xd04   :  { %8463 = vpow2.f32 %v7942_v2  ;;  %v7943_v15 = vmul.f32 -1.442695, %v6350_v37  ;;  %v7944_v49 = vmul.f32 -1.442695, %v6352_v56 }
 0xd06   :  { %8465 = vpow2.f32 %v7943_v15 }
 0xd07   :  { %8467 = vtanh.f32 %v6351_v33  ;;  %v14024_v33 = vld [vmem:[#allocation133_spill] sm:$0xff] }
 0xd08   :  { %8469 = vpow2.f32 %v7944_v49  ;;  %v14020_v49 = vld [vmem:[#allocation35_spill] sm:$0xff] }
 0xd11   :  { %v8464_v57 = vpop.eup %8463 }
 0xd12   :  { %v6356_v34 = vadd.f32 1.0, %v8464_v57  ;;  %v14021_v57 = vld [vmem:[#allocation38_spill] sm:$0xff] }
 0xd13   :  { %v8466_v46 = vpop.eup %8465 }
 0xd14   :  { %8471 = vrcp.f32 %v6356_v34  ;;  %v6362_v36 = vadd.f32 1.0, %v8466_v46  ;;  %v8468_v55 = vpop.eup %8467  ;;  %v14019_v34 = vld [vmem:[#allocation37_spill] sm:$0xff]  ;;  %v14022_v46 = vld [vmem:[#allocation36_spill] sm:$0xff] }
 0xd15   :  { %v8470_v26 = vpop.eup %8469 }
 0xd16   :  { %8473 = vrcp.f32 %v6362_v36  ;;  %v6369_v27 = vadd.f32 1.0, %v8470_v26  ;;  %v14025_v36 = vld [vmem:[#allocation134_spill] sm:$0xff]  ;;  %v14027_v26 = vld [vmem:[#allocation77_spill] sm:$0xff] }
 0xd18   :  { %8475 = vrcp.f32 %v6369_v27  ;;  %v14031_v27 = vld [vmem:[#allocation81_spill] sm:$0xff] }
 0xd21   :  { %v8472_v2 = vpop.eup %8471 }
 0xd22   :  { %v6373_v48 = vmul.f32 %v8472_v2, %v8468_v55  ;;  %v14026_v55 = vld [vmem:[#allocation132_spill] sm:$0xff]  ;;  %v14028_v2 = vld [vmem:[#allocation78_spill] sm:$0xff] }
 0xd23   :  { %v8474_v37 = vpop.eup %8473 }
 0xd24   :  { %v6372_v15 = vmul.f32 %v8474_v37, %v12368_v25  ;;  %v14018_v25 = vld [vmem:[#allocation75_spill] sm:$0xff]  ;;  %v14030_v37 = vld [vmem:[#allocation80_spill] sm:$0xff] }
 0xd25   :  { %v8476_v56 = vpop.eup %8475 }
 0xd26   :  { %v12446_v9 = vadd.f32 %v6373_v48, %v6372_v15  ;;  %v14029_v48 = vld [vmem:[#allocation79_spill] sm:$0xff]  ;;  %v14032_v15 = vld [vmem:[#allocation82_spill] sm:$0xff] }
 0xd28   :  { %8477 = vtanh.f32 %v12446_v9 }
 0xd35   :  { %v8478_v14 = vpop.eup %8477 }
 0xd36   :  { %v12449_v20 = vmul.f32 %v8478_v14, %v8476_v56  ;;  %v14033_v56 = vld [vmem:[#allocation83_spill] sm:$0xff]  ;;  %v14034_v14 = vmov 0.0  }
 0xd38   :  { %14017 = vst [vmem:[#allocation86_spill] sm:$0xff] %v12449_v20  ;;  %6511 = vmatmul.mubr.f32.vlgmr.msra.gmra.mxu0 %v12449_v20  ;;  %6582 = vmatmul.mubr.f32.vlgmr.msra.gmra.mxu1 %v12449_v20  ;;  %v14035_v20 = vld [vmem:[#allocation84_spill] sm:$0xff] }
 0xd39   :  { %6686 = vmatpush1.msra.mxu0 %v12175_v3  ;;  %6757 = vmatpush1.msra.mxu1 %v12177_v43 }
 0xd3a   :  { %6687 = vmatprep.subr.mxu0 %v12181_v22  ;;  %6758 = vmatprep.subr.mxu1 %v12183_v54 }
 0xd3b   :  { %6688 = vmatpush1.msra.mxu0 %v12187_v50  ;;  %6759 = vmatpush1.msra.mxu1 %v12189_v40 }
 0xd3c   :  { %6689 = vmatprep.subr.mxu0 %v12193_v18  ;;  %6760 = vmatprep.subr.mxu1 %v12195_v63 }
 0xd3d   :  { %6690 = vmatpush1.msra.mxu0 %v12199_v60  ;;  %6761 = vmatpush1.msra.mxu1 %v12201_v42 }
 0xd3e   :  { %6691 = vmatprep.subr.mxu0 %v12205_v17  ;;  %6762 = vmatprep.subr.mxu1 %v12207_v21 }
 0xd3f   :  { %6692 = vmatpush1.msra.mxu0 %v12211_v35  ;;  %6763 = vmatpush1.msra.mxu1 %v12213_v8 }
 0xd40   :  { %6693 = vmatprep.subr.mxu0 %v12217_v13  ;;  %6764 = vmatprep.subr.mxu1 %v12219_v52 }
 0xd41   :  { %6694 = vmatpush1.msra.mxu0 %v12223_v6  ;;  %6765 = vmatpush1.msra.mxu1 %v12225_v41 }
 0xd42   :  { %6695 = vmatprep.subr.mxu0 %v12229_v7  ;;  %6766 = vmatprep.subr.mxu1 %v12231_v47 }
 0xd43   :  { %6696 = vmatpush1.msra.mxu0 %v12235_v19  ;;  %6767 = vmatpush1.msra.mxu1 %v12237_v16 }
 0xd44   :  { %6697 = vmatprep.subr.mxu0 %v12241_v62  ;;  %6768 = vmatprep.subr.mxu1 %v12243_v4 }
 0xd45   :  { %6698 = vmatpush1.msra.mxu0 %v12247_v44  ;;  %6769 = vmatpush1.msra.mxu1 %v12249_v32 }
 0xd46   :  { %6699 = vmatprep.subr.mxu0 %v12253_v1  ;;  %6770 = vmatprep.subr.mxu1 %v12255_v45 }
 0xd47   :  { %6700 = vmatpush1.msra.mxu0 %v12257_v30  ;;  %6771 = vmatpush1.msra.mxu1 %v12261_v11 }
 0xd48   :  { %6701 = vmatprep.subr.mxu0 %v12263_v24  ;;  %6772 = vmatprep.subr.mxu1 %v12265_v0 }
 0xd49   :  { %6702 = vmatpush1.msra.mxu0 %v12269_v61  ;;  %6773 = vmatpush1.msra.mxu1 %v12271_v23 }
 0xd4a   :  { %6703 = vmatprep.subr.mxu0 %v12273_v31  ;;  %6774 = vmatprep.subr.mxu1 %v12277_v53 }
 0xd4b   :  { %6704 = vmatpush1.msra.mxu0 %v12279_v58  ;;  %6775 = vmatpush1.msra.mxu1 %v12281_v12 }
 0xd4c   :  { %6705 = vmatprep.subr.mxu0 %v12285_v28  ;;  %6776 = vmatprep.subr.mxu1 %v12287_v59 }
 0xd4d   :  { %6706 = vmatpush1.msra.mxu0 %v12291_v38  ;;  %6777 = vmatpush1.msra.mxu1 %v12293_v39 }
 0xd4e   :  { %6707 = vmatprep.subr.mxu0 %v12297_v5  ;;  %6778 = vmatprep.subr.mxu1 %v12299_v51 }
 0xd4f   :  { %6708 = vmatpush1.msra.mxu0 %v12303_v10  ;;  %6779 = vmatpush1.msra.mxu1 %v14018_v25 }
 0xd50   :  { %6709 = vmatprep.subr.mxu0 %v14019_v34  ;;  %6780 = vmatprep.subr.mxu1 %v14020_v49  ;;  %v14041_v49 = vld [vmem:[#allocation116_spill] sm:$0xff] }
 0xd51   :  { %6710 = vmatpush1.msra.mxu0 %v14021_v57  ;;  %6781 = vmatpush1.msra.mxu1 %v14022_v46  ;;  %v14040_v57 = vld [vmem:[#allocation65_spill] sm:$0xff] }
 0xd52   :  { %6711 = vmatprep.subr.mxu0 %v14023_v29  ;;  %6782 = vmatprep.subr.mxu1 %v14024_v33 }
 0xd53   :  { %6712 = vmatpush1.msra.mxu0 %v14025_v36  ;;  %6783 = vmatpush1.msra.mxu1 %v14026_v55  ;;  %v14036_v55 = vld [vmem:[#allocation126_spill] sm:$0xff] }
 0xd54   :  { %6713 = vmatprep.subr.mxu0 %v14027_v26  ;;  %6784 = vmatprep.subr.mxu1 %v14028_v2  ;;  %v14037_v26 = vld [vmem:[#allocation124_spill] sm:$0xff] }
 0xd55   :  { %6714 = vmatpush1.msra.mxu0 %v14029_v48  ;;  %6785 = vmatpush1.msra.mxu1 %v14030_v37  ;;  %v14038_v48 = vld [vmem:[#allocation118_spill] sm:$0xff] }
 0xd56   :  { %6715 = vmatprep.subr.mxu0 %v14031_v27  ;;  %6786 = vmatprep.subr.mxu1 %v14032_v15  ;;  %v14039_v27 = vld [vmem:[#allocation64_spill] sm:$0xff] }
 0xd57   :  { %6716 = vmatpush1.msra.mxu0 %v14033_v56  ;;  %6749 = vmatprep.mubr.f32.mxu0 %v14034_v14 }
 0xd58   :  { %6787 = vmatpush1.msra.mxu1 %v14035_v20  ;;  %6820 = vmatprep.mubr.f32.mxu1 %v14034_v14 }
 0xd59   :  { %6924 = vmatprep.subr.mxu0 %v14036_v55  ;;  %6995 = vmatprep.subr.mxu1 %v14037_v26 }
 0xdf8   :  { %v6512_v2 = vpop.f32.mrf.mxu0  ;;  %v6583_v15 = vpop.f32.mrf.mxu1 }
 0xdf9   :  { %v6588_v36 = vadd.f32 %v6512_v2, %v14038_v48  ;;  %v6590_v14 = vadd.f32 %v6583_v15, %v14041_v49  ;;  %v7160_v15 = vld [vmem:[#allocation20 + $0x1e8] sm:$0xff] }
 0xdfa   :  { %v6514_v37 = vpop.f32.mrf.mxu0  ;;  %v6585_v46 = vpop.f32.mrf.mxu1 }
 0xdfb   :  { %v7945_v33 = vmul.f32 -1.442695, %v6588_v36  ;;  %v6589_v29 = vadd.f32 %v6514_v37, %v14039_v27  ;;  %v6591_v20 = vadd.f32 %v6585_v46, %v14040_v57 }
 0xdfd   :  { %8479 = vpow2.f32 %v7945_v33  ;;  %v7946_v56 = vmul.f32 -1.442695, %v6589_v29  ;;  %v7947_v34 = vmul.f32 -1.442695, %v6591_v20 }
 0xdff   :  { %8481 = vpow2.f32 %v7946_v56 }
 0xe00   :  { %8483 = vtanh.f32 %v6590_v14  ;;  %v7159_v14 = vld [vmem:[#allocation20 + $0x1e0] sm:$0xff] }
 0xe01   :  { %8485 = vpow2.f32 %v7947_v34 }
 0xe0a   :  { %v8480_v55 = vpop.eup %8479 }
 0xe0b   :  { %v6595_v25 = vadd.f32 1.0, %v8480_v55  ;;  %v7162_v55 = vld [vmem:[#allocation20 + $0x1f8] sm:$0xff] }
 0xe0c   :  { %v8482_v26 = vpop.eup %8481 }
 0xe0d   :  { %8487 = vrcp.f32 %v6595_v25  ;;  %v6601_v2 = vadd.f32 1.0, %v8482_v26  ;;  %v8484_v36 = vpop.eup %8483  ;;  %v7156_v26 = vld [vmem:[#allocation20 + $0x1c8] sm:$0xff] }
 0xe0e   :  { %v8486_v48 = vpop.eup %8485 }
 0xe0f   :  { %8489 = vrcp.f32 %v6601_v2  ;;  %v6608_v27 = vadd.f32 1.0, %v8486_v48  ;;  %v7161_v2 = vld [vmem:[#allocation20 + $0x1f0] sm:$0xff]  ;;  %v7158_v48 = vld [vmem:[#allocation20 + $0x1d8] sm:$0xff] }
 0xe11   :  { %8491 = vrcp.f32 %v6608_v27  ;;  %v7154_v27 = vld [vmem:[#allocation20 + $0x1b8] sm:$0xff] }
 0xe1a   :  { %v8488_v33 = vpop.eup %8487 }
 0xe1b   :  { %v6612_v37 = vmul.f32 %v8488_v33, %v8484_v36  ;;  %v7155_v36 = vld [vmem:[#allocation20 + $0x1c0] sm:$0xff]  ;;  %v7152_v33 = vld [vmem:[#allocation20 + $0x1a8] sm:$0xff] }
 0xe1c   :  { %v8490_v29 = vpop.eup %8489 }
 0xe1d   :  { %v6611_v56 = vmul.f32 %v8490_v29, %v12446_v9  ;;  %v7151_v29 = vld [vmem:[#allocation20 + $0x1a0] sm:$0xff] }
 0xe1e   :  { %v8492_v20 = vpop.eup %8491 }
 0xe1f   :  { %v12524_v57 = vadd.f32 %v6612_v37, %v6611_v56  ;;  %v7157_v37 = vld [vmem:[#allocation20 + $0x1d0] sm:$0xff]  ;;  %v7148_v56 = vld [vmem:[#allocation20 + $0x188] sm:$0xff] }
 0xe21   :  { %8493 = vtanh.f32 %v12524_v57 }
 0xe2e   :  { %v8494_v49 = vpop.eup %8493 }
 0xe2f   :  { %v12527_v46 = vmul.f32 %v8494_v49, %v8492_v20  ;;  %v7147_v20 = vld [vmem:[#allocation20 + $0x180] sm:$0xff]  ;;  %v7150_v49 = vld [vmem:[#allocation20 + $0x198] sm:$0xff] }
 0xe31   :  { %6750 = vmatmul.mubr.f32.vlgmr.msra.gmra.mxu0 %v12527_v46  ;;  %6821 = vmatmul.mubr.f32.vlgmr.msra.gmra.mxu1 %v12527_v46 }
 0xe32   :  { %6925 = vmatpush1.msra.mxu0 %v12175_v3  ;;  %6996 = vmatpush1.msra.mxu1 %v12177_v43  ;;  %v14053_v3 = vld [vmem:[#allocation79_spill] sm:$0xff]  ;;  %v14054_v43 = vld [vmem:[#allocation80_spill] sm:$0xff] }
 0xe33   :  { %6926 = vmatprep.subr.mxu0 %v12181_v22  ;;  %6997 = vmatprep.subr.mxu1 %v12183_v54  ;;  %v14055_v22 = vld [vmem:[#allocation81_spill] sm:$0xff]  ;;  %v14056_v54 = vld [vmem:[#allocation82_spill] sm:$0xff] }
 0xe34   :  { %6927 = vmatpush1.msra.mxu0 %v12187_v50  ;;  %6998 = vmatpush1.msra.mxu1 %v12189_v40  ;;  %v14057_v50 = vld [vmem:[#allocation83_spill] sm:$0xff]  ;;  %v14058_v40 = vmov 0.0  }
 0xe35   :  { %6928 = vmatprep.subr.mxu0 %v12193_v18  ;;  %6999 = vmatprep.subr.mxu1 %v12195_v63  ;;  %v14059_v18 = vld [vmem:[#allocation84_spill] sm:$0xff] }
 0xe36   :  { %6929 = vmatpush1.msra.mxu0 %v12199_v60  ;;  %7000 = vmatpush1.msra.mxu1 %v12201_v42  ;;  %v14060_v60 = vld [vmem:[#allocation66_spill] sm:$0xff] }
 0xe37   :  { %6930 = vmatprep.subr.mxu0 %v12205_v17  ;;  %7001 = vmatprep.subr.mxu1 %v12207_v21 }
 0xe38   :  { %6931 = vmatpush1.msra.mxu0 %v12211_v35  ;;  %7002 = vmatpush1.msra.mxu1 %v12213_v8  ;;  %v14061_v35 = vld [vmem:[#allocation68_spill] sm:$0xff] }
 0xe39   :  { %6932 = vmatprep.subr.mxu0 %v12217_v13  ;;  %7003 = vmatprep.subr.mxu1 %v12219_v52 }
 0xe3a   :  { %6933 = vmatpush1.msra.mxu0 %v12223_v6  ;;  %7004 = vmatpush1.msra.mxu1 %v12225_v41  ;;  %v14062_v41 = vld [vmem:[#allocation69_spill] sm:$0xff] }
 0xe3b   :  { %6934 = vmatprep.subr.mxu0 %v12229_v7  ;;  %7005 = vmatprep.subr.mxu1 %v12231_v47  ;;  %v14063_v47 = vld [vmem:[#allocation67_spill] sm:$0xff] }
 0xe3c   :  { %6935 = vmatpush1.msra.mxu0 %v12235_v19  ;;  %7006 = vmatpush1.msra.mxu1 %v12237_v16 }
 0xe3d   :  { %6936 = vmatprep.subr.mxu0 %v12241_v62  ;;  %7007 = vmatprep.subr.mxu1 %v12243_v4 }
 0xe3e   :  { %6937 = vmatpush1.msra.mxu0 %v12247_v44  ;;  %7008 = vmatpush1.msra.mxu1 %v12249_v32 }
 0xe3f   :  { %6938 = vmatprep.subr.mxu0 %v12253_v1  ;;  %7009 = vmatprep.subr.mxu1 %v12255_v45 }
 0xe40   :  { %6939 = vmatpush1.msra.mxu0 %v12257_v30  ;;  %7010 = vmatpush1.msra.mxu1 %v12261_v11 }
 0xe41   :  { %6940 = vmatprep.subr.mxu0 %v12263_v24  ;;  %7011 = vmatprep.subr.mxu1 %v12265_v0 }
 0xe42   :  { %6941 = vmatpush1.msra.mxu0 %v12269_v61  ;;  %7012 = vmatpush1.msra.mxu1 %v12271_v23 }
 0xe43   :  { %6942 = vmatprep.subr.mxu0 %v12273_v31  ;;  %7013 = vmatprep.subr.mxu1 %v12277_v53  ;;  %v14042_v31 = vld [vmem:[#allocation75_spill] sm:$0xff]  ;;  %v14043_v53 = vld [vmem:[#allocation37_spill] sm:$0xff] }
 0xe44   :  { %6943 = vmatpush1.msra.mxu0 %v12279_v58  ;;  %7014 = vmatpush1.msra.mxu1 %v12281_v12  ;;  %v14044_v58 = vld [vmem:[#allocation35_spill] sm:$0xff]  ;;  %v14045_v12 = vld [vmem:[#allocation38_spill] sm:$0xff] }
 0xe45   :  { %6944 = vmatprep.subr.mxu0 %v12285_v28  ;;  %7015 = vmatprep.subr.mxu1 %v12287_v59  ;;  %v14046_v28 = vld [vmem:[#allocation36_spill] sm:$0xff]  ;;  %v14047_v59 = vld [vmem:[#allocation131_spill] sm:$0xff] }
 0xe46   :  { %6945 = vmatpush1.msra.mxu0 %v12291_v38  ;;  %7016 = vmatpush1.msra.mxu1 %v12293_v39  ;;  %v14048_v38 = vld [vmem:[#allocation133_spill] sm:$0xff]  ;;  %v14049_v39 = vld [vmem:[#allocation134_spill] sm:$0xff] }
 0xe47   :  { %6946 = vmatprep.subr.mxu0 %v12297_v5  ;;  %7017 = vmatprep.subr.mxu1 %v12299_v51  ;;  %v14050_v5 = vld [vmem:[#allocation132_spill] sm:$0xff]  ;;  %v14051_v51 = vld [vmem:[#allocation77_spill] sm:$0xff] }
 0xe48   :  { %6947 = vmatpush1.msra.mxu0 %v12303_v10  ;;  %7018 = vmatpush1.msra.mxu1 %v14042_v31  ;;  %v14052_v10 = vld [vmem:[#allocation78_spill] sm:$0xff]  ;;  %v7144_v31 = vld [vmem:[#allocation20 + $0x168] sm:$0xff] }
 0xe49   :  { %6948 = vmatprep.subr.mxu0 %v14043_v53  ;;  %7019 = vmatprep.subr.mxu1 %v14044_v58  ;;  %v7149_v53 = vld [vmem:[#allocation20 + $0x190] sm:$0xff]  ;;  %v7143_v58 = vld [vmem:[#allocation20 + $0x160] sm:$0xff] }
 0xe4a   :  { %6949 = vmatpush1.msra.mxu0 %v14045_v12  ;;  %7020 = vmatpush1.msra.mxu1 %v14046_v28  ;;  %v7146_v12 = vld [vmem:[#allocation20 + $0x178] sm:$0xff]  ;;  %v7140_v28 = vld [vmem:[#allocation20 + $0x148] sm:$0xff] }
 0xe4b   :  { %6950 = vmatprep.subr.mxu0 %v14047_v59  ;;  %7021 = vmatprep.subr.mxu1 %v14048_v38  ;;  %v7145_v59 = vld [vmem:[#allocation20 + $0x170] sm:$0xff]  ;;  %v7139_v38 = vld [vmem:[#allocation20 + $0x140] sm:$0xff] }
 0xe4c   :  { %6951 = vmatpush1.msra.mxu0 %v14049_v39  ;;  %7022 = vmatpush1.msra.mxu1 %v14050_v5  ;;  %v7142_v39 = vld [vmem:[#allocation20 + $0x158] sm:$0xff]  ;;  %v7136_v5 = vld [vmem:[#allocation20 + $0x128] sm:$0xff] }
 0xe4d   :  { %6952 = vmatprep.subr.mxu0 %v14051_v51  ;;  %7023 = vmatprep.subr.mxu1 %v14052_v10  ;;  %v7141_v51 = vld [vmem:[#allocation20 + $0x150] sm:$0xff]  ;;  %v7135_v10 = vld [vmem:[#allocation20 + $0x120] sm:$0xff] }
 0xe4e   :  { %6953 = vmatpush1.msra.mxu0 %v14053_v3  ;;  %7024 = vmatpush1.msra.mxu1 %v14054_v43  ;;  %v7138_v3 = vld [vmem:[#allocation20 + $0x138] sm:$0xff]  ;;  %v7132_v43 = vld [vmem:[#allocation20 + $0x108] sm:$0xff] }
 0xe4f   :  { %6954 = vmatprep.subr.mxu0 %v14055_v22  ;;  %7025 = vmatprep.subr.mxu1 %v14056_v54  ;;  %v7137_v22 = vld [vmem:[#allocation20 + $0x130] sm:$0xff]  ;;  %v7131_v54 = vld [vmem:[#allocation20 + $0x100] sm:$0xff] }
 0xe50   :  { %6955 = vmatpush1.msra.mxu0 %v14057_v50  ;;  %6988 = vmatprep.mubr.f32.mxu0 %v14058_v40  ;;  %v7134_v50 = vld [vmem:[#allocation20 + $0x118] sm:$0xff] }
 0xe51   :  { %7026 = vmatpush1.msra.mxu1 %v14059_v18  ;;  %7059 = vmatprep.mubr.f32.mxu1 %v14058_v40  ;;  %v7128_v18 = vld [vmem:[#allocation20 + $0xe8] sm:$0xff] }
 0xe52   :  { %7163 = vmatprep.subr.mxu0 %v7160_v15  ;;  %7234 = vmatprep.subr.mxu1 %v7162_v55  ;;  %v7105_v15 = vld [vmem:[#allocation20 + $0x30] sm:$0xff]  ;;  %v7102_v55 = vld [vmem:[#allocation20 + $0x18] sm:$0xff] }
 0xef1   :  { %v6751_v63 = vpop.f32.mrf.mxu0  ;;  %v6822_v13 = vpop.f32.mrf.mxu1 }
 0xef2   :  { %v6827_v42 = vadd.f32 %v6751_v63, %v14060_v60  ;;  %v6829_v19 = vadd.f32 %v6822_v13, %v14063_v47  ;;  %v7133_v63 = vld [vmem:[#allocation20 + $0x110] sm:$0xff]  ;;  %v7127_v60 = vld [vmem:[#allocation20 + $0xe0] sm:$0xff]  ;;  %v7120_v13 = vld [vmem:[#allocation20 + $0xa8] sm:$0xff] }
 0xef3   :  { %v6753_v17 = vpop.f32.mrf.mxu0  ;;  %v6824_v6 = vpop.f32.mrf.mxu1  ;;  %v7121_v47 = vld [vmem:[#allocation20 + $0xb0] sm:$0xff] }
 0xef4   :  { %v7948_v21 = vmul.f32 -1.442695, %v6827_v42  ;;  %v6828_v8 = vadd.f32 %v6753_v17, %v14061_v35  ;;  %v6830_v7 = vadd.f32 %v6824_v6, %v14062_v41  ;;  %v7130_v42 = vld [vmem:[#allocation20 + $0xf8] sm:$0xff]  ;;  %v7124_v17 = vld [vmem:[#allocation20 + $0xc8] sm:$0xff]  ;;  %v7123_v35 = vld [vmem:[#allocation20 + $0xc0] sm:$0xff] }
 0xef5   :  { %v7119_v6 = vld [vmem:[#allocation20 + $0xa0] sm:$0xff]  ;;  %v7122_v41 = vld [vmem:[#allocation20 + $0xb8] sm:$0xff] }
 0xef6   :  { %8495 = vpow2.f32 %v7948_v21  ;;  %v7949_v52 = vmul.f32 -1.442695, %v6828_v8  ;;  %v7950_v16 = vmul.f32 -1.442695, %v6830_v7  ;;  %v7129_v21 = vld [vmem:[#allocation20 + $0xf0] sm:$0xff]  ;;  %v7126_v8 = vld [vmem:[#allocation20 + $0xd8] sm:$0xff] }
 0xef7   :  { %v7116_v7 = vld [vmem:[#allocation20 + $0x88] sm:$0xff] }
 0xef8   :  { %8497 = vpow2.f32 %v7949_v52  ;;  %v7125_v52 = vld [vmem:[#allocation20 + $0xd0] sm:$0xff] }
 0xef9   :  { %8499 = vtanh.f32 %v6829_v19  ;;  %v7115_v19 = vld [vmem:[#allocation20 + $0x80] sm:$0xff] }
 0xefa   :  { %8501 = vpow2.f32 %v7950_v16  ;;  %v7118_v16 = vld [vmem:[#allocation20 + $0x98] sm:$0xff] }
 0xf03   :  { %v8496_v62 = vpop.eup %8495 }
 0xf04   :  { %v6834_v4 = vadd.f32 1.0, %v8496_v62  ;;  %v7112_v62 = vld [vmem:[#allocation20 + $0x68] sm:$0xff] }
 0xf05   :  { %v8498_v44 = vpop.eup %8497 }
 0xf06   :  { %8503 = vrcp.f32 %v6834_v4  ;;  %v6840_v32 = vadd.f32 1.0, %v8498_v44  ;;  %v8500_v1 = vpop.eup %8499  ;;  %v7117_v4 = vld [vmem:[#allocation20 + $0x90] sm:$0xff]  ;;  %v7111_v44 = vld [vmem:[#allocation20 + $0x60] sm:$0xff] }
 0xf07   :  { %v8502_v45 = vpop.eup %8501 }
 0xf08   :  { %8505 = vrcp.f32 %v6840_v32  ;;  %v6847_v0 = vadd.f32 1.0, %v8502_v45  ;;  %v7114_v32 = vld [vmem:[#allocation20 + $0x78] sm:$0xff]  ;;  %v7113_v45 = vld [vmem:[#allocation20 + $0x70] sm:$0xff] }
 0xf0a   :  { %8507 = vrcp.f32 %v6847_v0  ;;  %v7109_v0 = vld [vmem:[#allocation20 + $0x50] sm:$0xff] }
 0xf13   :  { %v8504_v30 = vpop.eup %8503 }
 0xf14   :  { %v6851_v11 = vmul.f32 %v8504_v30, %v8500_v1  ;;  %v7108_v1 = vld [vmem:[#allocation20 + $0x48] sm:$0xff]  ;;  %v7107_v30 = vld [vmem:[#allocation20 + $0x40] sm:$0xff] }
 0xf15   :  { %v8506_v24 = vpop.eup %8505 }
 0xf16   :  { %v6850_v61 = vmul.f32 %v8506_v24, %v12524_v57  ;;  %v7153_v57 = vld [vmem:[#allocation20 + $0x1b0] sm:$0xff]  ;;  %v7104_v24 = vld [vmem:[#allocation20 + $0x28] sm:$0xff] }
 0xf17   :  { %v8508_v9 = vpop.eup %8507 }
 0xf18   :  { %v12600_v23 = vadd.f32 %v6851_v11, %v6850_v61  ;;  %v7110_v11 = vld [vmem:[#allocation20 + $0x58] sm:$0xff]  ;;  %v7103_v61 = vld [vmem:[#allocation20 + $0x20] sm:$0xff] }
 0xf1a   :  { %8509 = vtanh.f32 %v12600_v23 }
 0xf27   :  { %v8510_v25 = vpop.eup %8509 }
 0xf28   :  { %v12603_v34 = vmul.f32 %v8510_v25, %v8508_v9  ;;  %v7106_v9 = vld [vmem:[#allocation20 + $0x38] sm:$0xff]  ;;  %v7100_v25 = vld [vmem:[#allocation20 + $0x8] sm:$0xff] }
 0xf2a   :  { %6989 = vmatmul.mubr.f32.vlgmr.msra.gmra.mxu0 %v12603_v34  ;;  %7060 = vmatmul.mubr.f32.vlgmr.msra.gmra.mxu1 %v12603_v34 }
 0xf2b   :  { %7227 = vmatprep.mubr.f32.mxu0 %v14058_v40  ;;  %7298 = vmatprep.mubr.f32.mxu1 %v14058_v40 }
 0xf2c   :  { %7164 = vmatpush1.msra.mxu0 %v7159_v14  ;;  %7235 = vmatpush1.msra.mxu1 %v7161_v2  ;;  %v7099_v14 = vld [vmem:[#allocation20] sm:$0xff]  ;;  %v7357_v2 = vld [vmem:[#allocation21 + $0x78] sm:$0xff] }
 0xf2d   :  { %7165 = vmatprep.subr.mxu0 %v7156_v26  ;;  %7236 = vmatprep.subr.mxu1 %v7158_v48  ;;  %v7101_v26 = vld [vmem:[#allocation20 + $0x10] sm:$0xff] }
 0xf2e   :  { %7166 = vmatpush1.msra.mxu0 %v7155_v36  ;;  %7237 = vmatpush1.msra.mxu1 %v7157_v37  ;;  %v14064_v48 = vld [vmem:[#allocation70_spill] sm:$0xff] }
 0xf2f   :  { %7167 = vmatprep.subr.mxu0 %v7152_v33  ;;  %7238 = vmatprep.subr.mxu1 %v7154_v27  ;;  %v14065_v27 = vld [vmem:[#allocation72_spill] sm:$0xff] }
 0xf30   :  { %7168 = vmatpush1.msra.mxu0 %v7151_v29  ;;  %7239 = vmatpush1.msra.mxu1 %v7153_v57 }
 0xf31   :  { %7169 = vmatprep.subr.mxu0 %v7148_v56  ;;  %7240 = vmatprep.subr.mxu1 %v7150_v49 }
 0xf32   :  { %7170 = vmatpush1.msra.mxu0 %v7147_v20  ;;  %7241 = vmatpush1.msra.mxu1 %v7149_v53 }
 0xf33   :  { %7171 = vmatprep.subr.mxu0 %v7144_v31  ;;  %7242 = vmatprep.subr.mxu1 %v7146_v12  ;;  %v14066_v31 = vld [vmem:[#allocation73_spill] sm:$0xff] }
 0xf34   :  { %7172 = vmatpush1.msra.mxu0 %v7143_v58  ;;  %7243 = vmatpush1.msra.mxu1 %v7145_v59  ;;  %v14067_v58 = vld [vmem:[#allocation71_spill] sm:$0xff] }
 0xf35   :  { %7173 = vmatprep.subr.mxu0 %v7140_v28  ;;  %7244 = vmatprep.subr.mxu1 %v7142_v39 }
 0xf36   :  { %7174 = vmatpush1.msra.mxu0 %v7139_v38  ;;  %7245 = vmatpush1.msra.mxu1 %v7141_v51 }
 0xf37   :  { %7175 = vmatprep.subr.mxu0 %v7136_v5  ;;  %7246 = vmatprep.subr.mxu1 %v7138_v3 }
 0xf38   :  { %7176 = vmatpush1.msra.mxu0 %v7135_v10  ;;  %7247 = vmatpush1.msra.mxu1 %v7137_v22 }
 0xf39   :  { %7177 = vmatprep.subr.mxu0 %v7132_v43  ;;  %7248 = vmatprep.subr.mxu1 %v7134_v50 }
 0xf3a   :  { %7178 = vmatpush1.msra.mxu0 %v7131_v54  ;;  %7249 = vmatpush1.msra.mxu1 %v7133_v63 }
 0xf3b   :  { %7179 = vmatprep.subr.mxu0 %v7128_v18  ;;  %7250 = vmatprep.subr.mxu1 %v7130_v42 }
 0xf3c   :  { %7180 = vmatpush1.msra.mxu0 %v7127_v60  ;;  %7251 = vmatpush1.msra.mxu1 %v7129_v21  ;;  %v14068_v21 = vld [vmem:[#allocation123_spill] sm:$0xff] }
 0xf3d   :  { %7181 = vmatprep.subr.mxu0 %v7124_v17  ;;  %7252 = vmatprep.subr.mxu1 %v7126_v8  ;;  %v7356_v17 = vld [vmem:[#allocation21 + $0x70] sm:$0xff]  ;;  %v7353_v8 = vld [vmem:[#allocation21 + $0x58] sm:$0xff] }
 0xf3e   :  { %7182 = vmatpush1.msra.mxu0 %v7123_v35  ;;  %7253 = vmatpush1.msra.mxu1 %v7125_v52  ;;  %v7355_v35 = vld [vmem:[#allocation21 + $0x68] sm:$0xff] }
 0xf3f   :  { %7183 = vmatprep.subr.mxu0 %v7120_v13  ;;  %7254 = vmatprep.subr.mxu1 %v7122_v41  ;;  %v7352_v13 = vld [vmem:[#allocation21 + $0x50] sm:$0xff]  ;;  %v7351_v52 = vld [vmem:[#allocation21 + $0x48] sm:$0xff]  ;;  %v7349_v41 = vld [vmem:[#allocation21 + $0x38] sm:$0xff] }
 0xf40   :  { %7184 = vmatpush1.msra.mxu0 %v7119_v6  ;;  %7255 = vmatpush1.msra.mxu1 %v7121_v47  ;;  %v7350_v6 = vld [vmem:[#allocation21 + $0x40] sm:$0xff]  ;;  %v7347_v47 = vld [vmem:[#allocation21 + $0x28] sm:$0xff] }
 0xf41   :  { %7185 = vmatprep.subr.mxu0 %v7116_v7  ;;  %7256 = vmatprep.subr.mxu1 %v7118_v16  ;;  %v7348_v7 = vld [vmem:[#allocation21 + $0x30] sm:$0xff]  ;;  %v7345_v16 = vld [vmem:[#allocation21 + $0x18] sm:$0xff] }
 0xf42   :  { %7186 = vmatpush1.msra.mxu0 %v7115_v19  ;;  %7257 = vmatpush1.msra.mxu1 %v7117_v4  ;;  %v7346_v19 = vld [vmem:[#allocation21 + $0x20] sm:$0xff]  ;;  %v7343_v4 = vld [vmem:[#allocation21 + $0x8] sm:$0xff] }
 0xf43   :  { %7187 = vmatprep.subr.mxu0 %v7112_v62  ;;  %7258 = vmatprep.subr.mxu1 %v7114_v32  ;;  %v7344_v62 = vld [vmem:[#allocation21 + $0x10] sm:$0xff]  ;;  %v14069_v32 = vld [vmem:[#allocation125_spill] sm:$0xff] }
 0xf44   :  { %7188 = vmatpush1.msra.mxu0 %v7111_v44  ;;  %7259 = vmatpush1.msra.mxu1 %v7113_v45  ;;  %v7342_v44 = vld [vmem:[#allocation21] sm:$0xff]  ;;  %v14071_v45 = vld [vmem:[#allocation86_spill] sm:$0xff] }
 0xf45   :  { %7189 = vmatprep.subr.mxu0 %v7108_v1  ;;  %7260 = vmatprep.subr.mxu1 %v7110_v11  ;;  %v14070_v1 = vld [vmem:[#allocation85_spill] sm:$0xff] }
 0xf46   :  { %7190 = vmatpush1.msra.mxu0 %v7107_v30  ;;  %7261 = vmatpush1.msra.mxu1 %v7109_v0  ;;  %v14072_v11 = vld [vmem:[#allocation45_spill] sm:$0xff] }
 0xf47   :  { %7191 = vmatprep.subr.mxu0 %v7104_v24  ;;  %7262 = vmatprep.subr.mxu1 %v7106_v9  ;;  %v14073_v9 = vld [vmem:[#allocation98_spill] sm:$0xff] }
 0xf48   :  { %7192 = vmatpush1.msra.mxu0 %v7103_v61  ;;  %7263 = vmatpush1.msra.mxu1 %v7105_v15 }
 0xf49   :  { %7193 = vmatprep.subr.mxu0 %v7100_v25  ;;  %7264 = vmatprep.subr.mxu1 %v7102_v55 }
 0xf4a   :  { %7194 = vmatpush1.msra.mxu0 %v7099_v14  ;;  %7265 = vmatpush1.msra.mxu1 %v7101_v26  ;;  %v14074_v26 = vld [vmem:[#allocation44_spill] sm:$0xff] }
 0xf4b   :  { %8026 = vmatprep.subr.mxu0 %v7357_v2  ;;  %8070 = vmatprep.subr.mxu1 %v14058_v40 }
 0xfea   :  { %v6990_v36 = vpop.f32.mrf.mxu0  ;;  %v7061_v57 = vpop.f32.mrf.mxu1 }
 0xfeb   :  { %v7066_v33 = vadd.f32 %v6990_v36, %v14064_v48  ;;  %v7068_v12 = vadd.f32 %v7061_v57, %v14067_v58  ;;  %v14075_v36 = vld [vmem:[#allocation43_spill] sm:$0xff] }
 0xfec   :  { %v6992_v37 = vpop.f32.mrf.mxu0  ;;  %v7063_v49 = vpop.f32.mrf.mxu1 }
 0xfed   :  { %v7951_v29 = vmul.f32 -1.442695, %v7066_v33  ;;  %v7067_v56 = vadd.f32 %v6992_v37, %v14065_v27  ;;  %v7069_v53 = vadd.f32 %v7063_v49, %v14066_v31  ;;  %v7957_v49 = vld [vmem:[%s12720_s12] ss:$0 sm:$0xff] }
 0xfef   :  { %8511 = vpow2.f32 %v7951_v29  ;;  %v7952_v20 = vmul.f32 -1.442695, %v7067_v56  ;;  %v7953_v28 = vmul.f32 -1.442695, %v7069_v53 }
 0xff1   :  { %8513 = vpow2.f32 %v7952_v20 }
 0xff2   :  { %8515 = vtanh.f32 %v7068_v12 }
 0xff3   :  { %8517 = vpow2.f32 %v7953_v28 }
 0xffc   :  { %v8512_v59 = vpop.eup %8511 }
 0xffd   :  { %v7073_v38 = vadd.f32 1.0, %v8512_v59 }
 0xffe   :  { %v8514_v39 = vpop.eup %8513 }
 0xfff   :  { %8519 = vrcp.f32 %v7073_v38  ;;  %v7079_v5 = vadd.f32 1.0, %v8514_v39  ;;  %v8516_v51 = vpop.eup %8515 }
0x1000   :  { %v8518_v10 = vpop.eup %8517 }
0x1001   :  { %8521 = vrcp.f32 %v7079_v5  ;;  %v7086_v54 = vadd.f32 1.0, %v8518_v10 }
0x1003   :  { %8523 = vrcp.f32 %v7086_v54 }
0x100c   :  { %v8520_v3 = vpop.eup %8519 }
0x100d   :  { %v7090_v43 = vmul.f32 %v8520_v3, %v8516_v51 }
0x100e   :  { %v8522_v22 = vpop.eup %8521 }
0x100f   :  { %v7089_v50 = vmul.f32 %v8522_v22, %v12600_v23  ;;  %v7354_v23 = vld [vmem:[#allocation21 + $0x60] sm:$0xff] }
0x1010   :  { %v8524_v63 = vpop.eup %8523 }
0x1011   :  { %v12615_v18 = vadd.f32 %v7090_v43, %v7089_v50 }
0x1013   :  { %8525 = vtanh.f32 %v12615_v18 }
0x1020   :  { %v8526_v60 = vpop.eup %8525 }
0x1021   :  { %v12618_v42 = vmul.f32 %v8526_v60, %v8524_v63 }
0x1023   :  { %7228 = vmatmul.mubr.f32.vlgmr.msra.gmra.mxu0 %v12618_v42  ;;  %7299 = vmatmul.mubr.f32.vlgmr.msra.gmra.mxu1 %v12618_v42 }
0x1024   :  { %8027 = vmatpush3.msra.mxu0 %v7357_v2  ;;  %8058 = vmatprep.mubr.f32.mxu0 %v14068_v21 }
0x1025   :  { %8028 = vmatprep.subr.mxu0 %v7356_v17  ;;  %8102 = vmatprep.mubr.msk.f32.mxu1 %vm8805_vm0, %v14058_v40 }
0x1026   :  { %8029 = vmatpush3.msra.mxu0 %v7356_v17 }
0x1027   :  { %8030 = vmatprep.subr.mxu0 %v7355_v35 }
0x1028   :  { %8031 = vmatpush3.msra.mxu0 %v7355_v35 }
0x1029   :  { %8032 = vmatprep.subr.mxu0 %v7354_v23 }
0x102a   :  { %8033 = vmatpush3.msra.mxu0 %v7354_v23 }
0x102b   :  { %8034 = vmatprep.subr.mxu0 %v7353_v8 }
0x102c   :  { %8035 = vmatpush3.msra.mxu0 %v7353_v8 }
0x102d   :  { %8036 = vmatprep.subr.mxu0 %v7352_v13 }
0x102e   :  { %8037 = vmatpush3.msra.mxu0 %v7352_v13 }
0x102f   :  { %8038 = vmatprep.subr.mxu0 %v7351_v52 }
0x1030   :  { %8039 = vmatpush3.msra.mxu0 %v7351_v52 }
0x1031   :  { %8040 = vmatprep.subr.mxu0 %v7350_v6 }
0x1032   :  { %8041 = vmatpush3.msra.mxu0 %v7350_v6 }
0x1033   :  { %8042 = vmatprep.subr.mxu0 %v7349_v41 }
0x1034   :  { %8043 = vmatpush3.msra.mxu0 %v7349_v41 }
0x1035   :  { %8044 = vmatprep.subr.mxu0 %v7348_v7 }
0x1036   :  { %8045 = vmatpush3.msra.mxu0 %v7348_v7 }
0x1037   :  { %8046 = vmatprep.subr.mxu0 %v7347_v47 }
0x1038   :  { %8047 = vmatpush3.msra.mxu0 %v7347_v47 }
0x1039   :  { %8048 = vmatprep.subr.mxu0 %v7346_v19 }
0x103a   :  { %8049 = vmatpush3.msra.mxu0 %v7346_v19 }
0x103b   :  { %8050 = vmatprep.subr.mxu0 %v7345_v16 }
0x103c   :  { %8051 = vmatpush3.msra.mxu0 %v7345_v16 }
0x103d   :  { %8052 = vmatprep.subr.mxu0 %v7344_v62 }
0x103e   :  { %8053 = vmatpush3.msra.mxu0 %v7344_v62 }
0x103f   :  { %8054 = vmatprep.subr.mxu0 %v7343_v4 }
0x1040   :  { %8055 = vmatpush3.msra.mxu0 %v7343_v4 }
0x1041   :  { %8056 = vmatprep.subr.mxu0 %v7342_v44 }
0x1042   :  { %8057 = vmatpush3.msra.mxu0 %v7342_v44 }
0x1043   :  { %8059 = vmatmul.mubr.f32.vlgmr.msra.gmra.mxu0 %v14069_v32  ;;  %8105 = vmatprep.subr.mxu0 %v14058_v40 }
0x1044   :  { %8061 = vmatprep.mubr.f32.mxu0 %v14070_v1 }
0x1047   :  { %8062 = vmatmul.mubr.f32.gmra.mxu0 %v14071_v45 }
0x1048   :  { %8064 = vmatprep.mubr.f32.mxu0 %v12527_v46 }
0x104b   :  { %8065 = vmatmul.mubr.f32.gmra.mxu0 %v12603_v34 }
0x104c   :  { %8067 = vmatprep.mubr.f32.mxu0 %v12618_v42 }
0x10e3   :  { %v7229_v30 = vpop.f32.mrf.mxu0  ;;  %v7300_v15 = vpop.f32.mrf.mxu1 }
0x10e4   :  { %v7305_v24 = vadd.f32 %v7229_v30, %v14072_v11  ;;  %v7307_v48 = vadd.f32 %v7300_v15, %v14075_v36 }
0x10e5   :  { %v7231_v0 = vpop.f32.mrf.mxu0  ;;  %v7302_v55 = vpop.f32.mrf.mxu1 }
0x10e6   :  { %v7954_v61 = vmul.f32 -1.442695, %v7305_v24  ;;  %v7306_v25 = vadd.f32 %v7231_v0, %v14073_v9  ;;  %v7308_v2 = vadd.f32 %v7302_v55, %v14074_v26 }
0x10e8   :  { %8527 = vpow2.f32 %v7954_v61  ;;  %v7955_v14 = vmul.f32 -1.442695, %v7306_v25  ;;  %v7956_v33 = vmul.f32 -1.442695, %v7308_v2  ;;  %v7959_v2 = vld [vmem:[#allocation8] ss:$0 sm:$0xff] }
0x10ea   :  { %8529 = vpow2.f32 %v7955_v14  ;;  %v8804_v14 = vmov 0  }
0x10eb   :  { %8531 = vtanh.f32 %v7307_v48  ;;  %8158 = vset.pattern.permute.xlu1 %v8804_v14  ;;  %8157 = vset.pattern.permute.xlu0 %v8804_v14 }
0x10ec   :  { %8533 = vpow2.f32 %v7956_v33 }
0x10f5   :  { %v8528_v37 = vpop.eup %8527 }
0x10f6   :  { %v7312_v29 = vadd.f32 1.0, %v8528_v37 }
0x10f7   :  { %v8530_v27 = vpop.eup %8529 }
0x10f8   :  { %8535 = vrcp.f32 %v7312_v29  ;;  %v7318_v56 = vadd.f32 1.0, %v8530_v27  ;;  %v8532_v57 = vpop.eup %8531 }
0x10f9   :  { %v8534_v31 = vpop.eup %8533 }
0x10fa   :  { %8537 = vrcp.f32 %v7318_v56  ;;  %v7325_v39 = vadd.f32 1.0, %v8534_v31 }
0x1103   :  { %v8060_v20 = vpop.f32.mrf.mxu0 }
0x1104   :  { %v7437_v28 = vadd.f32 %v8060_v20, %v7957_v49 }
0x1105   :  { %v8536_v53 = vpop.eup %8535  ;;  %v7431_v58 = vpop.f32.mrf.mxu0 }
0x1106   :  { %v7329_v12 = vmul.f32 %v8536_v53, %v8532_v57  ;;  %v7432_v59 = vadd.f32 %v7957_v49, %v7431_v58 }
0x1107   :  { %v8538_v38 = vpop.eup %8537  ;;  %v8063_v5 = vpop.f32.mrf.mxu0 }
0x1108   :  { %v7328_v51 = vmul.f32 %v8538_v38, %v12615_v18  ;;  %8539 = vtanh.f32 %v7432_v59  ;;  %v7447_v43 = vadd.f32 %v8063_v5, %v7957_v49  ;;  %v7958_v18 = vld [vmem:[%s12721_s13] ss:$0 sm:$0xff] }
0x1109   :  { %v7441_v10 = vpop.f32.mrf.mxu0  ;;  %8541 = vtanh.f32 %v7437_v28 }
0x110a   :  { %v7330_v3 = vadd.f32 %v7329_v12, %v7328_v51  ;;  %v7442_v22 = vadd.f32 %v7957_v49, %v7441_v10  ;;  %8543 = vrcp.f32 %v7325_v39 }
0x110b   :  { %v8066_v54 = vpop.f32.mrf.mxu0 }
0x110c   :  { %8545 = vtanh.f32 %v7442_v22  ;;  %v7457_v63 = vadd.f32 %v8066_v54, %v7957_v49 }
0x110d   :  { %v7451_v50 = vpop.f32.mrf.mxu0  ;;  %8547 = vtanh.f32 %v7330_v3 }
0x110e   :  { %8549 = vtanh.f32 %v7447_v43  ;;  %v7452_v60 = vadd.f32 %v7957_v49, %v7451_v50 }
0x1110   :  { %8551 = vtanh.f32 %v7452_v60 }
0x1111   :  { %8553 = vtanh.f32 %v7457_v63 }
0x1115   :  { %v8540_v17 = vpop.eup %8539 }
0x1116   :  { %v7485_v35 = vmul.f32 %v8540_v17, %v7958_v18  ;;  %v8542_v23 = vpop.eup %8541 }
0x1117   :  { %v8544_v8 = vpop.eup %8543  ;;  %v7486_v41 = vmul.f32 %v8542_v23, %v7958_v18 }
0x1118   :  { %7493 = vadd.xlane.f32.xlu0 %v7485_v35 }
0x1119   :  { %v8546_v13 = vpop.eup %8545 }
0x111a   :  { %v8548_v52 = vpop.eup %8547  ;;  %v7487_v6 = vmul.f32 %v8546_v13, %v7958_v18 }
0x111b   :  { %v8550_v7 = vpop.eup %8549  ;;  %v12641_v47 = vmul.f32 %v8548_v52, %v8544_v8 }
0x111c   :  { %7497 = vadd.xlane.f32.xlu1 %v7487_v6  ;;  %7495 = vadd.xlane.f32.xlu0 %v7486_v41  ;;  %v7488_v16 = vmul.f32 %v8550_v7, %v7958_v18 }
0x111d   :  { %v8552_v19 = vpop.eup %8551  ;;  %8068 = vmatmul.mubr.f32.gmra.mxu0 %v12641_v47 }
0x111e   :  { %v7489_v62 = vmul.f32 %v8552_v19, %v7958_v18  ;;  %v8554_v4 = vpop.eup %8553  ;;  %8137 = vmatprep.mubr.msk.f32.mxu0 %vm8805_vm0, %v14058_v40 }
0x111f   :  { %v7490_v44 = vmul.f32 %v8554_v4, %v7958_v18  ;;  %v7662_v4 = vld [vmem:[#allocation23 + $0x78] sm:$0xff] }
0x1120   :  { %7499 = vadd.xlane.f32.xlu1 %v7488_v16  ;;  %7501 = vadd.xlane.f32.xlu0 %v7489_v62 }
0x1121   :  { %8071 = vmatpush3.msra.mxu1 %v7662_v4 }
0x1122   :  { %8072 = vmatprep.subr.mxu1 %v14058_v40 }
0x1124   :  { %7503 = vadd.xlane.f32.xlu1 %v7490_v44 }
0x11a1   :  { %v7494_v55 = vpop.xlane.xlu0 %7493 }
0x11a2   :  { %v7516_v33 = vadd.f32 %v7959_v2, %v7494_v55  ;;  %v7659_v55 = vld [vmem:[#allocation23 + $0x60] sm:$0xff] }
0x11a5   :  { %v7496_v26 = vpop.xlane.xlu0 %7495  ;;  %v7498_v36 = vpop.xlane.xlu1 %7497 }
0x11a6   :  { %v7517_v48 = vadd.f32 %v7959_v2, %v7496_v26  ;;  %v7518_v27 = vadd.f32 %v7959_v2, %v7498_v36  ;;  %v7658_v26 = vld [vmem:[#allocation23 + $0x58] sm:$0xff]  ;;  %v7657_v36 = vld [vmem:[#allocation23 + $0x50] sm:$0xff] }
0x11a8   :  { %v7524_v37 = vmax.f32 %v7516_v33, %v7517_v48 }
0x11a9   :  { %v7500_v29 = vpop.xlane.xlu1 %7499  ;;  %v7502_v20 = vpop.xlane.xlu0 %7501 }
0x11aa   :  { %v7519_v56 = vadd.f32 %v7959_v2, %v7500_v29  ;;  %v7525_v57 = vmax.f32 %v7524_v37, %v7518_v27  ;;  %v7520_v53 = vadd.f32 %v7959_v2, %v7502_v20  ;;  %v7656_v37 = vld [vmem:[#allocation23 + $0x48] sm:$0xff]  ;;  %v7655_v29 = vld [vmem:[#allocation23 + $0x40] sm:$0xff] }
0x11ab   :  { %v7651_v20 = vld [vmem:[#allocation23 + $0x20] sm:$0xff] }
0x11ad   :  { %v7504_v31 = vpop.xlane.xlu1 %7503 }
0x11ae   :  { %v7521_v12 = vadd.f32 %v7959_v2, %v7504_v31  ;;  %v7649_v31 = vld [vmem:[#allocation23 + $0x10] sm:$0xff] }
0x11dd   :  { %v8069_v30 = vpop.f32.mrf.mxu0 }
0x11de   :  { %v7467_v11 = vadd.f32 %v8069_v30, %v7957_v49 }
0x11df   :  { %v7461_v24 = vpop.f32.mrf.mxu0 }
0x11e0   :  { %8555 = vtanh.f32 %v7467_v11  ;;  %v7462_v0 = vadd.f32 %v7957_v49, %v7461_v24  ;;  %v7526_v49 = vmax.f32 %v7525_v57, %v7519_v56  ;;  %v7652_v57 = vld [vmem:[#allocation23 + $0x28] sm:$0xff] }
0x11e2   :  { %8557 = vtanh.f32 %v7462_v0  ;;  %v7527_v58 = vmax.f32 %v7526_v49, %v7520_v53  ;;  %v7661_v0 = vld [vmem:[#allocation23 + $0x70] sm:$0xff]  ;;  %v7650_v49 = vld [vmem:[#allocation23 + $0x18] sm:$0xff] }
0x11e3   :  { %8073 = vmatpush3.msra.mxu1 %v7661_v0 }
0x11e4   :  { %v7528_v38 = vmax.f32 %v7527_v58, %v7521_v12  ;;  %8074 = vmatprep.subr.mxu1 %v14058_v40  ;;  %v7774_v58 = vld [vmem:[#allocation24 + $0x78] sm:$0xff] }
0x11e5   :  { %8106 = vmatpush3.msra.mxu0 %v7774_v58 }
0x11e6   :  { %8107 = vmatprep.subr.mxu0 %v14058_v40 }
0x11ed   :  { %v8556_v61 = vpop.eup %8555 }
0x11ee   :  { %v7492_v9 = vmul.f32 %v8556_v61, %v7958_v18  ;;  %v7660_v61 = vld [vmem:[#allocation23 + $0x68] sm:$0xff] }
0x11ef   :  { %v8558_v25 = vpop.eup %8557  ;;  %8075 = vmatpush3.msra.mxu1 %v7660_v61 }
0x11f0   :  { %7507 = vadd.xlane.f32.xlu1 %v7492_v9  ;;  %v7491_v15 = vmul.f32 %v8558_v25, %v7958_v18  ;;  %8076 = vmatprep.subr.mxu1 %v14058_v40 }
0x11f1   :  { %8077 = vmatpush3.msra.mxu1 %v7659_v55 }
0x11f2   :  { %7505 = vadd.xlane.f32.xlu0 %v7491_v15  ;;  %8078 = vmatprep.subr.mxu1 %v14058_v40 }
0x11f3   :  { %8079 = vmatpush3.msra.mxu1 %v7658_v26 }
0x11f4   :  { %8080 = vmatprep.subr.mxu1 %v14058_v40 }
0x11f5   :  { %8081 = vmatpush3.msra.mxu1 %v7657_v36 }
0x11f6   :  { %8082 = vmatprep.subr.mxu1 %v14058_v40 }
0x11f7   :  { %8083 = vmatpush3.msra.mxu1 %v7656_v37  ;;  %v7964_v37 = vld [vmem:[%s12728_s20] ss:$0 sm:$0xff] }
0x11f8   :  { %8084 = vmatprep.subr.mxu1 %v14058_v40 }
0x11f9   :  { %8085 = vmatpush3.msra.mxu1 %v7655_v29 }
0x11fa   :  { %8086 = vmatprep.subr.mxu1 %v14058_v40 }
0x1279   :  { %v7508_v28 = vpop.xlane.xlu1 %7507 }
0x127a   :  { %v7523_v5 = vadd.f32 %v7959_v2, %v7508_v28  ;;  %v7647_v28 = vld [vmem:[#allocation23] sm:$0xff] }
0x127b   :  { %v7506_v59 = vpop.xlane.xlu0 %7505 }
0x127c   :  { %v7522_v39 = vadd.f32 %v7959_v2, %v7506_v59  ;;  %v7772_v59 = vld [vmem:[#allocation24 + $0x68] sm:$0xff] }
0x127e   :  { %v7529_v51 = vmax.f32 %v7528_v38, %v7522_v39  ;;  %v7771_v38 = vld [vmem:[#allocation24 + $0x60] sm:$0xff] }
0x1280   :  { %v7530_v10 = vmax.f32 %v7529_v51, %v7523_v5  ;;  %v7768_v51 = vld [vmem:[#allocation24 + $0x48] sm:$0xff] }
0x1282   :  { %v7534_v3 = vsub.f32 %v7517_v48, %v7530_v10  ;;  %v7531_v43 = vsub.f32 %v7516_v33, %v7530_v10  ;;  %v7537_v22 = vsub.f32 %v7518_v27, %v7530_v10  ;;  %v7540_v63 = vsub.f32 %v7519_v56, %v7530_v10  ;;  %v7654_v27 = vld [vmem:[#allocation23 + $0x38] sm:$0xff]  ;;  %v7653_v56 = vld [vmem:[#allocation23 + $0x30] sm:$0xff] }
0x1283   :  { %v7543_v17 = vsub.f32 %v7520_v53, %v7530_v10  ;;  %v7546_v35 = vsub.f32 %v7521_v12, %v7530_v10  ;;  %v7549_v23 = vsub.f32 %v7522_v39, %v7530_v10  ;;  %v7552_v52 = vsub.f32 %v7523_v5, %v7530_v10  ;;  %8087 = vmatpush3.msra.mxu1 %v7654_v27  ;;  %v7648_v53 = vld [vmem:[#allocation23 + $0x8] sm:$0xff]  ;;  %v7773_v12 = vld [vmem:[#allocation24 + $0x70] sm:$0xff]  ;;  %v7770_v39 = vld [vmem:[#allocation24 + $0x58] sm:$0xff] }
0x1284   :  { %v7535_v54 = vmul.f32 1.442695, %v7534_v3  ;;  %v7532_v50 = vmul.f32 1.442695, %v7531_v43  ;;  %v7538_v60 = vmul.f32 1.442695, %v7537_v22  ;;  %8088 = vmatprep.subr.mxu1 %v14058_v40  ;;  %8108 = vmatpush3.msra.mxu0 %v7773_v12 }
0x1285   :  { %v7541_v18 = vmul.f32 1.442695, %v7540_v63  ;;  %v7544_v8 = vmul.f32 1.442695, %v7543_v17  ;;  %v7547_v13 = vmul.f32 1.442695, %v7546_v35  ;;  %8089 = vmatpush3.msra.mxu1 %v7653_v56  ;;  %8109 = vmatprep.subr.mxu0 %v14058_v40 }
0x1286   :  { %8559 = vpow2.f32 %v7535_v54  ;;  %v7550_v6 = vmul.f32 1.442695, %v7549_v23  ;;  %v7553_v41 = vmul.f32 1.442695, %v7552_v52  ;;  %8090 = vmatprep.subr.mxu1 %v14058_v40  ;;  %8110 = vmatpush3.msra.mxu0 %v7772_v59  ;;  %v7769_v5 = vld [vmem:[#allocation24 + $0x50] sm:$0xff]  ;;  %v7767_v10 = vld [vmem:[#allocation24 + $0x40] sm:$0xff] }
0x1287   :  { %8561 = vpow2.f32 %v7532_v50  ;;  %8091 = vmatpush3.msra.mxu1 %v7652_v57  ;;  %8111 = vmatprep.subr.mxu0 %v14058_v40  ;;  %v7766_v3 = vld [vmem:[#allocation24 + $0x38] sm:$0xff]  ;;  %v7765_v43 = vld [vmem:[#allocation24 + $0x30] sm:$0xff]  ;;  %v7764_v22 = vld [vmem:[#allocation24 + $0x28] sm:$0xff] }
0x1288   :  { %8563 = vpow2.f32 %v7538_v60  ;;  %8092 = vmatprep.subr.mxu1 %v14058_v40  ;;  %8112 = vmatpush3.msra.mxu0 %v7771_v38  ;;  %v7965_v27 = vld [vmem:[%s12730_s22] ss:$0 sm:$0xff]  ;;  %v7967_v12 = vld [vmem:[#allocation9] ss:$0 sm:$0xff] }
0x1289   :  { %8565 = vpow2.f32 %v7541_v18  ;;  %8093 = vmatpush3.msra.mxu1 %v7651_v20  ;;  %8113 = vmatprep.subr.mxu0 %v14058_v40 }
0x128a   :  { %8567 = vpow2.f32 %v7544_v8  ;;  %8094 = vmatprep.subr.mxu1 %v14058_v40  ;;  %8114 = vmatpush3.msra.mxu0 %v7770_v39 }
0x128b   :  { %8569 = vpow2.f32 %v7547_v13  ;;  %8095 = vmatpush3.msra.mxu1 %v7650_v49  ;;  %8115 = vmatprep.subr.mxu0 %v14058_v40 }
0x128c   :  { %8571 = vpow2.f32 %v7550_v6  ;;  %8096 = vmatprep.subr.mxu1 %v14058_v40  ;;  %8116 = vmatpush3.msra.mxu0 %v7769_v5 }
0x128d   :  { %8573 = vpow2.f32 %v7553_v41  ;;  %8097 = vmatpush3.msra.mxu1 %v7649_v31  ;;  %8117 = vmatprep.subr.mxu0 %v14058_v40  ;;  %v7966_v31 = vld [vmem:[%s12731_s23] ss:$0 sm:$0xff] }
0x128e   :  { %8098 = vmatprep.subr.mxu1 %v14058_v40  ;;  %8118 = vmatpush3.msra.mxu0 %v7768_v51 }
0x128f   :  { %8099 = vmatpush3.msra.mxu1 %v7648_v53  ;;  %8119 = vmatprep.subr.mxu0 %v14058_v40 }
0x1290   :  { %8100 = vmatprep.subr.mxu1 %v14058_v40  ;;  %8120 = vmatpush3.msra.mxu0 %v7767_v10 }
0x1291   :  { %8101 = vmatpush3.msra.mxu1 %v7647_v28  ;;  %8121 = vmatprep.subr.mxu0 %v14058_v40 }
0x1292   :  { %8122 = vmatpush3.msra.mxu0 %v7766_v3 }
0x1293   :  { %v8560_v7 = vpop.eup %8559  ;;  %8123 = vmatprep.subr.mxu0 %v14058_v40 }
0x1294   :  { %v8562_v19 = vpop.eup %8561  ;;  %7572 = vperm.xlu1 %8158, %v8560_v7   ;;  %8124 = vmatpush3.msra.mxu0 %v7765_v43 }
0x1295   :  { %7565 = vperm.xlu0 %8157, %v8562_v19   ;;  %v7555_v16 = vadd.f32 %v8562_v19, %v8560_v7  ;;  %v8564_v62 = vpop.eup %8563  ;;  %8125 = vmatprep.subr.mxu0 %v14058_v40 }
0x1296   :  { %v8566_v30 = vpop.eup %8565  ;;  %8126 = vmatpush3.msra.mxu0 %v7764_v22 }
0x1297   :  { %v7556_v44 = vadd.f32 %v8564_v62, %v7555_v16  ;;  %v8568_v24 = vpop.eup %8567  ;;  %8127 = vmatprep.subr.mxu0 %v14058_v40 }
0x1298   :  { %7580 = vperm.xlu1 %8158, %v8564_v62   ;;  %v8570_v25 = vpop.eup %8569 }
0x1299   :  { %v7557_v11 = vadd.f32 %v8566_v30, %v7556_v44  ;;  %v8572_v14 = vpop.eup %8571 }
0x129a   :  { %v8574_v48 = vpop.eup %8573 }
0x129b   :  { %v7558_v9 = vadd.f32 %v8568_v24, %v7557_v11 }
0x129c   :  { %7588 = vperm.xlu1 %8158, %v8566_v30  }
0x129d   :  { %v7559_v15 = vadd.f32 %v8570_v25, %v7558_v9  ;;  %v7762_v9 = vld [vmem:[#allocation24 + $0x18] sm:$0xff] }
0x129f   :  { %v7560_v2 = vadd.f32 %v8572_v14, %v7559_v15  ;;  %v7759_v15 = vld [vmem:[#allocation24] sm:$0xff] }
0x12a0   :  { %7596 = vperm.xlu1 %8158, %v8568_v24  }
0x12a1   :  { %v7561_v33 = vadd.f32 %v8574_v48, %v7560_v2 }
0x12a4   :  { %7626 = vperm.xlu1 %8158, %v7561_v33  }
0x12a8   :  { %7604 = vperm.xlu1 %8158, %v8570_v25   ;;  %v7760_v25 = vld [vmem:[#allocation24 + $0x8] sm:$0xff] }
0x12ac   :  { %7612 = vperm.xlu1 %8158, %v8572_v14   ;;  %v7962_v14 = vld [vmem:[%s12726_s18] ss:$0 sm:$0xff] }
0x12b0   :  { %7619 = vperm.xlu1 %8158, %v8574_v48   ;;  %v7963_v48 = vld [vmem:[%s12727_s19] ss:$0 sm:$0xff] }
0x130f   :  { %v7573_v54 = vpop.permute.xlu1 %7572 }
0x1310   :  { %v7566_v60 = vpop.permute.xlu0 %7565  ;;  %v7575_v18 = vmul.f32 %v7573_v54, %v14069_v32 }
0x1311   :  { %v7568_v35 = vmul.f32 %v7566_v60, %v14068_v21 }
0x1313   :  { %v7581_v50 = vpop.permute.xlu1 %7580  ;;  %v7576_v13 = vadd.f32 %v7575_v18, %v7568_v35 }
0x1314   :  { %v7583_v8 = vmul.f32 %v7581_v50, %v14070_v1 }
0x1316   :  { %v7584_v41 = vadd.f32 %v7583_v8, %v7576_v13 }
0x1317   :  { %v7589_v63 = vpop.permute.xlu1 %7588 }
0x1318   :  { %v7591_v52 = vmul.f32 %v7589_v63, %v14071_v45  ;;  %v7960_v45 = vld [vmem:[%s12723_s15] ss:$0 sm:$0xff] }
0x131a   :  { %v7592_v19 = vadd.f32 %v7591_v52, %v7584_v41 }
0x131b   :  { %v7597_v17 = vpop.permute.xlu1 %7596 }
0x131c   :  { %v7599_v7 = vmul.f32 %v7597_v17, %v12527_v46  ;;  %v7961_v46 = vld [vmem:[%s12724_s16] ss:$0 sm:$0xff] }
0x131e   :  { %v7600_v4 = vadd.f32 %v7599_v7, %v7592_v19 }
0x131f   :  { %v7627_v23 = vpop.permute.xlu1 %7626 }
0x1320   :  { %8575 = vrcp.f32 %v7627_v23 }
0x1323   :  { %v7605_v6 = vpop.permute.xlu1 %7604 }
0x1324   :  { %v7607_v16 = vmul.f32 %v7605_v6, %v12603_v34 }
0x1326   :  { %v7608_v44 = vadd.f32 %v7607_v16, %v7600_v4 }
0x1327   :  { %v7613_v62 = vpop.permute.xlu1 %7612 }
0x1328   :  { %v7615_v32 = vmul.f32 %v7613_v62, %v12618_v42  ;;  %v7763_v42 = vld [vmem:[#allocation24 + $0x20] sm:$0xff] }
0x1329   :  { %8128 = vmatpush3.msra.mxu0 %v7763_v42 }
0x132a   :  { %v7616_v30 = vadd.f32 %v7615_v32, %v7608_v44  ;;  %8129 = vmatprep.subr.mxu0 %v14058_v40 }
0x132b   :  { %v7620_v21 = vpop.permute.xlu1 %7619  ;;  %8130 = vmatpush3.msra.mxu0 %v7762_v9 }
0x132c   :  { %v7622_v1 = vmul.f32 %v7620_v21, %v12641_v47  ;;  %v7761_v47 = vld [vmem:[#allocation24 + $0x10] sm:$0xff]  ;;  %8131 = vmatprep.subr.mxu0 %v14058_v40 }
0x132d   :  { %v8576_v24 = vpop.eup %8575  ;;  %8132 = vmatpush3.msra.mxu0 %v7761_v47 }
0x132e   :  { %v7623_v11 = vadd.f32 %v7622_v1, %v7616_v30  ;;  %8133 = vmatprep.subr.mxu0 %v14058_v40 }
0x132f   :  { %8134 = vmatpush3.msra.mxu0 %v7760_v25 }
0x1330   :  { %v7630_v0 = vmul.f32 %v8576_v24, %v7623_v11  ;;  %8135 = vmatprep.subr.mxu0 %v14058_v40 }
0x1331   :  { %8136 = vmatpush3.msra.mxu0 %v7759_v15 }
0x1332   :  { %v7638_v34 = vmul.f32 %v7960_v45, %v7630_v0 }
0x1334   :  { %v7646_v61 = vadd.f32 %v7961_v46, %v7638_v34 }
0x1336   :  { %8103 = vmatmul.mubr.f32.vlgmr.msra.gmra.mxu1 %v7646_v61 }
0x13f6   :  { %v7736_v55 = vpop.f32.mrf.mxu1 }
0x13f7   :  { %v7737_v26 = vadd.f32 %v7962_v14, %v7736_v55 }
0x13f8   :  { %v8104_v2 = vpop.f32.mrf.mxu1 }
0x13f9   :  { %vm7740_vm1 = vcmp.gt.f32.partialorder %v7737_v26, 0.0  ;;  %v7741_v36 = vmul.f32 0.1, %v7737_v26 }
0x13fb   :  { %v7742_v33 = vsel %vm7740_vm1, %v7737_v26, %v7741_v36 }
0x13fc   :  { %v7750_v40 = vmul.f32 %v7963_v48, %v7742_v33 }
0x13fe   :  { %v7758_v29 = vadd.f32 %v7964_v37, %v7750_v40 }
0x1400   :  { %8138 = vmatmul.mubr.f32.vlgmr.msra.gmra.mxu0 %v7758_v29 }
0x14c0   :  { %v7848_v56 = vpop.f32.mrf.mxu0 }
0x14c1   :  { %v7849_v57 = vadd.f32 %v7965_v27, %v7848_v56 }
0x14c2   :  { %v8139_v20 = vpop.f32.mrf.mxu0 }
0x14c3   :  { %v7853_v49 = vmul.f32 0.1, %v7849_v57  ;;  %vm7852_vm2 = vcmp.gt.f32.partialorder %v7849_v57, 0.0 }
0x14c5   :  { %v7854_v53 = vsel %vm7852_vm2, %v7849_v57, %v7853_v49 }
0x14c6   :  { %v7862_v58 = vmul.f32 %v7966_v31, %v7854_v53 }
0x14c8   :  { %7863 = vadd.xlane.f32.xlu0 %v7862_v58 }
0x1551   :  { %v7864_v28 = vpop.xlane.xlu0 %7863 }
0x1552   :  { %v7872_v59 = vadd.f32 %v7967_v12, %v7864_v28 }
0x1554   :  { %7874 = vst.msk [vmem:[%s12732_s25] sm:$0x3] %vm7873_vm3, %v7872_v59 }
0x1555   :  { %7879 = vsyncpa [#allocation11], 1 }
0x1556   :  { %7880 = vsyncpa [#allocation13], 1 }
0x1557   :  { %7881 = vsyncpa [#allocation16], 1 }
0x1558   :  { %7882 = vsyncpa [#allocation19], 1 }
0x1559   :  { %7883 = vsyncpa [#allocation22], 1 }
0x155a   :  { %7884 = vsyncpa [#allocation25], 1 }

</bundles_post_ra>
